<compile_context>
chip_gen: v5e
topology: v5e:2x2
jax: 0.10.0
libtpu: 0.0.40
codegen_flags: <defaults>
</compile_context>

<pallas_src>
import functools

import jax
import jax.numpy as jnp
from jax import lax
from jax.experimental import pallas as pl
from jax.experimental.pallas import tpu as pltpu

EPS = 1e-5


def _compiler_params():
    kwargs = dict(dimension_semantics=("parallel",))
    try:
        cap = pltpu.get_tpu_info().vmem_capacity_bytes
        # leave headroom; on v7x (64 MiB) this caps at 48 MiB, on v5e/v6e at 96 MiB
        kwargs["vmem_limit_bytes"] = int(min(cap * 3 // 4, 96 * 1024 * 1024))
    except Exception:
        pass  # fall back to the default scoped VMEM limit
    return pltpu.CompilerParams(**kwargs)


def _conv_phases(x_ref, w_ref, *, H, W, Cin, Cout):
    """All 4 sub-pixel phases of the stride-2 transposed conv for one image.

    x_ref : (1, H+2, W+2, Cin) bf16 block, NHWC input padded by 1 pixel.
    w_ref : (16, Cout, Cin) bf16 block; index = ((ph*2+pw)*2 + dh)*2 + dw,
            w_ref[idx][co, ci] = W_pt[ci, co, 3-ph-2*dh, 3-pw-2*dw].
    returns list of 4 f32 arrays of shape (Cout, H*W), phase order
            (ph, pw) = (0,0), (0,1), (1,0), (1,1).
    """
    # 9 shifted (H*W, Cin) views assembled in VMEM (never materialized in HBM).
    # TODO(synk): for W not a multiple of 8 or very large H*W, add an H-tile grid
    # axis / pad W so the (H, W, Cin) -> (H*W, Cin) merge stays tile-aligned.
    slabs = {}
    for r in range(3):
        for c in range(3):
            slabs[(r, c)] = x_ref[0, r:r + H, c:c + W, :].reshape(H * W, Cin)

    # contract Cin of (Cout, Cin) with Cin of (H*W, Cin) -> (Cout, H*W): spatial on lanes.
    dn = (((1,), (1,)), ((), ()))
    phases = []
    for ph in range(2):
        for pw in range(2):
            acc = jnp.zeros((Cout, H * W), jnp.float32)
            for dh in range(2):
                for dw in range(2):
                    wk = w_ref[(ph * 2 + pw) * 4 + dh * 2 + dw]  # (Cout, Cin) bf16
                    acc = acc + lax.dot_general(
                        wk, slabs[(ph + dh, pw + dw)], dn,
                        preferred_element_type=jnp.float32)
            phases.append(acc)
    return phases


def _stats_kernel(x_ref, w_ref, stats_ref, *, H, W, Cin, Cout):
    """Pass 1: per-image partial BN statistics (sum, sum of squares) per channel."""
    s = jnp.zeros((Cout, 1), jnp.float32)
    ss = jnp.zeros((Cout, 1), jnp.float32)
    for z in _conv_phases(x_ref, w_ref, H=H, W=W, Cin=Cin, Cout=Cout):
        s = s + jnp.sum(z, axis=1, keepdims=True)
        ss = ss + jnp.sum(z * z, axis=1, keepdims=True)
    stats_ref[0, :, 0:1] = s
    stats_ref[0, :, 1:2] = ss


def _bn_relu_kernel(x_ref, w_ref, scale_ref, bias_ref, out_ref, *, H, W, Cin, Cout):
    """Pass 2: recompute conv, apply precomputed BN scale/bias, ReLU, lane-dense store."""
    scale = scale_ref[...]  # (Cout, 1) f32, broadcast over lanes
    bias = bias_ref[...]
    phases = _conv_phases(x_ref, w_ref, H=H, W=W, Cin=Cin, Cout=Cout)
    for p, z in enumerate(phases):
        y = jnp.maximum(z * scale + bias, 0.0)
        out_ref[0, p, :, :] = y.astype(out_ref.dtype)


def decoder_block_forward(x, w, gamma, beta, *, eps=EPS):
    """x: (B, Cin, H, W) NCHW f32; w: (Cin, Cout, 4, 4) PyTorch ConvTranspose2d layout."""
    B, Cin, H, W = x.shape
    Cin_w, Cout, KH, KW = w.shape
    assert Cin_w == Cin and KH == 4 and KW == 4
    Ho, Wo = 2 * H, 2 * W
    HW = H * W

    # ---- light glue: NHWC, 1-pixel zero pad, bf16 operands (input-sized pass only) ----
    x_pad = jnp.pad(
        jnp.transpose(x, (0, 2, 3, 1)).astype(jnp.bfloat16),
        ((0, 0), (1, 1), (1, 1), (0, 0)))                       # (B, H+2, W+2, Cin)

    # ---- weight: sub-pixel decomposition of the 4x4 stride-2 kernel (16 taps) ----
    # out[b, co, 2m+ph, 2n+pw] = sum_{ci,dh,dw} x_pad[b, m+ph+dh, n+pw+dw, ci]
    #                                           * w[ci, co, 3-ph-2*dh, 3-pw-2*dw]
    wco = jnp.transpose(w, (1, 0, 2, 3)).astype(jnp.float32)    # (Cout, Cin, 4, 4)
    taps = []
    for ph in range(2):
        for pw in range(2):
            for dh in range(2):
                for dw in range(2):
                    taps.append(wco[:, :, 3 - ph - 2 * dh, 3 - pw - 2 * dw])
    w_sub = jnp.stack(taps, axis=0).astype(jnp.bfloat16)        # (16, Cout, Cin)

    cparams = _compiler_params()

    # ---- pass 1: per-image partial stats (fully parallel grid, no accumulator) ----
    stats = pl.pallas_call(
        functools.partial(_stats_kernel, H=H, W=W, Cin=Cin, Cout=Cout),
        out_shape=jax.ShapeDtypeStruct((B, Cout, 2), jnp.float32),
        grid=(B,),
        in_specs=[
            pl.BlockSpec((1, H + 2, W + 2, Cin), lambda b: (b, 0, 0, 0)),
            pl.BlockSpec((16, Cout, Cin), lambda b: (0, 0, 0)),
        ],
        out_specs=pl.BlockSpec((1, Cout, 2), lambda b: (b, 0, 0)),
        compiler_params=cparams,
    )(x_pad, w_sub)

    # ---- tiny JAX: fold stats -> per-channel scale / bias (computed once) ----
    m_total = float(B * Ho * Wo)
    s = jnp.sum(stats[:, :, 0], axis=0)
    ss = jnp.sum(stats[:, :, 1], axis=0)
    mean = s / m_total
    var = jnp.maximum(ss / m_total - mean * mean, 0.0)          # biased batch variance
    scale = gamma.astype(jnp.float32) * lax.rsqrt(var + eps)
    bias = beta.astype(jnp.float32) - mean * scale
    scale = scale.reshape(Cout, 1)
    bias = bias.reshape(Cout, 1)

    # ---- pass 2: recompute conv, fused BN (scale/bias) + ReLU, lane-dense output ----
    out_t = pl.pallas_call(
        functools.partial(_bn_relu_kernel, H=H, W=W, Cin=Cin, Cout=Cout),
        out_shape=jax.ShapeDtypeStruct((B, 4, Cout, HW), jnp.float32),
        grid=(B,),
        in_specs=[
            pl.BlockSpec((1, H + 2, W + 2, Cin), lambda b: (b, 0, 0, 0)),
            pl.BlockSpec((16, Cout, Cin), lambda b: (0, 0, 0)),
            pl.BlockSpec((Cout, 1), lambda b: (0, 0)),
            pl.BlockSpec((Cout, 1), lambda b: (0, 0)),
        ],
        out_specs=pl.BlockSpec((1, 4, Cout, HW), lambda b: (b, 0, 0, 0)),
        compiler_params=cparams,
    )(x_pad, w_sub, scale, bias)

    # depth-to-space + NCHW: out[b, co, 2m+ph, 2n+pw] = out_t[b, ph*2+pw, co, m*W+n]
    # TODO(synk): a strided interleaved store is not expressible via BlockSpec; if the
    # consumer can take NHWC/phase-separated output this final XLA transpose disappears.
    out = out_t.reshape(B, 2, 2, Cout, H, W)
    out = out.transpose(0, 3, 4, 1, 5, 2).reshape(B, Cout, Ho, Wo)
    return out


def _reference_forward(x, w, gamma, beta, *, eps=EPS):
    """Pure-JAX reference: ConvTranspose2d + BatchNorm2d(train) + ReLU.

    Uses the same bf16-rounded matmul operands as the kernel (accumulation in f32).
    """
    Cout = w.shape[1]
    xb = x.astype(jnp.bfloat16).astype(jnp.float32)
    wb = w.astype(jnp.bfloat16).astype(jnp.float32)
    # transposed conv == lhs-dilated conv with the spatially flipped kernel (OIHW)
    w_oihw = jnp.flip(wb, axis=(2, 3)).transpose(1, 0, 2, 3)
    z = lax.conv_general_dilated(
        xb, w_oihw, window_strides=(1, 1), padding=[(2, 2), (2, 2)],
        lhs_dilation=(2, 2), rhs_dilation=(1, 1),
        dimension_numbers=("NCHW", "OIHW", "NCHW"),
        precision=lax.Precision.HIGHEST)
    mean = jnp.mean(z, axis=(0, 2, 3), keepdims=True)
    var = jnp.mean((z - mean) ** 2, axis=(0, 2, 3), keepdims=True)  # biased
    zn = (z - mean) * lax.rsqrt(var + eps)
    zn = zn * gamma.reshape(1, Cout, 1, 1) + beta.reshape(1, Cout, 1, 1)
    return jnp.maximum(zn, 0.0)


if __name__ == "__main__":
    key = jax.random.PRNGKey(0)
    k_x, k_w = jax.random.split(key)

    B, Cin, Cout, H, W = 2, 4, 8, 16, 16
    x = jax.random.normal(k_x, (B, Cin, H, W), dtype=jnp.float32)
    # ConvTranspose2d weight layout: (in_channels, out_channels, kH, kW)
    w = 0.1 * jax.random.normal(k_w, (Cin, Cout, 4, 4), dtype=jnp.float32)
    # BatchNorm2d default init: weight=1, bias=0
    gamma = jnp.ones((Cout,), jnp.float32)
    beta = jnp.zeros((Cout,), jnp.float32)

    fwd = jax.jit(decoder_block_forward)
    out = jax.block_until_ready(fwd(x, w, gamma, beta))
    assert out.shape == (B, Cout, 2 * H, 2 * W), out.shape

    ref = jax.block_until_ready(_reference_forward(x, w, gamma, beta))
    max_err = float(jnp.max(jnp.abs(out - ref)))
    assert jnp.allclose(out, ref, atol=1e-2, rtol=1e-2), max_err

    print("KERNEL_OK")
</pallas_src>

<mosaic_0001>
module attributes {stable_mosaic.version = 11 : i64} {
  func.func @_stats_kernel(%arg0: i32, %arg1: memref<1x18x18x4xbf16, #tpu.memory_space<vmem>>, %arg2: memref<16x8x4xbf16, #tpu.memory_space<vmem>>, %arg3: memref<1x8x2xf32, #tpu.memory_space<vmem>>) attributes {dimension_semantics = [#tpu.dimension_semantics<parallel>], iteration_bounds = array<i64: 2>, scalar_prefetch = 0 : i64, scratch_operands = 0 : i64, tpu.core_type = #tpu.core_type<tc>, window_params = [{transform_indices = @transform_0, window_bounds = array<i64: 1, 18, 18, 4>}, {pipeline_mode = #tpu.pipeline_mode<synchronous>, transform_indices = @transform_1, window_bounds = array<i64: 16, 8, 4>}, {transform_indices = @transform_2, window_bounds = array<i64: 1, 8, 2>}]} {
    %cst = arith.constant 0.000000e+00 : f32
    %0 = vector.broadcast %cst : f32 to vector<8x1xf32>
    %cst_0 = arith.constant 0.000000e+00 : f32
    %1 = vector.broadcast %cst_0 : f32 to vector<8x1xf32>
    %c0 = arith.constant 0 : index
    %c0_1 = arith.constant 0 : index
    %c0_2 = arith.constant 0 : index
    %c0_3 = arith.constant 0 : index
    %2 = vector.load %arg1[%c0, %c0_1, %c0_2, %c0_3] : memref<1x18x18x4xbf16, #tpu.memory_space<vmem>>, vector<1x16x16x4xbf16>
    %3 = vector.shape_cast %2 : vector<1x16x16x4xbf16> to vector<16x16x4xbf16>
    %4 = vector.shape_cast %3 : vector<16x16x4xbf16> to vector<256x4xbf16>
    %c0_4 = arith.constant 0 : index
    %c0_5 = arith.constant 0 : index
    %c1 = arith.constant 1 : index
    %c0_6 = arith.constant 0 : index
    %5 = vector.load %arg1[%c0_4, %c0_5, %c1, %c0_6] : memref<1x18x18x4xbf16, #tpu.memory_space<vmem>>, vector<1x16x16x4xbf16>
    %6 = vector.shape_cast %5 : vector<1x16x16x4xbf16> to vector<16x16x4xbf16>
    %7 = vector.shape_cast %6 : vector<16x16x4xbf16> to vector<256x4xbf16>
    %c0_7 = arith.constant 0 : index
    %c0_8 = arith.constant 0 : index
    %c2 = arith.constant 2 : index
    %c0_9 = arith.constant 0 : index
    %8 = vector.load %arg1[%c0_7, %c0_8, %c2, %c0_9] : memref<1x18x18x4xbf16, #tpu.memory_space<vmem>>, vector<1x16x16x4xbf16>
    %9 = vector.shape_cast %8 : vector<1x16x16x4xbf16> to vector<16x16x4xbf16>
    %10 = vector.shape_cast %9 : vector<16x16x4xbf16> to vector<256x4xbf16>
    %c0_10 = arith.constant 0 : index
    %c1_11 = arith.constant 1 : index
    %c0_12 = arith.constant 0 : index
    %c0_13 = arith.constant 0 : index
    %11 = vector.load %arg1[%c0_10, %c1_11, %c0_12, %c0_13] : memref<1x18x18x4xbf16, #tpu.memory_space<vmem>>, vector<1x16x16x4xbf16>
    %12 = vector.shape_cast %11 : vector<1x16x16x4xbf16> to vector<16x16x4xbf16>
    %13 = vector.shape_cast %12 : vector<16x16x4xbf16> to vector<256x4xbf16>
    %c0_14 = arith.constant 0 : index
    %c1_15 = arith.constant 1 : index
    %c1_16 = arith.constant 1 : index
    %c0_17 = arith.constant 0 : index
    %14 = vector.load %arg1[%c0_14, %c1_15, %c1_16, %c0_17] : memref<1x18x18x4xbf16, #tpu.memory_space<vmem>>, vector<1x16x16x4xbf16>
    %15 = vector.shape_cast %14 : vector<1x16x16x4xbf16> to vector<16x16x4xbf16>
    %16 = vector.shape_cast %15 : vector<16x16x4xbf16> to vector<256x4xbf16>
    %c0_18 = arith.constant 0 : index
    %c1_19 = arith.constant 1 : index
    %c2_20 = arith.constant 2 : index
    %c0_21 = arith.constant 0 : index
    %17 = vector.load %arg1[%c0_18, %c1_19, %c2_20, %c0_21] : memref<1x18x18x4xbf16, #tpu.memory_space<vmem>>, vector<1x16x16x4xbf16>
    %18 = vector.shape_cast %17 : vector<1x16x16x4xbf16> to vector<16x16x4xbf16>
    %19 = vector.shape_cast %18 : vector<16x16x4xbf16> to vector<256x4xbf16>
    %c0_22 = arith.constant 0 : index
    %c2_23 = arith.constant 2 : index
    %c0_24 = arith.constant 0 : index
    %c0_25 = arith.constant 0 : index
    %20 = vector.load %arg1[%c0_22, %c2_23, %c0_24, %c0_25] : memref<1x18x18x4xbf16, #tpu.memory_space<vmem>>, vector<1x16x16x4xbf16>
    %21 = vector.shape_cast %20 : vector<1x16x16x4xbf16> to vector<16x16x4xbf16>
    %22 = vector.shape_cast %21 : vector<16x16x4xbf16> to vector<256x4xbf16>
    %c0_26 = arith.constant 0 : index
    %c2_27 = arith.constant 2 : index
    %c1_28 = arith.constant 1 : index
    %c0_29 = arith.constant 0 : index
    %23 = vector.load %arg1[%c0_26, %c2_27, %c1_28, %c0_29] : memref<1x18x18x4xbf16, #tpu.memory_space<vmem>>, vector<1x16x16x4xbf16>
    %24 = vector.shape_cast %23 : vector<1x16x16x4xbf16> to vector<16x16x4xbf16>
    %25 = vector.shape_cast %24 : vector<16x16x4xbf16> to vector<256x4xbf16>
    %c0_30 = arith.constant 0 : index
    %c2_31 = arith.constant 2 : index
    %c2_32 = arith.constant 2 : index
    %c0_33 = arith.constant 0 : index
    %26 = vector.load %arg1[%c0_30, %c2_31, %c2_32, %c0_33] : memref<1x18x18x4xbf16, #tpu.memory_space<vmem>>, vector<1x16x16x4xbf16>
    %27 = vector.shape_cast %26 : vector<1x16x16x4xbf16> to vector<16x16x4xbf16>
    %28 = vector.shape_cast %27 : vector<16x16x4xbf16> to vector<256x4xbf16>
    %cst_34 = arith.constant 0.000000e+00 : f32
    %29 = vector.broadcast %cst_34 : f32 to vector<8x256xf32>
    %c0_35 = arith.constant 0 : index
    %c0_36 = arith.constant 0 : index
    %c0_37 = arith.constant 0 : index
    %30 = vector.load %arg2[%c0_35, %c0_36, %c0_37] : memref<16x8x4xbf16, #tpu.memory_space<vmem>>, vector<1x8x4xbf16>
    %31 = vector.shape_cast %30 : vector<1x8x4xbf16> to vector<8x4xbf16>
    %cst_38 = arith.constant dense<0.000000e+00> : vector<8x256xf32>
    %32 = tpu.matmul %31, %4, %cst_38 {dimension_numbers = #tpu.dot_dimension_numbers<[1], [1], [0], [0], [0, 0, 1, 0], [], []>} : vector<8x4xbf16>, vector<256x4xbf16>, vector<8x256xf32> -> vector<8x256xf32>
    %33 = arith.addf %29, %32 : vector<8x256xf32>
    %c1_39 = arith.constant 1 : index
    %c0_40 = arith.constant 0 : index
    %c0_41 = arith.constant 0 : index
    %34 = vector.load %arg2[%c1_39, %c0_40, %c0_41] : memref<16x8x4xbf16, #tpu.memory_space<vmem>>, vector<1x8x4xbf16>
    %35 = vector.shape_cast %34 : vector<1x8x4xbf16> to vector<8x4xbf16>
    %cst_42 = arith.constant dense<0.000000e+00> : vector<8x256xf32>
    %36 = tpu.matmul %35, %7, %cst_42 {dimension_numbers = #tpu.dot_dimension_numbers<[1], [1], [0], [0], [0, 0, 1, 0], [], []>} : vector<8x4xbf16>, vector<256x4xbf16>, vector<8x256xf32> -> vector<8x256xf32>
    %37 = arith.addf %33, %36 : vector<8x256xf32>
    %c2_43 = arith.constant 2 : index
    %c0_44 = arith.constant 0 : index
    %c0_45 = arith.constant 0 : index
    %38 = vector.load %arg2[%c2_43, %c0_44, %c0_45] : memref<16x8x4xbf16, #tpu.memory_space<vmem>>, vector<1x8x4xbf16>
    %39 = vector.shape_cast %38 : vector<1x8x4xbf16> to vector<8x4xbf16>
    %cst_46 = arith.constant dense<0.000000e+00> : vector<8x256xf32>
    %40 = tpu.matmul %39, %13, %cst_46 {dimension_numbers = #tpu.dot_dimension_numbers<[1], [1], [0], [0], [0, 0, 1, 0], [], []>} : vector<8x4xbf16>, vector<256x4xbf16>, vector<8x256xf32> -> vector<8x256xf32>
    %41 = arith.addf %37, %40 : vector<8x256xf32>
    %c3 = arith.constant 3 : index
    %c0_47 = arith.constant 0 : index
    %c0_48 = arith.constant 0 : index
    %42 = vector.load %arg2[%c3, %c0_47, %c0_48] : memref<16x8x4xbf16, #tpu.memory_space<vmem>>, vector<1x8x4xbf16>
    %43 = vector.shape_cast %42 : vector<1x8x4xbf16> to vector<8x4xbf16>
    %cst_49 = arith.constant dense<0.000000e+00> : vector<8x256xf32>
    %44 = tpu.matmul %43, %16, %cst_49 {dimension_numbers = #tpu.dot_dimension_numbers<[1], [1], [0], [0], [0, 0, 1, 0], [], []>} : vector<8x4xbf16>, vector<256x4xbf16>, vector<8x256xf32> -> vector<8x256xf32>
    %45 = arith.addf %41, %44 : vector<8x256xf32>
    %cst_50 = arith.constant 0.000000e+00 : f32
    %46 = vector.broadcast %cst_50 : f32 to vector<8x256xf32>
    %c4 = arith.constant 4 : index
    %c0_51 = arith.constant 0 : index
    %c0_52 = arith.constant 0 : index
    %47 = vector.load %arg2[%c4, %c0_51, %c0_52] : memref<16x8x4xbf16, #tpu.memory_space<vmem>>, vector<1x8x4xbf16>
    %48 = vector.shape_cast %47 : vector<1x8x4xbf16> to vector<8x4xbf16>
    %cst_53 = arith.constant dense<0.000000e+00> : vector<8x256xf32>
    %49 = tpu.matmul %48, %7, %cst_53 {dimension_numbers = #tpu.dot_dimension_numbers<[1], [1], [0], [0], [0, 0, 1, 0], [], []>} : vector<8x4xbf16>, vector<256x4xbf16>, vector<8x256xf32> -> vector<8x256xf32>
    %50 = arith.addf %46, %49 : vector<8x256xf32>
    %c5 = arith.constant 5 : index
    %c0_54 = arith.constant 0 : index
    %c0_55 = arith.constant 0 : index
    %51 = vector.load %arg2[%c5, %c0_54, %c0_55] : memref<16x8x4xbf16, #tpu.memory_space<vmem>>, vector<1x8x4xbf16>
    %52 = vector.shape_cast %51 : vector<1x8x4xbf16> to vector<8x4xbf16>
    %cst_56 = arith.constant dense<0.000000e+00> : vector<8x256xf32>
    %53 = tpu.matmul %52, %10, %cst_56 {dimension_numbers = #tpu.dot_dimension_numbers<[1], [1], [0], [0], [0, 0, 1, 0], [], []>} : vector<8x4xbf16>, vector<256x4xbf16>, vector<8x256xf32> -> vector<8x256xf32>
    %54 = arith.addf %50, %53 : vector<8x256xf32>
    %c6 = arith.constant 6 : index
    %c0_57 = arith.constant 0 : index
    %c0_58 = arith.constant 0 : index
    %55 = vector.load %arg2[%c6, %c0_57, %c0_58] : memref<16x8x4xbf16, #tpu.memory_space<vmem>>, vector<1x8x4xbf16>
    %56 = vector.shape_cast %55 : vector<1x8x4xbf16> to vector<8x4xbf16>
    %cst_59 = arith.constant dense<0.000000e+00> : vector<8x256xf32>
    %57 = tpu.matmul %56, %16, %cst_59 {dimension_numbers = #tpu.dot_dimension_numbers<[1], [1], [0], [0], [0, 0, 1, 0], [], []>} : vector<8x4xbf16>, vector<256x4xbf16>, vector<8x256xf32> -> vector<8x256xf32>
    %58 = arith.addf %54, %57 : vector<8x256xf32>
    %c7 = arith.constant 7 : index
    %c0_60 = arith.constant 0 : index
    %c0_61 = arith.constant 0 : index
    %59 = vector.load %arg2[%c7, %c0_60, %c0_61] : memref<16x8x4xbf16, #tpu.memory_space<vmem>>, vector<1x8x4xbf16>
    %60 = vector.shape_cast %59 : vector<1x8x4xbf16> to vector<8x4xbf16>
    %cst_62 = arith.constant dense<0.000000e+00> : vector<8x256xf32>
    %61 = tpu.matmul %60, %19, %cst_62 {dimension_numbers = #tpu.dot_dimension_numbers<[1], [1], [0], [0], [0, 0, 1, 0], [], []>} : vector<8x4xbf16>, vector<256x4xbf16>, vector<8x256xf32> -> vector<8x256xf32>
    %62 = arith.addf %58, %61 : vector<8x256xf32>
    %cst_63 = arith.constant 0.000000e+00 : f32
    %63 = vector.broadcast %cst_63 : f32 to vector<8x256xf32>
    %c8 = arith.constant 8 : index
    %c0_64 = arith.constant 0 : index
    %c0_65 = arith.constant 0 : index
    %64 = vector.load %arg2[%c8, %c0_64, %c0_65] : memref<16x8x4xbf16, #tpu.memory_space<vmem>>, vector<1x8x4xbf16>
    %65 = vector.shape_cast %64 : vector<1x8x4xbf16> to vector<8x4xbf16>
    %cst_66 = arith.constant dense<0.000000e+00> : vector<8x256xf32>
    %66 = tpu.matmul %65, %13, %cst_66 {dimension_numbers = #tpu.dot_dimension_numbers<[1], [1], [0], [0], [0, 0, 1, 0], [], []>} : vector<8x4xbf16>, vector<256x4xbf16>, vector<8x256xf32> -> vector<8x256xf32>
    %67 = arith.addf %63, %66 : vector<8x256xf32>
    %c9 = arith.constant 9 : index
    %c0_67 = arith.constant 0 : index
    %c0_68 = arith.constant 0 : index
    %68 = vector.load %arg2[%c9, %c0_67, %c0_68] : memref<16x8x4xbf16, #tpu.memory_space<vmem>>, vector<1x8x4xbf16>
    %69 = vector.shape_cast %68 : vector<1x8x4xbf16> to vector<8x4xbf16>
    %cst_69 = arith.constant dense<0.000000e+00> : vector<8x256xf32>
    %70 = tpu.matmul %69, %16, %cst_69 {dimension_numbers = #tpu.dot_dimension_numbers<[1], [1], [0], [0], [0, 0, 1, 0], [], []>} : vector<8x4xbf16>, vector<256x4xbf16>, vector<8x256xf32> -> vector<8x256xf32>
    %71 = arith.addf %67, %70 : vector<8x256xf32>
    %c10 = arith.constant 10 : index
    %c0_70 = arith.constant 0 : index
    %c0_71 = arith.constant 0 : index
    %72 = vector.load %arg2[%c10, %c0_70, %c0_71] : memref<16x8x4xbf16, #tpu.memory_space<vmem>>, vector<1x8x4xbf16>
    %73 = vector.shape_cast %72 : vector<1x8x4xbf16> to vector<8x4xbf16>
    %cst_72 = arith.constant dense<0.000000e+00> : vector<8x256xf32>
    %74 = tpu.matmul %73, %22, %cst_72 {dimension_numbers = #tpu.dot_dimension_numbers<[1], [1], [0], [0], [0, 0, 1, 0], [], []>} : vector<8x4xbf16>, vector<256x4xbf16>, vector<8x256xf32> -> vector<8x256xf32>
    %75 = arith.addf %71, %74 : vector<8x256xf32>
    %c11 = arith.constant 11 : index
    %c0_73 = arith.constant 0 : index
    %c0_74 = arith.constant 0 : index
    %76 = vector.load %arg2[%c11, %c0_73, %c0_74] : memref<16x8x4xbf16, #tpu.memory_space<vmem>>, vector<1x8x4xbf16>
    %77 = vector.shape_cast %76 : vector<1x8x4xbf16> to vector<8x4xbf16>
    %cst_75 = arith.constant dense<0.000000e+00> : vector<8x256xf32>
    %78 = tpu.matmul %77, %25, %cst_75 {dimension_numbers = #tpu.dot_dimension_numbers<[1], [1], [0], [0], [0, 0, 1, 0], [], []>} : vector<8x4xbf16>, vector<256x4xbf16>, vector<8x256xf32> -> vector<8x256xf32>
    %79 = arith.addf %75, %78 : vector<8x256xf32>
    %cst_76 = arith.constant 0.000000e+00 : f32
    %80 = vector.broadcast %cst_76 : f32 to vector<8x256xf32>
    %c12 = arith.constant 12 : index
    %c0_77 = arith.constant 0 : index
    %c0_78 = arith.constant 0 : index
    %81 = vector.load %arg2[%c12, %c0_77, %c0_78] : memref<16x8x4xbf16, #tpu.memory_space<vmem>>, vector<1x8x4xbf16>
    %82 = vector.shape_cast %81 : vector<1x8x4xbf16> to vector<8x4xbf16>
    %cst_79 = arith.constant dense<0.000000e+00> : vector<8x256xf32>
    %83 = tpu.matmul %82, %16, %cst_79 {dimension_numbers = #tpu.dot_dimension_numbers<[1], [1], [0], [0], [0, 0, 1, 0], [], []>} : vector<8x4xbf16>, vector<256x4xbf16>, vector<8x256xf32> -> vector<8x256xf32>
    %84 = arith.addf %80, %83 : vector<8x256xf32>
    %c13 = arith.constant 13 : index
    %c0_80 = arith.constant 0 : index
    %c0_81 = arith.constant 0 : index
    %85 = vector.load %arg2[%c13, %c0_80, %c0_81] : memref<16x8x4xbf16, #tpu.memory_space<vmem>>, vector<1x8x4xbf16>
    %86 = vector.shape_cast %85 : vector<1x8x4xbf16> to vector<8x4xbf16>
    %cst_82 = arith.constant dense<0.000000e+00> : vector<8x256xf32>
    %87 = tpu.matmul %86, %19, %cst_82 {dimension_numbers = #tpu.dot_dimension_numbers<[1], [1], [0], [0], [0, 0, 1, 0], [], []>} : vector<8x4xbf16>, vector<256x4xbf16>, vector<8x256xf32> -> vector<8x256xf32>
    %88 = arith.addf %84, %87 : vector<8x256xf32>
    %c14 = arith.constant 14 : index
    %c0_83 = arith.constant 0 : index
    %c0_84 = arith.constant 0 : index
    %89 = vector.load %arg2[%c14, %c0_83, %c0_84] : memref<16x8x4xbf16, #tpu.memory_space<vmem>>, vector<1x8x4xbf16>
    %90 = vector.shape_cast %89 : vector<1x8x4xbf16> to vector<8x4xbf16>
    %cst_85 = arith.constant dense<0.000000e+00> : vector<8x256xf32>
    %91 = tpu.matmul %90, %25, %cst_85 {dimension_numbers = #tpu.dot_dimension_numbers<[1], [1], [0], [0], [0, 0, 1, 0], [], []>} : vector<8x4xbf16>, vector<256x4xbf16>, vector<8x256xf32> -> vector<8x256xf32>
    %92 = arith.addf %88, %91 : vector<8x256xf32>
    %c15 = arith.constant 15 : index
    %c0_86 = arith.constant 0 : index
    %c0_87 = arith.constant 0 : index
    %93 = vector.load %arg2[%c15, %c0_86, %c0_87] : memref<16x8x4xbf16, #tpu.memory_space<vmem>>, vector<1x8x4xbf16>
    %94 = vector.shape_cast %93 : vector<1x8x4xbf16> to vector<8x4xbf16>
    %cst_88 = arith.constant dense<0.000000e+00> : vector<8x256xf32>
    %95 = tpu.matmul %94, %28, %cst_88 {dimension_numbers = #tpu.dot_dimension_numbers<[1], [1], [0], [0], [0, 0, 1, 0], [], []>} : vector<8x4xbf16>, vector<256x4xbf16>, vector<8x256xf32> -> vector<8x256xf32>
    %96 = arith.addf %92, %95 : vector<8x256xf32>
    %cst_89 = arith.constant dense<0.000000e+00> : vector<8xf32>
    %97 = vector.multi_reduction <add>, %45, %cst_89 [1] : vector<8x256xf32> to vector<8xf32>
    %98 = vector.shape_cast %97 : vector<8xf32> to vector<8x1xf32>
    %99 = arith.addf %0, %98 : vector<8x1xf32>
    %100 = arith.mulf %45, %45 : vector<8x256xf32>
    %cst_90 = arith.constant dense<0.000000e+00> : vector<8xf32>
    %101 = vector.multi_reduction <add>, %100, %cst_90 [1] : vector<8x256xf32> to vector<8xf32>
    %102 = vector.shape_cast %101 : vector<8xf32> to vector<8x1xf32>
    %103 = arith.addf %1, %102 : vector<8x1xf32>
    %cst_91 = arith.constant dense<0.000000e+00> : vector<8xf32>
    %104 = vector.multi_reduction <add>, %62, %cst_91 [1] : vector<8x256xf32> to vector<8xf32>
    %105 = vector.shape_cast %104 : vector<8xf32> to vector<8x1xf32>
    %106 = arith.addf %99, %105 : vector<8x1xf32>
    %107 = arith.mulf %62, %62 : vector<8x256xf32>
    %cst_92 = arith.constant dense<0.000000e+00> : vector<8xf32>
    %108 = vector.multi_reduction <add>, %107, %cst_92 [1] : vector<8x256xf32> to vector<8xf32>
    %109 = vector.shape_cast %108 : vector<8xf32> to vector<8x1xf32>
    %110 = arith.addf %103, %109 : vector<8x1xf32>
    %cst_93 = arith.constant dense<0.000000e+00> : vector<8xf32>
    %111 = vector.multi_reduction <add>, %79, %cst_93 [1] : vector<8x256xf32> to vector<8xf32>
    %112 = vector.shape_cast %111 : vector<8xf32> to vector<8x1xf32>
    %113 = arith.addf %106, %112 : vector<8x1xf32>
    %114 = arith.mulf %79, %79 : vector<8x256xf32>
    %cst_94 = arith.constant dense<0.000000e+00> : vector<8xf32>
    %115 = vector.multi_reduction <add>, %114, %cst_94 [1] : vector<8x256xf32> to vector<8xf32>
    %116 = vector.shape_cast %115 : vector<8xf32> to vector<8x1xf32>
    %117 = arith.addf %110, %116 : vector<8x1xf32>
    %cst_95 = arith.constant dense<0.000000e+00> : vector<8xf32>
    %118 = vector.multi_reduction <add>, %96, %cst_95 [1] : vector<8x256xf32> to vector<8xf32>
    %119 = vector.shape_cast %118 : vector<8xf32> to vector<8x1xf32>
    %120 = arith.addf %113, %119 : vector<8x1xf32>
    %121 = arith.mulf %96, %96 : vector<8x256xf32>
    %cst_96 = arith.constant dense<0.000000e+00> : vector<8xf32>
    %122 = vector.multi_reduction <add>, %121, %cst_96 [1] : vector<8x256xf32> to vector<8xf32>
    %123 = vector.shape_cast %122 : vector<8xf32> to vector<8x1xf32>
    %124 = arith.addf %117, %123 : vector<8x1xf32>
    %c0_97 = arith.constant 0 : index
    %c0_98 = arith.constant 0 : index
    %c0_99 = arith.constant 0 : index
    %125 = vector.load %arg3[%c0_97, %c0_98, %c0_99] : memref<1x8x2xf32, #tpu.memory_space<vmem>>, vector<1x8x1xf32>
    %126 = vector.shape_cast %125 : vector<1x8x1xf32> to vector<8x1xf32>
    %127 = vector.shape_cast %120 : vector<8x1xf32> to vector<1x8x1xf32>
    tpu.vector_store %arg3[%c0_97, %c0_98, %c0_99], %127 {strides = array<i32>} : memref<1x8x2xf32, #tpu.memory_space<vmem>>, vector<1x8x1xf32>,
    %c0_100 = arith.constant 0 : index
    %c0_101 = arith.constant 0 : index
    %c1_102 = arith.constant 1 : index
    %128 = vector.load %arg3[%c0_100, %c0_101, %c1_102] : memref<1x8x2xf32, #tpu.memory_space<vmem>>, vector<1x8x1xf32>
    %129 = vector.shape_cast %128 : vector<1x8x1xf32> to vector<8x1xf32>
    %130 = vector.shape_cast %124 : vector<8x1xf32> to vector<1x8x1xf32>
    tpu.vector_store %arg3[%c0_100, %c0_101, %c1_102], %130 {strides = array<i32>} : memref<1x8x2xf32, #tpu.memory_space<vmem>>, vector<1x8x1xf32>,
    return
  }
  func.func @transform_0(%arg0: i32) -> (i32, i32, i32, i32) {
    %c0_i32 = arith.constant 0 : i32
    %c0_i32_0 = arith.constant 0 : i32
    %c0_i32_1 = arith.constant 0 : i32
    %c0_i32_2 = arith.constant 0 : i32
    return %arg0, %c0_i32, %c0_i32_0, %c0_i32_1 : i32, i32, i32, i32
  }
  func.func @transform_1(%arg0: i32) -> (i32, i32, i32) {
    %c0_i32 = arith.constant 0 : i32
    %c0_i32_0 = arith.constant 0 : i32
    %c0_i32_1 = arith.constant 0 : i32
    %c0_i32_2 = arith.constant 0 : i32
    return %c0_i32, %c0_i32_0, %c0_i32_1 : i32, i32, i32
  }
  func.func @transform_2(%arg0: i32) -> (i32, i32, i32) {
    %c0_i32 = arith.constant 0 : i32
    %c0_i32_0 = arith.constant 0 : i32
    %c0_i32_1 = arith.constant 0 : i32
    return %arg0, %c0_i32, %c0_i32_0 : i32, i32, i32
  }
}

module attributes {stable_mosaic.version = 11 : i64} {
  func.func @_bn_relu_kernel(%arg0: i32, %arg1: memref<1x18x18x4xbf16, #tpu.memory_space<vmem>>, %arg2: memref<16x8x4xbf16, #tpu.memory_space<vmem>>, %arg3: memref<8x1xf32, #tpu.memory_space<vmem>>, %arg4: memref<8x1xf32, #tpu.memory_space<vmem>>, %arg5: memref<1x4x8x256xf32, #tpu.memory_space<vmem>>) attributes {dimension_semantics = [#tpu.dimension_semantics<parallel>], iteration_bounds = array<i64: 2>, scalar_prefetch = 0 : i64, scratch_operands = 0 : i64, tpu.core_type = #tpu.core_type<tc>, window_params = [{transform_indices = @transform_0, window_bounds = array<i64: 1, 18, 18, 4>}, {pipeline_mode = #tpu.pipeline_mode<synchronous>, transform_indices = @transform_1, window_bounds = array<i64: 16, 8, 4>}, {pipeline_mode = #tpu.pipeline_mode<synchronous>, transform_indices = @transform_2, window_bounds = array<i64: 8, 1>}, {pipeline_mode = #tpu.pipeline_mode<synchronous>, transform_indices = @transform_3, window_bounds = array<i64: 8, 1>}, {transform_indices = @transform_4, window_bounds = array<i64: 1, 4, 8, 256>}]} {
    %c0 = arith.constant 0 : index
    %c0_0 = arith.constant 0 : index
    %0 = vector.load %arg3[%c0, %c0_0] : memref<8x1xf32, #tpu.memory_space<vmem>>, vector<8x1xf32>
    %c0_1 = arith.constant 0 : index
    %c0_2 = arith.constant 0 : index
    %1 = vector.load %arg4[%c0_1, %c0_2] : memref<8x1xf32, #tpu.memory_space<vmem>>, vector<8x1xf32>
    %c0_3 = arith.constant 0 : index
    %c0_4 = arith.constant 0 : index
    %c0_5 = arith.constant 0 : index
    %c0_6 = arith.constant 0 : index
    %2 = vector.load %arg1[%c0_3, %c0_4, %c0_5, %c0_6] : memref<1x18x18x4xbf16, #tpu.memory_space<vmem>>, vector<1x16x16x4xbf16>
    %3 = vector.shape_cast %2 : vector<1x16x16x4xbf16> to vector<16x16x4xbf16>
    %4 = vector.shape_cast %3 : vector<16x16x4xbf16> to vector<256x4xbf16>
    %c0_7 = arith.constant 0 : index
    %c0_8 = arith.constant 0 : index
    %c1 = arith.constant 1 : index
    %c0_9 = arith.constant 0 : index
    %5 = vector.load %arg1[%c0_7, %c0_8, %c1, %c0_9] : memref<1x18x18x4xbf16, #tpu.memory_space<vmem>>, vector<1x16x16x4xbf16>
    %6 = vector.shape_cast %5 : vector<1x16x16x4xbf16> to vector<16x16x4xbf16>
    %7 = vector.shape_cast %6 : vector<16x16x4xbf16> to vector<256x4xbf16>
    %c0_10 = arith.constant 0 : index
    %c0_11 = arith.constant 0 : index
    %c2 = arith.constant 2 : index
    %c0_12 = arith.constant 0 : index
    %8 = vector.load %arg1[%c0_10, %c0_11, %c2, %c0_12] : memref<1x18x18x4xbf16, #tpu.memory_space<vmem>>, vector<1x16x16x4xbf16>
    %9 = vector.shape_cast %8 : vector<1x16x16x4xbf16> to vector<16x16x4xbf16>
    %10 = vector.shape_cast %9 : vector<16x16x4xbf16> to vector<256x4xbf16>
    %c0_13 = arith.constant 0 : index
    %c1_14 = arith.constant 1 : index
    %c0_15 = arith.constant 0 : index
    %c0_16 = arith.constant 0 : index
    %11 = vector.load %arg1[%c0_13, %c1_14, %c0_15, %c0_16] : memref<1x18x18x4xbf16, #tpu.memory_space<vmem>>, vector<1x16x16x4xbf16>
    %12 = vector.shape_cast %11 : vector<1x16x16x4xbf16> to vector<16x16x4xbf16>
    %13 = vector.shape_cast %12 : vector<16x16x4xbf16> to vector<256x4xbf16>
    %c0_17 = arith.constant 0 : index
    %c1_18 = arith.constant 1 : index
    %c1_19 = arith.constant 1 : index
    %c0_20 = arith.constant 0 : index
    %14 = vector.load %arg1[%c0_17, %c1_18, %c1_19, %c0_20] : memref<1x18x18x4xbf16, #tpu.memory_space<vmem>>, vector<1x16x16x4xbf16>
    %15 = vector.shape_cast %14 : vector<1x16x16x4xbf16> to vector<16x16x4xbf16>
    %16 = vector.shape_cast %15 : vector<16x16x4xbf16> to vector<256x4xbf16>
    %c0_21 = arith.constant 0 : index
    %c1_22 = arith.constant 1 : index
    %c2_23 = arith.constant 2 : index
    %c0_24 = arith.constant 0 : index
    %17 = vector.load %arg1[%c0_21, %c1_22, %c2_23, %c0_24] : memref<1x18x18x4xbf16, #tpu.memory_space<vmem>>, vector<1x16x16x4xbf16>
    %18 = vector.shape_cast %17 : vector<1x16x16x4xbf16> to vector<16x16x4xbf16>
    %19 = vector.shape_cast %18 : vector<16x16x4xbf16> to vector<256x4xbf16>
    %c0_25 = arith.constant 0 : index
    %c2_26 = arith.constant 2 : index
    %c0_27 = arith.constant 0 : index
    %c0_28 = arith.constant 0 : index
    %20 = vector.load %arg1[%c0_25, %c2_26, %c0_27, %c0_28] : memref<1x18x18x4xbf16, #tpu.memory_space<vmem>>, vector<1x16x16x4xbf16>
    %21 = vector.shape_cast %20 : vector<1x16x16x4xbf16> to vector<16x16x4xbf16>
    %22 = vector.shape_cast %21 : vector<16x16x4xbf16> to vector<256x4xbf16>
    %c0_29 = arith.constant 0 : index
    %c2_30 = arith.constant 2 : index
    %c1_31 = arith.constant 1 : index
    %c0_32 = arith.constant 0 : index
    %23 = vector.load %arg1[%c0_29, %c2_30, %c1_31, %c0_32] : memref<1x18x18x4xbf16, #tpu.memory_space<vmem>>, vector<1x16x16x4xbf16>
    %24 = vector.shape_cast %23 : vector<1x16x16x4xbf16> to vector<16x16x4xbf16>
    %25 = vector.shape_cast %24 : vector<16x16x4xbf16> to vector<256x4xbf16>
    %c0_33 = arith.constant 0 : index
    %c2_34 = arith.constant 2 : index
    %c2_35 = arith.constant 2 : index
    %c0_36 = arith.constant 0 : index
    %26 = vector.load %arg1[%c0_33, %c2_34, %c2_35, %c0_36] : memref<1x18x18x4xbf16, #tpu.memory_space<vmem>>, vector<1x16x16x4xbf16>
    %27 = vector.shape_cast %26 : vector<1x16x16x4xbf16> to vector<16x16x4xbf16>
    %28 = vector.shape_cast %27 : vector<16x16x4xbf16> to vector<256x4xbf16>
    %cst = arith.constant 0.000000e+00 : f32
    %29 = vector.broadcast %cst : f32 to vector<8x256xf32>
    %c0_37 = arith.constant 0 : index
    %c0_38 = arith.constant 0 : index
    %c0_39 = arith.constant 0 : index
    %30 = vector.load %arg2[%c0_37, %c0_38, %c0_39] : memref<16x8x4xbf16, #tpu.memory_space<vmem>>, vector<1x8x4xbf16>
    %31 = vector.shape_cast %30 : vector<1x8x4xbf16> to vector<8x4xbf16>
    %cst_40 = arith.constant dense<0.000000e+00> : vector<8x256xf32>
    %32 = tpu.matmul %31, %4, %cst_40 {dimension_numbers = #tpu.dot_dimension_numbers<[1], [1], [0], [0], [0, 0, 1, 0], [], []>} : vector<8x4xbf16>, vector<256x4xbf16>, vector<8x256xf32> -> vector<8x256xf32>
    %33 = arith.addf %29, %32 : vector<8x256xf32>
    %c1_41 = arith.constant 1 : index
    %c0_42 = arith.constant 0 : index
    %c0_43 = arith.constant 0 : index
    %34 = vector.load %arg2[%c1_41, %c0_42, %c0_43] : memref<16x8x4xbf16, #tpu.memory_space<vmem>>, vector<1x8x4xbf16>
    %35 = vector.shape_cast %34 : vector<1x8x4xbf16> to vector<8x4xbf16>
    %cst_44 = arith.constant dense<0.000000e+00> : vector<8x256xf32>
    %36 = tpu.matmul %35, %7, %cst_44 {dimension_numbers = #tpu.dot_dimension_numbers<[1], [1], [0], [0], [0, 0, 1, 0], [], []>} : vector<8x4xbf16>, vector<256x4xbf16>, vector<8x256xf32> -> vector<8x256xf32>
    %37 = arith.addf %33, %36 : vector<8x256xf32>
    %c2_45 = arith.constant 2 : index
    %c0_46 = arith.constant 0 : index
    %c0_47 = arith.constant 0 : index
    %38 = vector.load %arg2[%c2_45, %c0_46, %c0_47] : memref<16x8x4xbf16, #tpu.memory_space<vmem>>, vector<1x8x4xbf16>
    %39 = vector.shape_cast %38 : vector<1x8x4xbf16> to vector<8x4xbf16>
    %cst_48 = arith.constant dense<0.000000e+00> : vector<8x256xf32>
    %40 = tpu.matmul %39, %13, %cst_48 {dimension_numbers = #tpu.dot_dimension_numbers<[1], [1], [0], [0], [0, 0, 1, 0], [], []>} : vector<8x4xbf16>, vector<256x4xbf16>, vector<8x256xf32> -> vector<8x256xf32>
    %41 = arith.addf %37, %40 : vector<8x256xf32>
    %c3 = arith.constant 3 : index
    %c0_49 = arith.constant 0 : index
    %c0_50 = arith.constant 0 : index
    %42 = vector.load %arg2[%c3, %c0_49, %c0_50] : memref<16x8x4xbf16, #tpu.memory_space<vmem>>, vector<1x8x4xbf16>
    %43 = vector.shape_cast %42 : vector<1x8x4xbf16> to vector<8x4xbf16>
    %cst_51 = arith.constant dense<0.000000e+00> : vector<8x256xf32>
    %44 = tpu.matmul %43, %16, %cst_51 {dimension_numbers = #tpu.dot_dimension_numbers<[1], [1], [0], [0], [0, 0, 1, 0], [], []>} : vector<8x4xbf16>, vector<256x4xbf16>, vector<8x256xf32> -> vector<8x256xf32>
    %45 = arith.addf %41, %44 : vector<8x256xf32>
    %cst_52 = arith.constant 0.000000e+00 : f32
    %46 = vector.broadcast %cst_52 : f32 to vector<8x256xf32>
    %c4 = arith.constant 4 : index
    %c0_53 = arith.constant 0 : index
    %c0_54 = arith.constant 0 : index
    %47 = vector.load %arg2[%c4, %c0_53, %c0_54] : memref<16x8x4xbf16, #tpu.memory_space<vmem>>, vector<1x8x4xbf16>
    %48 = vector.shape_cast %47 : vector<1x8x4xbf16> to vector<8x4xbf16>
    %cst_55 = arith.constant dense<0.000000e+00> : vector<8x256xf32>
    %49 = tpu.matmul %48, %7, %cst_55 {dimension_numbers = #tpu.dot_dimension_numbers<[1], [1], [0], [0], [0, 0, 1, 0], [], []>} : vector<8x4xbf16>, vector<256x4xbf16>, vector<8x256xf32> -> vector<8x256xf32>
    %50 = arith.addf %46, %49 : vector<8x256xf32>
    %c5 = arith.constant 5 : index
    %c0_56 = arith.constant 0 : index
    %c0_57 = arith.constant 0 : index
    %51 = vector.load %arg2[%c5, %c0_56, %c0_57] : memref<16x8x4xbf16, #tpu.memory_space<vmem>>, vector<1x8x4xbf16>
    %52 = vector.shape_cast %51 : vector<1x8x4xbf16> to vector<8x4xbf16>
    %cst_58 = arith.constant dense<0.000000e+00> : vector<8x256xf32>
    %53 = tpu.matmul %52, %10, %cst_58 {dimension_numbers = #tpu.dot_dimension_numbers<[1], [1], [0], [0], [0, 0, 1, 0], [], []>} : vector<8x4xbf16>, vector<256x4xbf16>, vector<8x256xf32> -> vector<8x256xf32>
    %54 = arith.addf %50, %53 : vector<8x256xf32>
    %c6 = arith.constant 6 : index
    %c0_59 = arith.constant 0 : index
    %c0_60 = arith.constant 0 : index
    %55 = vector.load %arg2[%c6, %c0_59, %c0_60] : memref<16x8x4xbf16, #tpu.memory_space<vmem>>, vector<1x8x4xbf16>
    %56 = vector.shape_cast %55 : vector<1x8x4xbf16> to vector<8x4xbf16>
    %cst_61 = arith.constant dense<0.000000e+00> : vector<8x256xf32>
    %57 = tpu.matmul %56, %16, %cst_61 {dimension_numbers = #tpu.dot_dimension_numbers<[1], [1], [0], [0], [0, 0, 1, 0], [], []>} : vector<8x4xbf16>, vector<256x4xbf16>, vector<8x256xf32> -> vector<8x256xf32>
    %58 = arith.addf %54, %57 : vector<8x256xf32>
    %c7 = arith.constant 7 : index
    %c0_62 = arith.constant 0 : index
    %c0_63 = arith.constant 0 : index
    %59 = vector.load %arg2[%c7, %c0_62, %c0_63] : memref<16x8x4xbf16, #tpu.memory_space<vmem>>, vector<1x8x4xbf16>
    %60 = vector.shape_cast %59 : vector<1x8x4xbf16> to vector<8x4xbf16>
    %cst_64 = arith.constant dense<0.000000e+00> : vector<8x256xf32>
    %61 = tpu.matmul %60, %19, %cst_64 {dimension_numbers = #tpu.dot_dimension_numbers<[1], [1], [0], [0], [0, 0, 1, 0], [], []>} : vector<8x4xbf16>, vector<256x4xbf16>, vector<8x256xf32> -> vector<8x256xf32>
    %62 = arith.addf %58, %61 : vector<8x256xf32>
    %cst_65 = arith.constant 0.000000e+00 : f32
    %63 = vector.broadcast %cst_65 : f32 to vector<8x256xf32>
    %c8 = arith.constant 8 : index
    %c0_66 = arith.constant 0 : index
    %c0_67 = arith.constant 0 : index
    %64 = vector.load %arg2[%c8, %c0_66, %c0_67] : memref<16x8x4xbf16, #tpu.memory_space<vmem>>, vector<1x8x4xbf16>
    %65 = vector.shape_cast %64 : vector<1x8x4xbf16> to vector<8x4xbf16>
    %cst_68 = arith.constant dense<0.000000e+00> : vector<8x256xf32>
    %66 = tpu.matmul %65, %13, %cst_68 {dimension_numbers = #tpu.dot_dimension_numbers<[1], [1], [0], [0], [0, 0, 1, 0], [], []>} : vector<8x4xbf16>, vector<256x4xbf16>, vector<8x256xf32> -> vector<8x256xf32>
    %67 = arith.addf %63, %66 : vector<8x256xf32>
    %c9 = arith.constant 9 : index
    %c0_69 = arith.constant 0 : index
    %c0_70 = arith.constant 0 : index
    %68 = vector.load %arg2[%c9, %c0_69, %c0_70] : memref<16x8x4xbf16, #tpu.memory_space<vmem>>, vector<1x8x4xbf16>
    %69 = vector.shape_cast %68 : vector<1x8x4xbf16> to vector<8x4xbf16>
    %cst_71 = arith.constant dense<0.000000e+00> : vector<8x256xf32>
    %70 = tpu.matmul %69, %16, %cst_71 {dimension_numbers = #tpu.dot_dimension_numbers<[1], [1], [0], [0], [0, 0, 1, 0], [], []>} : vector<8x4xbf16>, vector<256x4xbf16>, vector<8x256xf32> -> vector<8x256xf32>
    %71 = arith.addf %67, %70 : vector<8x256xf32>
    %c10 = arith.constant 10 : index
    %c0_72 = arith.constant 0 : index
    %c0_73 = arith.constant 0 : index
    %72 = vector.load %arg2[%c10, %c0_72, %c0_73] : memref<16x8x4xbf16, #tpu.memory_space<vmem>>, vector<1x8x4xbf16>
    %73 = vector.shape_cast %72 : vector<1x8x4xbf16> to vector<8x4xbf16>
    %cst_74 = arith.constant dense<0.000000e+00> : vector<8x256xf32>
    %74 = tpu.matmul %73, %22, %cst_74 {dimension_numbers = #tpu.dot_dimension_numbers<[1], [1], [0], [0], [0, 0, 1, 0], [], []>} : vector<8x4xbf16>, vector<256x4xbf16>, vector<8x256xf32> -> vector<8x256xf32>
    %75 = arith.addf %71, %74 : vector<8x256xf32>
    %c11 = arith.constant 11 : index
    %c0_75 = arith.constant 0 : index
    %c0_76 = arith.constant 0 : index
    %76 = vector.load %arg2[%c11, %c0_75, %c0_76] : memref<16x8x4xbf16, #tpu.memory_space<vmem>>, vector<1x8x4xbf16>
    %77 = vector.shape_cast %76 : vector<1x8x4xbf16> to vector<8x4xbf16>
    %cst_77 = arith.constant dense<0.000000e+00> : vector<8x256xf32>
    %78 = tpu.matmul %77, %25, %cst_77 {dimension_numbers = #tpu.dot_dimension_numbers<[1], [1], [0], [0], [0, 0, 1, 0], [], []>} : vector<8x4xbf16>, vector<256x4xbf16>, vector<8x256xf32> -> vector<8x256xf32>
    %79 = arith.addf %75, %78 : vector<8x256xf32>
    %cst_78 = arith.constant 0.000000e+00 : f32
    %80 = vector.broadcast %cst_78 : f32 to vector<8x256xf32>
    %c12 = arith.constant 12 : index
    %c0_79 = arith.constant 0 : index
    %c0_80 = arith.constant 0 : index
    %81 = vector.load %arg2[%c12, %c0_79, %c0_80] : memref<16x8x4xbf16, #tpu.memory_space<vmem>>, vector<1x8x4xbf16>
    %82 = vector.shape_cast %81 : vector<1x8x4xbf16> to vector<8x4xbf16>
    %cst_81 = arith.constant dense<0.000000e+00> : vector<8x256xf32>
    %83 = tpu.matmul %82, %16, %cst_81 {dimension_numbers = #tpu.dot_dimension_numbers<[1], [1], [0], [0], [0, 0, 1, 0], [], []>} : vector<8x4xbf16>, vector<256x4xbf16>, vector<8x256xf32> -> vector<8x256xf32>
    %84 = arith.addf %80, %83 : vector<8x256xf32>
    %c13 = arith.constant 13 : index
    %c0_82 = arith.constant 0 : index
    %c0_83 = arith.constant 0 : index
    %85 = vector.load %arg2[%c13, %c0_82, %c0_83] : memref<16x8x4xbf16, #tpu.memory_space<vmem>>, vector<1x8x4xbf16>
    %86 = vector.shape_cast %85 : vector<1x8x4xbf16> to vector<8x4xbf16>
    %cst_84 = arith.constant dense<0.000000e+00> : vector<8x256xf32>
    %87 = tpu.matmul %86, %19, %cst_84 {dimension_numbers = #tpu.dot_dimension_numbers<[1], [1], [0], [0], [0, 0, 1, 0], [], []>} : vector<8x4xbf16>, vector<256x4xbf16>, vector<8x256xf32> -> vector<8x256xf32>
    %88 = arith.addf %84, %87 : vector<8x256xf32>
    %c14 = arith.constant 14 : index
    %c0_85 = arith.constant 0 : index
    %c0_86 = arith.constant 0 : index
    %89 = vector.load %arg2[%c14, %c0_85, %c0_86] : memref<16x8x4xbf16, #tpu.memory_space<vmem>>, vector<1x8x4xbf16>
    %90 = vector.shape_cast %89 : vector<1x8x4xbf16> to vector<8x4xbf16>
    %cst_87 = arith.constant dense<0.000000e+00> : vector<8x256xf32>
    %91 = tpu.matmul %90, %25, %cst_87 {dimension_numbers = #tpu.dot_dimension_numbers<[1], [1], [0], [0], [0, 0, 1, 0], [], []>} : vector<8x4xbf16>, vector<256x4xbf16>, vector<8x256xf32> -> vector<8x256xf32>
    %92 = arith.addf %88, %91 : vector<8x256xf32>
    %c15 = arith.constant 15 : index
    %c0_88 = arith.constant 0 : index
    %c0_89 = arith.constant 0 : index
    %93 = vector.load %arg2[%c15, %c0_88, %c0_89] : memref<16x8x4xbf16, #tpu.memory_space<vmem>>, vector<1x8x4xbf16>
    %94 = vector.shape_cast %93 : vector<1x8x4xbf16> to vector<8x4xbf16>
    %cst_90 = arith.constant dense<0.000000e+00> : vector<8x256xf32>
    %95 = tpu.matmul %94, %28, %cst_90 {dimension_numbers = #tpu.dot_dimension_numbers<[1], [1], [0], [0], [0, 0, 1, 0], [], []>} : vector<8x4xbf16>, vector<256x4xbf16>, vector<8x256xf32> -> vector<8x256xf32>
    %96 = arith.addf %92, %95 : vector<8x256xf32>
    %97 = vector.broadcast %0 : vector<8x1xf32> to vector<8x256xf32>
    %98 = arith.mulf %45, %97 : vector<8x256xf32>
    %99 = vector.broadcast %1 : vector<8x1xf32> to vector<8x256xf32>
    %100 = arith.addf %98, %99 : vector<8x256xf32>
    %cst_91 = arith.constant 0.000000e+00 : f32
    %101 = vector.broadcast %cst_91 : f32 to vector<8x256xf32>
    %102 = arith.maximumf %100, %101 : vector<8x256xf32>
    %c0_92 = arith.constant 0 : index
    %c0_93 = arith.constant 0 : index
    %c0_94 = arith.constant 0 : index
    %c0_95 = arith.constant 0 : index
    %103 = vector.load %arg5[%c0_92, %c0_93, %c0_94, %c0_95] : memref<1x4x8x256xf32, #tpu.memory_space<vmem>>, vector<1x1x8x256xf32>
    %104 = vector.shape_cast %103 : vector<1x1x8x256xf32> to vector<8x256xf32>
    %105 = vector.shape_cast %102 : vector<8x256xf32> to vector<1x1x8x256xf32>
    tpu.vector_store %arg5[%c0_92, %c0_93, %c0_94, %c0_95], %105 {strides = array<i32>} : memref<1x4x8x256xf32, #tpu.memory_space<vmem>>, vector<1x1x8x256xf32>,
    %106 = vector.broadcast %0 : vector<8x1xf32> to vector<8x256xf32>
    %107 = arith.mulf %62, %106 : vector<8x256xf32>
    %108 = vector.broadcast %1 : vector<8x1xf32> to vector<8x256xf32>
    %109 = arith.addf %107, %108 : vector<8x256xf32>
    %cst_96 = arith.constant 0.000000e+00 : f32
    %110 = vector.broadcast %cst_96 : f32 to vector<8x256xf32>
    %111 = arith.maximumf %109, %110 : vector<8x256xf32>
    %c0_97 = arith.constant 0 : index
    %c1_98 = arith.constant 1 : index
    %c0_99 = arith.constant 0 : index
    %c0_100 = arith.constant 0 : index
    %112 = vector.load %arg5[%c0_97, %c1_98, %c0_99, %c0_100] : memref<1x4x8x256xf32, #tpu.memory_space<vmem>>, vector<1x1x8x256xf32>
    %113 = vector.shape_cast %112 : vector<1x1x8x256xf32> to vector<8x256xf32>
    %114 = vector.shape_cast %111 : vector<8x256xf32> to vector<1x1x8x256xf32>
    tpu.vector_store %arg5[%c0_97, %c1_98, %c0_99, %c0_100], %114 {strides = array<i32>} : memref<1x4x8x256xf32, #tpu.memory_space<vmem>>, vector<1x1x8x256xf32>,
    %115 = vector.broadcast %0 : vector<8x1xf32> to vector<8x256xf32>
    %116 = arith.mulf %79, %115 : vector<8x256xf32>
    %117 = vector.broadcast %1 : vector<8x1xf32> to vector<8x256xf32>
    %118 = arith.addf %116, %117 : vector<8x256xf32>
    %cst_101 = arith.constant 0.000000e+00 : f32
    %119 = vector.broadcast %cst_101 : f32 to vector<8x256xf32>
    %120 = arith.maximumf %118, %119 : vector<8x256xf32>
    %c0_102 = arith.constant 0 : index
    %c2_103 = arith.constant 2 : index
    %c0_104 = arith.constant 0 : index
    %c0_105 = arith.constant 0 : index
    %121 = vector.load %arg5[%c0_102, %c2_103, %c0_104, %c0_105] : memref<1x4x8x256xf32, #tpu.memory_space<vmem>>, vector<1x1x8x256xf32>
    %122 = vector.shape_cast %121 : vector<1x1x8x256xf32> to vector<8x256xf32>
    %123 = vector.shape_cast %120 : vector<8x256xf32> to vector<1x1x8x256xf32>
    tpu.vector_store %arg5[%c0_102, %c2_103, %c0_104, %c0_105], %123 {strides = array<i32>} : memref<1x4x8x256xf32, #tpu.memory_space<vmem>>, vector<1x1x8x256xf32>,
    %124 = vector.broadcast %0 : vector<8x1xf32> to vector<8x256xf32>
    %125 = arith.mulf %96, %124 : vector<8x256xf32>
    %126 = vector.broadcast %1 : vector<8x1xf32> to vector<8x256xf32>
    %127 = arith.addf %125, %126 : vector<8x256xf32>
    %cst_106 = arith.constant 0.000000e+00 : f32
    %128 = vector.broadcast %cst_106 : f32 to vector<8x256xf32>
    %129 = arith.maximumf %127, %128 : vector<8x256xf32>
    %c0_107 = arith.constant 0 : index
    %c3_108 = arith.constant 3 : index
    %c0_109 = arith.constant 0 : index
    %c0_110 = arith.constant 0 : index
    %130 = vector.load %arg5[%c0_107, %c3_108, %c0_109, %c0_110] : memref<1x4x8x256xf32, #tpu.memory_space<vmem>>, vector<1x1x8x256xf32>
    %131 = vector.shape_cast %130 : vector<1x1x8x256xf32> to vector<8x256xf32>
    %132 = vector.shape_cast %129 : vector<8x256xf32> to vector<1x1x8x256xf32>
    tpu.vector_store %arg5[%c0_107, %c3_108, %c0_109, %c0_110], %132 {strides = array<i32>} : memref<1x4x8x256xf32, #tpu.memory_space<vmem>>, vector<1x1x8x256xf32>,
    return
  }
  func.func @transform_0(%arg0: i32) -> (i32, i32, i32, i32) {
    %c0_i32 = arith.constant 0 : i32
    %c0_i32_0 = arith.constant 0 : i32
    %c0_i32_1 = arith.constant 0 : i32
    %c0_i32_2 = arith.constant 0 : i32
    return %arg0, %c0_i32, %c0_i32_0, %c0_i32_1 : i32, i32, i32, i32
  }
  func.func @transform_1(%arg0: i32) -> (i32, i32, i32) {
    %c0_i32 = arith.constant 0 : i32
    %c0_i32_0 = arith.constant 0 : i32
    %c0_i32_1 = arith.constant 0 : i32
    %c0_i32_2 = arith.constant 0 : i32
    return %c0_i32, %c0_i32_0, %c0_i32_1 : i32, i32, i32
  }
  func.func @transform_2(%arg0: i32) -> (i32, i32) {
    %c0_i32 = arith.constant 0 : i32
    %c0_i32_0 = arith.constant 0 : i32
    %c0_i32_1 = arith.constant 0 : i32
    return %c0_i32, %c0_i32_0 : i32, i32
  }
  func.func @transform_3(%arg0: i32) -> (i32, i32) {
    %c0_i32 = arith.constant 0 : i32
    %c0_i32_0 = arith.constant 0 : i32
    %c0_i32_1 = arith.constant 0 : i32
    return %c0_i32, %c0_i32_0 : i32, i32
  }
  func.func @transform_4(%arg0: i32) -> (i32, i32, i32, i32) {
    %c0_i32 = arith.constant 0 : i32
    %c0_i32_0 = arith.constant 0 : i32
    %c0_i32_1 = arith.constant 0 : i32
    %c0_i32_2 = arith.constant 0 : i32
    return %arg0, %c0_i32, %c0_i32_0, %c0_i32_1 : i32, i32, i32, i32
  }
}

</mosaic_0001>

<bundles_post_ra>
// kernel: decoder_block_forward.3
= control target key start
LH: loop header
LB: loop body
LE: loop exit
PB: predicated region body
PF: predicated region fallthrough
CT: control target
= control target key end

     0   :  { %s4139_s15 = smov 0   ;;  %s5719_s0 = inlined_call_operand.vmem [shape: bf16[2,18,18,4], index: 0, kind: input, shape index: {}]   ;;  %s5720_s1 = inlined_call_operand.vmem [shape: bf16[16,8,4], index: 1, kind: input, shape index: {}]   ;;  %s5721_s2 = inlined_call_operand.vmem [shape: f32[8,1], index: 2, kind: input, shape index: {}]   ;;  %s5722_s3 = inlined_call_operand.vmem [shape: f32[8,1], index: 3, kind: input, shape index: {}]   ;;  %s5723_s4 = inlined_call_operand.vmem [shape: f32[2,4,8,256], index: 4, kind: output, shape index: {}]  }
   0x1 LB: > { %s3556_s16 = sadd.s32 4294967295, %s4111_s15   ;;  %p3560_p0 = scmp.ge.s32.totalorder %s4111_s15, 1  ;;  %s4111_s15 = sphi %s4139_s15, %s14_s15  }
   0x2   : > { %p162_p1 = scmp.lt.s32.totalorder %s4111_s15, 3 }
   0x4   : > { %p163_p2 = pnand %p3560_p0, %p162_p1 }
   0x6   : > { %166 = sbr.rel (%p163_p2) target bundleno = 725 (0x2d5), region = 36 }
   0xb   : > { %p188_p3 = scmp.lt.s32.totalorder %s3556_s16, 1  ;;  %vm2083_vm0 = vcmask 31744   ;;  %vm248_vm1 = vsmask.f32 3328  ;;  %vm249_vm2 = vsmask.f32 7440 }
   0xc   : > { %vm4181_vm3 = vmor %vm248_vm1, %vm249_vm2  ;;  %vm699_vm4 = vcmask 1042432   ;;  %vm700_vm5 = vcmask 1046532  }
   0xd   : > { %s5906_s16 = smov (!%p188_p3, %s3556_s16), 1  ;;  %vm4664_vm6 = vmor %vm699_vm4, %vm700_vm5 }
   0xe   : > { %s4036_s17 = smul.u32 216, %s5906_s16 }
  0x10   : > { %s4153_s20 = scalar_lea.vmem %s5719_s0, %s4036_s17  ;;  %s3987_s17 = sshll.u32 %s5906_s16, 6 }
  0x11   : > { %v3995_v0 = vld [vmem:[%s4153_s20 + $0x54] sm:$0xff]  ;;  %v3994_v2 = vld [vmem:[%s4153_s20 + $0x48] sm:$0xff]  ;;  %v4165_v9 = vld [vmem:[%s4153_s20 + $0x5c] sm:$0x1]  ;;  %s5117_s19 = scalar_lea.vmem %s5723_s4, %s3987_s17 }
  0x12   : > { %v4003_v1 = vld [vmem:[%s4153_s20 + $0xb4] sm:$0xff]  ;;  %v4002_v3 = vld [vmem:[%s4153_s20 + $0xa8] sm:$0xff]  ;;  %v2250_v6 = vsel %vm2083_vm0, %v3995_v0, 0  ;;  %v2247_v8 = vsel %vm2083_vm0, %v3994_v2, 0  ;;  %v439_v17 = vshll.u32 %v4165_v9, 16  ;;  %v3993_v30 = vld [vmem:[%s4153_s20 + $0x3c] sm:$0xff] }
  0x13   : > { %v214_v4 = vld [vmem:[%s4153_s20 + $0x54] sm:$0xf]  ;;  %v215_v5 = vld [vmem:[%s4153_s20 + $0x58] sm:$0xf]  ;;  %v2274_v7 = vsel %vm2083_vm0, %v4003_v1, 0  ;;  %2276 = vmatpush.bf16.xpose.msra.mxu2 %v2250_v6  ;;  %v2271_v11 = vsel %vm2083_vm0, %v4002_v3, 0 }
  0x14   : > { %v420_v10 = vshrl.u32 %v214_v4, 16  ;;  %2289 = vmatpush.bf16.xpose.msra.mxu3 %v2274_v7  ;;  %v423_v12 = vshll.u32 %v214_v4, 16  ;;  %v429_v13 = vshll.u32 %v215_v5, 16  ;;  %v433_v14 = vshrl.u32 %v215_v5, 16  ;;  %v230_v15 = vld [vmem:[%s4153_s20 + $0xb4] sm:$0xf] }
  0x15   : > { %v231_v19 = vld [vmem:[%s4153_s20 + $0xb8] sm:$0xf]  ;;  %v612_v20 = vshrl.u32 %v230_v15, 16  ;;  %v4173_v24 = vld [vmem:[%s4153_s20 + $0xbc] sm:$0x1]  ;;  %v615_v25 = vshll.u32 %v230_v15, 16 }
  0x16   : > { %v422_v16 = vrot.slane %v420_v10, 4  ;;  %v425_v21 = vrot.slane %v423_v12, 5  ;;  %v431_v22 = vrot.slane %v429_v13, 5  ;;  %v435_v23 = vrot.slane %v433_v14, 4  ;;  %v4001_v31 = vld [vmem:[%s4153_s20 + $0x9c] sm:$0xff]  ;;  %v3992_v12 = vld [vmem:[%s4153_s20 + $0x30] sm:$0xff] }
  0x17   : > { %v441_v26 = vrot.slane %v439_v17, 5  ;;  %v614_v27 = vrot.slane %v612_v20, 4  ;;  %v621_v28 = vshll.u32 %v231_v19, 16  ;;  %v625_v29 = vshrl.u32 %v231_v19, 16  ;;  %v212_v36 = vld [vmem:[%s4153_s20 + $0x48] sm:$0xf] }
  0x18   : > { %v426_v32 = vor.u32 %v425_v21, %v422_v16  ;;  %v436_v33 = vor.u32 %v435_v23, %v431_v22  ;;  %v617_v34 = vrot.slane %v615_v25, 5  ;;  %v631_v35 = vshll.u32 %v4173_v24, 16  ;;  %v213_v42 = vld [vmem:[%s4153_s20 + $0x4c] sm:$0xf]  ;;  %v238_v54 = vld [vmem:[%s4153_s20 + $0x50] sm:$0x1] }
  0x19   : > { %v623_v38 = vrot.slane %v621_v28, 5  ;;  %v627_v39 = vrot.slane %v625_v29, 4  ;;  %v2244_v41 = vsel %vm2083_vm0, %v3993_v30, 0  ;;  %v2268_v48 = vsel %vm2083_vm0, %v4001_v31, 0  ;;  %v228_v60 = vld [vmem:[%s4153_s20 + $0xa8] sm:$0xf] }
  0x1a   : > { %v427_v43 = vrot.slane %v426_v32, 4  ;;  %v437_v44 = vrot.slane %v436_v33, 4  ;;  %v618_v45 = vor.u32 %v617_v34, %v614_v27  ;;  %v633_v46 = vrot.slane %v631_v35, 5  ;;  %v229_v1 = vld [vmem:[%s4153_s20 + $0xac] sm:$0xf] }
  0x1b   : > { %v628_v47 = vor.u32 %v627_v39, %v623_v38  ;;  %v396_v49 = vshrl.u32 %v212_v36, 16  ;;  %v399_v50 = vshll.u32 %v212_v36, 16  ;;  %2277 = vmatpush.bf16.xpose.msra.mxu2 %v2247_v8  ;;  %v405_v55 = vshll.u32 %v213_v42, 16  ;;  %v246_v10 = vld [vmem:[%s4153_s20 + $0xb0] sm:$0x1] }
  0x1c   : > { %2290 = vmatpush.bf16.xpose.msra.mxu3 %v2271_v11  ;;  %v432_v51 = vsel %vm4181_vm3, %v427_v43, %v431_v22  ;;  %v442_v52 = vsel %vm4181_vm3, %v437_v44, %v441_v26  ;;  %v619_v53 = vrot.slane %v618_v45, 4  ;;  %v409_v0 = vshrl.u32 %v213_v42, 16  ;;  %v4000_v22 = vld [vmem:[%s4153_s20 + $0x90] sm:$0xff]  ;;  %v210_v28 = vld [vmem:[%s4153_s20 + $0x3c] sm:$0xf] }
  0x1d   : > { %v2049_v56 = vunpack.c.l.b16 %v432_v51  ;;  %v2050_v57 = vunpack.c.l.b16 %v442_v52  ;;  %v629_v58 = vrot.slane %v628_v47, 4  ;;  %v398_v59 = vrot.slane %v396_v49, 4  ;;  %v211_v33 = vld [vmem:[%s4153_s20 + $0x40] sm:$0xf]  ;;  %v237_v39 = vld [vmem:[%s4153_s20 + $0x44] sm:$0x1] }
  0x1e   : > { %v624_v61 = vsel %vm4181_vm3, %v619_v53, %v623_v38  ;;  %v401_v62 = vrot.slane %v399_v50, 5  ;;  %v407_v63 = vrot.slane %v405_v55, 5  ;;  %v415_v5 = vshll.u32 %v238_v54, 16  ;;  %v226_v53 = vld [vmem:[%s4153_s20 + $0x9c] sm:$0xf] }
  0x1f   : > { %v2074_v2 = vpack.c.b16 %v2050_v57, %v2049_v56  ;;  %v634_v3 = vsel %vm4181_vm3, %v629_v58, %v633_v46  ;;  %v2065_v4 = vunpack.c.l.b16 %v624_v61  ;;  %v411_v8 = vrot.slane %v409_v0, 4  ;;  %v227_v58 = vld [vmem:[%s4153_s20 + $0xa0] sm:$0xf] }
  0x20   : > { %v2066_v6 = vunpack.c.l.b16 %v634_v3  ;;  %v402_v7 = vor.u32 %v401_v62, %v398_v59  ;;  %v588_v11 = vshrl.u32 %v228_v60, 16  ;;  %v417_v14 = vrot.slane %v415_v5, 5 }
  0x21   : > { %v4203_v13 = vsel %vm2083_vm0, %v2074_v2, 0  ;;  %v591_v15 = vshll.u32 %v228_v60, 16  ;;  %v597_v16 = vshll.u32 %v229_v1, 16  ;;  %v412_v20 = vor.u32 %v411_v8, %v407_v63  ;;  %v3991_v8 = vld [vmem:[%s4153_s20 + $0x24] sm:$0xff] }
  0x22   : > { %2135 = vmatpush.bf16.xpose.msra.mxu0 %v4203_v13  ;;  %v2082_v17 = vpack.c.b16 %v2066_v6, %v2065_v4  ;;  %v403_v19 = vrot.slane %v402_v7, 4  ;;  %v590_v21 = vrot.slane %v588_v11, 4  ;;  %v601_v26 = vshrl.u32 %v229_v1, 16 }
  0x23   : > { %v593_v23 = vrot.slane %v591_v15, 5  ;;  %v599_v25 = vrot.slane %v597_v16, 5  ;;  %v607_v27 = vshll.u32 %v246_v10, 16  ;;  %2278 = vmatpush.bf16.xpose.msra.mxu2 %v2244_v41  ;;  %v413_v31 = vrot.slane %v412_v20, 4  ;;  %v3999_v10 = vld [vmem:[%s4153_s20 + $0x84] sm:$0xff] }
  0x24   : > { %v4209_v29 = vsel %vm2083_vm0, %v2082_v17, 0  ;;  %2291 = vmatpush.bf16.xpose.msra.mxu3 %v2268_v48  ;;  %v408_v30 = vsel %vm4181_vm3, %v403_v19, %v407_v63  ;;  %v2241_v32 = vsel %vm2083_vm0, %v3992_v12, 0  ;;  %v603_v36 = vrot.slane %v601_v26, 4  ;;  %v245_v63 = vld [vmem:[%s4153_s20 + $0xa4] sm:$0x1] }
  0x25   : > { %2148 = vmatpush.bf16.xpose.msra.mxu1 %v4209_v29  ;;  %v2047_v34 = vunpack.c.l.b16 %v408_v30  ;;  %v594_v35 = vor.u32 %v593_v23, %v590_v21  ;;  %v609_v38 = vrot.slane %v607_v27, 5  ;;  %v418_v42 = vsel %vm4181_vm3, %v413_v31, %v417_v14  ;;  %v208_v21 = vld [vmem:[%s4153_s20 + $0x30] sm:$0xf]  ;;  %v209_v27 = vld [vmem:[%s4153_s20 + $0x34] sm:$0xf] }
  0x26   : > { %v2265_v41 = vsel %vm2083_vm0, %v4000_v22, 0  ;;  %v372_v43 = vshrl.u32 %v210_v28, 16  ;;  %v375_v44 = vshll.u32 %v210_v28, 16  ;;  %v2048_v45 = vunpack.c.l.b16 %v418_v42  ;;  %v236_v28 = vld [vmem:[%s4153_s20 + $0x38] sm:$0x1] }
  0x27   : > { %v595_v46 = vrot.slane %v594_v35, 4  ;;  %v604_v47 = vor.u32 %v603_v36, %v599_v25  ;;  %v381_v48 = vshll.u32 %v211_v33, 16  ;;  %v385_v51 = vshrl.u32 %v211_v33, 16 }
  0x28   : > { %v374_v49 = vrot.slane %v372_v43, 4  ;;  %v377_v50 = vrot.slane %v375_v44, 5  ;;  %v391_v52 = vshll.u32 %v237_v39, 16  ;;  %v2073_v54 = vpack.c.b16 %v2048_v45, %v2047_v34  ;;  %v224_v44 = vld [vmem:[%s4153_s20 + $0x90] sm:$0xf] }
  0x29   : > { %v600_v55 = vsel %vm4181_vm3, %v595_v46, %v599_v25  ;;  %v605_v56 = vrot.slane %v604_v47, 4  ;;  %v383_v57 = vrot.slane %v381_v48, 5  ;;  %v387_v61 = vrot.slane %v385_v51, 4 }
  0x2a   : > { %v2063_v59 = vunpack.c.l.b16 %v600_v55  ;;  %v378_v60 = vor.u32 %v377_v50, %v374_v49  ;;  %v393_v62 = vrot.slane %v391_v52, 5  ;;  %v4226_v0 = vsel %vm2083_vm0, %v2073_v54, 0  ;;  %v225_v49 = vld [vmem:[%s4153_s20 + $0x94] sm:$0xf]  ;;  %v244_v54 = vld [vmem:[%s4153_s20 + $0x98] sm:$0x1] }
  0x2b   : > { %v610_v1 = vsel %vm4181_vm3, %v605_v56, %v609_v38  ;;  %v564_v2 = vshrl.u32 %v226_v53, 16  ;;  %v567_v3 = vshll.u32 %v226_v53, 16  ;;  %2136 = vmatpush.bf16.xpose.msra.mxu0 %v4226_v0  ;;  %2279 = vmatpush.bf16.xpose.msra.mxu2 %v2241_v32  ;;  %v388_v6 = vor.u32 %v387_v61, %v383_v57 }
  0x2c   : > { %v2064_v4 = vunpack.c.l.b16 %v610_v1  ;;  %v379_v5 = vrot.slane %v378_v60, 4  ;;  %v573_v7 = vshll.u32 %v227_v58, 16  ;;  %2292 = vmatpush.bf16.xpose.msra.mxu3 %v2265_v41  ;;  %v577_v14 = vshrl.u32 %v227_v58, 16 }
  0x2d   : > { %v566_v11 = vrot.slane %v564_v2, 4  ;;  %v569_v12 = vrot.slane %v567_v3, 5  ;;  %v583_v15 = vshll.u32 %v245_v63, 16  ;;  %v389_v19 = vrot.slane %v388_v6, 4 }
  0x2e   : > { %v2081_v16 = vpack.c.b16 %v2064_v4, %v2063_v59  ;;  %v384_v17 = vsel %vm4181_vm3, %v379_v5, %v383_v57  ;;  %v575_v20 = vrot.slane %v573_v7, 5  ;;  %v579_v25 = vrot.slane %v577_v14, 4  ;;  %v3990_v59 = vld [vmem:[%s4153_s20 + $0x18] sm:$0xff] }
  0x2f   : > { %v2045_v22 = vunpack.c.l.b16 %v384_v17  ;;  %v570_v23 = vor.u32 %v569_v12, %v566_v11  ;;  %v585_v26 = vrot.slane %v583_v15, 5  ;;  %v394_v31 = vsel %vm4181_vm3, %v389_v19, %v393_v62  ;;  %v3998_v5 = vld [vmem:[%s4153_s20 + $0x78] sm:$0xff]  ;;  %v206_v11 = vld [vmem:[%s4153_s20 + $0x24] sm:$0xf]  ;;  %v207_v17 = vld [vmem:[%s4153_s20 + $0x28] sm:$0xf] }
  0x30   : > { %v4239_v30 = vsel %vm2083_vm0, %v2081_v16, 0  ;;  %v2238_v32 = vsel %vm2083_vm0, %v3991_v8, 0  ;;  %v2262_v33 = vsel %vm2083_vm0, %v3999_v10, 0  ;;  %v2046_v34 = vunpack.c.l.b16 %v394_v31 }
  0x31   : > { %2149 = vmatpush.bf16.xpose.msra.mxu1 %v4239_v30  ;;  %v571_v35 = vrot.slane %v570_v23, 4  ;;  %v580_v36 = vor.u32 %v579_v25, %v575_v20  ;;  %v348_v38 = vshrl.u32 %v208_v21, 16  ;;  %v351_v39 = vshll.u32 %v208_v21, 16  ;;  %v235_v23 = vld [vmem:[%s4153_s20 + $0x2c] sm:$0x1] }
  0x32   : > { %v357_v42 = vshll.u32 %v209_v27, 16  ;;  %v361_v41 = vshrl.u32 %v209_v27, 16  ;;  %v367_v43 = vshll.u32 %v236_v28, 16  ;;  %v2072_v45 = vpack.c.b16 %v2046_v34, %v2045_v22 }
  0x33   : > { %v576_v46 = vsel %vm4181_vm3, %v571_v35, %v575_v20  ;;  %v581_v47 = vrot.slane %v580_v36, 4  ;;  %v350_v48 = vrot.slane %v348_v38, 4  ;;  %2280 = vmatpush.bf16.xpose.msra.mxu2 %v2238_v32  ;;  %v353_v51 = vrot.slane %v351_v39, 5 }
  0x34   : > { %v2061_v50 = vunpack.c.l.b16 %v576_v46  ;;  %v359_v52 = vrot.slane %v357_v42, 5  ;;  %v363_v53 = vrot.slane %v361_v41, 4  ;;  %v4252_v55 = vsel %vm2083_vm0, %v2072_v45, 0  ;;  %2293 = vmatpush.bf16.xpose.msra.mxu3 %v2262_v33  ;;  %v222_v42 = vld [vmem:[%s4153_s20 + $0x84] sm:$0xf] }
  0x35   : > { %v586_v56 = vsel %vm4181_vm3, %v581_v47, %v585_v26  ;;  %v369_v57 = vrot.slane %v367_v43, 5  ;;  %v540_v58 = vshrl.u32 %v224_v44, 16  ;;  %2137 = vmatpush.bf16.xpose.msra.mxu0 %v4252_v55  ;;  %v354_v61 = vor.u32 %v353_v51, %v350_v48  ;;  %v223_v46 = vld [vmem:[%s4153_s20 + $0x88] sm:$0xf]  ;;  %v243_v51 = vld [vmem:[%s4153_s20 + $0x8c] sm:$0x1] }
  0x36   : > { %v2062_v60 = vunpack.c.l.b16 %v586_v56  ;;  %v364_v62 = vor.u32 %v363_v53, %v359_v52  ;;  %v543_v63 = vshll.u32 %v224_v44, 16  ;;  %v549_v2 = vshll.u32 %v225_v49, 16 }
  0x37   : > { %v542_v1 = vrot.slane %v540_v58, 4  ;;  %v553_v3 = vshrl.u32 %v225_v49, 16  ;;  %v559_v4 = vshll.u32 %v244_v54, 16  ;;  %v355_v7 = vrot.slane %v354_v61, 4 }
  0x38   : > { %v2080_v6 = vpack.c.b16 %v2062_v60, %v2061_v50  ;;  %v365_v8 = vrot.slane %v364_v62, 4  ;;  %v545_v10 = vrot.slane %v543_v63, 5  ;;  %v551_v12 = vrot.slane %v549_v2, 5 }
  0x39   : > { %v555_v14 = vrot.slane %v553_v3, 4  ;;  %v561_v15 = vrot.slane %v559_v4, 5  ;;  %v2235_v16 = vsel %vm2083_vm0, %v3990_v59, 0  ;;  %v360_v20 = vsel %vm4181_vm3, %v355_v7, %v359_v52  ;;  %v3997_v3 = vld [vmem:[%s4153_s20 + $0x6c] sm:$0xff] }
  0x3a   : > { %v4263_v19 = vsel %vm2083_vm0, %v2080_v6, 0  ;;  %v370_v21 = vsel %vm4181_vm3, %v365_v8, %v369_v57  ;;  %v546_v22 = vor.u32 %v545_v10, %v542_v1  ;;  %v2043_v25 = vunpack.c.l.b16 %v360_v20  ;;  %v3989_v57 = vld [vmem:[%s4153_s20 + $0xc] sm:$0xff]  ;;  %v204_v8 = vld [vmem:[%s4153_s20 + $0x18] sm:$0xf] }
  0x3b   : > { %2150 = vmatpush.bf16.xpose.msra.mxu1 %v4263_v19  ;;  %v2044_v26 = vunpack.c.l.b16 %v370_v21  ;;  %v556_v27 = vor.u32 %v555_v14, %v551_v12  ;;  %v2259_v28 = vsel %vm2083_vm0, %v3998_v5, 0  ;;  %2281 = vmatpush.bf16.xpose.msra.mxu2 %v2235_v16  ;;  %v324_v32 = vshrl.u32 %v206_v11, 16 }
  0x3c   : > { %v547_v31 = vrot.slane %v546_v22, 4  ;;  %v327_v33 = vshll.u32 %v206_v11, 16  ;;  %v333_v34 = vshll.u32 %v207_v17, 16  ;;  %2294 = vmatpush.bf16.xpose.msra.mxu3 %v2259_v28  ;;  %v337_v38 = vshrl.u32 %v207_v17, 16  ;;  %v234_v22 = vld [vmem:[%s4153_s20 + $0x20] sm:$0x1] }
  0x3d   : > { %v2071_v35 = vpack.c.b16 %v2044_v26, %v2043_v25  ;;  %v557_v36 = vrot.slane %v556_v27, 4  ;;  %v343_v39 = vshll.u32 %v235_v23, 16  ;;  %v326_v43 = vrot.slane %v324_v32, 4 }
  0x3e   : > { %v552_v41 = vsel %vm4181_vm3, %v547_v31, %v551_v12  ;;  %v329_v44 = vrot.slane %v327_v33, 5  ;;  %v335_v45 = vrot.slane %v333_v34, 5  ;;  %v339_v50 = vrot.slane %v337_v38, 4 }
  0x3f   : > { %v4277_v47 = vsel %vm2083_vm0, %v2071_v35, 0  ;;  %v562_v48 = vsel %vm4181_vm3, %v557_v36, %v561_v15  ;;  %v2059_v49 = vunpack.c.l.b16 %v552_v41  ;;  %v345_v54 = vrot.slane %v343_v39, 5  ;;  %v205_v15 = vld [vmem:[%s4153_s20 + $0x1c] sm:$0xf]  ;;  %v220_v39 = vld [vmem:[%s4153_s20 + $0x78] sm:$0xf] }
  0x40   : > { %2138 = vmatpush.bf16.xpose.msra.mxu0 %v4277_v47  ;;  %v2060_v52 = vunpack.c.l.b16 %v562_v48  ;;  %v330_v53 = vor.u32 %v329_v44, %v326_v43  ;;  %v516_v56 = vshrl.u32 %v222_v42, 16  ;;  %v340_v58 = vor.u32 %v339_v50, %v335_v45 }
  0x41   : > { %v519_v59 = vshll.u32 %v222_v42, 16  ;;  %v525_v60 = vshll.u32 %v223_v46, 16  ;;  %v529_v61 = vshrl.u32 %v223_v46, 16  ;;  %v535_v2 = vshll.u32 %v243_v51, 16  ;;  %v242_v51 = vld [vmem:[%s4153_s20 + $0x80] sm:$0x1] }
  0x42   : > { %v2079_v62 = vpack.c.b16 %v2060_v52, %v2059_v49  ;;  %v331_v63 = vrot.slane %v330_v53, 4  ;;  %v518_v1 = vrot.slane %v516_v56, 4  ;;  %v341_v4 = vrot.slane %v340_v58, 4 }
  0x43   : > { %v521_v5 = vrot.slane %v519_v59, 5  ;;  %v527_v6 = vrot.slane %v525_v60, 5  ;;  %v531_v7 = vrot.slane %v529_v61, 4  ;;  %v537_v12 = vrot.slane %v535_v2, 5  ;;  %v3988_v61 = vld [vmem:[%s4153_s20] sm:$0xff] }
  0x44   : > { %v4287_v10 = vsel %vm2083_vm0, %v2079_v62, 0  ;;  %v336_v11 = vsel %vm4181_vm3, %v331_v63, %v335_v45  ;;  %v2232_v14 = vsel %vm2083_vm0, %v3989_v57, 0  ;;  %v346_v16 = vsel %vm4181_vm3, %v341_v4, %v345_v54  ;;  %v221_v45 = vld [vmem:[%s4153_s20 + $0x7c] sm:$0xf]  ;;  %v3996_v62 = vld [vmem:[%s4153_s20 + $0x60] sm:$0xff] }
  0x45   : > { %2151 = vmatpush.bf16.xpose.msra.mxu1 %v4287_v10  ;;  %v2041_v17 = vunpack.c.l.b16 %v336_v11  ;;  %v522_v20 = vor.u32 %v521_v5, %v518_v1  ;;  %v532_v21 = vor.u32 %v531_v7, %v527_v6  ;;  %2282 = vmatpush.bf16.xpose.msra.mxu2 %v2232_v14  ;;  %v2042_v23 = vunpack.c.l.b16 %v346_v16  ;;  %v3594_v4 = vld [vmem:[%s4153_s20 + $0x60] sm:$0xf]  ;;  %v3595_v11 = vld [vmem:[%s4153_s20 + $0x64] sm:$0xf] }
  0x46   : > { %v2256_v25 = vsel %vm2083_vm0, %v3997_v3, 0  ;;  %v300_v26 = vshrl.u32 %v204_v8, 16  ;;  %v303_v27 = vshll.u32 %v204_v8, 16  ;;  %v309_v32 = vshll.u32 %v205_v15, 16 }
  0x47   : > { %v523_v28 = vrot.slane %v522_v20, 4  ;;  %v533_v31 = vrot.slane %v532_v21, 4  ;;  %2295 = vmatpush.bf16.xpose.msra.mxu3 %v2256_v25  ;;  %v313_v33 = vshrl.u32 %v205_v15, 16  ;;  %v2070_v34 = vpack.c.b16 %v2042_v23, %v2041_v17  ;;  %v3619_v17 = vld [vmem:[%s4153_s20 + $0x68] sm:$0x1] }
  0x48   : > { %v302_v35 = vrot.slane %v300_v26, 4  ;;  %v305_v36 = vrot.slane %v303_v27, 5  ;;  %v319_v38 = vshll.u32 %v234_v22, 16  ;;  %v311_v43 = vrot.slane %v309_v32, 5 }
  0x49   : > { %v528_v42 = vsel %vm4181_vm3, %v523_v28, %v527_v6  ;;  %v538_v41 = vsel %vm4181_vm3, %v533_v31, %v537_v12  ;;  %v315_v44 = vrot.slane %v313_v33, 4  ;;  %v4305_v46 = vsel %vm2083_vm0, %v2070_v34, 0 }
  0x4a   : > { %v2057_v48 = vunpack.c.l.b16 %v528_v42  ;;  %v2058_v49 = vunpack.c.l.b16 %v538_v41  ;;  %v306_v50 = vor.u32 %v305_v36, %v302_v35  ;;  %2139 = vmatpush.bf16.xpose.msra.mxu0 %v4305_v46  ;;  %v321_v53 = vrot.slane %v319_v38, 5  ;;  %v3610_v35 = vld [vmem:[%s4153_s20 + $0xc0] sm:$0xf]  ;;  %v3611_v41 = vld [vmem:[%s4153_s20 + $0xc4] sm:$0xf] }
  0x4b   : > { %v316_v52 = vor.u32 %v315_v44, %v311_v43  ;;  %v492_v54 = vshrl.u32 %v220_v39, 16  ;;  %v495_v56 = vshll.u32 %v220_v39, 16  ;;  %v501_v59 = vshll.u32 %v221_v45, 16 }
  0x4c   : > { %v2078_v57 = vpack.c.b16 %v2058_v49, %v2057_v48  ;;  %v307_v58 = vrot.slane %v306_v50, 4  ;;  %v505_v60 = vshrl.u32 %v221_v45, 16  ;;  %v511_v3 = vshll.u32 %v242_v51, 16  ;;  %v3627_v49 = vld [vmem:[%s4153_s20 + $0xc8] sm:$0x1] }
  0x4d   : > { %v317_v63 = vrot.slane %v316_v52, 4  ;;  %v494_v1 = vrot.slane %v492_v54, 4  ;;  %v497_v2 = vrot.slane %v495_v56, 5  ;;  %v503_v7 = vrot.slane %v501_v59, 5  ;;  %v202_v59 = vld [vmem:[%s4153_s20 + $0xc] sm:$0xf] }
  0x4e   : > { %v4313_v5 = vsel %vm2083_vm0, %v2078_v57, 0  ;;  %v312_v6 = vsel %vm4181_vm3, %v307_v58, %v311_v43  ;;  %v507_v8 = vrot.slane %v505_v60, 4  ;;  %v513_v16 = vrot.slane %v511_v3, 5 }
  0x4f   : > { %2152 = vmatpush.bf16.xpose.msra.mxu1 %v4313_v5  ;;  %v322_v12 = vsel %vm4181_vm3, %v317_v63, %v321_v53  ;;  %v2039_v14 = vunpack.c.l.b16 %v312_v6  ;;  %v498_v15 = vor.u32 %v497_v2, %v494_v1  ;;  %v2229_v22 = vsel %vm2083_vm0, %v3988_v61, 0  ;;  %v203_v6 = vld [vmem:[%s4153_s20 + $0x10] sm:$0xf] }
  0x50   : > { %v2040_v20 = vunpack.c.l.b16 %v322_v12  ;;  %v508_v21 = vor.u32 %v507_v8, %v503_v7  ;;  %v2253_v23 = vsel %vm2083_vm0, %v3996_v62, 0  ;;  %2283 = vmatpush.bf16.xpose.msra.mxu2 %v2229_v22  ;;  %v1032_v26 = vshrl.u32 %v3594_v4, 16  ;;  %v233_v12 = vld [vmem:[%s4153_s20 + $0x14] sm:$0x1] }
  0x51   : > { %v499_v25 = vrot.slane %v498_v15, 4  ;;  %2296 = vmatpush.bf16.xpose.msra.mxu3 %v2253_v23  ;;  %v1035_v27 = vshll.u32 %v3594_v4, 16  ;;  %v1041_v28 = vshll.u32 %v3595_v11, 16  ;;  %v1045_v33 = vshrl.u32 %v3595_v11, 16 }
  0x52   : > { %v2069_v31 = vpack.c.b16 %v2040_v20, %v2039_v14  ;;  %v509_v32 = vrot.slane %v508_v21, 4  ;;  %v1051_v34 = vshll.u32 %v3619_v17, 16  ;;  %v1034_v38 = vrot.slane %v1032_v26, 4  ;;  %v218_v21 = vld [vmem:[%s4153_s20 + $0x6c] sm:$0xf] }
  0x53   : > { %v504_v36 = vsel %vm4181_vm3, %v499_v25, %v503_v7  ;;  %v1037_v39 = vrot.slane %v1035_v27, 5  ;;  %v1043_v42 = vrot.slane %v1041_v28, 5  ;;  %v1047_v48 = vrot.slane %v1045_v33, 4 }
  0x54   : > { %v4329_v43 = vsel %vm2083_vm0, %v2069_v31, 0  ;;  %v514_v44 = vsel %vm4181_vm3, %v509_v32, %v513_v16  ;;  %v2055_v45 = vunpack.c.l.b16 %v504_v36  ;;  %v1053_v52 = vrot.slane %v1051_v34, 5  ;;  %v219_v36 = vld [vmem:[%s4153_s20 + $0x70] sm:$0xf] }
  0x55   : > { %2140 = vmatpush.bf16.xpose.msra.mxu0 %v4329_v43  ;;  %v2056_v50 = vunpack.c.l.b16 %v514_v44  ;;  %v1038_v51 = vor.u32 %v1037_v39, %v1034_v38  ;;  %v1224_v53 = vshrl.u32 %v3610_v35, 16  ;;  %v1048_v54 = vor.u32 %v1047_v48, %v1043_v42 }
  0x56   : > { %v1227_v56 = vshll.u32 %v3610_v35, 16  ;;  %v1233_v57 = vshll.u32 %v3611_v41, 16  ;;  %v1237_v58 = vshrl.u32 %v3611_v41, 16  ;;  %v1243_v63 = vshll.u32 %v3627_v49, 16 }
  0x57   : > { %v2077_v60 = vpack.c.b16 %v2056_v50, %v2055_v45  ;;  %v1039_v61 = vrot.slane %v1038_v51, 4  ;;  %v1226_v62 = vrot.slane %v1224_v53, 4  ;;  %v1049_v1 = vrot.slane %v1048_v54, 4  ;;  %v241_v45 = vld [vmem:[%s4153_s20 + $0x74] sm:$0x1] }
  0x58   : > { %v1229_v2 = vrot.slane %v1227_v56, 5  ;;  %v1235_v3 = vrot.slane %v1233_v57, 5  ;;  %v1239_v4 = vrot.slane %v1237_v58, 4  ;;  %v1245_v11 = vrot.slane %v1243_v63, 5 }
  0x59   : > { %v4338_v7 = vsel %vm2083_vm0, %v2077_v60, 0  ;;  %v1044_v8 = vsel %vm4181_vm3, %v1039_v61, %v1043_v42  ;;  %v276_v14 = vshrl.u32 %v202_v59, 16  ;;  %v1054_v15 = vsel %vm4181_vm3, %v1049_v1, %v1053_v52  ;;  %v3592_v52 = vld [vmem:[%s4153_s20 + $0x54] sm:$0xf] }
  0x5a   : > { %2153 = vmatpush.bf16.xpose.msra.mxu1 %v4338_v7  ;;  %v2463_v16 = vunpack.c.l.b16 %v1044_v8  ;;  %v1230_v17 = vor.u32 %v1229_v2, %v1226_v62  ;;  %v1240_v20 = vor.u32 %v1239_v4, %v1235_v3  ;;  %v2464_v22 = vunpack.c.l.b16 %v1054_v15  ;;  %v3593_v62 = vld [vmem:[%s4153_s20 + $0x58] sm:$0xf]  ;;  %v3608_v4 = vld [vmem:[%s4153_s20 + $0xb4] sm:$0xf] }
  0x5b   : > { %v278_v23 = vrot.slane %v276_v14, 4  ;;  %v279_v25 = vshll.u32 %v202_v59, 16  ;;  %v285_v26 = vshll.u32 %v203_v6, 16  ;;  %v289_v31 = vshrl.u32 %v203_v6, 16  ;;  %v3618_v14 = vld [vmem:[%s4153_s20 + $0x5c] sm:$0x1] }
  0x5c   : > { %v1231_v27 = vrot.slane %v1230_v17, 4  ;;  %v1241_v28 = vrot.slane %v1240_v20, 4  ;;  %v295_v32 = vshll.u32 %v233_v12, 16  ;;  %v2488_v33 = vpack.c.b16 %v2464_v22, %v2463_v16 }
  0x5d   : > { %v281_v34 = vrot.slane %v279_v25, 5  ;;  %v287_v35 = vrot.slane %v285_v26, 5  ;;  %v468_v38 = vshrl.u32 %v218_v21, 16  ;;  %v291_v41 = vrot.slane %v289_v31, 4  ;;  %v3609_v31 = vld [vmem:[%s4153_s20 + $0xb8] sm:$0xf] }
  0x5e   : > { %v1236_v39 = vsel %vm4181_vm3, %v1231_v27, %v1235_v3  ;;  %v1246_v42 = vsel %vm4181_vm3, %v1241_v28, %v1245_v11  ;;  %v297_v44 = vrot.slane %v295_v32, 5  ;;  %v4354_v48 = vsel %vm2083_vm0, %v2488_v33, 0 }
  0x5f   : > { %v2479_v49 = vunpack.c.l.b16 %v1236_v39  ;;  %v2480_v50 = vunpack.c.l.b16 %v1246_v42  ;;  %v282_v51 = vor.u32 %v281_v34, %v278_v23  ;;  %2548 = vmatpush.bf16.xpose.msrb.mxu2 %v4354_v48  ;;  %v292_v53 = vor.u32 %v291_v41, %v287_v35 }
  0x60   : > { %v470_v54 = vrot.slane %v468_v38, 4  ;;  %v471_v56 = vshll.u32 %v218_v21, 16  ;;  %v477_v57 = vshll.u32 %v219_v36, 16  ;;  %v481_v60 = vshrl.u32 %v219_v36, 16  ;;  %v3626_v38 = vld [vmem:[%s4153_s20 + $0xbc] sm:$0x1] }
  0x61   : > { %v2496_v58 = vpack.c.b16 %v2480_v50, %v2479_v49  ;;  %v283_v59 = vrot.slane %v282_v51, 4  ;;  %v487_v61 = vshll.u32 %v241_v45, 16  ;;  %v293_v63 = vrot.slane %v292_v53, 4  ;;  %v200_v45 = vld [vmem:[%s4153_s20] sm:$0xf] }
  0x62   : > { %v473_v1 = vrot.slane %v471_v56, 5  ;;  %v479_v2 = vrot.slane %v477_v57, 5  ;;  %v1008_v3 = vshrl.u32 %v3592_v52, 16  ;;  %v483_v11 = vrot.slane %v481_v60, 4 }
  0x63   : > { %v4361_v6 = vsel %vm2083_vm0, %v2496_v58, 0  ;;  %v288_v8 = vsel %vm4181_vm3, %v283_v59, %v287_v35  ;;  %v489_v12 = vrot.slane %v487_v61, 5  ;;  %v298_v15 = vsel %vm4181_vm3, %v293_v63, %v297_v44  ;;  %v201_v61 = vld [vmem:[%s4153_s20 + $0x4] sm:$0xf] }
  0x64   : > { %2561 = vmatpush.bf16.xpose.msrb.mxu3 %v4361_v6  ;;  %v2037_v16 = vunpack.c.l.b16 %v288_v8  ;;  %v474_v17 = vor.u32 %v473_v1, %v470_v54  ;;  %v1010_v20 = vrot.slane %v1008_v3, 4  ;;  %v2038_v21 = vunpack.c.l.b16 %v298_v15  ;;  %v216_v8 = vld [vmem:[%s4153_s20 + $0x60] sm:$0xf]  ;;  %v232_v15 = vld [vmem:[%s4153_s20 + $0x8] sm:$0x1] }
  0x65   : > { %v484_v22 = vor.u32 %v483_v11, %v479_v2  ;;  %v1011_v23 = vshll.u32 %v3592_v52, 16  ;;  %v1017_v25 = vshll.u32 %v3593_v62, 16  ;;  %v1021_v27 = vshrl.u32 %v3593_v62, 16 }
  0x66   : > { %v475_v26 = vrot.slane %v474_v17, 4  ;;  %v1027_v28 = vshll.u32 %v3618_v14, 16  ;;  %v1200_v32 = vshrl.u32 %v3608_v4, 16  ;;  %v2068_v33 = vpack.c.b16 %v2038_v21, %v2037_v16 }
  0x67   : > { %v485_v34 = vrot.slane %v484_v22, 4  ;;  %v1013_v35 = vrot.slane %v1011_v23, 5  ;;  %v1019_v36 = vrot.slane %v1017_v25, 5  ;;  %v1023_v42 = vrot.slane %v1021_v27, 4 }
  0x68   : > { %v480_v39 = vsel %vm4181_vm3, %v475_v26, %v479_v2  ;;  %v1029_v41 = vrot.slane %v1027_v28, 5  ;;  %v1202_v44 = vrot.slane %v1200_v32, 4  ;;  %v4375_v49 = vsel %vm2083_vm0, %v2068_v33, 0 }
  0x69   : > { %v490_v50 = vsel %vm4181_vm3, %v485_v34, %v489_v12  ;;  %v2053_v51 = vunpack.c.l.b16 %v480_v39  ;;  %v1014_v52 = vor.u32 %v1013_v35, %v1010_v20  ;;  %2141 = vmatpush.bf16.xpose.msra.mxu0 %v4375_v49  ;;  %v1024_v54 = vor.u32 %v1023_v42, %v1019_v36  ;;  %v4011_v39 = vld [vmem:[%s4153_s20 + $0x60] sm:$0xff] }
  0x6a   : > { %v2054_v53 = vunpack.c.l.b16 %v490_v50  ;;  %v1203_v56 = vshll.u32 %v3608_v4, 16  ;;  %v1209_v57 = vshll.u32 %v3609_v31, 16  ;;  %v1213_v59 = vshrl.u32 %v3609_v31, 16  ;;  %v240_v50 = vld [vmem:[%s4153_s20 + $0x68] sm:$0x1] }
  0x6b   : > { %v1015_v58 = vrot.slane %v1014_v52, 4  ;;  %v1219_v60 = vshll.u32 %v3626_v38, 16  ;;  %v252_v62 = vshrl.u32 %v200_v45, 16  ;;  %v1025_v1 = vrot.slane %v1024_v54, 4  ;;  %v217_v38 = vld [vmem:[%s4153_s20 + $0x64] sm:$0xf] }
  0x6c   : > { %v2076_v63 = vpack.c.b16 %v2054_v53, %v2053_v51  ;;  %v1205_v2 = vrot.slane %v1203_v56, 5  ;;  %v1211_v3 = vrot.slane %v1209_v57, 5  ;;  %v1215_v12 = vrot.slane %v1213_v59, 4  ;;  %v4019_v56 = vld [vmem:[%s4153_s20 + $0xc0] sm:$0xff] }
  0x6d   : > { %v1020_v11 = vsel %vm4181_vm3, %v1015_v58, %v1019_v36  ;;  %v1221_v14 = vrot.slane %v1219_v60, 5  ;;  %v254_v16 = vrot.slane %v252_v62, 4  ;;  %v1030_v17 = vsel %vm4181_vm3, %v1025_v1, %v1029_v41 }
  0x6e   : > { %v4386_v4 = vsel %vm2083_vm0, %v2076_v63, 0  ;;  %v2461_v20 = vunpack.c.l.b16 %v1020_v11  ;;  %v1206_v21 = vor.u32 %v1205_v2, %v1202_v44  ;;  %v2462_v22 = vunpack.c.l.b16 %v1030_v17  ;;  %v3590_v2 = vld [vmem:[%s4153_s20 + $0x48] sm:$0xf] }
  0x6f   : > { %2154 = vmatpush.bf16.xpose.msra.mxu1 %v4386_v4  ;;  %v1216_v23 = vor.u32 %v1215_v12, %v1211_v3  ;;  %v255_v25 = vshll.u32 %v200_v45, 16  ;;  %v261_v26 = vshll.u32 %v201_v61, 16  ;;  %v265_v28 = vshrl.u32 %v201_v61, 16 }
  0x70   : > { %v1207_v27 = vrot.slane %v1206_v21, 4  ;;  %v271_v31 = vshll.u32 %v232_v15, 16  ;;  %v444_v32 = vshrl.u32 %v216_v8, 16  ;;  %v2487_v33 = vpack.c.b16 %v2462_v22, %v2461_v20  ;;  %v3591_v15 = vld [vmem:[%s4153_s20 + $0x4c] sm:$0xf] }
  0x71   : > { %v1217_v34 = vrot.slane %v1216_v23, 4  ;;  %v257_v35 = vrot.slane %v255_v25, 5  ;;  %v263_v36 = vrot.slane %v261_v26, 5  ;;  %v267_v41 = vrot.slane %v265_v28, 4  ;;  %v3617_v21 = vld [vmem:[%s4153_s20 + $0x50] sm:$0x1] }
  0x72   : > { %v1212_v42 = vsel %vm4181_vm3, %v1207_v27, %v1211_v3  ;;  %v273_v44 = vrot.slane %v271_v31, 5  ;;  %v446_v45 = vrot.slane %v444_v32, 4  ;;  %v4397_v51 = vsel %vm2083_vm0, %v2487_v33, 0 }
  0x73   : > { %v1222_v52 = vsel %vm4181_vm3, %v1217_v34, %v1221_v14  ;;  %v2477_v53 = vunpack.c.l.b16 %v1212_v42  ;;  %v258_v54 = vor.u32 %v257_v35, %v254_v16  ;;  %2549 = vmatpush.bf16.xpose.msrb.mxu2 %v4397_v51  ;;  %v268_v58 = vor.u32 %v267_v41, %v263_v36 }
  0x74   : > { %v2478_v57 = vunpack.c.l.b16 %v1222_v52  ;;  %v447_v59 = vshll.u32 %v216_v8, 16  ;;  %v453_v60 = vshll.u32 %v217_v38, 16  ;;  %v457_v62 = vshrl.u32 %v217_v38, 16  ;;  %v3606_v38 = vld [vmem:[%s4153_s20 + $0xa8] sm:$0xf] }
  0x75   : > { %v259_v61 = vrot.slane %v258_v54, 4  ;;  %v463_v63 = vshll.u32 %v240_v50, 16  ;;  %v4404_v1 = vsel %vm2083_vm0, %v4011_v39, 0  ;;  %v269_v11 = vrot.slane %v268_v58, 4 }
  0x76   : > { %5785 = vst [vmem:[#allocation2_spill] sm:$0xff] %v4404_v1  ;;  %v2495_v3 = vpack.c.b16 %v2478_v57, %v2477_v53  ;;  %v449_v12 = vrot.slane %v447_v59, 5  ;;  %v455_v14 = vrot.slane %v453_v60, 5  ;;  %v459_v17 = vrot.slane %v457_v62, 4 }
  0x77   : > { %v264_v16 = vsel %vm4181_vm3, %v259_v61, %v263_v36  ;;  %v465_v20 = vrot.slane %v463_v63, 5  ;;  %v4411_v8 = vsel %vm2083_vm0, %v4019_v56, 0  ;;  %v274_v23 = vsel %vm4181_vm3, %v269_v11, %v273_v44  ;;  %v3607_v44 = vld [vmem:[%s4153_s20 + $0xac] sm:$0xf]  ;;  %v3625_v56 = vld [vmem:[%s4153_s20 + $0xb0] sm:$0x1] }
  0x78   : > { %5786 = vst [vmem:[#allocation3_spill] sm:$0xff] %v4411_v8  ;;  %v4415_v22 = vsel %vm2083_vm0, %v2495_v3, 0  ;;  %v2035_v25 = vunpack.c.l.b16 %v264_v16  ;;  %v450_v26 = vor.u32 %v449_v12, %v446_v45  ;;  %v2036_v27 = vunpack.c.l.b16 %v274_v23  ;;  %v4018_v16 = vld [vmem:[%s4153_s20 + $0xb4] sm:$0xff] }
  0x79   : > { %2562 = vmatpush.bf16.xpose.msrb.mxu3 %v4415_v22  ;;  %v460_v28 = vor.u32 %v459_v17, %v455_v14  ;;  %v984_v31 = vshrl.u32 %v3590_v2, 16  ;;  %v987_v32 = vshll.u32 %v3590_v2, 16  ;;  %v993_v34 = vshll.u32 %v3591_v15, 16 }
  0x7a   : > { %v451_v33 = vrot.slane %v450_v26, 4  ;;  %v997_v35 = vshrl.u32 %v3591_v15, 16  ;;  %v1003_v36 = vshll.u32 %v3617_v21, 16  ;;  %v2067_v39 = vpack.c.b16 %v2036_v27, %v2035_v25  ;;  %v4010_v15 = vld [vmem:[%s4153_s20 + $0x54] sm:$0xff]  ;;  %v3588_v25 = vld [vmem:[%s4153_s20 + $0x3c] sm:$0xf] }
  0x7b   : > { %v461_v42 = vrot.slane %v460_v28, 4  ;;  %v986_v41 = vrot.slane %v984_v31, 4  ;;  %v989_v50 = vrot.slane %v987_v32, 5  ;;  %v995_v52 = vrot.slane %v993_v34, 5  ;;  %v3589_v32 = vld [vmem:[%s4153_s20 + $0x40] sm:$0xf] }
  0x7c   : > { %v456_v45 = vsel %vm4181_vm3, %v451_v33, %v455_v14  ;;  %v999_v53 = vrot.slane %v997_v35, 4  ;;  %v1005_v54 = vrot.slane %v1003_v36, 5  ;;  %v4426_v57 = vsel %vm2083_vm0, %v2067_v39, 0 }
  0x7d   : > { %v466_v58 = vsel %vm4181_vm3, %v461_v42, %v465_v20  ;;  %v2051_v59 = vunpack.c.l.b16 %v456_v45  ;;  %v990_v60 = vor.u32 %v989_v50, %v986_v41  ;;  %2142 = vmatpush.bf16.xpose.msra.mxu0 %v4426_v57  ;;  %v1176_v63 = vshrl.u32 %v3606_v38, 16 }
  0x7e   : > { %v2052_v61 = vunpack.c.l.b16 %v466_v58  ;;  %v1000_v62 = vor.u32 %v999_v53, %v995_v52  ;;  %v1179_v2 = vshll.u32 %v3606_v38, 16  ;;  %v1185_v11 = vshll.u32 %v3607_v44, 16  ;;  %v3616_v38 = vld [vmem:[%s4153_s20 + $0x44] sm:$0x1] }
  0x7f   : > { %v991_v3 = vrot.slane %v990_v60, 4  ;;  %v1189_v12 = vshrl.u32 %v3607_v44, 16  ;;  %v1195_v14 = vshll.u32 %v3625_v56, 16  ;;  %v1178_v21 = vrot.slane %v1176_v63, 4  ;;  %v3604_v60 = vld [vmem:[%s4153_s20 + $0x9c] sm:$0xf] }
  0x80   : > { %v2075_v17 = vpack.c.b16 %v2052_v61, %v2051_v59  ;;  %v1001_v20 = vrot.slane %v1000_v62, 4  ;;  %v1181_v23 = vrot.slane %v1179_v2, 5  ;;  %v1187_v27 = vrot.slane %v1185_v11, 5 }
  0x81   : > { %v996_v26 = vsel %vm4181_vm3, %v991_v3, %v995_v52  ;;  %v1191_v28 = vrot.slane %v1189_v12, 4  ;;  %v1197_v31 = vrot.slane %v1195_v14, 5  ;;  %v4446_v41 = vsel %vm2083_vm0, %v4010_v15, 0  ;;  %v3605_v3 = vld [vmem:[%s4153_s20 + $0xa0] sm:$0xf] }
  0x82   : > { %v4439_v33 = vsel %vm2083_vm0, %v2075_v17, 0  ;;  %v1006_v34 = vsel %vm4181_vm3, %v1001_v20, %v1005_v54  ;;  %v2459_v35 = vunpack.c.l.b16 %v996_v26  ;;  %v1182_v36 = vor.u32 %v1181_v23, %v1178_v21  ;;  %5787 = vst [vmem:[#allocation4_spill] sm:$0xff] %v4446_v41 }
  0x83   : > { %2155 = vmatpush.bf16.xpose.msra.mxu1 %v4439_v33  ;;  %v2460_v39 = vunpack.c.l.b16 %v1006_v34  ;;  %v1192_v42 = vor.u32 %v1191_v28, %v1187_v27  ;;  %v4449_v50 = vsel %vm2083_vm0, %v4018_v16, 0  ;;  %v960_v45 = vshrl.u32 %v3588_v25, 16  ;;  %v3624_v16 = vld [vmem:[%s4153_s20 + $0xa4] sm:$0x1] }
  0x84   : > { %5788 = vst [vmem:[#allocation5_spill] sm:$0xff] %v4449_v50  ;;  %v1183_v44 = vrot.slane %v1182_v36, 4  ;;  %v963_v52 = vshll.u32 %v3588_v25, 16  ;;  %v969_v53 = vshll.u32 %v3589_v32, 16  ;;  %v973_v58 = vshrl.u32 %v3589_v32, 16  ;;  %v4009_v25 = vld [vmem:[%s4153_s20 + $0x48] sm:$0xff] }
  0x85   : > { %2419 = vmatpush.bf16.xpose.msrb.mxu0 %v4404_v1  ;;  %v2486_v54 = vpack.c.b16 %v2460_v39, %v2459_v35  ;;  %v1193_v56 = vrot.slane %v1192_v42, 4  ;;  %v979_v59 = vshll.u32 %v3616_v38, 16  ;;  %v962_v62 = vrot.slane %v960_v45, 4  ;;  %v4017_v38 = vld [vmem:[%s4153_s20 + $0xa8] sm:$0xff] }
  0x86   : > { %v1188_v61 = vsel %vm4181_vm3, %v1183_v44, %v1187_v27  ;;  %v965_v63 = vrot.slane %v963_v52, 5  ;;  %v971_v2 = vrot.slane %v969_v53, 5  ;;  %v975_v15 = vrot.slane %v973_v58, 4  ;;  %v3586_v52 = vld [vmem:[%s4153_s20 + $0x30] sm:$0xf] }
  0x87   : > { %v4457_v11 = vsel %vm2083_vm0, %v2486_v54, 0  ;;  %v1198_v12 = vsel %vm4181_vm3, %v1193_v56, %v1197_v31  ;;  %v2475_v14 = vunpack.c.l.b16 %v1188_v61  ;;  %v981_v21 = vrot.slane %v979_v59, 5  ;;  %v3587_v59 = vld [vmem:[%s4153_s20 + $0x34] sm:$0xf]  ;;  %v4004_v1 = vld [vmem:[%s4153_s20 + $0xc] sm:$0xff] }
  0x88   : > { %2550 = vmatpush.bf16.xpose.msrb.mxu2 %v4457_v11  ;;  %v2476_v17 = vunpack.c.l.b16 %v1198_v12  ;;  %v966_v20 = vor.u32 %v965_v63, %v962_v62  ;;  %v1152_v23 = vshrl.u32 %v3604_v60, 16  ;;  %v976_v26 = vor.u32 %v975_v15, %v971_v2 }
  0x89   : > { %v1155_v27 = vshll.u32 %v3604_v60, 16  ;;  %v1161_v28 = vshll.u32 %v3605_v3, 16  ;;  %v1165_v32 = vshrl.u32 %v3605_v3, 16  ;;  %v1171_v36 = vshll.u32 %v3624_v16, 16  ;;  %v3615_v3 = vld [vmem:[%s4153_s20 + $0x38] sm:$0x1] }
  0x8a   : > { %v2494_v31 = vpack.c.b16 %v2476_v17, %v2475_v14  ;;  %v967_v34 = vrot.slane %v966_v20, 4  ;;  %v1154_v35 = vrot.slane %v1152_v23, 4  ;;  %v977_v39 = vrot.slane %v976_v26, 4 }
  0x8b   : > { %2432 = vmatpush.bf16.xpose.msrb.mxu1 %v4411_v8  ;;  %v1157_v42 = vrot.slane %v1155_v27, 5  ;;  %v1163_v44 = vrot.slane %v1161_v28, 5  ;;  %v1167_v45 = vrot.slane %v1165_v32, 4  ;;  %v1173_v56 = vrot.slane %v1171_v36, 5  ;;  %v3602_v28 = vld [vmem:[%s4153_s20 + $0x90] sm:$0xf] }
  0x8c   : > { %v4468_v53 = vsel %vm2083_vm0, %v2494_v31, 0  ;;  %v972_v54 = vsel %vm4181_vm3, %v967_v34, %v971_v2  ;;  %v4474_v58 = vsel %vm2083_vm0, %v4009_v25, 0  ;;  %v982_v60 = vsel %vm4181_vm3, %v977_v39, %v981_v21  ;;  %v3603_v36 = vld [vmem:[%s4153_s20 + $0x94] sm:$0xf]  ;;  %v4013_v8 = vld [vmem:[%s4153_s20 + $0x78] sm:$0xff] }
  0x8d   : > { %2420 = vmatpush.bf16.xpose.msrb.mxu0 %v4446_v41  ;;  %5789 = vst [vmem:[#allocation6_spill] sm:$0xff] %v4474_v58  ;;  %2563 = vmatpush.bf16.xpose.msrb.mxu3 %v4468_v53  ;;  %v2457_v61 = vunpack.c.l.b16 %v972_v54  ;;  %v1158_v62 = vor.u32 %v1157_v42, %v1154_v35  ;;  %v1168_v63 = vor.u32 %v1167_v45, %v1163_v44  ;;  %v2458_v12 = vunpack.c.l.b16 %v982_v60 }
  0x8e   : > { %v4482_v14 = vsel %vm2083_vm0, %v4017_v38, 0  ;;  %v936_v2 = vshrl.u32 %v3586_v52, 16  ;;  %v939_v15 = vshll.u32 %v3586_v52, 16  ;;  %v945_v20 = vshll.u32 %v3587_v59, 16  ;;  %v3623_v52 = vld [vmem:[%s4153_s20 + $0x98] sm:$0x1] }
  0x8f   : > { %5790 = vst [vmem:[#allocation7_spill] sm:$0xff] %v4482_v14  ;;  %v1159_v16 = vrot.slane %v1158_v62, 4  ;;  %v1169_v17 = vrot.slane %v1168_v63, 4  ;;  %v949_v23 = vshrl.u32 %v3587_v59, 16  ;;  %v2485_v21 = vpack.c.b16 %v2458_v12, %v2457_v61  ;;  %v4016_v12 = vld [vmem:[%s4153_s20 + $0x9c] sm:$0xff] }
  0x90   : > { %v938_v25 = vrot.slane %v936_v2, 4  ;;  %v941_v26 = vrot.slane %v939_v15, 5  ;;  %v955_v27 = vshll.u32 %v3615_v3, 16  ;;  %v947_v34 = vrot.slane %v945_v20, 5  ;;  %v4008_v3 = vld [vmem:[%s4153_s20 + $0x3c] sm:$0xff] }
  0x91   : > { %v1164_v32 = vsel %vm4181_vm3, %v1159_v16, %v1163_v44  ;;  %v1174_v31 = vsel %vm4181_vm3, %v1169_v17, %v1173_v56  ;;  %v951_v35 = vrot.slane %v949_v23, 4  ;;  %v4492_v38 = vsel %vm2083_vm0, %v2485_v21, 0  ;;  %v3584_v20 = vld [vmem:[%s4153_s20 + $0x24] sm:$0xf] }
  0x92   : > { %v2473_v39 = vunpack.c.l.b16 %v1164_v32  ;;  %v2474_v42 = vunpack.c.l.b16 %v1174_v31  ;;  %v942_v45 = vor.u32 %v941_v26, %v938_v25  ;;  %2551 = vmatpush.bf16.xpose.msrb.mxu2 %v4492_v38  ;;  %v957_v44 = vrot.slane %v955_v27, 5  ;;  %v3585_v27 = vld [vmem:[%s4153_s20 + $0x28] sm:$0xf] }
  0x93   : > { %2433 = vmatpush.bf16.xpose.msrb.mxu1 %v4449_v50  ;;  %v952_v54 = vor.u32 %v951_v35, %v947_v34  ;;  %v1128_v59 = vshrl.u32 %v3602_v28, 16  ;;  %v1131_v60 = vshll.u32 %v3602_v28, 16  ;;  %v1137_v62 = vshll.u32 %v3603_v36, 16 }
  0x94   : > { %v2493_v56 = vpack.c.b16 %v2474_v42, %v2473_v39  ;;  %v943_v61 = vrot.slane %v942_v45, 4  ;;  %v1141_v63 = vshrl.u32 %v3603_v36, 16  ;;  %v1147_v17 = vshll.u32 %v3623_v52, 16  ;;  %v3614_v36 = vld [vmem:[%s4153_s20 + $0x2c] sm:$0x1] }
  0x95   : > { %2421 = vmatpush.bf16.xpose.msrb.mxu0 %v4474_v58  ;;  %v953_v2 = vrot.slane %v952_v54, 4  ;;  %v1130_v15 = vrot.slane %v1128_v59, 4  ;;  %v1133_v16 = vrot.slane %v1131_v60, 5  ;;  %v1139_v25 = vrot.slane %v1137_v62, 5  ;;  %v2032_v39 = vld [vmem:[%s5720_s1] sm:$0xf] }
  0x96   : > { %v4501_v23 = vsel %vm2083_vm0, %v2493_v56, 0  ;;  %v948_v21 = vsel %vm4181_vm3, %v943_v61, %v947_v34  ;;  %v1143_v26 = vrot.slane %v1141_v63, 4  ;;  %v1149_v35 = vrot.slane %v1147_v17, 5  ;;  %3807 = vmatmul.msk.bf16.vlgmr.msra.gmra.mxu2 %vm2083_vm0, %v2032_v39  ;;  %3808 = vmatmul.msk.bf16.vlgmr.msra.gmra.mxu3 %vm2083_vm0, %v2032_v39  ;;  %v4526_v17 = vld [vmem:[%s4153_s20 + $0x88] sm:$0xf]  ;;  %v4007_v39 = vld [vmem:[%s4153_s20 + $0x30] sm:$0xff] }
  0x97   : > { %2564 = vmatpush.bf16.xpose.msrb.mxu3 %v4501_v23  ;;  %v958_v28 = vsel %vm4181_vm3, %v953_v2, %v957_v44  ;;  %v2455_v32 = vunpack.c.l.b16 %v948_v21  ;;  %v1134_v31 = vor.u32 %v1133_v16, %v1130_v15  ;;  %v4514_v34 = vsel %vm2083_vm0, %v4008_v3, 0  ;;  %v3600_v3 = vld [vmem:[%s4153_s20 + $0x84] sm:$0xf] }
  0x98   : > { %v2456_v42 = vunpack.c.l.b16 %v958_v28  ;;  %v1144_v45 = vor.u32 %v1143_v26, %v1139_v25  ;;  %5791 = vst [vmem:[#allocation8_spill] sm:$0xff] %v4514_v34  ;;  %v4517_v52 = vsel %vm2083_vm0, %v4016_v12, 0  ;;  %v912_v44 = vshrl.u32 %v3584_v20, 16  ;;  %v3622_v28 = vld [vmem:[%s4153_s20 + $0x8c] sm:$0x1] }
  0x99   : > { %5792 = vst [vmem:[#allocation9_spill] sm:$0xff] %v4517_v52  ;;  %v1135_v54 = vrot.slane %v1134_v31, 4  ;;  %v915_v59 = vshll.u32 %v3584_v20, 16  ;;  %v921_v60 = vshll.u32 %v3585_v27, 16  ;;  %v925_v62 = vshrl.u32 %v3585_v27, 16 }
  0x9a   : > { %v2484_v56 = vpack.c.b16 %v2456_v42, %v2455_v32  ;;  %v1145_v61 = vrot.slane %v1144_v45, 4  ;;  %v931_v63 = vshll.u32 %v3614_v36, 16  ;;  %v914_v2 = vrot.slane %v912_v44, 4 }
  0x9b   : > { %2434 = vmatpush.bf16.xpose.msrb.mxu1 %v4482_v14  ;;  %v1140_v12 = vsel %vm4181_vm3, %v1135_v54, %v1139_v25  ;;  %v917_v15 = vrot.slane %v915_v59, 5  ;;  %v923_v16 = vrot.slane %v921_v60, 5  ;;  %v927_v27 = vrot.slane %v925_v62, 4 }
  0x9c   : > { %v4529_v21 = vsel %vm2083_vm0, %v2484_v56, 0  ;;  %v1150_v20 = vsel %vm4181_vm3, %v1145_v61, %v1149_v35  ;;  %v2471_v26 = vunpack.c.l.b16 %v1140_v12  ;;  %v933_v31 = vrot.slane %v931_v63, 5  ;;  %v4015_v61 = vld [vmem:[%s4153_s20 + $0x90] sm:$0xff] }
  0x9d   : > { %2422 = vmatpush.bf16.xpose.msrb.mxu0 %v4514_v34  ;;  %2552 = vmatpush.bf16.xpose.msrb.mxu2 %v4529_v21  ;;  %v2472_v25 = vunpack.c.l.b16 %v1150_v20  ;;  %v918_v32 = vor.u32 %v917_v15, %v914_v2  ;;  %v1104_v36 = vshrl.u32 %v3600_v3, 16  ;;  %v928_v42 = vor.u32 %v927_v27, %v923_v16  ;;  %v3582_v15 = vld [vmem:[%s4153_s20 + $0x18] sm:$0xf]  ;;  %v4604_v34 = vld [vmem:[%s4153_s20 + $0x14] sm:$0x1] }
  0x9e   : > { %v1107_v45 = vshll.u32 %v3600_v3, 16  ;;  %v1113_v54 = vshll.u32 %v4526_v17, 16  ;;  %v1117_v35 = vshrl.u32 %v4526_v17, 16  ;;  %v1123_v56 = vshll.u32 %v3622_v28, 16 }
  0x9f   : > { %v2492_v44 = vpack.c.b16 %v2472_v25, %v2471_v26  ;;  %v919_v59 = vrot.slane %v918_v32, 4  ;;  %v1106_v60 = vrot.slane %v1104_v36, 4  ;;  %v929_v62 = vrot.slane %v928_v42, 4  ;;  %v4550_v26 = vld [vmem:[%s4153_s20 + $0x1c] sm:$0xf] }
  0xa0   : > { %v1109_v12 = vrot.slane %v1107_v45, 5  ;;  %v1115_v2 = vrot.slane %v1113_v54, 5  ;;  %v1119_v63 = vrot.slane %v1117_v35, 4  ;;  %v1125_v27 = vrot.slane %v1123_v56, 5  ;;  %v4557_v42 = vld [vmem:[%s4153_s20 + $0x20] sm:$0x1] }
  0xa1   : > { %v4542_v20 = vsel %vm2083_vm0, %v2492_v44, 0  ;;  %v924_v3 = vsel %vm4181_vm3, %v919_v59, %v923_v16  ;;  %v4547_v40 = vsel %vm2083_vm0, %v4007_v39, 0  ;;  %v934_v28 = vsel %vm4181_vm3, %v929_v62, %v933_v31  ;;  %v3740_v16 = vld [vmem:[%s5720_s1 + $0x4] sm:$0xf] }
  0xa2   : > { %5793 = vst [vmem:[#allocation10_spill] sm:$0xff] %v4547_v40  ;;  %2565 = vmatpush.bf16.xpose.msrb.mxu3 %v4542_v20  ;;  %v2453_v25 = vunpack.c.l.b16 %v924_v3  ;;  %v1110_v32 = vor.u32 %v1109_v12, %v1106_v60  ;;  %v1120_v36 = vor.u32 %v1119_v63, %v1115_v2  ;;  %v2454_v39 = vunpack.c.l.b16 %v934_v28  ;;  %3741 = vmatmul.msk.bf16.vlgmr.msra.gmra.mxu0 %vm2083_vm0, %v3740_v16  ;;  %v3598_v63 = vld [vmem:[%s4153_s20 + $0x78] sm:$0xf] }
  0xa3   : > { %2435 = vmatpush.bf16.xpose.msrb.mxu1 %v4517_v52  ;;  %v4563_v45 = vsel %vm2083_vm0, %v4015_v61, 0  ;;  %v888_v54 = vshrl.u32 %v3582_v15, 16  ;;  %v891_v35 = vshll.u32 %v3582_v15, 16  ;;  %v897_v59 = vshll.u32 %v4550_v26, 16  ;;  %v3580_v52 = vld [vmem:[%s4153_s20 + $0xc] sm:$0xf] }
  0xa4   : > { %5794 = vst [vmem:[#allocation11_spill] sm:$0xff] %v4563_v45  ;;  %3742 = vmatmul.msk.bf16.vlgmr.msra.gmra.mxu1 %vm2083_vm0, %v3740_v16  ;;  %v1111_v31 = vrot.slane %v1110_v32, 4  ;;  %v1121_v44 = vrot.slane %v1120_v36, 4  ;;  %v901_v60 = vshrl.u32 %v4550_v26, 16  ;;  %v2483_v56 = vpack.c.b16 %v2454_v39, %v2453_v25  ;;  %v4577_v36 = vld [vmem:[%s4153_s20 + $0x7c] sm:$0xf] }
  0xa5   : > { %2423 = vmatpush.bf16.xpose.msrb.mxu0 %v4547_v40  ;;  %v890_v62 = vrot.slane %v888_v54, 4  ;;  %v893_v61 = vrot.slane %v891_v35, 5  ;;  %v907_v12 = vshll.u32 %v4557_v42, 16  ;;  %v899_v28 = vrot.slane %v897_v59, 5  ;;  %v4583_v35 = vld [vmem:[%s4153_s20 + $0x80] sm:$0x1] }
  0xa6   : > { %v1116_v15 = vsel %vm4181_vm3, %v1111_v31, %v1115_v2  ;;  %v1126_v3 = vsel %vm4181_vm3, %v1121_v44, %v1125_v27  ;;  %v903_v32 = vrot.slane %v901_v60, 4  ;;  %v4580_v16 = vsel %vm2083_vm0, %v2483_v56, 0 }
  0xa7   : > { %v2469_v25 = vunpack.c.l.b16 %v1116_v15  ;;  %v2470_v39 = vunpack.c.l.b16 %v1126_v3  ;;  %v894_v54 = vor.u32 %v893_v61, %v890_v62  ;;  %2553 = vmatpush.bf16.xpose.msrb.mxu2 %v4580_v16  ;;  %v909_v31 = vrot.slane %v907_v12, 5  ;;  %v4014_v15 = vld [vmem:[%s4153_s20 + $0x84] sm:$0xff] }
  0xa8   : > { %v904_v2 = vor.u32 %v903_v32, %v899_v28  ;;  %v1080_v27 = vshrl.u32 %v3598_v63, 16  ;;  %v1083_v44 = vshll.u32 %v3598_v63, 16  ;;  %v1089_v18 = vshll.u32 %v4577_v36, 16 }
  0xa9   : > { %v2491_v59 = vpack.c.b16 %v2470_v39, %v2469_v25  ;;  %v895_v60 = vrot.slane %v894_v54, 4  ;;  %v1093_v56 = vshrl.u32 %v4577_v36, 16  ;;  %v1099_v40 = vshll.u32 %v4583_v35, 16  ;;  %v4598_v39 = vld [vmem:[%s4153_s20 + $0x10] sm:$0xf] }
  0xaa   : > { %v905_v62 = vrot.slane %v904_v2, 4  ;;  %v1082_v61 = vrot.slane %v1080_v27, 4  ;;  %v1085_v3 = vrot.slane %v1083_v44, 5  ;;  %v1091_v32 = vrot.slane %v1089_v18, 5 }
  0xab   : > { %2436 = vmatpush.bf16.xpose.msrb.mxu1 %v4563_v45  ;;  %v4006_v45 = vld [vmem:[%s4153_s20 + $0x24] sm:$0xff]  ;;  %v4593_v12 = vsel %vm2083_vm0, %v2491_v59, 0  ;;  %v900_v63 = vsel %vm4181_vm3, %v895_v60, %v899_v28  ;;  %v1095_v25 = vrot.slane %v1093_v56, 4  ;;  %v1101_v44 = vrot.slane %v1099_v40, 5 }
  0xac   : > { %2566 = vmatpush.bf16.xpose.msrb.mxu3 %v4593_v12  ;;  %v910_v54 = vsel %vm4181_vm3, %v905_v62, %v909_v31  ;;  %v2451_v2 = vunpack.c.l.b16 %v900_v63  ;;  %v1086_v27 = vor.u32 %v1085_v3, %v1082_v61  ;;  %v4607_v58 = vsel %vm2083_vm0, %v4006_v45, 0  ;;  %v3596_v3 = vld [vmem:[%s4153_s20 + $0x6c] sm:$0xf] }
  0xad   : > { %v2452_v59 = vunpack.c.l.b16 %v910_v54  ;;  %v1096_v14 = vor.u32 %v1095_v25, %v1091_v32  ;;  %5795 = vst [vmem:[#allocation12_spill] sm:$0xff] %v4607_v58  ;;  %v4610_v18 = vsel %vm2083_vm0, %v4014_v15, 0  ;;  %2424 = vmatpush.bf16.xpose.msrb.mxu0 %v4607_v58  ;;  %v864_v31 = vshrl.u32 %v3580_v52, 16 }
  0xae   : > { %5796 = vst [vmem:[#allocation13_spill] sm:$0xff] %v4610_v18  ;;  %v1087_v28 = vrot.slane %v1086_v27, 4  ;;  %v867_v60 = vshll.u32 %v3580_v52, 16  ;;  %v873_v40 = vshll.u32 %v4598_v39, 16  ;;  %v877_v61 = vshrl.u32 %v4598_v39, 16 }
  0xaf   : > { %v2482_v56 = vpack.c.b16 %v2452_v59, %v2451_v2  ;;  %v1097_v62 = vrot.slane %v1096_v14, 4  ;;  %v883_v45 = vshll.u32 %v4604_v34, 16  ;;  %v866_v63 = vrot.slane %v864_v31, 4  ;;  %v4621_v27 = vld [vmem:[%s4153_s20 + $0x70] sm:$0xf] }
  0xb0   : > { %v1092_v15 = vsel %vm4181_vm3, %v1087_v28, %v1091_v32  ;;  %v869_v25 = vrot.slane %v867_v60, 5  ;;  %v875_v54 = vrot.slane %v873_v40, 5  ;;  %v879_v59 = vrot.slane %v877_v61, 4  ;;  %v4005_v40 = vld [vmem:[%s4153_s20 + $0x18] sm:$0xff] }
  0xb1   : > { %v4624_v52 = vsel %vm2083_vm0, %v2482_v56, 0  ;;  %v1102_v14 = vsel %vm4181_vm3, %v1097_v62, %v1101_v44  ;;  %v2467_v2 = vunpack.c.l.b16 %v1092_v15  ;;  %v885_v31 = vrot.slane %v883_v45, 5 }
  0xb2   : > { %5797 = vst [vmem:[#allocation14_spill] sm:$0xff] %v4624_v52  ;;  %2554 = vmatpush.bf16.xpose.msrb.mxu2 %v4624_v52  ;;  %v2468_v32 = vunpack.c.l.b16 %v1102_v14  ;;  %v870_v28 = vor.u32 %v869_v25, %v866_v63  ;;  %v1056_v60 = vshrl.u32 %v3596_v3, 16  ;;  %v880_v58 = vor.u32 %v879_v59, %v875_v54  ;;  %v4012_v52 = vld [vmem:[%s4153_s20 + $0x6c] sm:$0xff] }
  0xb3   : > { %2437 = vmatpush.bf16.xpose.msrb.mxu1 %v4610_v18  ;;  %v4629_v18 = vld [vmem:[%s4153_s20 + $0x74] sm:$0x1]  ;;  %v1059_v56 = vshll.u32 %v3596_v3, 16  ;;  %v1065_v50 = vshll.u32 %v4621_v27, 16  ;;  %v1069_v44 = vshrl.u32 %v4621_v27, 16 }
  0xb4   : > { %v2490_v62 = vpack.c.b16 %v2468_v32, %v2467_v2  ;;  %v871_v61 = vrot.slane %v870_v28, 4  ;;  %v1058_v15 = vrot.slane %v1056_v60, 4  ;;  %v1075_v41 = vshll.u32 %v4629_v18, 16 }
  0xb5   : > { %v881_v63 = vrot.slane %v880_v58, 4  ;;  %v1061_v45 = vrot.slane %v1059_v56, 5  ;;  %v1067_v25 = vrot.slane %v1065_v50, 5  ;;  %v1071_v14 = vrot.slane %v1069_v44, 4  ;;  %v642_v56 = vld [vmem:[%s4153_s20 + $0x54] sm:$0xe] }
  0xb6   : > { %v4640_v3 = vsel %vm2083_vm0, %v2490_v62, 0  ;;  %v876_v2 = vsel %vm4181_vm3, %v871_v61, %v875_v54  ;;  %v1077_v59 = vrot.slane %v1075_v41, 5  ;;  %v4645_v32 = vsel %vm2083_vm0, %v4005_v40, 0  ;;  %v650_v44 = vld [vmem:[%s4153_s20 + $0xb4] sm:$0xe] }
  0xb7   : > { %5798 = vst [vmem:[#allocation15_spill] sm:$0xff] %v4640_v3  ;;  %2567 = vmatpush.bf16.xpose.msrb.mxu3 %v4640_v3  ;;  %v886_v28 = vsel %vm4181_vm3, %v881_v63, %v885_v31  ;;  %v2449_v58 = vunpack.c.l.b16 %v876_v2  ;;  %v1062_v60 = vor.u32 %v1061_v45, %v1058_v15  ;;  %v1072_v50 = vor.u32 %v1071_v14, %v1067_v25  ;;  %v641_v31 = vld [vmem:[%s4153_s20 + $0x48] sm:$0xe] }
  0xb8   : > { %5799 = vst [vmem:[#allocation16_spill] sm:$0xff] %v4645_v32  ;;  %2425 = vmatpush.bf16.xpose.msrb.mxu0 %v4645_v32  ;;  %v2450_v62 = vunpack.c.l.b16 %v886_v28  ;;  %v4654_v54 = vsel %vm2083_vm0, %v4013_v8, 0  ;;  %v4657_v41 = vsel %vm2083_vm0, %v4004_v1, 0  ;;  %v4660_v40 = vsel %vm2083_vm0, %v4012_v52, 0  ;;  %v4047_v1 = vld [vmem:[%s4153_s20 + $0x58] sm:$0xf] }
  0xb9   : > { %5800 = vst [vmem:[#allocation17_spill] sm:$0xff] %v4654_v54  ;;  %v1063_v61 = vrot.slane %v1062_v60, 4  ;;  %v1073_v15 = vrot.slane %v1072_v50, 4  ;;  %v3571_v8 = vrot.slane %v642_v56, 9  ;;  %v753_v14 = vrot.slane %v4047_v1, 5 }
  0xba   : > { %5801 = vst [vmem:[#allocation18_spill] sm:$0xff] %v4657_v41  ;;  %v2481_v63 = vpack.c.b16 %v2450_v62, %v2449_v58  ;;  %v3579_v2 = vrot.slane %v650_v44, 9  ;;  %v4048_v60 = vld [vmem:[%s4153_s20 + $0xb8] sm:$0xf]  ;;  %v649_v44 = vld [vmem:[%s4153_s20 + $0xa8] sm:$0xe] }
  0xbb   : > { %5802 = vst [vmem:[#allocation19_spill] sm:$0xff] %v4660_v40  ;;  %2438 = vmatpush.bf16.xpose.msrb.mxu1 %v4654_v54  ;;  %v1068_v52 = vsel %vm4181_vm3, %v1063_v61, %v1067_v25  ;;  %v1078_v28 = vsel %vm4181_vm3, %v1073_v15, %v1077_v59  ;;  %v809_v50 = vrot.slane %v4048_v60, 5  ;;  %v3570_v54 = vrot.slane %v641_v31, 9  ;;  %v4049_v1 = vld [vmem:[%s4153_s20 + $0x4c] sm:$0xf] }
  0xbc   : > { %v4675_v58 = vsel %vm2083_vm0, %v2481_v63, 0  ;;  %v2465_v62 = vunpack.c.l.b16 %v1068_v52  ;;  %v2466_v32 = vunpack.c.l.b16 %v1078_v28  ;;  %v754_v56 = vsel %vm4664_vm6, %v3571_v8, %v753_v14  ;;  %v4050_v28 = vld [vmem:[%s4153_s20 + $0x50] sm:$0x1] }
  0xbd   : > { %5805 = vst [vmem:[#allocation20_spill] sm:$0xff] %v4675_v58  ;;  %2555 = vmatpush.bf16.xpose.msrb.mxu2 %v4675_v58  ;;  %v755_v25 = vrot.slane %v753_v14, 4  ;;  %v2594_v61 = vunpack.c.l.b16 %v754_v56  ;;  %v810_v59 = vsel %vm4664_vm6, %v3579_v2, %v809_v50  ;;  %v811_v15 = vrot.slane %v809_v50, 4 }
  0xbe   : > { %v2489_v31 = vpack.c.b16 %v2466_v32, %v2465_v62  ;;  %v2610_v63 = vunpack.c.l.b16 %v810_v59  ;;  %v746_v52 = vrot.slane %v4049_v1, 5  ;;  %v749_v60 = vrot.slane %v4050_v28, 5  ;;  %v640_v28 = vld [vmem:[%s4153_s20 + $0x3c] sm:$0xe] }
  0xbf   : > { %v5806_v8 = vrot.slane %v4165_v9, 5  ;;  %v5807_v56 = vrot.slane %v4173_v24, 5  ;;  %v3578_v2 = vrot.slane %v649_v44, 9  ;;  %v3876_v24 = vld [vmem:[%s5720_s1 + $0xc] sm:$0xf] }
  0xc0   : > { %2426 = vmatpush.bf16.xpose.msrb.mxu0 %v4657_v41  ;;  %v4697_v62 = vsel %vm2083_vm0, %v2489_v31, 0  ;;  %v747_v9 = vsel %vm4664_vm6, %v3570_v54, %v746_v52  ;;  %v748_v44 = vrot.slane %v746_v52, 4  ;;  %v3569_v52 = vrot.slane %v640_v28, 9 }
  0xc1   : > { %v757_v14 = vsel %vm4664_vm6, %v755_v25, %v5806_v8  ;;  %v813_v32 = vsel %vm4664_vm6, %v811_v15, %v5807_v56  ;;  %5808 = vst [vmem:[#allocation21_spill] sm:$0xff] %v4697_v62  ;;  %2568 = vmatpush.bf16.xpose.msrb.mxu3 %v4697_v62  ;;  %v2592_v25 = vunpack.c.l.b16 %v747_v9  ;;  %v4052_v56 = vld [vmem:[%s4153_s20 + $0xb0] sm:$0x1]  ;;  %v4053_v9 = vld [vmem:[%s4153_s20 + $0x40] sm:$0xf] }
  0xc2   : > { %v2595_v59 = vunpack.c.l.b16 %v757_v14  ;;  %v2611_v1 = vunpack.c.l.b16 %v813_v32  ;;  %v3809_v14 = vld [vmem:[%s5720_s1 + $0x8] sm:$0xf]  ;;  %v805_v32 = vrot.slane %v4052_v56, 5  ;;  %v739_v41 = vrot.slane %v4053_v9, 5  ;;  %v4055_v56 = vld [vmem:[%s4153_s20 + $0xa0] sm:$0xf] }
  0xc3   : > { %2439 = vmatpush.bf16.xpose.msrb.mxu1 %v4660_v40  ;;  %v750_v40 = vsel %vm4664_vm6, %v748_v44, %v749_v60  ;;  %v198_v60 = vld [vmem:[%s5721_s2] sm:$0xff] }
  0xc4   : > { %v2619_v54 = vpack.c.b16 %v2595_v59, %v2594_v61  ;;  %v2627_v8 = vpack.c.b16 %v2611_v1, %v2610_v63  ;;  %3877 = vmatmul.msk.bf16.vlgmr.msrb.gmra.mxu2 %vm2083_vm0, %v3876_v24  ;;  %v2593_v63 = vunpack.c.l.b16 %v750_v40  ;;  %v4113_v59 = vmov 0   ;;  %v4054_v40 = vld [vmem:[%s4153_s20 + $0x44] sm:$0x1] }
  0xc5   : > { %2708 = vmatpush.bf16.xpose.msra.mxu2 %v4203_v13  ;;  %v4051_v13 = vld [vmem:[%s4153_s20 + $0xac] sm:$0xf]  ;;  %4046 = vset.pattern.permute.xlu0 %v4113_v59  ;;  %v740_v28 = vsel %vm4664_vm6, %v3569_v52, %v739_v41  ;;  %v741_v44 = vrot.slane %v739_v41, 4  ;;  %v4056_v41 = vld [vmem:[%s4153_s20 + $0xa4] sm:$0x1] }
  0xc6   : > { %v802_v50 = vrot.slane %v4051_v13, 5  ;;  %v2677_v61 = vsel %vm2083_vm0, %v2627_v8, 0  ;;  %3458 = vperm.xlu0 %4046, %v198_v60   ;;  %v2590_v52 = vunpack.c.l.b16 %v740_v28 }
  0xc7   : > { %3874 = vmatmul.msk.bf16.vlgmr.msrb.gmra.mxu0 %vm2083_vm0, %v3809_v14 }
  0xc8   : > { %v803_v15 = vsel %vm4664_vm6, %v3578_v2, %v802_v50  ;;  %v804_v31 = vrot.slane %v802_v50, 4  ;;  %v648_v2 = vld [vmem:[%s4153_s20 + $0x9c] sm:$0xe]  ;;  %3878 = vmatmul.msk.bf16.vlgmr.msrb.gmra.mxu3 %vm2083_vm0, %v3876_v24 }
  0xc9   : > { %2721 = vmatpush.bf16.xpose.msra.mxu3 %v4209_v29  ;;  %v2608_v13 = vunpack.c.l.b16 %v803_v15  ;;  %v2653_v29 = vsel %vm2083_vm0, %v2619_v54, 0  ;;  %v742_v15 = vrot.slane %v4054_v40, 5  ;;  %v639_v54 = vld [vmem:[%s4153_s20 + $0x30] sm:$0xe]  ;;  %v3577_v8 = vrot.slane %v648_v2, 9 }
  0xca   : > { %v806_v50 = vsel %vm4664_vm6, %v804_v31, %v805_v32  ;;  %2679 = vmatpush.bf16.xpose.msra.mxu0 %v2653_v29  ;;  %v2618_v31 = vpack.c.b16 %v2593_v63, %v2592_v25  ;;  %v795_v32 = vrot.slane %v4055_v56, 5  ;;  %3875 = vmatmul.msk.bf16.vlgmr.msrb.gmra.mxu1 %vm2083_vm0, %v3809_v14  ;;  %v3568_v2 = vrot.slane %v639_v54, 9  ;;  %v4058_v14 = vld [vmem:[%s4153_s20 + $0x38] sm:$0x1] }
  0xcb   : > { %2692 = vmatpush.bf16.xpose.msra.mxu1 %v2677_v61  ;;  %v2609_v1 = vunpack.c.l.b16 %v806_v50  ;;  %v743_v29 = vsel %vm4664_vm6, %v741_v44, %v742_v15  ;;  %v798_v61 = vrot.slane %v4056_v41, 5  ;;  %v647_v50 = vld [vmem:[%s4153_s20 + $0x90] sm:$0xe]  ;;  %v735_v44 = vrot.slane %v4058_v14, 5  ;;  %v4059_v15 = vld [vmem:[%s4153_s20 + $0x94] sm:$0xf] }
  0xcc   : > { %v796_v25 = vsel %vm4664_vm6, %v3577_v8, %v795_v32  ;;  %v2650_v63 = vsel %vm2083_vm0, %v2618_v31, 0  ;;  %v3576_v40 = vrot.slane %v647_v50, 9  ;;  %v788_v8 = vrot.slane %v4059_v15, 5  ;;  %v4060_v31 = vld [vmem:[%s4153_s20 + $0x98] sm:$0x1] }
  0xcd   : > { %2709 = vmatpush.bf16.xpose.msra.mxu2 %v4226_v0  ;;  %v2626_v9 = vpack.c.b16 %v2609_v1, %v2608_v13  ;;  %v2591_v0 = vunpack.c.l.b16 %v743_v29  ;;  %v797_v13 = vrot.slane %v795_v32, 4  ;;  %v2606_v60 = vunpack.c.l.b16 %v796_v25  ;;  %v4057_v1 = vld [vmem:[%s4153_s20 + $0x34] sm:$0xf] }
  0xce   : > { %v732_v28 = vrot.slane %v4057_v1, 5  ;;  %v791_v32 = vrot.slane %v4060_v31, 5  ;;  %v790_v29 = vrot.slane %v788_v8, 4  ;;  %v646_v1 = vld [vmem:[%s4153_s20 + $0x84] sm:$0xe] }
  0xcf   : > { %v2674_v59 = vsel %vm2083_vm0, %v2626_v9, 0  ;;  %v799_v24 = vsel %vm4664_vm6, %v797_v13, %v798_v61  ;;  %v2617_v9 = vpack.c.b16 %v2591_v0, %v2590_v52  ;;  %v638_v61 = vld [vmem:[%s4153_s20 + $0x24] sm:$0xe]  ;;  %v789_v52 = vsel %vm4664_vm6, %v3576_v40, %v788_v8  ;;  %v4061_v0 = vld [vmem:[%s4153_s20 + $0x28] sm:$0xf] }
  0xd0   : > { %v2607_v54 = vunpack.c.l.b16 %v799_v24  ;;  %v734_v56 = vrot.slane %v732_v28, 4  ;;  %v733_v41 = vsel %vm4664_vm6, %v3568_v2, %v732_v28  ;;  %v725_v13 = vrot.slane %v4061_v0, 5  ;;  %v4062_v2 = vld [vmem:[%s4153_s20 + $0x88] sm:$0xf]  ;;  %v4063_v24 = vld [vmem:[%s4153_s20 + $0x2c] sm:$0x1] }
  0xd1   : > { %2722 = vmatpush.bf16.xpose.msra.mxu3 %v4239_v30  ;;  %v199_v30 = vld [vmem:[%s5722_s3] sm:$0xff]  ;;  %v2647_v28 = vsel %vm2083_vm0, %v2617_v9, 0  ;;  %v728_v14 = vrot.slane %v4063_v24, 5  ;;  %v2604_v15 = vunpack.c.l.b16 %v789_v52  ;;  %v3575_v8 = vrot.slane %v646_v1, 9  ;;  %v4066_v1 = vld [vmem:[%s4153_s20 + $0x7c] sm:$0xf] }
  0xd2   : > { %2680 = vmatpush.bf16.xpose.msra.mxu0 %v2650_v63  ;;  %v2625_v50 = vpack.c.b16 %v2607_v54, %v2606_v60  ;;  %v736_v25 = vsel %vm4664_vm6, %v734_v56, %v735_v44  ;;  %3465 = vperm.xlu0 %4046, %v199_v30   ;;  %v792_v63 = vsel %vm4664_vm6, %v790_v29, %v791_v32  ;;  %v727_v60 = vrot.slane %v725_v13, 4  ;;  %v4064_v32 = vld [vmem:[%s4153_s20 + $0x8c] sm:$0x1] }
  0xd3   : > { %2693 = vmatpush.bf16.xpose.msra.mxu1 %v2674_v59  ;;  %v781_v59 = vrot.slane %v4062_v2, 5  ;;  %v2588_v44 = vunpack.c.l.b16 %v733_v41  ;;  %v2589_v40 = vunpack.c.l.b16 %v736_v25  ;;  %v2605_v56 = vunpack.c.l.b16 %v792_v63 }
  0xd4   : > { %v2671_v54 = vsel %vm2083_vm0, %v2625_v50, 0  ;;  %v784_v9 = vrot.slane %v4064_v32, 5  ;;  %v729_v29 = vsel %vm4664_vm6, %v727_v60, %v728_v14  ;;  %v774_v63 = vrot.slane %v4066_v1, 5  ;;  %v4067_v14 = vld [vmem:[%s4153_s20 + $0x20] sm:$0x1] }
  0xd5   : > { %2710 = vmatpush.bf16.xpose.msra.mxu2 %v4252_v55  ;;  %v3567_v55 = vrot.slane %v638_v61, 9  ;;  %v783_v31 = vrot.slane %v781_v59, 4  ;;  %v782_v41 = vsel %vm4664_vm6, %v3575_v8, %v781_v59  ;;  %v4065_v61 = vld [vmem:[%s4153_s20 + $0x1c] sm:$0xf]  ;;  %v2616_v25 = vpack.c.b16 %v2589_v40, %v2588_v44  ;;  %v644_v1 = vld [vmem:[%s4153_s20 + $0x6c] sm:$0xe] }
  0xd6   : > { %v718_v50 = vrot.slane %v4065_v61, 5  ;;  %v2624_v52 = vpack.c.b16 %v2605_v56, %v2604_v15  ;;  %v721_v8 = vrot.slane %v4067_v14, 5  ;;  %v776_v40 = vrot.slane %v774_v63, 4  ;;  %v4068_v15 = vld [vmem:[%s4153_s20 + $0x80] sm:$0x1] }
  0xd7   : > { %v726_v30 = vsel %vm4664_vm6, %v3567_v55, %v725_v13  ;;  %v785_v0 = vsel %vm4664_vm6, %v783_v31, %v784_v9  ;;  %v645_v13 = vld [vmem:[%s4153_s20 + $0x78] sm:$0xe]  ;;  %v2602_v55 = vunpack.c.l.b16 %v782_v41  ;;  %v777_v56 = vrot.slane %v4068_v15, 5  ;;  %v4069_v61 = vld [vmem:[%s4153_s20 + $0x10] sm:$0xf] }
  0xd8   : > { %v2586_v2 = vunpack.c.l.b16 %v726_v30  ;;  %v2603_v59 = vunpack.c.l.b16 %v785_v0  ;;  %v720_v24 = vrot.slane %v718_v50, 4  ;;  %v2668_v44 = vsel %vm2083_vm0, %v2624_v52, 0  ;;  %v4073_v15 = vld [vmem:[%s4153_s20 + $0x74] sm:$0x1] }
  0xd9   : > { %2723 = vmatpush.bf16.xpose.msra.mxu3 %v4263_v19  ;;  %v637_v19 = vld [vmem:[%s4153_s20 + $0x18] sm:$0xe]  ;;  %v778_v41 = vsel %vm4664_vm6, %v776_v40, %v777_v56  ;;  %v770_v56 = vrot.slane %v4073_v15, 5 }
  0xda   : > { %2681 = vmatpush.bf16.xpose.msra.mxu0 %v2647_v28  ;;  %v2587_v28 = vunpack.c.l.b16 %v729_v29  ;;  %v3566_v60 = vrot.slane %v637_v19, 9  ;;  %v2623_v9 = vpack.c.b16 %v2603_v59, %v2602_v55  ;;  %v3635_v29 = vld [vmem:[%s4153_s20 + $0x60] sm:$0xe]  ;;  %v636_v19 = vld [vmem:[%s4153_s20 + $0xc] sm:$0xe] }
  0xdb   : > { %2694 = vmatpush.bf16.xpose.msra.mxu1 %v2671_v54  ;;  %v3574_v54 = vrot.slane %v645_v13, 9  ;;  %v4071_v55 = vld [vmem:[%s4153_s20 + $0x64] sm:$0xf]  ;;  %v3565_v14 = vrot.slane %v636_v19, 9 }
  0xdc   : > { %v2615_v31 = vpack.c.b16 %v2587_v28, %v2586_v2  ;;  %v719_v32 = vsel %vm4664_vm6, %v3566_v60, %v718_v50  ;;  %v711_v50 = vrot.slane %v4069_v61, 5  ;;  %v3651_v28 = vrot.slane %v3635_v29, 9  ;;  %v3643_v60 = vld [vmem:[%s4153_s20 + $0xc0] sm:$0xe]  ;;  %v4076_v61 = vld [vmem:[%s4153_s20 + $0xc8] sm:$0x1] }
  0xdd   : > { %2711 = vmatpush.bf16.xpose.msra.mxu2 %v4277_v47  ;;  %v2644_v47 = vsel %vm2083_vm0, %v2616_v25, 0  ;;  %v775_v30 = vsel %vm4664_vm6, %v3574_v54, %v774_v63  ;;  %v4070_v25 = vld [vmem:[%s4153_s20 + $0x70] sm:$0xf]  ;;  %v2584_v13 = vunpack.c.l.b16 %v719_v32  ;;  %v2665_v59 = vsel %vm2083_vm0, %v2623_v9, 0  ;;  %v4074_v32 = vld [vmem:[%s4153_s20 + $0xc4] sm:$0xf] }
  0xde   : > { %v767_v52 = vrot.slane %v4070_v25, 5  ;;  %v2641_v0 = vsel %vm2083_vm0, %v2615_v31, 0  ;;  %v2600_v63 = vunpack.c.l.b16 %v775_v30  ;;  %v3659_v31 = vrot.slane %v3643_v60, 9 }
  0xdf   : > { %v1421_v25 = vrot.slane %v4076_v61, 5 }
  0xe0   : > { %v769_v40 = vrot.slane %v767_v52, 4 }
  0xe1   : > { %2724 = vmatpush.bf16.xpose.msra.mxu3 %v4287_v10  ;;  %v722_v10 = vsel %vm4664_vm6, %v720_v24, %v721_v8  ;;  %v2601_v24 = vunpack.c.l.b16 %v778_v41  ;;  %v4072_v8 = vld [vmem:[%s4153_s20 + $0x14] sm:$0x1]  ;;  %v4075_v41 = vld [vmem:[%s4153_s20 + $0x68] sm:$0x1] }
  0xe2   : > { %2682 = vmatpush.bf16.xpose.msra.mxu0 %v2644_v47  ;;  %v2585_v2 = vunpack.c.l.b16 %v722_v10  ;;  %v714_v54 = vrot.slane %v4072_v8, 5  ;;  %v713_v47 = vrot.slane %v711_v50, 4  ;;  %v1418_v10 = vrot.slane %v4074_v32, 5  ;;  %v4079_v8 = vld [vmem:[%s4153_s20 + $0x64] sm:$0xf] }
  0xe3   : > { %2695 = vmatpush.bf16.xpose.msra.mxu1 %v2668_v44  ;;  %v3573_v44 = vrot.slane %v644_v1, 9  ;;  %v1365_v19 = vrot.slane %v4075_v41, 5  ;;  %v4080_v32 = vld [vmem:[%s4153_s20 + $0xb8] sm:$0xf]  ;;  %v3642_v41 = vld [vmem:[%s4153_s20 + $0xb4] sm:$0xe] }
  0xe4   : > { %v2614_v30 = vpack.c.b16 %v2585_v2, %v2584_v13  ;;  %v712_v13 = vsel %vm4664_vm6, %v3565_v14, %v711_v50  ;;  %v715_v1 = vsel %vm4664_vm6, %v713_v47, %v714_v54  ;;  %v643_v14 = vld [vmem:[%s4153_s20 + $0x60] sm:$0xe]  ;;  %v760_v54 = vrot.slane %v4079_v8, 5  ;;  %v4083_v8 = vld [vmem:[%s4153_s20 + $0x5c] sm:$0x1] }
  0xe5   : > { %2712 = vmatpush.bf16.xpose.msra.mxu2 %v4305_v46  ;;  %v1362_v46 = vrot.slane %v4071_v55, 5  ;;  %v768_v2 = vsel %vm4664_vm6, %v3573_v44, %v767_v52  ;;  %v635_v55 = vld [vmem:[%s4153_s20] sm:$0xe]  ;;  %v2582_v47 = vunpack.c.l.b16 %v712_v13  ;;  %v2583_v44 = vunpack.c.l.b16 %v715_v1  ;;  %v4082_v13 = vld [vmem:[%s4153_s20 + $0x68] sm:$0x1] }
  0xe6   : > { %v2638_v60 = vsel %vm2083_vm0, %v2614_v30, 0  ;;  %v3564_v30 = vrot.slane %v635_v55, 9  ;;  %v3572_v61 = vrot.slane %v643_v14, 9  ;;  %v763_v1 = vrot.slane %v4082_v13, 5 }
  0xe7   : > { %v4813_v9 = vsel %vm4664_vm6, %v3651_v28, %v1362_v46  ;;  %v1364_v29 = vrot.slane %v1362_v46, 4  ;;  %v4829_v28 = vsel %vm4664_vm6, %v3659_v31, %v1418_v10  ;;  %v4077_v46 = vld [vmem:[%s4153_s20 + $0x4] sm:$0xf]  ;;  %v2613_v55 = vpack.c.b16 %v2583_v44, %v2582_v47 }
  0xe8   : > { %v704_v50 = vrot.slane %v4077_v46, 5  ;;  %v762_v46 = vrot.slane %v760_v54, 4  ;;  %v2799_v14 = vunpack.c.l.b16 %v4829_v28 }
  0xe9   : > { %2725 = vmatpush.bf16.xpose.msra.mxu3 %v4313_v5  ;;  %v2622_v5 = vpack.c.b16 %v2601_v24, %v2600_v63  ;;  %v2783_v63 = vunpack.c.l.b16 %v4813_v9  ;;  %v1366_v52 = vsel %vm4664_vm6, %v1364_v29, %v1365_v19  ;;  %v4081_v9 = vld [vmem:[%s4153_s20 + $0x8] sm:$0x1] }
  0xea   : > { %2683 = vmatpush.bf16.xpose.msra.mxu0 %v2641_v0  ;;  %v771_v0 = vsel %vm4664_vm6, %v769_v40, %v770_v56  ;;  %v2598_v40 = vunpack.c.l.b16 %v768_v2  ;;  %v3634_v56 = vld [vmem:[%s4153_s20 + $0x54] sm:$0xe]  ;;  %v707_v29 = vrot.slane %v4081_v9, 5  ;;  %v706_v19 = vrot.slane %v704_v50, 4 }
  0xeb   : > { %2696 = vmatpush.bf16.xpose.msra.mxu1 %v2665_v59  ;;  %v4078_v59 = vld [vmem:[%s4153_s20 + $0x58] sm:$0xf]  ;;  %v2599_v15 = vunpack.c.l.b16 %v771_v0  ;;  %v2662_v31 = vsel %vm2083_vm0, %v2622_v5, 0  ;;  %v2784_v2 = vunpack.c.l.b16 %v1366_v52  ;;  %v3650_v0 = vrot.slane %v3634_v56, 9  ;;  %v4084_v52 = vld [vmem:[%s4153_s20 + $0xbc] sm:$0x1] }
  0xec   : > { %v1355_v24 = vrot.slane %v4078_v59, 5  ;;  %v3658_v9 = vrot.slane %v3642_v41, 9  ;;  %v1414_v56 = vrot.slane %v4084_v52, 5 }
  0xed   : > { %2713 = vmatpush.bf16.xpose.msra.mxu2 %v4329_v43  ;;  %v1420_v43 = vrot.slane %v1418_v10, 4  ;;  %v1411_v10 = vrot.slane %v4080_v32, 5  ;;  %v2621_v32 = vpack.c.b16 %v2599_v15, %v2598_v40  ;;  %v2635_v40 = vsel %vm2083_vm0, %v2613_v55, 0  ;;  %v3633_v15 = vld [vmem:[%s4153_s20 + $0x48] sm:$0xe] }
  0xee   : > { %v1357_v59 = vrot.slane %v1355_v24, 4  ;;  %v1356_v28 = vsel %vm4664_vm6, %v3650_v0, %v1355_v24  ;;  %v3649_v0 = vrot.slane %v3633_v15, 9  ;;  %v4087_v55 = vld [vmem:[%s4153_s20 + $0xac] sm:$0xf] }
  0xef   : > { %v1422_v5 = vsel %vm4664_vm6, %v1420_v43, %v1421_v25  ;;  %v1413_v13 = vrot.slane %v1411_v10, 4  ;;  %v761_v25 = vsel %vm4664_vm6, %v3572_v61, %v760_v54  ;;  %v2808_v43 = vpack.c.b16 %v2784_v2, %v2783_v63 }
  0xf0   : > { %v2800_v47 = vunpack.c.l.b16 %v1422_v5  ;;  %v2781_v24 = vunpack.c.l.b16 %v1356_v28  ;;  %v1412_v61 = vsel %vm4664_vm6, %v3658_v9, %v1411_v10  ;;  %v3641_v5 = vld [vmem:[%s4153_s20 + $0xa8] sm:$0xe]  ;;  %v4089_v28 = vld [vmem:[%s4153_s20 + $0xb0] sm:$0x1] }
  0xf1   : > { %2726 = vmatpush.bf16.xpose.msra.mxu3 %v4338_v7  ;;  %v1358_v7 = vrot.slane %v4083_v8, 5  ;;  %v705_v8 = vsel %vm4664_vm6, %v3564_v30, %v704_v50  ;;  %v2659_v50 = vsel %vm2083_vm0, %v2621_v32, 0  ;;  %v1404_v32 = vrot.slane %v4087_v55, 5  ;;  %v4092_v55 = vld [vmem:[%s4153_s20 + $0xa4] sm:$0x1] }
  0xf2   : > { %2684 = vmatpush.bf16.xpose.msra.mxu0 %v2638_v60  ;;  %v708_v60 = vsel %vm4664_vm6, %v706_v19, %v707_v29  ;;  %v2580_v54 = vunpack.c.l.b16 %v705_v8  ;;  %v2596_v29 = vunpack.c.l.b16 %v761_v25  ;;  %v2816_v2 = vpack.c.b16 %v2800_v47, %v2799_v14  ;;  %v3632_v25 = vld [vmem:[%s4153_s20 + $0x3c] sm:$0xe] }
  0xf3   : > { %2697 = vmatpush.bf16.xpose.msra.mxu1 %v2662_v31  ;;  %v1359_v44 = vsel %vm4664_vm6, %v1357_v59, %v1358_v7  ;;  %v4085_v31 = vld [vmem:[%s4153_s20 + $0x4c] sm:$0xf]  ;;  %v2581_v63 = vunpack.c.l.b16 %v708_v60  ;;  %v4086_v59 = vld [vmem:[%s4153_s20 + $0x50] sm:$0x1]  ;;  %v2797_v10 = vunpack.c.l.b16 %v1412_v61  ;;  %v3657_v60 = vrot.slane %v3641_v5, 9 }
  0xf4   : > { %v1348_v30 = vrot.slane %v4085_v31, 5  ;;  %v2782_v19 = vunpack.c.l.b16 %v1359_v44  ;;  %v1351_v7 = vrot.slane %v4086_v59, 5  ;;  %v1406_v47 = vrot.slane %v1404_v32, 4  ;;  %v4091_v61 = vld [vmem:[%s4153_s20 + $0x44] sm:$0x1] }
  0xf5   : > { %2714 = vmatpush.bf16.xpose.msra.mxu2 %v4375_v49  ;;  %v764_v49 = vsel %vm4664_vm6, %v762_v46, %v763_v1  ;;  %v1415_v46 = vsel %vm4664_vm6, %v1413_v13, %v1414_v56  ;;  %v4874_v1 = vsel %vm2083_vm0, %v2808_v43, 0  ;;  %v2612_v13 = vpack.c.b16 %v2581_v63, %v2580_v54  ;;  %v3640_v63 = vld [vmem:[%s4153_s20 + $0x9c] sm:$0xe] }
  0xf6   : > { %v2597_v41 = vunpack.c.l.b16 %v764_v49  ;;  %v2798_v9 = vunpack.c.l.b16 %v1415_v46  ;;  %v2807_v14 = vpack.c.b16 %v2782_v19, %v2781_v24  ;;  %v4882_v56 = vsel %vm2083_vm0, %v2816_v2, 0  ;;  %v4088_v49 = vld [vmem:[%s4153_s20 + $0x40] sm:$0xf] }
  0xf7   : > { %v1349_v8 = vsel %vm4664_vm6, %v3649_v0, %v1348_v30  ;;  %v1341_v43 = vrot.slane %v4088_v49, 5  ;;  %v1407_v44 = vrot.slane %v4089_v28, 5  ;;  %v3648_v54 = vrot.slane %v3632_v25, 9  ;;  %v4094_v28 = vld [vmem:[%s4153_s20 + $0x94] sm:$0xf] }
  0xf8   : > { %v2620_v52 = vpack.c.b16 %v2597_v41, %v2596_v29  ;;  %v4896_v31 = vsel %vm2083_vm0, %v2807_v14, 0  ;;  %v4090_v29 = vld [vmem:[%s4153_s20 + $0xa0] sm:$0xf]  ;;  %v1344_v46 = vrot.slane %v4091_v61, 5  ;;  %v4093_v14 = vld [vmem:[%s4153_s20 + $0x34] sm:$0xf] }
  0xf9   : > { %2727 = vmatpush.bf16.xpose.msra.mxu3 %v4386_v4  ;;  %v1350_v4 = vrot.slane %v1348_v30, 4  ;;  %v2779_v30 = vunpack.c.l.b16 %v1349_v8  ;;  %v1397_v41 = vrot.slane %v4090_v29, 5  ;;  %v1343_v19 = vrot.slane %v1341_v43, 4  ;;  %v4096_v61 = vld [vmem:[%s4153_s20 + $0x98] sm:$0x1] }
  0xfa   : > { %2685 = vmatpush.bf16.xpose.msra.mxu0 %v2635_v40  ;;  %v2815_v40 = vpack.c.b16 %v2798_v9, %v2797_v10  ;;  %v2656_v15 = vsel %vm2083_vm0, %v2620_v52, 0  ;;  %v1408_v2 = vsel %vm4664_vm6, %v1406_v47, %v1407_v44  ;;  %v3631_v52 = vld [vmem:[%s4153_s20 + $0x30] sm:$0xe]  ;;  %v1334_v8 = vrot.slane %v4093_v14, 5 }
  0xfb   : > { %2698 = vmatpush.bf16.xpose.msra.mxu1 %v2659_v50  ;;  %v2632_v50 = vsel %vm2083_vm0, %v2612_v13, 0  ;;  %v1399_v5 = vrot.slane %v1397_v41, 4  ;;  %v2796_v9 = vunpack.c.l.b16 %v1408_v2  ;;  %v1345_v13 = vsel %vm4664_vm6, %v1343_v19, %v1344_v46  ;;  %v3639_v47 = vld [vmem:[%s4153_s20 + $0x90] sm:$0xe] }
  0xfc   : > { %v4906_v0 = vsel %vm2083_vm0, %v2815_v40, 0  ;;  %v2778_v49 = vunpack.c.l.b16 %v1345_v13  ;;  %v1390_v44 = vrot.slane %v4094_v28, 5  ;;  %v1393_v46 = vrot.slane %v4096_v61, 5  ;;  %v3879_v14 = vld [vmem:[%s5720_s1 + $0x10] sm:$0xf] }
  0xfd   : > { %2715 = vmatpush.bf16.xpose.msra.mxu2 %v4426_v57  ;;  %v1352_v57 = vsel %vm4664_vm6, %v1350_v4, %v1351_v7  ;;  %v3656_v4 = vrot.slane %v3640_v63, 9  ;;  %v1342_v7 = vsel %vm4664_vm6, %v3648_v54, %v1341_v43 }
  0xfe   : > { %v2780_v24 = vunpack.c.l.b16 %v1352_v57  ;;  %v3647_v57 = vrot.slane %v3631_v52, 9  ;;  %v1392_v19 = vrot.slane %v1390_v44, 4 }
  0xff   : > { %v1398_v25 = vsel %vm4664_vm6, %v3656_v4, %v1397_v41  ;;  %v3655_v41 = vrot.slane %v3639_v47, 9 }
 0x100   : > { %v2806_v10 = vpack.c.b16 %v2780_v24, %v2779_v30  ;;  %v4095_v30 = vld [vmem:[%s4153_s20 + $0x38] sm:$0x1]  ;;  %v2793_v63 = vunpack.c.l.b16 %v1398_v25  ;;  %v1394_v52 = vsel %vm4664_vm6, %v1392_v19, %v1393_v46  ;;  %v4098_v25 = vld [vmem:[%s4153_s20 + $0x2c] sm:$0x1] }
 0x101   : > { %2728 = vmatpush.bf16.xpose.msra.mxu3 %v4439_v33  ;;  %v1405_v33 = vsel %vm4664_vm6, %v3657_v60, %v1404_v32  ;;  %v1400_v32 = vrot.slane %v4092_v55, 5  ;;  %v2777_v60 = vunpack.c.l.b16 %v1342_v7  ;;  %v1337_v54 = vrot.slane %v4095_v30, 5 }
 0x102   : > { %2686 = vmatpush.bf16.xpose.msra.mxu0 %v2632_v50  ;;  %v2795_v59 = vunpack.c.l.b16 %v1405_v33  ;;  %v4926_v40 = vsel %vm2083_vm0, %v2806_v10, 0  ;;  %v1335_v33 = vsel %vm4664_vm6, %v3647_v57, %v1334_v8  ;;  %v1391_v13 = vsel %vm4664_vm6, %v3655_v41, %v1390_v44 }
 0x103   : > { %2699 = vmatpush.bf16.xpose.msra.mxu1 %v2656_v15  ;;  %v1401_v43 = vsel %vm4664_vm6, %v1399_v5, %v1400_v32  ;;  %v1336_v15 = vrot.slane %v1334_v8, 4  ;;  %v2805_v24 = vpack.c.b16 %v2778_v49, %v2777_v60  ;;  %v3630_v5 = vld [vmem:[%s4153_s20 + $0x24] sm:$0xe]  ;;  %v2775_v32 = vunpack.c.l.b16 %v1335_v33 }
 0x104   : > { %v2814_v50 = vpack.c.b16 %v2796_v9, %v2795_v59  ;;  %v2794_v29 = vunpack.c.l.b16 %v1401_v43  ;;  %v4097_v59 = vld [vmem:[%s4153_s20 + $0x28] sm:$0xf]  ;;  %v3646_v8 = vrot.slane %v3630_v5, 9  ;;  %v1330_v49 = vrot.slane %v4098_v25, 5  ;;  %v3638_v43 = vld [vmem:[%s4153_s20 + $0x84] sm:$0xe]  ;;  %3883 = vmatmul.msk.bf16.vlgmr.msra.gmra.mxu2 %vm2083_vm0, %v3879_v14 }
 0x105   : > { %2868 = vmatpush.bf16.xpose.msrb.mxu2 %v4874_v1  ;;  %v1338_v4 = vsel %vm4664_vm6, %v1336_v15, %v1337_v54  ;;  %v1327_v7 = vrot.slane %v4097_v59, 5  ;;  %v4944_v10 = vsel %vm2083_vm0, %v2805_v24, 0  ;;  %v1383_v57 = vrot.slane %v4526_v17, 5  ;;  %v3629_v24 = vld [vmem:[%s4153_s20 + $0x18] sm:$0xe] }
 0x106   : > { %v4936_v2 = vsel %vm2083_vm0, %v2814_v50, 0  ;;  %v2813_v55 = vpack.c.b16 %v2794_v29, %v2793_v63  ;;  %v2776_v9 = vunpack.c.l.b16 %v1338_v4  ;;  %v2791_v47 = vunpack.c.l.b16 %v1391_v13  ;;  %v4099_v63 = vld [vmem:[%s4153_s20 + $0x8c] sm:$0x1] }
 0x107   : > { %v1329_v60 = vrot.slane %v1327_v7, 4  ;;  %v2792_v50 = vunpack.c.l.b16 %v1394_v52  ;;  %v3654_v15 = vrot.slane %v3638_v43, 9  ;;  %v1328_v17 = vsel %vm4664_vm6, %v3646_v8, %v1327_v7 }
 0x108   : > { %3884 = vmatmul.msk.bf16.vlgmr.msra.gmra.mxu3 %vm2083_vm0, %v3879_v14  ;;  %v4962_v28 = vsel %vm2083_vm0, %v2813_v55, 0  ;;  %v2804_v44 = vpack.c.b16 %v2776_v9, %v2775_v32  ;;  %v1385_v54 = vrot.slane %v1383_v57, 4  ;;  %v1386_v29 = vrot.slane %v4099_v63, 5  ;;  %v3637_v9 = vld [vmem:[%s4153_s20 + $0x78] sm:$0xe] }
 0x109   : > { %2881 = vmatpush.bf16.xpose.msrb.mxu3 %v4882_v56  ;;  %v1331_v30 = vsel %vm4664_vm6, %v1329_v60, %v1330_v49  ;;  %v1320_v41 = vrot.slane %v4550_v26, 5  ;;  %v2812_v33 = vpack.c.b16 %v2792_v50, %v2791_v47  ;;  %v2773_v19 = vunpack.c.l.b16 %v1328_v17  ;;  %v3880_v26 = vld [vmem:[%s5720_s1 + $0x14] sm:$0xf] }
 0x10a   : > { %2739 = vmatpush.bf16.xpose.msrb.mxu0 %v4354_v48  ;;  %v2774_v61 = vunpack.c.l.b16 %v1331_v30  ;;  %v4973_v46 = vsel %vm2083_vm0, %v2804_v44, 0  ;;  %v1384_v4 = vsel %vm4664_vm6, %v3654_v15, %v1383_v57  ;;  %v1387_v59 = vsel %vm4664_vm6, %v1385_v54, %v1386_v29  ;;  %3882 = vmatmul.msk.bf16.vlgmr.msra.gmra.mxu1 %vm2083_vm0, %v3880_v26  ;;  %v3628_v57 = vld [vmem:[%s4153_s20 + $0xc] sm:$0xe] }
 0x10b   : > { %2752 = vmatpush.bf16.xpose.msrb.mxu1 %v4361_v6  ;;  %v1376_v7 = vrot.slane %v4577_v36, 5  ;;  %v3645_v5 = vrot.slane %v3629_v24, 9  ;;  %v1322_v55 = vrot.slane %v1320_v41, 4  ;;  %v1323_v32 = vrot.slane %v4557_v42, 5  ;;  %3881 = vmatmul.msk.bf16.vlgmr.msra.gmra.mxu0 %vm2083_vm0, %v3880_v26 }
 0x10c   : > { %v2803_v36 = vpack.c.b16 %v2774_v61, %v2773_v19  ;;  %v2789_v13 = vunpack.c.l.b16 %v1384_v4  ;;  %v2790_v52 = vunpack.c.l.b16 %v1387_v59  ;;  %v4991_v14 = vsel %vm2083_vm0, %v2812_v33, 0 }
 0x10d   : > { %2869 = vmatpush.bf16.xpose.msrb.mxu2 %v4896_v31  ;;  %v3653_v8 = vrot.slane %v3637_v9, 9  ;;  %v1378_v42 = vrot.slane %v1376_v7, 4  ;;  %v1379_v60 = vrot.slane %v4583_v35, 5  ;;  %v1321_v25 = vsel %vm4664_vm6, %v3645_v5, %v1320_v41  ;;  %v3636_v41 = vld [vmem:[%s4153_s20 + $0x6c] sm:$0xe] }
 0x10e   : > { %v1324_v49 = vsel %vm4664_vm6, %v1322_v55, %v1323_v32  ;;  %v1313_v43 = vrot.slane %v4598_v39, 5  ;;  %v5002_v47 = vsel %vm2083_vm0, %v2803_v36, 0  ;;  %v2811_v44 = vpack.c.b16 %v2790_v52, %v2789_v13 }
 0x10f   : > { %5809 = vst [vmem:[#allocation22_spill] sm:$0xff] %v5002_v47  ;;  %v2771_v50 = vunpack.c.l.b16 %v1321_v25  ;;  %v2772_v15 = vunpack.c.l.b16 %v1324_v49  ;;  %v1377_v35 = vsel %vm4664_vm6, %v3653_v8, %v1376_v7  ;;  %v1380_v17 = vsel %vm4664_vm6, %v1378_v42, %v1379_v60 }
 0x110   : > { %v3644_v39 = vrot.slane %v3628_v57, 9  ;;  %v1315_v63 = vrot.slane %v1313_v43, 4  ;;  %v1316_v29 = vrot.slane %v4604_v34, 5  ;;  %v1369_v24 = vrot.slane %v4621_v27, 5 }
 0x111   : > { %2882 = vmatpush.bf16.xpose.msrb.mxu3 %v4906_v0  ;;  %v5019_v33 = vsel %vm2083_vm0, %v2811_v44, 0  ;;  %v2802_v19 = vpack.c.b16 %v2772_v15, %v2771_v50  ;;  %v2787_v61 = vunpack.c.l.b16 %v1377_v35  ;;  %v2788_v4 = vunpack.c.l.b16 %v1380_v17  ;;  %v5814_v35 = vld [vmem:[#allocation14_spill] sm:$0xff] }
 0x112   : > { %2740 = vmatpush.bf16.xpose.msrb.mxu0 %v4397_v51  ;;  %5810 = vst [vmem:[#allocation23_spill] sm:$0xff] %v5019_v33  ;;  %v3652_v59 = vrot.slane %v3636_v41, 9  ;;  %v1314_v34 = vsel %vm4664_vm6, %v3644_v39, %v1313_v43  ;;  %v1317_v27 = vsel %vm4664_vm6, %v1315_v63, %v1316_v29  ;;  %v1371_v5 = vrot.slane %v1369_v24, 4  ;;  %v5816_v39 = vld [vmem:[#allocation2_spill] sm:$0xff]  ;;  %v5817_v63 = vld [vmem:[#allocation3_spill] sm:$0xff]  ;;  %v5818_v41 = vld [vmem:[#allocation4_spill] sm:$0xff] }
 0x113   : > { %2753 = vmatpush.bf16.xpose.msrb.mxu1 %v4415_v22  ;;  %v1372_v55 = vrot.slane %v4629_v18, 5  ;;  %v5032_v32 = vsel %vm2083_vm0, %v2802_v19, 0  ;;  %v2810_v9 = vpack.c.b16 %v2788_v4, %v2787_v61  ;;  %v2769_v36 = vunpack.c.l.b16 %v1314_v34  ;;  %v3888_v29 = vld [vmem:[%s5720_s1 + $0x1c] sm:$0xf]  ;;  %v3674_v61 = vld [vmem:[%s4153_s20 + $0x6c] sm:$0xf] }
 0x114   : > { %5811 = vst [vmem:[#allocation24_spill] sm:$0xff] %v5032_v32  ;;  %v2770_v13 = vunpack.c.l.b16 %v1317_v27  ;;  %v1370_v42 = vsel %vm4664_vm6, %v3652_v59, %v1369_v24  ;;  %v3885_v24 = vld [vmem:[%s5720_s1 + $0x18] sm:$0xf]  ;;  %v3675_v4 = vld [vmem:[%s4153_s20 + $0x70] sm:$0xf]  ;;  %v1641_v27 = vshrl.u32 %v3674_v61, 16 }
 0x115   : > { %2870 = vmatpush.bf16.xpose.msrb.mxu2 %v4926_v40  ;;  %v1373_v60 = vsel %vm4664_vm6, %v1371_v5, %v1372_v55  ;;  %v5042_v18 = vsel %vm2083_vm0, %v2810_v9, 0  ;;  %v2785_v49 = vunpack.c.l.b16 %v1370_v42  ;;  %v5819_v19 = vld [vmem:[#allocation5_spill] sm:$0xff]  ;;  %v3690_v59 = vld [vmem:[%s4153_s20 + $0xcc] sm:$0xf]  ;;  %v1644_v5 = vshll.u32 %v3674_v61, 16 }
 0x116   : > { %5812 = vst [vmem:[#allocation25_spill] sm:$0xff] %v5042_v18  ;;  %v2801_v25 = vpack.c.b16 %v2770_v13, %v2769_v36  ;;  %v2786_v43 = vunpack.c.l.b16 %v1373_v60  ;;  %v1650_v55 = vshll.u32 %v3675_v4, 16  ;;  %v1654_v9 = vshrl.u32 %v3675_v4, 16  ;;  %v3691_v36 = vld [vmem:[%s4153_s20 + $0xd0] sm:$0xf]  ;;  %v5820_v13 = vld [vmem:[#allocation6_spill] sm:$0xff] }
 0x117   : > { %v1842_v42 = vshll.u32 %v3691_v36, 16  ;;  %v1846_v60 = vshrl.u32 %v3691_v36, 16 }
 0x118   : > { %v5046_v50 = vsel %vm2083_vm0, %v2801_v25, 0  ;;  %v2809_v15 = vpack.c.b16 %v2786_v43, %v2785_v49  ;;  %v1643_v25 = vrot.slane %v1641_v27, 4  ;;  %v1646_v49 = vrot.slane %v1644_v5, 5 }
 0x119   : > { %2883 = vmatpush.bf16.xpose.msrb.mxu3 %v4936_v2  ;;  %v5008_v30 = vpop.f32.mrf.mxu2  ;;  %v5010_v54 = vpop.f32.mrf.mxu3  ;;  %5813 = vst [vmem:[#allocation26_spill] sm:$0xff] %v5046_v50  ;;  %v1652_v43 = vrot.slane %v1650_v55, 5  ;;  %v1844_v4 = vrot.slane %v1842_v42, 5  ;;  %v1848_v55 = vrot.slane %v1846_v60, 4 }
 0x11a   : > { %2741 = vmatpush.bf16.xpose.msrb.mxu0 %v4457_v11  ;;  %v5052_v17 = vsel %vm2083_vm0, %v2809_v15, 0  ;;  %v3699_v15 = vld [vmem:[%s4153_s20 + $0x74] sm:$0x1] }
 0x11b   : > { %2754 = vmatpush.bf16.xpose.msrb.mxu1 %v4468_v53  ;;  %5815 = vst [vmem:[#allocation14_spill] sm:$0xff] %v5052_v17  ;;  %v1660_v61 = vshll.u32 %v3699_v15, 16  ;;  %v5822_v15 = vld [vmem:[#allocation8_spill] sm:$0xff] }
 0x11d   : > { %2871 = vmatpush.bf16.xpose.msrb.mxu2 %v4944_v10 }
 0x11f   : > { %v5021_v7 = vpop.f32.mrf.mxu0 }
 0x121   : > { %2884 = vmatpush.bf16.xpose.msrb.mxu3 %v4962_v28  ;;  %v5023_v26 = vpop.f32.mrf.mxu1  ;;  %v2287_v52 = vpop.f32.mrf.mxu2 }
 0x122   : > { %2742 = vmatpush.bf16.xpose.msrb.mxu0 %v4492_v38  ;;  %v2300_v8 = vpop.f32.mrf.mxu3  ;;  %v1833_v52 = vshrl.u32 %v3690_v59, 16 }
 0x123   : > { %2755 = vmatpush.bf16.xpose.msrb.mxu1 %v4501_v23  ;;  %v1836_v8 = vshll.u32 %v3690_v59, 16  ;;  %v5821_v59 = vld [vmem:[#allocation7_spill] sm:$0xff] }
 0x125   : > { %2872 = vmatpush.bf16.xpose.msrb.mxu2 %v4973_v46 }
 0x127   : > { %v2146_v57 = vpop.f32.mrf.mxu0 }
 0x128   : > { %v1656_v57 = vrot.slane %v1654_v9, 4 }
 0x129   : > { %2885 = vmatpush.bf16.xpose.msrb.mxu3 %v4991_v14  ;;  %v2159_v44 = vpop.f32.mrf.mxu1 }
 0x12a   : > { %2743 = vmatpush.bf16.xpose.msrb.mxu0 %v4529_v21  ;;  %v2286_v44 = vadd.f32 %v5008_v30, %v5021_v7  ;;  %v1662_v7 = vrot.slane %v1660_v61, 5 }
 0x12b   : > { %2756 = vmatpush.bf16.xpose.msrb.mxu1 %v4542_v20 }
 0x12d   : > { %2873 = vmatpush.bf16.xpose.msrb.mxu2 %v5002_v47 }
 0x131   : > { %2886 = vmatpush.bf16.xpose.msrb.mxu3 %v5019_v33 }
 0x132   : > { %2744 = vmatpush.bf16.xpose.msrb.mxu0 %v4580_v16 }
 0x133   : > { %2757 = vmatpush.bf16.xpose.msrb.mxu1 %v4593_v12 }
 0x135   : > { %2874 = vmatpush.bf16.xpose.msrb.mxu2 %v5032_v32 }
 0x138   : > { %v5078_v34 = vpop.permute.xlu0 %3458 }
 0x139   : > { %2887 = vmatpush.bf16.xpose.msrb.mxu3 %v5042_v18  ;;  %v3686_v18 = vld [vmem:[%s4153_s20 + $0xb4] sm:$0xf] }
 0x13a   : > { %2745 = vmatpush.bf16.xpose.msrb.mxu0 %v5814_v35 }
 0x13b   : > { %2758 = vmatpush.bf16.xpose.msrb.mxu1 %v4640_v3 }
 0x13d   : > { %2875 = vmatpush.bf16.xpose.msrb.mxu2 %v5046_v50 }
 0x141   : > { %2888 = vmatpush.bf16.xpose.msrb.mxu3 %v5052_v17 }
 0x142   : > { %2746 = vmatpush.bf16.xpose.msrb.mxu0 %v4675_v58 }
 0x143   : > { %2759 = vmatpush.bf16.xpose.msrb.mxu1 %v4697_v62 }
 0x144   : > { %3889 = vmatmul.msk.bf16.vlgmr.msrb.gmra.mxu2 %vm2083_vm0, %v3888_v29 }
 0x145   : > { %2932 = vmatpush.bf16.xpose.msra.mxu2 %v5816_v39  ;;  %v3707_v39 = vld [vmem:[%s4153_s20 + $0xd4] sm:$0x1] }
 0x146   : > { %v1852_v9 = vshll.u32 %v3707_v39, 16 }
 0x147   : > { %v2441_v36 = vpop.f32.mrf.mxu1  ;;  %v2557_v42 = vpop.f32.mrf.mxu2 }
 0x148   : > { %3890 = vmatmul.msk.bf16.vlgmr.msrb.gmra.mxu3 %vm2083_vm0, %v3888_v29  ;;  %v1838_v29 = vrot.slane %v1836_v8, 5  ;;  %v1849_v8 = vor.u32 %v1848_v55, %v1844_v4  ;;  %v5104_v55 = vld [vmem:[%s4153_s20 + $0x68] sm:$0x1] }
 0x149   : > { %2945 = vmatpush.bf16.xpose.msra.mxu3 %v5817_v63  ;;  %3886 = vmatmul.msk.bf16.vlgmr.msrb.gmra.mxu0 %vm2083_vm0, %v3885_v24  ;;  %v1835_v63 = vrot.slane %v1833_v52, 4  ;;  %v2299_v52 = vadd.f32 %v5010_v54, %v5023_v26  ;;  %v5095_v54 = vpop.permute.xlu0 %3465  ;;  %5823 = vst [vmem:[#allocation2_spill] sm:$0xff] %v5104_v55 }
 0x14a   : > { %2903 = vmatpush.bf16.xpose.msra.mxu0 %v4354_v48  ;;  %3887 = vmatmul.msk.bf16.vlgmr.msrb.gmra.mxu1 %vm2083_vm0, %v3885_v24  ;;  %v1647_v24 = vor.u32 %v1646_v49, %v1643_v25  ;;  %v3672_v25 = vld [vmem:[%s4153_s20 + $0x60] sm:$0xf] }
 0x14b   : > { %2916 = vmatpush.bf16.xpose.msra.mxu1 %v4361_v6  ;;  %v1839_v5 = vor.u32 %v1838_v29, %v1835_v63  ;;  %v1617_v60 = vshrl.u32 %v3672_v25, 16  ;;  %v2446_v39 = vadd.f32 %v2441_v36, %v2299_v52  ;;  %v1854_v29 = vrot.slane %v1852_v9, 5  ;;  %v2570_v36 = vpop.f32.mrf.mxu3 }
 0x14d   : > { %2933 = vmatpush.bf16.xpose.msra.mxu2 %v5818_v41  ;;  %v2428_v41 = vpop.f32.mrf.mxu0  ;;  %v1840_v49 = vrot.slane %v1839_v5, 4  ;;  %v1850_v5 = vrot.slane %v1849_v8, 4  ;;  %v5112_v8 = vld [vmem:[%s4153_s20 + $0xc4] sm:$0xf] }
 0x14e   : > { %v2445_v27 = vadd.f32 %v2428_v41, %v2286_v44  ;;  %v1620_v44 = vshll.u32 %v3672_v25, 16  ;;  %v3688_v41 = vld [vmem:[%s4153_s20 + $0xc0] sm:$0xf] }
 0x14f   : > { %v1845_v52 = vsel %vm4181_vm3, %v1840_v49, %v1844_v4  ;;  %v1809_v25 = vshrl.u32 %v3688_v41, 16 }
 0x150   : > { %v2574_v63 = vadd.f32 %v2557_v42, %v2445_v27  ;;  %v1622_v61 = vrot.slane %v1620_v44, 5 }
 0x151   : > { %2946 = vmatpush.bf16.xpose.msra.mxu3 %v5819_v19  ;;  %v1657_v19 = vor.u32 %v1656_v57, %v1652_v43  ;;  %v3673_v57 = vld [vmem:[%s4153_s20 + $0x64] sm:$0xf] }
 0x152   : > { %2904 = vmatpush.bf16.xpose.msra.mxu0 %v4397_v51  ;;  %v1626_v27 = vshll.u32 %v3673_v57, 16  ;;  %v1630_v9 = vshrl.u32 %v3673_v57, 16 }
 0x153   : > { %2917 = vmatpush.bf16.xpose.msra.mxu1 %v4415_v22  ;;  %v1658_v30 = vrot.slane %v1657_v19, 4  ;;  %v1619_v19 = vrot.slane %v1617_v60, 4  ;;  %v1636_v60 = vshll.u32 %v5104_v55, 16  ;;  %v2572_v32 = vpop.f32.mrf.mxu3  ;;  %v5828_v55 = vld [vmem:[#allocation11_spill] sm:$0xff] }
 0x154   : > { %v1628_v49 = vrot.slane %v1626_v27, 5  ;;  %v1632_v44 = vrot.slane %v1630_v9, 4  ;;  %v1812_v27 = vshll.u32 %v3688_v41, 16  ;;  %v1818_v9 = vshll.u32 %v5112_v8, 16 }
 0x155   : > { %2934 = vmatpush.bf16.xpose.msra.mxu2 %v5820_v13  ;;  %v1648_v13 = vrot.slane %v1647_v24, 4  ;;  %v1663_v24 = vsel %vm4181_vm3, %v1658_v30, %v1662_v7  ;;  %v2575_v30 = vadd.f32 %v2570_v36, %v2446_v39  ;;  %v1623_v42 = vor.u32 %v1622_v61, %v1619_v19  ;;  %v3670_v36 = vld [vmem:[%s4153_s20 + $0x54] sm:$0xf] }
 0x156   : > { %v3120_v4 = vunpack.c.l.b16 %v1663_v24  ;;  %v1855_v19 = vsel %vm4181_vm3, %v1850_v5, %v1854_v29  ;;  %v5122_v61 = vunpack.c.l.b16 %v1845_v52  ;;  %v1811_v24 = vrot.slane %v1809_v25, 4 }
 0x157   : > { %v1653_v26 = vsel %vm4181_vm3, %v1648_v13, %v1652_v43  ;;  %v2430_v43 = vpop.f32.mrf.mxu0  ;;  %v5824_v13 = vld [vmem:[#allocation9_spill] sm:$0xff]  ;;  %v3462_v39 = vmul.f32 %v5078_v34, %v2575_v30  ;;  %v1624_v5 = vrot.slane %v1623_v42, 4  ;;  %v1638_v52 = vrot.slane %v1636_v60, 5 }
 0x158   : > { %v3119_v57 = vunpack.c.l.b16 %v1653_v26  ;;  %v1633_v26 = vor.u32 %v1632_v44, %v1628_v49  ;;  %v2559_v43 = vpop.f32.mrf.mxu2  ;;  %v1822_v30 = vshrl.u32 %v5112_v8, 16  ;;  %v1814_v25 = vrot.slane %v1812_v27, 5 }
 0x159   : > { %2947 = vmatpush.bf16.xpose.msra.mxu3 %v5821_v59  ;;  %v3461_v59 = vmul.f32 %v5078_v34, %v2574_v63  ;;  %v3469_v29 = vadd.f32 %v5095_v54, %v3462_v39  ;;  %v1820_v41 = vrot.slane %v1818_v9, 5  ;;  %v1596_v50 = vshll.u32 %v3670_v36, 16  ;;  %v5144_v9 = vld [vmem:[%s4153_s20 + $0x5c] sm:$0x1] }
 0x15a   : > { %2905 = vmatpush.bf16.xpose.msra.mxu0 %v4457_v11  ;;  %v1634_v44 = vrot.slane %v1633_v26, 4  ;;  %v1824_v17 = vrot.slane %v1822_v30, 4  ;;  %v3144_v39 = vpack.c.b16 %v3120_v4, %v3119_v57  ;;  %v1815_v42 = vor.u32 %v1814_v25, %v1811_v24  ;;  %5829 = vst [vmem:[#allocation5_spill] sm:$0xff] %v5144_v9  ;;  %v5159_v30 = vld [vmem:[%s4153_s20 + $0xb8] sm:$0xf]  ;;  %v5831_v25 = vld [vmem:[#allocation12_spill] sm:$0xff] }
 0x15b   : > { %2918 = vmatpush.bf16.xpose.msra.mxu1 %v4468_v53  ;;  %v3468_v7 = vadd.f32 %v5095_v54, %v3461_v59  ;;  %v5125_v59 = vld [vmem:[%s4153_s20 + $0xc8] sm:$0x1]  ;;  %v3471_v43 = vmax.f32 %v3469_v29, 0.0  ;;  %v1598_v29 = vrot.slane %v1596_v50, 5  ;;  %v1785_v24 = vshrl.u32 %v3686_v18, 16  ;;  %5830 = vst [vmem:[#allocation6_spill] sm:$0xff] %v5159_v30 }
 0x15c   : > { %5825 = vst [vmem:[#allocation3_spill] sm:$0xff] %v5125_v59  ;;  %v1825_v26 = vor.u32 %v1824_v17, %v1820_v41  ;;  %v1816_v57 = vrot.slane %v1815_v42, 4  ;;  %v1639_v32 = vsel %vm4181_vm3, %v1634_v44, %v1638_v52  ;;  %v5163_v52 = vsel %vm2083_vm0, %v3144_v39, 0  ;;  %v4027_v42 = vld [vmem:[%s4153_s20 + $0x6c] sm:$0xff] }
 0x15d   : > { %2935 = vmatpush.bf16.xpose.msra.mxu2 %v5822_v15  ;;  %v2443_v15 = vpop.f32.mrf.mxu1  ;;  %v3470_v63 = vmax.f32 %v3468_v7, 0.0  ;;  %v5136_v7 = vld [vmem:[%s4153_s20 + $0x58] sm:$0xf]  ;;  %3473 = vst [vmem:[%s5117_s19 + $0x8] sm:$0xff] %v3471_v43  ;;  %v5169_v43 = vld [vmem:[%s4153_s20 + $0xbc] sm:$0x1] }
 0x15e   : > { %5827 = vst [vmem:[#allocation4_spill] sm:$0xff] %v5136_v7  ;;  %v1828_v15 = vshll.u32 %v5125_v59, 16  ;;  %v1602_v60 = vshll.u32 %v5136_v7, 16  ;;  %v1821_v50 = vsel %vm4181_vm3, %v1816_v57, %v1820_v41  ;;  %v1787_v57 = vrot.slane %v1785_v24, 4 }
 0x15f   : > { %3472 = vst [vmem:[%s5117_s19] sm:$0xff] %v3470_v63  ;;  %v3136_v63 = vunpack.c.l.b16 %v1855_v19  ;;  %v1606_v19 = vshrl.u32 %v5136_v7, 16  ;;  %v3133_v41 = vunpack.c.l.b16 %v1821_v50  ;;  %v1794_v39 = vshll.u32 %v5159_v30, 16 }
 0x160   : > { %v1830_v27 = vrot.slane %v1828_v15, 5  ;;  %v5148_v4 = vrot.slane %v1602_v60, 5  ;;  %5832 = vst [vmem:[#allocation7_spill] sm:$0xff] %v5163_v52 }
 0x161   : > { %2948 = vmatpush.bf16.xpose.msra.mxu3 %v5824_v13  ;;  %v5826_v13 = vld [vmem:[#allocation10_spill] sm:$0xff]  ;;  %5833 = vst [vmem:[#allocation8_spill] sm:$0xff] %v5169_v43  ;;  %v1796_v50 = vrot.slane %v1794_v39, 5  ;;  %v5192_v39 = vld [vmem:[%s4153_s20 + $0x50] sm:$0x1] }
 0x162   : > { %2906 = vmatpush.bf16.xpose.msra.mxu0 %v4492_v38  ;;  %5837 = vst [vmem:[#allocation11_spill] sm:$0xff] %v5192_v39 }
 0x163   : > { %2919 = vmatpush.bf16.xpose.msra.mxu1 %v4501_v23 }
 0x165   : > { %2936 = vmatpush.bf16.xpose.msra.mxu2 %v5826_v13  ;;  %v1593_v13 = vshrl.u32 %v3670_v36, 16  ;;  %v1629_v36 = vsel %vm4181_vm3, %v1624_v5, %v1628_v49  ;;  %v1608_v49 = vrot.slane %v1606_v19, 4  ;;  %v1612_v5 = vshll.u32 %v5144_v9, 16 }
 0x166   : > { %v3117_v44 = vunpack.c.l.b16 %v1629_v36  ;;  %v1788_v19 = vshll.u32 %v3686_v18, 16 }
 0x167   : > { %v1595_v59 = vrot.slane %v1593_v13, 4  ;;  %v3118_v13 = vunpack.c.l.b16 %v1639_v32  ;;  %v1804_v32 = vshll.u32 %v5169_v43, 16 }
 0x169   : > { %2949 = vmatpush.bf16.xpose.msra.mxu3 %v5828_v55  ;;  %v1826_v55 = vrot.slane %v1825_v26, 4  ;;  %v1599_v17 = vor.u32 %v1598_v29, %v1595_v59  ;;  %v3152_v59 = vpack.c.b16 %v3136_v63, %v5122_v61  ;;  %v1609_v26 = vor.u32 %v1608_v49, %v5148_v4  ;;  %v3668_v29 = vld [vmem:[%s4153_s20 + $0x48] sm:$0xf] }
 0x16a   : > { %2907 = vmatpush.bf16.xpose.msra.mxu0 %v4529_v21  ;;  %v1798_v61 = vshrl.u32 %v5159_v30, 16  ;;  %v1569_v18 = vshrl.u32 %v3668_v29, 16  ;;  %v3143_v9 = vpack.c.b16 %v3118_v13, %v3117_v44  ;;  %v3684_v30 = vld [vmem:[%s4153_s20 + $0xa8] sm:$0xf] }
 0x16b   : > { %2920 = vmatpush.bf16.xpose.msra.mxu1 %v4542_v20  ;;  %v1831_v15 = vsel %vm4181_vm3, %v1826_v55, %v1830_v27  ;;  %v1600_v60 = vrot.slane %v1599_v17, 4  ;;  %v1610_v36 = vrot.slane %v1609_v26, 4  ;;  %v1614_v27 = vrot.slane %v1612_v5, 5  ;;  %v5834_v55 = vld [vmem:[#allocation13_spill] sm:$0xff]  ;;  %v4035_v26 = vld [vmem:[%s4153_s20 + $0xcc] sm:$0xff] }
 0x16c   : > { %v3134_v63 = vunpack.c.l.b16 %v1831_v15  ;;  %v1790_v17 = vrot.slane %v1788_v19, 5  ;;  %v1800_v49 = vrot.slane %v1798_v61, 4  ;;  %v5182_v24 = vsel %vm2083_vm0, %v3152_v59, 0 }
 0x16d   : > { %2937 = vmatpush.bf16.xpose.msra.mxu2 %v5831_v25  ;;  %v5179_v25 = vld [vmem:[%s4153_s20 + $0x4c] sm:$0xf]  ;;  %5836 = vst [vmem:[#allocation10_spill] sm:$0xff] %v5182_v24  ;;  %v5185_v15 = vsel %vm2083_vm0, %v4027_v42, 0  ;;  %v1572_v5 = vshll.u32 %v3668_v29, 16  ;;  %v1571_v61 = vrot.slane %v1569_v18, 4  ;;  %v1615_v44 = vsel %vm4181_vm3, %v1610_v36, %v1614_v27 }
 0x16e   : > { %5835 = vst [vmem:[#allocation9_spill] sm:$0xff] %v5179_v25  ;;  %v1791_v43 = vor.u32 %v1790_v17, %v1787_v57  ;;  %v1801_v19 = vor.u32 %v1800_v49, %v1796_v50  ;;  %v3151_v59 = vpack.c.b16 %v3134_v63, %v3133_v41  ;;  %v5838_v42 = vld [vmem:[#allocation16_spill] sm:$0xff]  ;;  %v1806_v57 = vrot.slane %v1804_v32, 5  ;;  %v4026_v49 = vld [vmem:[%s4153_s20 + $0x60] sm:$0xff]  ;;  %v5207_v63 = vld [vmem:[%s4153_s20 + $0xac] sm:$0xf] }
 0x16f   : > { %v1574_v13 = vrot.slane %v1572_v5, 5  ;;  %v1582_v17 = vshrl.u32 %v5179_v25, 16  ;;  %v1588_v41 = vshll.u32 %v5192_v39, 16  ;;  %5839 = vst [vmem:[#allocation12_spill] sm:$0xff] %v5207_v63  ;;  %v1761_v36 = vshrl.u32 %v3684_v30, 16  ;;  %v4034_v32 = vld [vmem:[%s4153_s20 + $0xc0] sm:$0xff] }
 0x170   : > { %v1802_v29 = vrot.slane %v1801_v19, 4  ;;  %v5210_v27 = vsel %vm2083_vm0, %v3143_v9, 0  ;;  %v5213_v5 = vsel %vm2083_vm0, %v4035_v26, 0  ;;  %v5842_v39 = vld [vmem:[#allocation17_spill] sm:$0xff]  ;;  %v1770_v33 = vshll.u32 %v5207_v63, 16 }
 0x171   : > { %2950 = vmatpush.bf16.xpose.msra.mxu3 %v5834_v55  ;;  %v1605_v55 = vsel %vm4181_vm3, %v1600_v60, %v5148_v4  ;;  %v1578_v4 = vshll.u32 %v5179_v25, 16  ;;  %v1792_v60 = vrot.slane %v1791_v43, 4  ;;  %v1575_v18 = vor.u32 %v1574_v13, %v1571_v61  ;;  %5840 = vst [vmem:[#allocation13_spill] sm:$0xff] %v5210_v27  ;;  %v5224_v25 = vld [vmem:[%s4153_s20 + $0xb0] sm:$0x1] }
 0x172   : > { %2908 = vmatpush.bf16.xpose.msra.mxu0 %v4580_v16  ;;  %v3115_v43 = vunpack.c.l.b16 %v1605_v55  ;;  %v1584_v19 = vrot.slane %v1582_v17, 4  ;;  %v5217_v61 = vsel %vm2083_vm0, %v3151_v59, 0  ;;  %v3116_v13 = vunpack.c.l.b16 %v1615_v44  ;;  %5843 = vst [vmem:[#allocation17_spill] sm:$0xff] %v5224_v25  ;;  %v3666_v17 = vld [vmem:[%s4153_s20 + $0x3c] sm:$0xf] }
 0x173   : > { %2921 = vmatpush.bf16.xpose.msra.mxu1 %v4593_v12  ;;  %v5203_v7 = vrot.slane %v1578_v4, 5  ;;  %5841 = vst [vmem:[#allocation16_spill] sm:$0xff] %v5217_v61  ;;  %v1797_v4 = vsel %vm4181_vm3, %v1792_v60, %v1796_v50  ;;  %v1763_v26 = vrot.slane %v1761_v36, 4  ;;  %v1764_v55 = vshll.u32 %v3684_v30, 16  ;;  %v5240_v30 = vld [vmem:[%s4153_s20 + $0x40] sm:$0xf] }
 0x174   : > { %v1807_v59 = vsel %vm4181_vm3, %v1802_v29, %v1806_v57  ;;  %v5230_v44 = vsel %vm2083_vm0, %v4026_v49, 0  ;;  %v1590_v50 = vrot.slane %v1588_v41, 5  ;;  %v1774_v60 = vshrl.u32 %v5207_v63, 16  ;;  %5844 = vst [vmem:[#allocation27_spill] sm:$0xff] %v5240_v30  ;;  %v5246_v63 = vld [vmem:[%s4153_s20 + $0x44] sm:$0x1] }
 0x175   : > { %2938 = vmatpush.bf16.xpose.msra.mxu2 %v5838_v42  ;;  %v1576_v42 = vrot.slane %v1575_v18, 4  ;;  %v1585_v9 = vor.u32 %v1584_v19, %v5203_v7  ;;  %v1766_v19 = vrot.slane %v1764_v55, 5  ;;  %v5237_v36 = vrot.slane %v1770_v33, 5  ;;  %5845 = vst [vmem:[#allocation28_spill] sm:$0xff] %v5246_v63 }
 0x176   : > { %v3142_v29 = vpack.c.b16 %v3116_v13, %v3115_v43  ;;  %v3131_v57 = vunpack.c.l.b16 %v1797_v4  ;;  %v1776_v49 = vrot.slane %v1774_v60, 4  ;;  %v1780_v41 = vshll.u32 %v5224_v25, 16 }
 0x177   : > { %v1586_v18 = vrot.slane %v1585_v9, 4  ;;  %v3132_v9 = vunpack.c.l.b16 %v1807_v59  ;;  %v1581_v33 = vsel %vm4181_vm3, %v1576_v42, %v5203_v7  ;;  %v1767_v55 = vor.u32 %v1766_v19, %v1763_v26 }
 0x178   : > { %v1545_v47 = vshrl.u32 %v3666_v17, 16  ;;  %v1777_v13 = vor.u32 %v1776_v49, %v5237_v36  ;;  %v1548_v4 = vshll.u32 %v3666_v17, 16  ;;  %v1554_v60 = vshll.u32 %v5240_v30, 16  ;;  %v4025_v49 = vld [vmem:[%s4153_s20 + $0x54] sm:$0xff] }
 0x179   : > { %2951 = vmatpush.bf16.xpose.msra.mxu3 %v5842_v39  ;;  %v5235_v39 = vsel %vm2083_vm0, %v4034_v32, 0  ;;  %v5846_v32 = vld [vmem:[#allocation18_spill] sm:$0xff]  ;;  %v1591_v43 = vsel %vm4181_vm3, %v1586_v18, %v1590_v50  ;;  %v1768_v59 = vrot.slane %v1767_v55, 4  ;;  %v1564_v7 = vshll.u32 %v5246_v63, 16  ;;  %v5847_v50 = vld [vmem:[#allocation19_spill] sm:$0xff] }
 0x17a   : > { %2909 = vmatpush.bf16.xpose.msra.mxu0 %v5814_v35  ;;  %v1547_v25 = vrot.slane %v1545_v47, 4  ;;  %v1778_v42 = vrot.slane %v1777_v13, 4  ;;  %v1782_v26 = vrot.slane %v1780_v41, 5  ;;  %v1550_v19 = vrot.slane %v1548_v4, 5  ;;  %v5268_v47 = vld [vmem:[%s4153_s20 + $0xa0] sm:$0xf] }
 0x17b   : > { %2922 = vmatpush.bf16.xpose.msra.mxu1 %v4640_v3  ;;  %v1558_v3 = vshrl.u32 %v5240_v30, 16  ;;  %v5264_v17 = vsel %vm2083_vm0, %v3142_v29, 0  ;;  %v3150_v18 = vpack.c.b16 %v3132_v9, %v3131_v57  ;;  %5849 = vst [vmem:[#allocation19_spill] sm:$0xff] %v5268_v47  ;;  %v3113_v13 = vunpack.c.l.b16 %v1581_v33  ;;  %v5277_v57 = vld [vmem:[%s4153_s20 + $0xa4] sm:$0x1] }
 0x17c   : > { %5848 = vst [vmem:[#allocation18_spill] sm:$0xff] %v5264_v17  ;;  %v3114_v63 = vunpack.c.l.b16 %v1591_v43  ;;  %v1773_v41 = vsel %vm4181_vm3, %v1768_v59, %v5237_v36  ;;  %v1551_v4 = vor.u32 %v1550_v19, %v1547_v25  ;;  %v1566_v29 = vrot.slane %v1564_v7, 5 }
 0x17d   : > { %2939 = vmatpush.bf16.xpose.msra.mxu2 %v5846_v32  ;;  %v3682_v32 = vld [vmem:[%s4153_s20 + $0x9c] sm:$0xf]  ;;  %v1560_v55 = vrot.slane %v1558_v3, 4  ;;  %5850 = vst [vmem:[#allocation29_spill] sm:$0xff] %v5277_v57  ;;  %v1783_v33 = vsel %vm4181_vm3, %v1778_v42, %v1782_v26  ;;  %v1746_v25 = vshll.u32 %v5268_v47, 16  ;;  %v1750_v36 = vshrl.u32 %v5268_v47, 16 }
 0x17e   : > { %v1737_v30 = vshrl.u32 %v3682_v32, 16  ;;  %v1740_v9 = vshll.u32 %v3682_v32, 16  ;;  %v1552_v43 = vrot.slane %v1551_v4, 4  ;;  %v5291_v32 = vsel %vm2083_vm0, %v4025_v49, 0  ;;  %v3664_v42 = vld [vmem:[%s4153_s20 + $0x30] sm:$0xf] }
 0x17f   : > { %v3141_v26 = vpack.c.b16 %v3114_v63, %v3113_v13  ;;  %v1748_v19 = vrot.slane %v1746_v25, 5  ;;  %v3130_v4 = vunpack.c.l.b16 %v1783_v33  ;;  %v4024_v25 = vld [vmem:[%s4153_s20 + $0x48] sm:$0xff]  ;;  %v1524_v33 = vshll.u32 %v3664_v42, 16 }
 0x180   : > { %v1739_v3 = vrot.slane %v1737_v30, 4  ;;  %v5288_v30 = vsel %vm2083_vm0, %v3150_v18, 0  ;;  %v1742_v7 = vrot.slane %v1740_v9, 5  ;;  %v3129_v18 = vunpack.c.l.b16 %v1773_v41 }
 0x181   : > { %2952 = vmatpush.bf16.xpose.msra.mxu3 %v5847_v50 }
 0x182   : > { %2910 = vmatpush.bf16.xpose.msra.mxu0 %v4675_v58 }
 0x183   : > { %2923 = vmatpush.bf16.xpose.msra.mxu1 %v4697_v62 }
 0x185   : > { %3204 = vmatpush.bf16.xpose.msrb.mxu2 %v5163_v52  ;;  %v5260_v52 = vrot.slane %v1554_v60, 5  ;;  %v4033_v60 = vld [vmem:[%s4153_s20 + $0xb4] sm:$0xff] }
 0x186   : > { %v5300_v49 = vsel %vm2083_vm0, %v4033_v60, 0 }
 0x187   : > { %v1561_v50 = vor.u32 %v1560_v55, %v5260_v52  ;;  %v1752_v55 = vrot.slane %v1750_v36, 4  ;;  %v1557_v9 = vsel %vm4181_vm3, %v1552_v43, %v5260_v52  ;;  %v5309_v36 = vld [vmem:[%s4153_s20 + $0x38] sm:$0x1]  ;;  %v5316_v52 = vsel %vm2083_vm0, %v3141_v26, 0  ;;  %v4032_v26 = vld [vmem:[%s4153_s20 + $0xa8] sm:$0xff] }
 0x188   : > { %5852 = vst [vmem:[#allocation31_spill] sm:$0xff] %v5316_v52  ;;  %v3111_v62 = vunpack.c.l.b16 %v1557_v9 }
 0x189   : > { %3217 = vmatpush.bf16.xpose.msrb.mxu3 %v5182_v24  ;;  %v1562_v59 = vrot.slane %v1561_v50, 4  ;;  %v1743_v50 = vor.u32 %v1742_v7, %v1739_v3  ;;  %v1753_v13 = vor.u32 %v1752_v55, %v1748_v19  ;;  %v3680_v7 = vld [vmem:[%s4153_s20 + $0x90] sm:$0xf]  ;;  %v5319_v55 = vld [vmem:[%s4153_s20 + $0x94] sm:$0xf] }
 0x18a   : > { %3075 = vmatpush.bf16.xpose.msrb.mxu0 %v5185_v15  ;;  %v1756_v15 = vshll.u32 %v5277_v57, 16  ;;  %v1521_v57 = vshrl.u32 %v3664_v42, 16  ;;  %5853 = vst [vmem:[#allocation32_spill] sm:$0xff] %v5319_v55  ;;  %v1540_v42 = vshll.u32 %v5309_v36, 16  ;;  %v5323_v24 = vld [vmem:[%s4153_s20 + $0x98] sm:$0x1] }
 0x18b   : > { %3088 = vmatpush.bf16.xpose.msrb.mxu1 %v5213_v5  ;;  %v5297_v5 = vld [vmem:[%s4153_s20 + $0x34] sm:$0xf]  ;;  %v1567_v63 = vsel %vm4181_vm3, %v1562_v59, %v1566_v29  ;;  %v1744_v41 = vrot.slane %v1743_v50, 4  ;;  %v1754_v43 = vrot.slane %v1753_v13, 4  ;;  %5854 = vst [vmem:[#allocation33_spill] sm:$0xff] %v5323_v24  ;;  %v1726_v9 = vshrl.u32 %v5319_v55, 16 }
 0x18c   : > { %5851 = vst [vmem:[#allocation30_spill] sm:$0xff] %v5297_v5  ;;  %v1530_v60 = vshll.u32 %v5297_v5, 16  ;;  %v1534_v3 = vshrl.u32 %v5297_v5, 16  ;;  %v1758_v29 = vrot.slane %v1756_v15, 5  ;;  %v1523_v59 = vrot.slane %v1521_v57, 4 }
 0x18d   : > { %3205 = vmatpush.bf16.xpose.msrb.mxu2 %v5210_v27  ;;  %v1526_v27 = vrot.slane %v1524_v33, 5  ;;  %v3149_v5 = vpack.c.b16 %v3130_v4, %v3129_v18  ;;  %v3112_v58 = vunpack.c.l.b16 %v1567_v63  ;;  %v1749_v57 = vsel %vm4181_vm3, %v1744_v41, %v1748_v19 }
 0x18e   : > { %v1532_v47 = vrot.slane %v1530_v60, 5  ;;  %v1536_v50 = vrot.slane %v1534_v3, 4  ;;  %v1713_v33 = vshrl.u32 %v3680_v7, 16  ;;  %v1716_v18 = vshll.u32 %v3680_v7, 16  ;;  %v5343_v7 = vld [vmem:[%s4153_s20 + $0x28] sm:$0xf] }
 0x18f   : > { %v1527_v15 = vor.u32 %v1526_v27, %v1523_v59  ;;  %v1722_v4 = vshll.u32 %v5319_v55, 16  ;;  %v3662_v27 = vld [vmem:[%s4153_s20 + $0x24] sm:$0xf]  ;;  %v1728_v59 = vrot.slane %v1726_v9, 4  ;;  %v5349_v55 = vsel %vm2083_vm0, %v4032_v26, 0 }
 0x190   : > { %v1537_v13 = vor.u32 %v1536_v50, %v1532_v47  ;;  %v1715_v19 = vrot.slane %v1713_v33, 4  ;;  %v1718_v60 = vrot.slane %v1716_v18, 5  ;;  %v5346_v50 = vsel %vm2083_vm0, %v3149_v5, 0  ;;  %v3891_v5 = vld [vmem:[%s5720_s1 + $0x20] sm:$0xf] }
 0x191   : > { %3218 = vmatpush.bf16.xpose.msrb.mxu3 %v5217_v61  ;;  %v5326_v61 = vsel %vm2083_vm0, %v4024_v25, 0  ;;  %v1528_v63 = vrot.slane %v1527_v15, 4  ;;  %v1542_v25 = vrot.slane %v1540_v42, 5  ;;  %v5340_v3 = vrot.slane %v1722_v4, 5  ;;  %5855 = vst [vmem:[#allocation34_spill] sm:$0xff] %v5346_v50  ;;  %3895 = vmatmul.msk.bf16.vlgmr.msra.gmra.mxu2 %vm2083_vm0, %v3891_v5 }
 0x192   : > { %3076 = vmatpush.bf16.xpose.msrb.mxu0 %v5230_v44  ;;  %v1732_v44 = vshll.u32 %v5323_v24, 16  ;;  %v1538_v41 = vrot.slane %v1537_v13, 4  ;;  %v3127_v24 = vunpack.c.l.b16 %v1749_v57  ;;  %v5354_v13 = vld [vmem:[%s4153_s20 + $0x2c] sm:$0x1]  ;;  %v1500_v57 = vshll.u32 %v3662_v27, 16  ;;  %3896 = vmatmul.msk.bf16.vlgmr.msra.gmra.mxu3 %vm2083_vm0, %v3891_v5  ;;  %v4023_v5 = vld [vmem:[%s4153_s20 + $0x3c] sm:$0xff] }
 0x193   : > { %3089 = vmatpush.bf16.xpose.msrb.mxu1 %v5235_v39  ;;  %v1759_v39 = vsel %vm4181_vm3, %v1754_v43, %v1758_v29  ;;  %v1719_v29 = vor.u32 %v1718_v60, %v1715_v19  ;;  %v1729_v42 = vor.u32 %v1728_v59, %v5340_v3  ;;  %5856 = vst [vmem:[#allocation35_spill] sm:$0xff] %v5354_v13  ;;  %v1506_v26 = vshll.u32 %v5343_v7, 16  ;;  %v5381_v59 = vld [vmem:[%s4153_s20 + $0x8c] sm:$0x1] }
 0x194   : > { %v3128_v43 = vunpack.c.l.b16 %v1759_v39  ;;  %v1734_v15 = vrot.slane %v1732_v44, 5  ;;  %v1543_v33 = vsel %vm4181_vm3, %v1538_v41, %v1542_v25  ;;  %v1510_v9 = vshrl.u32 %v5343_v7, 16  ;;  %v3678_v44 = vld [vmem:[%s4153_s20 + $0x84] sm:$0xf]  ;;  %5858 = vst [vmem:[#allocation37_spill] sm:$0xff] %v5381_v59 }
 0x195   : > { %3206 = vmatpush.bf16.xpose.msrb.mxu2 %v5264_v17  ;;  %v3140_v17 = vpack.c.b16 %v3112_v58, %v3111_v62  ;;  %v1533_v58 = vsel %vm4181_vm3, %v1528_v63, %v1532_v47  ;;  %v1497_v62 = vshrl.u32 %v3662_v27, 16  ;;  %v1720_v18 = vrot.slane %v1719_v29, 4  ;;  %v5374_v27 = vld [vmem:[%s4153_s20 + $0x88] sm:$0xf] }
 0x196   : > { %v1730_v4 = vrot.slane %v1729_v42, 4  ;;  %v1502_v39 = vrot.slane %v1500_v57, 5  ;;  %v5370_v63 = vrot.slane %v1506_v26, 5  ;;  %v1516_v19 = vshll.u32 %v5354_v13, 16  ;;  %v2701_v13 = vpop.f32.mrf.mxu1 }
 0x197   : > { %v1499_v47 = vrot.slane %v1497_v62, 4  ;;  %v5378_v25 = vsel %vm2083_vm0, %v3140_v17, 0  ;;  %v3148_v41 = vpack.c.b16 %v3128_v43, %v3127_v24  ;;  %v3109_v60 = vunpack.c.l.b16 %v1533_v58 }
 0x198   : > { %5857 = vst [vmem:[#allocation36_spill] sm:$0xff] %v5378_v25  ;;  %v1725_v29 = vsel %vm4181_vm3, %v1720_v18, %v5340_v3  ;;  %v1735_v42 = vsel %vm4181_vm3, %v1730_v4, %v1734_v15  ;;  %v1689_v57 = vshrl.u32 %v3678_v44, 16  ;;  %v1692_v24 = vshll.u32 %v3678_v44, 16  ;;  %v3660_v3 = vld [vmem:[%s4153_s20 + $0x18] sm:$0xf] }
 0x199   : > { %3219 = vmatpush.bf16.xpose.msrb.mxu3 %v5288_v30  ;;  %v1503_v62 = vor.u32 %v1502_v39, %v1499_v47  ;;  %v1698_v43 = vshll.u32 %v5374_v27, 16  ;;  %v1518_v26 = vrot.slane %v1516_v19, 5  ;;  %v5398_v39 = vld [vmem:[%s4153_s20 + $0x1c] sm:$0xf]  ;;  %v5401_v44 = vsel %vm2083_vm0, %v3148_v41, 0 }
 0x19a   : > { %3077 = vmatpush.bf16.xpose.msrb.mxu0 %v5291_v32  ;;  %v1512_v32 = vrot.slane %v1510_v9, 4  ;;  %v1708_v9 = vshll.u32 %v5381_v59, 16  ;;  %v1691_v18 = vrot.slane %v1689_v57, 4  ;;  %v1694_v4 = vrot.slane %v1692_v24, 5  ;;  %5859 = vst [vmem:[#allocation38_spill] sm:$0xff] %v5398_v39 }
 0x19b   : > { %3090 = vmatpush.bf16.xpose.msrb.mxu1 %v5300_v49  ;;  %v3110_v49 = vunpack.c.l.b16 %v1543_v33  ;;  %v1504_v58 = vrot.slane %v1503_v62, 4  ;;  %v1702_v33 = vshrl.u32 %v5374_v27, 16  ;;  %v5395_v47 = vrot.slane %v1698_v43, 5  ;;  %5860 = vst [vmem:[#allocation39_spill] sm:$0xff] %v5401_v44  ;;  %v4031_v62 = vld [vmem:[%s4153_s20 + $0x9c] sm:$0xff] }
 0x19c   : > { %v1513_v17 = vor.u32 %v1512_v32, %v5370_v63  ;;  %v3037_v19 = vsel %vm2083_vm0, %v4023_v5, 0  ;;  %v3892_v59 = vld [vmem:[%s5720_s1 + $0x24] sm:$0xf]  ;;  %v1695_v24 = vor.u32 %v1694_v4, %v1691_v18  ;;  %v5412_v43 = vld [vmem:[%s4153_s20 + $0x20] sm:$0x1]  ;;  %v1482_v5 = vshll.u32 %v5398_v39, 16 }
 0x19d   : > { %3207 = vmatpush.bf16.xpose.msrb.mxu2 %v5316_v52  ;;  %v3139_v32 = vpack.c.b16 %v3110_v49, %v3109_v60  ;;  %v1704_v52 = vrot.slane %v1702_v33, 4  ;;  %v1509_v57 = vsel %vm4181_vm3, %v1504_v58, %v5370_v63  ;;  %5861 = vst [vmem:[#allocation40_spill] sm:$0xff] %v5412_v43  ;;  %3893 = vmatmul.msk.bf16.vlgmr.msra.gmra.mxu0 %vm2083_vm0, %v3892_v59  ;;  %v1710_v49 = vrot.slane %v1708_v9, 5  ;;  %v3676_v33 = vld [vmem:[%s4153_s20 + $0x78] sm:$0xf] }
 0x19e   : > { %v1514_v15 = vrot.slane %v1513_v17, 4  ;;  %v3126_v17 = vunpack.c.l.b16 %v1735_v42  ;;  %3894 = vmatmul.msk.bf16.vlgmr.msra.gmra.mxu1 %vm2083_vm0, %v3892_v59  ;;  %v1473_v63 = vshrl.u32 %v3660_v3, 16  ;;  %v1476_v42 = vshll.u32 %v3660_v3, 16  ;;  %v5431_v4 = vld [vmem:[%s4153_s20 + $0x7c] sm:$0xf] }
 0x19f   : > { %v1705_v60 = vor.u32 %v1704_v52, %v5395_v47  ;;  %v1486_v59 = vshrl.u32 %v5398_v39, 16  ;;  %v5428_v52 = vsel %vm2083_vm0, %v3139_v32, 0  ;;  %5862 = vst [vmem:[#allocation41_spill] sm:$0xff] %v5431_v4  ;;  %v5447_v39 = vpop.f32.mrf.mxu3 }
 0x1a0   : > { %v1519_v41 = vsel %vm4181_vm3, %v1514_v15, %v1518_v26  ;;  %v1475_v58 = vrot.slane %v1473_v63, 4  ;;  %v1492_v26 = vshll.u32 %v5412_v43, 16  ;;  %v1478_v9 = vrot.slane %v1476_v42, 5 }
 0x1a1   : > { %3220 = vmatpush.bf16.xpose.msrb.mxu3 %v5346_v50  ;;  %v3125_v50 = vunpack.c.l.b16 %v1725_v29  ;;  %v1696_v29 = vrot.slane %v1695_v24, 4  ;;  %v1484_v15 = vrot.slane %v1482_v5, 5  ;;  %v1488_v18 = vrot.slane %v1486_v59, 4 }
 0x1a2   : > { %3078 = vmatpush.bf16.xpose.msrb.mxu0 %v5326_v61  ;;  %v3061_v61 = vsel %vm2083_vm0, %v4031_v62, 0  ;;  %v3107_v24 = vunpack.c.l.b16 %v1509_v57  ;;  %v1479_v63 = vor.u32 %v1478_v9, %v1475_v58  ;;  %v1665_v5 = vshrl.u32 %v3676_v33, 16  ;;  %v4022_v9 = vld [vmem:[%s4153_s20 + $0x30] sm:$0xff] }
 0x1a3   : > { %3091 = vmatpush.bf16.xpose.msrb.mxu1 %v5349_v55  ;;  %v1706_v55 = vrot.slane %v1705_v60, 4  ;;  %v3147_v3 = vpack.c.b16 %v3126_v17, %v3125_v50  ;;  %v1701_v62 = vsel %vm4181_vm3, %v1696_v29, %v5395_v47  ;;  %v5437_v60 = vld [vmem:[%s4153_s20 + $0x80] sm:$0x1]  ;;  %v1489_v42 = vor.u32 %v1488_v18, %v1484_v15  ;;  %v4030_v18 = vld [vmem:[%s4153_s20 + $0x90] sm:$0xff] }
 0x1a4   : > { %5863 = vst [vmem:[#allocation42_spill] sm:$0xff] %v5437_v60  ;;  %v1494_v59 = vrot.slane %v1492_v26, 5  ;;  %v1668_v43 = vshll.u32 %v3676_v33, 16  ;;  %v1674_v50 = vshll.u32 %v5431_v4, 16  ;;  %v1678_v17 = vshrl.u32 %v5431_v4, 16  ;;  %v2688_v4 = vpop.f32.mrf.mxu0 }
 0x1a5   : > { %3208 = vmatpush.bf16.xpose.msrb.mxu2 %v5378_v25  ;;  %v3108_v25 = vunpack.c.l.b16 %v1519_v41  ;;  %v1711_v32 = vsel %vm4181_vm3, %v1706_v55, %v1710_v49  ;;  %v1480_v57 = vrot.slane %v1479_v63, 4  ;;  %v1490_v47 = vrot.slane %v1489_v42, 4 }
 0x1a6   : > { %v1667_v41 = vrot.slane %v1665_v5, 4  ;;  %v1684_v29 = vshll.u32 %v5437_v60, 16  ;;  %v1670_v49 = vrot.slane %v1668_v43, 5  ;;  %v1676_v55 = vrot.slane %v1674_v50, 5 }
 0x1a7   : > { %v1680_v58 = vrot.slane %v1678_v17, 4  ;;  %v5451_v26 = vsel %vm2083_vm0, %v3147_v3, 0  ;;  %v3138_v33 = vpack.c.b16 %v3108_v25, %v3107_v24  ;;  %v3123_v63 = vunpack.c.l.b16 %v1701_v62 }
 0x1a8   : > { %v3124_v42 = vunpack.c.l.b16 %v1711_v32  ;;  %v1671_v5 = vor.u32 %v1670_v49, %v1667_v41  ;;  %v1495_v43 = vsel %vm4181_vm3, %v1490_v47, %v1494_v59  ;;  %v3034_v25 = vsel %vm2083_vm0, %v4022_v9, 0  ;;  %v2732_v47 = vpop.f32.mrf.mxu3  ;;  %v4021_v41 = vld [vmem:[%s4153_s20 + $0x24] sm:$0xff] }
 0x1a9   : > { %3221 = vmatpush.bf16.xpose.msrb.mxu3 %v5401_v44  ;;  %v5445_v44 = vpop.f32.mrf.mxu2  ;;  %v1681_v60 = vor.u32 %v1680_v58, %v1676_v55  ;;  %v3058_v24 = vsel %vm2083_vm0, %v4030_v18, 0  ;;  %v5463_v62 = vsel %vm2083_vm0, %v3138_v33, 0  ;;  %v2703_v18 = vpop.f32.mrf.mxu1  ;;  %v3031_v37 = vsel %vm2083_vm0, %v4021_v41, 0  ;;  %v4102_v41 = vld [vmem:[%s4153_s20 + $0x74] sm:$0x1] }
 0x1aa   : > { %3079 = vmatpush.bf16.xpose.msrb.mxu0 %v3037_v19  ;;  %v1485_v19 = vsel %vm4181_vm3, %v1480_v57, %v1484_v15  ;;  %v1672_v50 = vrot.slane %v1671_v5, 4  ;;  %v3146_v32 = vpack.c.b16 %v3124_v42, %v3123_v63  ;;  %v3106_v15 = vunpack.c.l.b16 %v1495_v43  ;;  %v4028_v43 = vld [vmem:[%s4153_s20 + $0x78] sm:$0xff]  ;;  %v4104_v18 = vld [vmem:[%s4153_s20 + $0x64] sm:$0xf] }
 0x1ab   : > { %3092 = vmatpush.bf16.xpose.msrb.mxu1 %v3061_v61  ;;  %v1686_v61 = vrot.slane %v1684_v29, 5  ;;  %v1682_v3 = vrot.slane %v1681_v60, 4  ;;  %v3105_v17 = vunpack.c.l.b16 %v1485_v19  ;;  %v4029_v29 = vld [vmem:[%s4153_s20 + $0x84] sm:$0xff]  ;;  %v4020_v19 = vld [vmem:[%s4153_s20 + $0x18] sm:$0xff] }
 0x1ac   : > { %v1677_v59 = vsel %vm4181_vm3, %v1672_v50, %v1676_v55  ;;  %v5473_v49 = vsel %vm2083_vm0, %v3146_v32, 0  ;;  %v2690_v55 = vpop.f32.mrf.mxu0  ;;  %v3055_v63 = vsel %vm2083_vm0, %v4029_v29, 0  ;;  %v3028_v50 = vsel %vm2083_vm0, %v4020_v19, 0 }
 0x1ad   : > { %3209 = vmatpush.bf16.xpose.msrb.mxu2 %v5428_v52  ;;  %v1687_v57 = vsel %vm4181_vm3, %v1682_v3, %v1686_v61  ;;  %v3137_v58 = vpack.c.b16 %v3106_v15, %v3105_v17  ;;  %v3121_v33 = vunpack.c.l.b16 %v1677_v59  ;;  %v3052_v3 = vsel %vm2083_vm0, %v4028_v43, 0  ;;  %v4100_v17 = vld [vmem:[%s4153_s20 + $0x70] sm:$0xf] }
 0x1ae   : > { %v3122_v9 = vunpack.c.l.b16 %v1687_v57  ;;  %v1971_v15 = vrot.slane %v4100_v17, 5  ;;  %v4101_v57 = vld [vmem:[%s4153_s20 + $0xd0] sm:$0xf]  ;;  %v1974_v29 = vrot.slane %v4102_v41, 5  ;;  %v2020_v43 = vrot.slane %v5112_v8, 5 }
 0x1af   : > { %v5479_v42 = vsel %vm2083_vm0, %v3137_v58, 0  ;;  %v5874_v41 = vld [vmem:[#allocation20_spill] sm:$0xff] }
 0x1b0   : > { %v3145_v5 = vpack.c.b16 %v3122_v9, %v3121_v33  ;;  %v1973_v47 = vrot.slane %v1971_v15, 4  ;;  %v4103_v9 = vld [vmem:[%s4153_s20 + $0xd4] sm:$0x1] }
 0x1b1   : > { %3222 = vmatpush.bf16.xpose.msrb.mxu3 %v5451_v26  ;;  %v2719_v60 = vpop.f32.mrf.mxu2 }
 0x1b2   : > { %3080 = vmatpush.bf16.xpose.msrb.mxu0 %v3034_v25  ;;  %v5485_v61 = vsel %vm2083_vm0, %v3145_v5, 0  ;;  %v3964_v25 = vld [vmem:[%s5720_s1 + $0x2c] sm:$0xf]  ;;  %v2027_v60 = vrot.slane %v4101_v57, 5 }
 0x1b3   : > { %3093 = vmatpush.bf16.xpose.msrb.mxu1 %v3058_v24 }
 0x1b4   : > { %v2029_v33 = vrot.slane %v2027_v60, 4 }
 0x1b5   : > { %3210 = vmatpush.bf16.xpose.msrb.mxu2 %v5463_v62 }
 0x1b9   : > { %3223 = vmatpush.bf16.xpose.msrb.mxu3 %v5473_v49 }
 0x1ba   : > { %3081 = vmatpush.bf16.xpose.msrb.mxu0 %v3031_v37  ;;  %v1964_v37 = vrot.slane %v4104_v18, 5 }
 0x1bb   : > { %3094 = vmatpush.bf16.xpose.msrb.mxu1 %v3055_v63 }
 0x1bd   : > { %3211 = vmatpush.bf16.xpose.msrb.mxu2 %v5479_v42 }
 0x1c1   : > { %3224 = vmatpush.bf16.xpose.msrb.mxu3 %v5485_v61 }
 0x1c2   : > { %3082 = vmatpush.bf16.xpose.msrb.mxu0 %v3028_v50  ;;  %v5864_v50 = vld [vmem:[#allocation22_spill] sm:$0xff] }
 0x1c3   : > { %3095 = vmatpush.bf16.xpose.msrb.mxu1 %v3052_v3  ;;  %v5865_v3 = vld [vmem:[#allocation23_spill] sm:$0xff] }
 0x1c4   : > { %3965 = vmatmul.msk.bf16.vlgmr.msrb.gmra.mxu2 %vm2083_vm0, %v3964_v25 }
 0x1c5   : > { %3268 = vmatpush.bf16.xpose.msra.mxu2 %v4354_v48  ;;  %v3897_v48 = vld [vmem:[%s5720_s1 + $0x28] sm:$0xf] }
 0x1c7   : > { %v2877_v24 = vpop.f32.mrf.mxu2 }
 0x1c8   : > { %3966 = vmatmul.msk.bf16.vlgmr.msrb.gmra.mxu3 %vm2083_vm0, %v3964_v25 }
 0x1c9   : > { %3281 = vmatpush.bf16.xpose.msra.mxu3 %v4361_v6  ;;  %3962 = vmatmul.msk.bf16.vlgmr.msrb.gmra.mxu0 %vm2083_vm0, %v3897_v48  ;;  %v2718_v6 = vadd.f32 %v5445_v44, %v2688_v4 }
 0x1ca   : > { %3239 = vmatpush.bf16.xpose.msra.mxu0 %v4874_v1  ;;  %3963 = vmatmul.msk.bf16.vlgmr.msrb.gmra.mxu1 %vm2083_vm0, %v3897_v48  ;;  %v2761_v1 = vpop.f32.mrf.mxu1  ;;  %v1966_v48 = vrot.slane %v1964_v37, 4 }
 0x1cb   : > { %3252 = vmatpush.bf16.xpose.msra.mxu1 %v4882_v56 }
 0x1cd   : > { %3269 = vmatpush.bf16.xpose.msra.mxu2 %v4397_v51  ;;  %v2731_v51 = vadd.f32 %v5447_v39, %v2701_v13 }
 0x1cf   : > { %v2879_v32 = vpop.f32.mrf.mxu2 }
 0x1d1   : > { %3282 = vmatpush.bf16.xpose.msra.mxu3 %v4415_v22  ;;  %v2748_v22 = vpop.f32.mrf.mxu0 }
 0x1d2   : > { %3240 = vmatpush.bf16.xpose.msra.mxu0 %v4896_v31  ;;  %v2765_v56 = vadd.f32 %v2748_v22, %v2718_v6  ;;  %v2766_v31 = vadd.f32 %v2761_v1, %v2731_v51  ;;  %v2763_v39 = vpop.f32.mrf.mxu1  ;;  %v5866_v6 = vld [vmem:[#allocation2_spill] sm:$0xff] }
 0x1d3   : > { %3253 = vmatpush.bf16.xpose.msra.mxu1 %v4906_v0  ;;  %v3722_v51 = vld [vmem:[%s4153_s20 + $0xc0] sm:$0xe] }
 0x1d4   : > { %v2894_v0 = vadd.f32 %v2877_v24, %v2765_v56  ;;  %v2022_v24 = vrot.slane %v2020_v43, 4 }
 0x1d5   : > { %3270 = vmatpush.bf16.xpose.msra.mxu2 %v4457_v11  ;;  %v2890_v11 = vpop.f32.mrf.mxu3 }
 0x1d6   : > { %v3474_v13 = vmul.f32 %v5078_v34, %v2894_v0 }
 0x1d9   : > { %3283 = vmatpush.bf16.xpose.msra.mxu3 %v4468_v53  ;;  %v2895_v53 = vadd.f32 %v2890_v11, %v2766_v31  ;;  %v3738_v31 = vrot.slane %v3722_v51, 9  ;;  %v5867_v11 = vld [vmem:[#allocation3_spill] sm:$0xff]  ;;  %v5879_v51 = vld [vmem:[#allocation12_spill] sm:$0xff] }
 0x1da   : > { %3241 = vmatpush.bf16.xpose.msra.mxu0 %v4926_v40 }
 0x1db   : > { %3254 = vmatpush.bf16.xpose.msra.mxu1 %v4936_v2  ;;  %v3475_v40 = vmul.f32 %v5078_v34, %v2895_v53  ;;  %v3476_v2 = vadd.f32 %v3474_v13, %v5095_v54  ;;  %v2023_v53 = vrot.slane %v5867_v11, 5  ;;  %v5868_v13 = vld [vmem:[#allocation4_spill] sm:$0xff]  ;;  %v5882_v11 = vld [vmem:[#allocation7_spill] sm:$0xff] }
 0x1dd   : > { %3271 = vmatpush.bf16.xpose.msra.mxu2 %v4492_v38  ;;  %v3477_v38 = vadd.f32 %v3475_v40, %v5095_v54  ;;  %v3478_v44 = vmax.f32 %v3476_v2, 0.0  ;;  %v2892_v59 = vpop.f32.mrf.mxu3  ;;  %v1957_v40 = vrot.slane %v5868_v13, 5  ;;  %v5869_v2 = vld [vmem:[#allocation15_spill] sm:$0xff] }
 0x1de   : > { %v5871_v59 = vld [vmem:[#allocation24_spill] sm:$0xff] }
 0x1df   : > { %v3479_v4 = vmax.f32 %v3477_v38, 0.0  ;;  %3979 = vst [vmem:[%s5117_s19 + $0x10] sm:$0xff] %v3478_v44  ;;  %v3713_v38 = vld [vmem:[%s4153_s20 + $0x54] sm:$0xe] }
 0x1e0   : > { %v3721_v44 = vld [vmem:[%s4153_s20 + $0xb4] sm:$0xe]  ;;  %v3729_v57 = vrot.slane %v3713_v38, 9 }
 0x1e1   : > { %3284 = vmatpush.bf16.xpose.msra.mxu3 %v4501_v23  ;;  %v2750_v23 = vpop.f32.mrf.mxu0  ;;  %3980 = vst [vmem:[%s5117_s19 + $0x18] sm:$0xff] %v3479_v4 }
 0x1e2   : > { %3242 = vmatpush.bf16.xpose.msra.mxu0 %v4944_v10  ;;  %v3715_v10 = vld [vmem:[%s4153_s20 + $0x6c] sm:$0xe]  ;;  %v5870_v23 = vld [vmem:[#allocation6_spill] sm:$0xff] }
 0x1e3   : > { %3255 = vmatpush.bf16.xpose.msra.mxu1 %v4962_v28  ;;  %v3723_v28 = vld [vmem:[%s4153_s20 + $0xcc] sm:$0xe] }
 0x1e4   : > { %v3739_v58 = vrot.slane %v3723_v28, 9  ;;  %v2024_v28 = vsel %vm4664_vm6, %v2022_v24, %v2023_v53  ;;  %v5883_v53 = vld [vmem:[#allocation10_spill] sm:$0xff] }
 0x1e5   : > { %3272 = vmatpush.bf16.xpose.msra.mxu2 %v4529_v21  ;;  %v3731_v21 = vrot.slane %v3715_v10, 9  ;;  %v5872_v10 = vld [vmem:[#allocation25_spill] sm:$0xff] }
 0x1e6   : > { %v2028_v63 = vsel %vm4664_vm6, %v3739_v58, %v2027_v60  ;;  %v1959_v60 = vrot.slane %v1957_v40, 4 }
 0x1e7   : > { %v1972_v55 = vsel %vm4664_vm6, %v3731_v21, %v1971_v15  ;;  %v3359_v22 = vunpack.c.l.b16 %v2028_v63  ;;  %v2021_v15 = vsel %vm4664_vm6, %v3738_v31, %v2020_v43  ;;  %v5873_v21 = vld [vmem:[#allocation5_spill] sm:$0xff]  ;;  %v3712_v63 = vld [vmem:[%s4153_s20 + $0x48] sm:$0xe] }
 0x1e9   : > { %3285 = vmatpush.bf16.xpose.msra.mxu3 %v4542_v20  ;;  %v2030_v20 = vrot.slane %v4103_v9, 5 }
 0x1ea   : > { %3243 = vmatpush.bf16.xpose.msra.mxu0 %v4973_v46  ;;  %v1975_v46 = vsel %vm4664_vm6, %v1973_v47, %v1974_v29  ;;  %v1960_v47 = vrot.slane %v5873_v21, 5  ;;  %v3737_v29 = vrot.slane %v3721_v44, 9 }
 0x1eb   : > { %3256 = vmatpush.bf16.xpose.msra.mxu1 %v4991_v14  ;;  %v3714_v14 = vld [vmem:[%s4153_s20 + $0x60] sm:$0xe]  ;;  %v3344_v5 = vunpack.c.l.b16 %v1975_v46  ;;  %v2031_v19 = vsel %vm4664_vm6, %v2029_v33, %v2030_v20  ;;  %v5875_v33 = vld [vmem:[#allocation8_spill] sm:$0xff]  ;;  %v5876_v20 = vld [vmem:[#allocation9_spill] sm:$0xff] }
 0x1ec   : > { %v3730_v25 = vrot.slane %v3714_v14, 9  ;;  %v3360_v1 = vunpack.c.l.b16 %v2031_v19  ;;  %v2016_v9 = vrot.slane %v5875_v33, 5  ;;  %v3358_v14 = vunpack.c.l.b16 %v2024_v28  ;;  %v5877_v19 = vld [vmem:[#allocation21_spill] sm:$0xff] }
 0x1ed   : > { %3273 = vmatpush.bf16.xpose.msra.mxu2 %v4580_v16  ;;  %v3343_v16 = vunpack.c.l.b16 %v1972_v55  ;;  %v1950_v55 = vrot.slane %v5876_v20, 5  ;;  %v5887_v20 = vld [vmem:[#allocation28_spill] sm:$0xff] }
 0x1ee   : > { %v1965_v8 = vsel %vm4664_vm6, %v3730_v25, %v1964_v37  ;;  %v3376_v39 = vpack.c.b16 %v3360_v1, %v3359_v22  ;;  %v3357_v37 = vunpack.c.l.b16 %v2021_v15  ;;  %v2006_v22 = vrot.slane %v5879_v51, 5  ;;  %v3710_v51 = vld [vmem:[%s4153_s20 + $0x30] sm:$0xe] }
 0x1ef   : > { %v3368_v56 = vpack.c.b16 %v3344_v5, %v3343_v16  ;;  %v3341_v32 = vunpack.c.l.b16 %v1965_v8  ;;  %v1958_v16 = vsel %vm4664_vm6, %v3729_v57, %v1957_v40  ;;  %v1961_v5 = vsel %vm4664_vm6, %v1959_v60, %v1960_v47  ;;  %v5880_v8 = vld [vmem:[#allocation26_spill] sm:$0xff]  ;;  %v5886_v47 = vld [vmem:[#allocation19_spill] sm:$0xff] }
 0x1f0   : > { %v3426_v46 = vsel %vm2083_vm0, %v3376_v39, 0  ;;  %v1952_v25 = vrot.slane %v1950_v55, 4  ;;  %v3339_v31 = vunpack.c.l.b16 %v1958_v16  ;;  %v3340_v24 = vunpack.c.l.b16 %v1961_v5  ;;  %v5884_v39 = vld [vmem:[#allocation17_spill] sm:$0xff] }
 0x1f1   : > { %3286 = vmatpush.bf16.xpose.msra.mxu3 %v4593_v12  ;;  %v1967_v12 = vrot.slane %v5866_v6, 5  ;;  %v3402_v4 = vsel %vm2083_vm0, %v3368_v56, 0  ;;  %v3375_v56 = vpack.c.b16 %v3358_v14, %v3357_v37  ;;  %v2009_v44 = vrot.slane %v5884_v39, 5  ;;  %v5889_v37 = vld [vmem:[#allocation16_spill] sm:$0xff] }
 0x1f2   : > { %3244 = vmatpush.bf16.xpose.msra.mxu0 %v5864_v50 }
 0x1f3   : > { %3257 = vmatpush.bf16.xpose.msra.mxu1 %v5865_v3  ;;  %v1968_v0 = vsel %vm4664_vm6, %v1966_v48, %v1967_v12  ;;  %v3728_v3 = vrot.slane %v3712_v63, 9  ;;  %v5878_v48 = vld [vmem:[#allocation11_spill] sm:$0xff] }
 0x1f4   : > { %v3342_v17 = vunpack.c.l.b16 %v1968_v0  ;;  %v1953_v6 = vrot.slane %v5878_v48, 5  ;;  %v3720_v12 = vld [vmem:[%s4153_s20 + $0xa8] sm:$0xe]  ;;  %v5881_v0 = vld [vmem:[#allocation14_spill] sm:$0xff] }
 0x1f5   : > { %3274 = vmatpush.bf16.xpose.msra.mxu2 %v5814_v35  ;;  %v2013_v35 = vrot.slane %v5870_v23, 5  ;;  %v1951_v38 = vsel %vm4664_vm6, %v3728_v3, %v1950_v55  ;;  %v1946_v55 = vrot.slane %v5887_v20, 5  ;;  %v5895_v20 = vld [vmem:[#allocation35_spill] sm:$0xff] }
 0x1f6   : > { %v3367_v18 = vpack.c.b16 %v3342_v17, %v3341_v32  ;;  %v1954_v23 = vsel %vm4664_vm6, %v1952_v25, %v1953_v6  ;;  %v3366_v32 = vpack.c.b16 %v3340_v24, %v3339_v31  ;;  %v5885_v17 = vld [vmem:[#allocation27_spill] sm:$0xff]  ;;  %v5891_v6 = vld [vmem:[#allocation30_spill] sm:$0xff] }
 0x1f7   : > { %v2015_v58 = vrot.slane %v2013_v35, 4  ;;  %v2014_v43 = vsel %vm4664_vm6, %v3737_v29, %v2013_v35  ;;  %v2008_v35 = vrot.slane %v2006_v22, 4  ;;  %v1943_v15 = vrot.slane %v5885_v17, 5  ;;  %v3967_v29 = vld [vmem:[%s5720_s1 + $0x30] sm:$0xf] }
 0x1f8   : > { %v3399_v1 = vsel %vm2083_vm0, %v3367_v18, 0  ;;  %v3355_v13 = vunpack.c.l.b16 %v2014_v43  ;;  %v3338_v28 = vunpack.c.l.b16 %v1954_v23  ;;  %v5888_v18 = vld [vmem:[#allocation13_spill] sm:$0xff] }
 0x1f9   : > { %3287 = vmatpush.bf16.xpose.msra.mxu3 %v5869_v2  ;;  %v2017_v50 = vsel %vm4664_vm6, %v2015_v58, %v2016_v9  ;;  %v3736_v2 = vrot.slane %v3720_v12, 9  ;;  %v2010_v21 = vsel %vm4664_vm6, %v2008_v35, %v2009_v44  ;;  %v3396_v58 = vsel %vm2083_vm0, %v3366_v32, 0  ;;  %v5890_v43 = vld [vmem:[#allocation29_spill] sm:$0xff]  ;;  %v5893_v35 = vld [vmem:[#allocation18_spill] sm:$0xff] }
 0x1fa   : > { %3245 = vmatpush.bf16.xpose.msra.mxu0 %v5871_v59  ;;  %v3356_v40 = vunpack.c.l.b16 %v2017_v50  ;;  %v3711_v59 = vld [vmem:[%s4153_s20 + $0x3c] sm:$0xe]  ;;  %v1945_v9 = vrot.slane %v1943_v15, 4  ;;  %v3354_v16 = vunpack.c.l.b16 %v2010_v21  ;;  %v2002_v50 = vrot.slane %v5890_v43, 5 }
 0x1fb   : > { %3258 = vmatpush.bf16.xpose.msra.mxu1 %v5872_v10  ;;  %v3337_v10 = vunpack.c.l.b16 %v1951_v38  ;;  %v2007_v60 = vsel %vm4664_vm6, %v3736_v2, %v2006_v22  ;;  %v3727_v33 = vrot.slane %v3711_v59, 9  ;;  %v1936_v12 = vrot.slane %v5891_v6, 5  ;;  %v5892_v2 = vld [vmem:[#allocation32_spill] sm:$0xff]  ;;  %v5894_v59 = vld [vmem:[#allocation33_spill] sm:$0xff] }
 0x1fc   : > { %v3374_v57 = vpack.c.b16 %v3356_v40, %v3355_v13  ;;  %v3353_v63 = vunpack.c.l.b16 %v2007_v60  ;;  %v1947_v48 = vsel %vm4664_vm6, %v1945_v9, %v1946_v55  ;;  %v1939_v13 = vrot.slane %v5309_v36, 5  ;;  %v3718_v40 = vld [vmem:[%s4153_s20 + $0x90] sm:$0xe]  ;;  %v3717_v55 = vld [vmem:[%s4153_s20 + $0x84] sm:$0xe]  ;;  %v5898_v43 = vld [vmem:[#allocation37_spill] sm:$0xff] }
 0x1fd   : > { %3275 = vmatpush.bf16.xpose.msra.mxu2 %v5874_v41  ;;  %v1999_v41 = vrot.slane %v5886_v47, 5  ;;  %v3365_v14 = vpack.c.b16 %v3338_v28, %v3337_v10  ;;  %v1944_v25 = vsel %vm4664_vm6, %v3727_v33, %v1943_v15  ;;  %v3336_v31 = vunpack.c.l.b16 %v1947_v48  ;;  %v3708_v6 = vld [vmem:[%s4153_s20 + $0x18] sm:$0xe] }
 0x1fe   : > { %v3420_v3 = vsel %vm2083_vm0, %v3374_v57, 0  ;;  %v1992_v38 = vrot.slane %v5892_v2, 5  ;;  %v3734_v32 = vrot.slane %v3718_v40, 9  ;;  %v1995_v10 = vrot.slane %v5894_v59, 5  ;;  %v3709_v57 = vld [vmem:[%s4153_s20 + $0x24] sm:$0xe] }
 0x1ff   : > { %v3393_v22 = vsel %vm2083_vm0, %v3365_v14, 0  ;;  %v1929_v28 = vrot.slane %v5343_v7, 5  ;;  %v3725_v33 = vrot.slane %v3709_v57, 9  ;;  %v1932_v7 = vrot.slane %v5895_v20, 5  ;;  %v5904_v57 = vld [vmem:[#allocation42_spill] sm:$0xff] }
 0x200   : > { %v1994_v15 = vrot.slane %v1992_v38, 4 }
 0x201   : > { %3288 = vmatpush.bf16.xpose.msra.mxu3 %v5877_v19  ;;  %v2001_v19 = vrot.slane %v1999_v41, 4  ;;  %v1931_v9 = vrot.slane %v1929_v28, 4 }
 0x202   : > { %3246 = vmatpush.bf16.xpose.msra.mxu0 %v5880_v8 }
 0x203   : > { %3259 = vmatpush.bf16.xpose.msra.mxu1 %v5881_v0  ;;  %v2003_v8 = vsel %vm4664_vm6, %v2001_v19, %v2002_v50  ;;  %v3968_v0 = vld [vmem:[%s5720_s1 + $0x34] sm:$0xf]  ;;  %v1930_v50 = vsel %vm4664_vm6, %v3725_v33, %v1929_v28 }
 0x204   : > { %3971 = vmatmul.msk.bf16.vlgmr.msra.gmra.mxu2 %vm2083_vm0, %v3967_v29 }
 0x205   : > { %3428 = vmatpush.bf16.xpose.msrb.mxu2 %v3402_v4  ;;  %v3423_v4 = vsel %vm2083_vm0, %v3375_v56, 0  ;;  %v3335_v56 = vunpack.c.l.b16 %v1944_v25  ;;  %v5899_v25 = vld [vmem:[#allocation38_spill] sm:$0xff] }
 0x206   : > { %v1922_v48 = vrot.slane %v5899_v25, 5 }
 0x207   : > { %v3364_v39 = vpack.c.b16 %v3336_v31, %v3335_v56 }
 0x208   : > { %3972 = vmatmul.msk.bf16.vlgmr.msra.gmra.mxu3 %vm2083_vm0, %v3967_v29  ;;  %v1996_v29 = vsel %vm4664_vm6, %v1994_v15, %v1995_v10 }
 0x209   : > { %3441 = vmatpush.bf16.xpose.msrb.mxu3 %v3426_v46  ;;  %v3719_v46 = vld [vmem:[%s4153_s20 + $0x9c] sm:$0xe]  ;;  %3969 = vmatmul.msk.bf16.vlgmr.msra.gmra.mxu0 %vm2083_vm0, %v3968_v0  ;;  %v3390_v47 = vsel %vm2083_vm0, %v3364_v39, 0 }
 0x20a   : > { %3299 = vmatpush.bf16.xpose.msrb.mxu0 %v5882_v11  ;;  %v3735_v5 = vrot.slane %v3719_v46, 9  ;;  %v3726_v11 = vrot.slane %v3710_v51, 9  ;;  %3970 = vmatmul.msk.bf16.vlgmr.msra.gmra.mxu1 %vm2083_vm0, %v3968_v0  ;;  %v5896_v46 = vld [vmem:[#allocation31_spill] sm:$0xff]  ;;  %v5900_v0 = vld [vmem:[#allocation40_spill] sm:$0xff] }
 0x20b   : > { %3312 = vmatpush.bf16.xpose.msrb.mxu1 %v5883_v53  ;;  %v1938_v53 = vrot.slane %v1936_v12, 4 }
 0x20c   : > { %v2000_v24 = vsel %vm4664_vm6, %v3735_v5, %v1999_v41  ;;  %v1937_v36 = vsel %vm4664_vm6, %v3726_v11, %v1936_v12  ;;  %v1993_v41 = vsel %vm4664_vm6, %v3734_v32, %v1992_v38  ;;  %v3733_v5 = vrot.slane %v3717_v55, 9 }
 0x20d   : > { %3429 = vmatpush.bf16.xpose.msrb.mxu2 %v3399_v1  ;;  %v3373_v1 = vpack.c.b16 %v3354_v16, %v3353_v63  ;;  %v3351_v44 = vunpack.c.l.b16 %v2000_v24  ;;  %v1940_v17 = vsel %vm4664_vm6, %v1938_v53, %v1939_v13  ;;  %v3333_v60 = vunpack.c.l.b16 %v1937_v36  ;;  %v3716_v53 = vld [vmem:[%s4153_s20 + $0x78] sm:$0xe] }
 0x20e   : > { %v3334_v21 = vunpack.c.l.b16 %v1940_v17  ;;  %v3349_v14 = vunpack.c.l.b16 %v1993_v41  ;;  %v3350_v63 = vunpack.c.l.b16 %v1996_v29  ;;  %v3724_v24 = vrot.slane %v3708_v6, 9  ;;  %v5901_v13 = vld [vmem:[#allocation41_spill] sm:$0xff] }
 0x20f   : > { %v3417_v23 = vsel %vm2083_vm0, %v3373_v1, 0  ;;  %v1925_v11 = vrot.slane %v5900_v0, 5  ;;  %v1978_v40 = vrot.slane %v5901_v13, 5  ;;  %v3732_v36 = vrot.slane %v3716_v53, 9 }
 0x210   : > { %v3371_v51 = vpack.c.b16 %v3350_v63, %v3349_v14  ;;  %v1923_v59 = vsel %vm4664_vm6, %v3724_v24, %v1922_v48 }
 0x211   : > { %3442 = vmatpush.bf16.xpose.msrb.mxu3 %v3423_v4  ;;  %v3352_v4 = vunpack.c.l.b16 %v2003_v8  ;;  %v1924_v8 = vrot.slane %v1922_v48, 4  ;;  %v1980_v28 = vrot.slane %v1978_v40, 4  ;;  %v1979_v29 = vsel %vm4664_vm6, %v3732_v36, %v1978_v40 }
 0x212   : > { %3300 = vmatpush.bf16.xpose.msrb.mxu0 %v5888_v18  ;;  %v5897_v18 = vld [vmem:[#allocation34_spill] sm:$0xff]  ;;  %v3411_v39 = vsel %vm2083_vm0, %v3371_v51, 0  ;;  %v3345_v55 = vunpack.c.l.b16 %v1979_v29 }
 0x213   : > { %3313 = vmatpush.bf16.xpose.msrb.mxu1 %v5889_v37  ;;  %v3363_v37 = vpack.c.b16 %v3334_v21, %v3333_v60  ;;  %v1926_v10 = vsel %vm4664_vm6, %v1924_v8, %v1925_v11 }
 0x214   : > { %v2941_v2 = vpop.f32.mrf.mxu2  ;;  %v3330_v41 = vunpack.c.l.b16 %v1926_v10 }
 0x215   : > { %3430 = vmatpush.bf16.xpose.msrb.mxu2 %v3396_v58  ;;  %v1985_v58 = vrot.slane %v5374_v27, 5  ;;  %v1988_v27 = vrot.slane %v5898_v43, 5  ;;  %v3387_v12 = vsel %vm2083_vm0, %v3363_v37, 0  ;;  %v2954_v38 = vpop.f32.mrf.mxu3 }
 0x217   : > { %v1987_v19 = vrot.slane %v1985_v58, 4  ;;  %v1986_v56 = vsel %vm4664_vm6, %v3733_v5, %v1985_v58 }
 0x219   : > { %3443 = vmatpush.bf16.xpose.msrb.mxu3 %v3420_v3  ;;  %v1933_v3 = vsel %vm4664_vm6, %v1931_v9, %v1932_v7  ;;  %v1989_v31 = vsel %vm4664_vm6, %v1987_v19, %v1988_v27 }
 0x21a   : > { %3301 = vmatpush.bf16.xpose.msrb.mxu0 %v5893_v35  ;;  %v3332_v1 = vunpack.c.l.b16 %v1933_v3  ;;  %v5903_v35 = vld [vmem:[#allocation39_spill] sm:$0xff]  ;;  %v3348_v32 = vunpack.c.l.b16 %v1989_v31  ;;  %v2912_v17 = vpop.f32.mrf.mxu0 }
 0x21b   : > { %3314 = vmatpush.bf16.xpose.msrb.mxu1 %v5288_v30  ;;  %v3372_v30 = vpack.c.b16 %v3352_v4, %v3351_v44  ;;  %v3347_v4 = vunpack.c.l.b16 %v1986_v56  ;;  %v2925_v15 = vpop.f32.mrf.mxu1 }
 0x21c   : > { %v2943_v33 = vpop.f32.mrf.mxu2 }
 0x21d   : > { %3431 = vmatpush.bf16.xpose.msrb.mxu2 %v3393_v22  ;;  %v3414_v16 = vsel %vm2083_vm0, %v3372_v30, 0  ;;  %v3331_v22 = vunpack.c.l.b16 %v1930_v50  ;;  %v1981_v30 = vrot.slane %v5904_v57, 5  ;;  %v3370_v21 = vpack.c.b16 %v3348_v32, %v3347_v4  ;;  %v2956_v9 = vpop.f32.mrf.mxu3 }
 0x21f   : > { %v3362_v44 = vpack.c.b16 %v3332_v1, %v3331_v22  ;;  %v1982_v58 = vsel %vm4664_vm6, %v1980_v28, %v1981_v30  ;;  %v3408_v20 = vsel %vm2083_vm0, %v3370_v21, 0 }
 0x221   : > { %3444 = vmatpush.bf16.xpose.msrb.mxu3 %v3417_v23  ;;  %v5902_v23 = vld [vmem:[#allocation36_spill] sm:$0xff]  ;;  %v3384_v60 = vsel %vm2083_vm0, %v3362_v44, 0 }
 0x222   : > { %3302 = vmatpush.bf16.xpose.msrb.mxu0 %v5896_v46  ;;  %v3346_v46 = vunpack.c.l.b16 %v1982_v58 }
 0x223   : > { %3315 = vmatpush.bf16.xpose.msrb.mxu1 %v5897_v18  ;;  %v2914_v18 = vpop.f32.mrf.mxu0  ;;  %v2927_v37 = vpop.f32.mrf.mxu1 }
 0x224   : > { %v3369_v63 = vpack.c.b16 %v3346_v46, %v3345_v55 }
 0x225   : > { %3432 = vmatpush.bf16.xpose.msrb.mxu2 %v3390_v47  ;;  %v3329_v47 = vunpack.c.l.b16 %v1923_v59 }
 0x226   : > { %v3405_v45 = vsel %vm2083_vm0, %v3369_v63, 0 }
 0x227   : > { %v3361_v7 = vpack.c.b16 %v3330_v41, %v3329_v47 }
 0x229   : > { %3445 = vmatpush.bf16.xpose.msrb.mxu3 %v3414_v16  ;;  %v3381_v14 = vsel %vm2083_vm0, %v3361_v7, 0 }
 0x22a   : > { %3303 = vmatpush.bf16.xpose.msrb.mxu0 %v5902_v23 }
 0x22b   : > { %3316 = vmatpush.bf16.xpose.msrb.mxu1 %v5903_v35 }
 0x22d   : > { %3433 = vmatpush.bf16.xpose.msrb.mxu2 %v3387_v12 }
 0x231   : > { %3446 = vmatpush.bf16.xpose.msrb.mxu3 %v3411_v39 }
 0x232   : > { %3304 = vmatpush.bf16.xpose.msrb.mxu0 %v5428_v52  ;;  %v3976_v52 = vld [vmem:[%s5720_s1 + $0x3c] sm:$0xf] }
 0x233   : > { %3317 = vmatpush.bf16.xpose.msrb.mxu1 %v5451_v26  ;;  %v3973_v26 = vld [vmem:[%s5720_s1 + $0x38] sm:$0xf] }
 0x235   : > { %3434 = vmatpush.bf16.xpose.msrb.mxu2 %v3384_v60 }
 0x239   : > { %3447 = vmatpush.bf16.xpose.msrb.mxu3 %v3408_v20 }
 0x23a   : > { %3305 = vmatpush.bf16.xpose.msrb.mxu0 %v5463_v62  ;;  %v2942_v62 = vadd.f32 %v2941_v2, %v2912_v17 }
 0x23b   : > { %3318 = vmatpush.bf16.xpose.msrb.mxu1 %v5473_v49  ;;  %v2955_v49 = vadd.f32 %v2954_v38, %v2925_v15 }
 0x23d   : > { %3435 = vmatpush.bf16.xpose.msrb.mxu2 %v3381_v14 }
 0x241   : > { %3448 = vmatpush.bf16.xpose.msrb.mxu3 %v3405_v45 }
 0x242   : > { %3306 = vmatpush.bf16.xpose.msrb.mxu0 %v5479_v42 }
 0x243   : > { %3319 = vmatpush.bf16.xpose.msrb.mxu1 %v5485_v61 }
 0x244   : > { %3977 = vmatmul.msk.bf16.vlgmr.msrb.gmra.mxu2 %vm2083_vm0, %v3976_v52 }
 0x246   : > { %v3084_v16 = vpop.f32.mrf.mxu0 }
 0x247   : > { %v3097_v5 = vpop.f32.mrf.mxu1  ;;  %v3101_v19 = vadd.f32 %v3084_v16, %v2942_v62  ;;  %v3213_v42 = vpop.f32.mrf.mxu2 }
 0x248   : > { %3978 = vmatmul.msk.bf16.vlgmr.msrb.gmra.mxu3 %vm2083_vm0, %v3976_v52  ;;  %v3102_v43 = vadd.f32 %v3097_v5, %v2955_v49 }
 0x249   : > { %3974 = vmatmul.msk.bf16.vlgmr.msrb.gmra.mxu0 %vm2083_vm0, %v3973_v26  ;;  %v3230_v61 = vadd.f32 %v3213_v42, %v3101_v19 }
 0x24a   : > { %3975 = vmatmul.msk.bf16.vlgmr.msrb.gmra.mxu1 %vm2083_vm0, %v3973_v26 }
 0x24b   : > { %v3226_v27 = vpop.f32.mrf.mxu3  ;;  %v3483_v3 = vmul.f32 %v5078_v34, %v3230_v61 }
 0x24c   : > { %v3231_v50 = vadd.f32 %v3226_v27, %v3102_v43 }
 0x24d   : > { %v3485_v48 = vadd.f32 %v3483_v3, %v5095_v54 }
 0x24e   : > { %v3484_v25 = vmul.f32 %v5078_v34, %v3231_v50  ;;  %v3086_v12 = vpop.f32.mrf.mxu0 }
 0x24f   : > { %v3099_v51 = vpop.f32.mrf.mxu1  ;;  %v3487_v22 = vmax.f32 %v3485_v48, 0.0  ;;  %v3215_v56 = vpop.f32.mrf.mxu2 }
 0x250   : > { %v3486_v6 = vadd.f32 %v3484_v25, %v5095_v54 }
 0x251   : > { %3981 = vst [vmem:[%s5117_s19 + $0x20] sm:$0xff] %v3487_v22 }
 0x252   : > { %v3488_v1 = vmax.f32 %v3486_v6, 0.0 }
 0x253   : > { %v3228_v31 = vpop.f32.mrf.mxu3 }
 0x254   : > { %3982 = vst [vmem:[%s5117_s19 + $0x28] sm:$0xff] %v3488_v1 }
 0x286   : > { %v3248_v0 = vpop.f32.mrf.mxu0 }
 0x287   : > { %v3277_v24 = vpop.f32.mrf.mxu2  ;;  %v3261_v11 = vpop.f32.mrf.mxu1 }
 0x288   : > { %v3278_v38 = vadd.f32 %v3277_v24, %v3248_v0 }
 0x28b   : > { %v3290_v8 = vpop.f32.mrf.mxu3 }
 0x28c   : > { %v3291_v35 = vadd.f32 %v3290_v8, %v3261_v11 }
 0x28e   : > { %v3250_v40 = vpop.f32.mrf.mxu0 }
 0x28f   : > { %v3279_v53 = vpop.f32.mrf.mxu2  ;;  %v3263_v2 = vpop.f32.mrf.mxu1 }
 0x293   : > { %v3292_v13 = vpop.f32.mrf.mxu3 }
 0x2c6   : > { %v3308_v39 = vpop.f32.mrf.mxu0 }
 0x2c7   : > { %v3437_v23 = vpop.f32.mrf.mxu2  ;;  %v3325_v44 = vadd.f32 %v3308_v39, %v3278_v38  ;;  %v3321_v4 = vpop.f32.mrf.mxu1 }
 0x2c8   : > { %v3326_v32 = vadd.f32 %v3321_v4, %v3291_v35 }
 0x2c9   : > { %v3454_v17 = vadd.f32 %v3437_v23, %v3325_v44 }
 0x2cb   : > { %v3450_v36 = vpop.f32.mrf.mxu3  ;;  %v3492_v59 = vmul.f32 %v5078_v34, %v3454_v17 }
 0x2cc   : > { %v3455_v15 = vadd.f32 %v3450_v36, %v3326_v32 }
 0x2cd   : > { %v3494_v28 = vadd.f32 %v3492_v59, %v5095_v54 }
 0x2ce   : > { %v3493_v10 = vmul.f32 %v5078_v34, %v3455_v15  ;;  %v3310_v60 = vpop.f32.mrf.mxu0 }
 0x2cf   : > { %v3439_v57 = vpop.f32.mrf.mxu2  ;;  %v3496_v21 = vmax.f32 %v3494_v28, 0.0  ;;  %v3323_v47 = vpop.f32.mrf.mxu1 }
 0x2d0   : > { %v3495_v30 = vadd.f32 %v3493_v10, %v5095_v54 }
 0x2d1   : > { %3983 = vst [vmem:[%s5117_s19 + $0x30] sm:$0xff] %v3496_v21 }
 0x2d2   : > { %v3497_v41 = vmax.f32 %v3495_v30, 0.0 }
 0x2d3   : > { %v3452_v29 = vpop.f32.mrf.mxu3 }
 0x2d4   : > { %3984 = vst [vmem:[%s5117_s19 + $0x38] sm:$0xff] %v3497_v41 }
 0x2d5 PF: > { %s14_s15 = sadd.s32 1, %s4111_s15  }
 0x2d6   : > { %p11_p4 = scmp.ge.s32.totalorder %s14_s15, 4  }
 0x2d8   :  { %13 = sbr.rel (!%p11_p4) target bundleno = 1 (0x1), region = 86 }

// kernel: decoder_block_forward.2
= control target key start
LH: loop header
LB: loop body
LE: loop exit
PB: predicated region body
PF: predicated region fallthrough
CT: control target
= control target key end

     0   :  { %s4055_s9 = smov 0   ;;  %s5633_s0 = inlined_call_operand.vmem [shape: bf16[2,18,18,4], index: 0, kind: input, shape index: {}]   ;;  %s5634_s1 = inlined_call_operand.vmem [shape: bf16[16,8,4], index: 1, kind: input, shape index: {}]   ;;  %s5635_s2 = inlined_call_operand.vmem [shape: f32[2,8,2], index: 2, kind: output, shape index: {}]  }
   0x1 LB: > { %s3495_s10 = sadd.s32 4294967295, %s4038_s9   ;;  %p3499_p0 = scmp.ge.s32.totalorder %s4038_s9, 1  ;;  %s4038_s9 = sphi %s4055_s9, %s12_s9  }
   0x2   : > { %p112_p1 = scmp.lt.s32.totalorder %s4038_s9, 3 }
   0x4   : > { %p113_p2 = pnand %p3499_p0, %p112_p1 }
   0x6   : > { %116 = sbr.rel (%p113_p2) target bundleno = 841 (0x349), region = 28 }
   0xb   : > { %p133_p3 = scmp.lt.s32.totalorder %s3495_s10, 1  ;;  %vm2025_vm0 = vcmask 31744   ;;  %vm190_vm1 = vsmask.f32 3328  ;;  %vm191_vm2 = vsmask.f32 7440 }
   0xc   : > { %vm4097_vm3 = vmor %vm190_vm1, %vm191_vm2  ;;  %v5697_v37 = vmov 0  ;;  %vm641_vm4 = vcmask 1042432   ;;  %vm642_vm5 = vcmask 1046532   ;;  %vm3438_vm7 = vcmask 7168  }
   0xd   : > { %s5820_s10 = smov (!%p133_p3, %s3495_s10), 1  ;;  %v5698_v37 = vsel %vm4097_vm3, 4294967295, %v5697_v37  ;;  %vm4583_vm6 = vmor %vm641_vm4, %vm642_vm5  ;;  %vm3440_vm8 = vcmask 15368  }
   0xe   : > { %s3967_s11 = smul.u32 216, %s5820_s10  ;;  %5699 = vst [vmem:[#allocation2_spill] sm:$0xff] %v5698_v37  ;;  %s3501_s21 = sshll.u32 %s5820_s10, 3 }
   0xf   : > { %s141_s24 = scalar_lea.vmem %s5635_s2, %s3501_s21 }
  0x10   : > { %s4069_s14 = scalar_lea.vmem %s5633_s0, %s3967_s11 }
  0x11   : > { %v3926_v0 = vld [vmem:[%s4069_s14 + $0x54] sm:$0xff]  ;;  %v3925_v2 = vld [vmem:[%s4069_s14 + $0x48] sm:$0xff]  ;;  %v4081_v9 = vld [vmem:[%s4069_s14 + $0x5c] sm:$0x1] }
  0x12   : > { %v3934_v1 = vld [vmem:[%s4069_s14 + $0xb4] sm:$0xff]  ;;  %v3933_v3 = vld [vmem:[%s4069_s14 + $0xa8] sm:$0xff]  ;;  %v2192_v6 = vsel %vm2025_vm0, %v3926_v0, 0  ;;  %v2189_v8 = vsel %vm2025_vm0, %v3925_v2, 0  ;;  %v381_v17 = vshll.u32 %v4081_v9, 16  ;;  %v3924_v30 = vld [vmem:[%s4069_s14 + $0x3c] sm:$0xff] }
  0x13   : > { %v156_v4 = vld [vmem:[%s4069_s14 + $0x54] sm:$0xf]  ;;  %v157_v5 = vld [vmem:[%s4069_s14 + $0x58] sm:$0xf]  ;;  %v2216_v7 = vsel %vm2025_vm0, %v3934_v1, 0  ;;  %2218 = vmatpush.bf16.xpose.msra.mxu2 %v2192_v6  ;;  %v2213_v11 = vsel %vm2025_vm0, %v3933_v3, 0 }
  0x14   : > { %v362_v10 = vshrl.u32 %v156_v4, 16  ;;  %2231 = vmatpush.bf16.xpose.msra.mxu3 %v2216_v7  ;;  %v365_v12 = vshll.u32 %v156_v4, 16  ;;  %v371_v13 = vshll.u32 %v157_v5, 16  ;;  %v375_v14 = vshrl.u32 %v157_v5, 16  ;;  %v172_v15 = vld [vmem:[%s4069_s14 + $0xb4] sm:$0xf] }
  0x15   : > { %v173_v19 = vld [vmem:[%s4069_s14 + $0xb8] sm:$0xf]  ;;  %v554_v20 = vshrl.u32 %v172_v15, 16  ;;  %v4089_v24 = vld [vmem:[%s4069_s14 + $0xbc] sm:$0x1]  ;;  %v557_v25 = vshll.u32 %v172_v15, 16 }
  0x16   : > { %v364_v16 = vrot.slane %v362_v10, 4  ;;  %v367_v21 = vrot.slane %v365_v12, 5  ;;  %v373_v22 = vrot.slane %v371_v13, 5  ;;  %v377_v23 = vrot.slane %v375_v14, 4  ;;  %v3932_v31 = vld [vmem:[%s4069_s14 + $0x9c] sm:$0xff]  ;;  %v3923_v12 = vld [vmem:[%s4069_s14 + $0x30] sm:$0xff] }
  0x17   : > { %v383_v26 = vrot.slane %v381_v17, 5  ;;  %v556_v27 = vrot.slane %v554_v20, 4  ;;  %v563_v28 = vshll.u32 %v173_v19, 16  ;;  %v567_v29 = vshrl.u32 %v173_v19, 16  ;;  %v154_v36 = vld [vmem:[%s4069_s14 + $0x48] sm:$0xf] }
  0x18   : > { %v368_v32 = vor.u32 %v367_v21, %v364_v16  ;;  %v378_v33 = vor.u32 %v377_v23, %v373_v22  ;;  %v559_v34 = vrot.slane %v557_v25, 5  ;;  %v573_v35 = vshll.u32 %v4089_v24, 16  ;;  %v155_v42 = vld [vmem:[%s4069_s14 + $0x4c] sm:$0xf]  ;;  %v180_v54 = vld [vmem:[%s4069_s14 + $0x50] sm:$0x1] }
  0x19   : > { %v565_v38 = vrot.slane %v563_v28, 5  ;;  %v569_v39 = vrot.slane %v567_v29, 4  ;;  %v2186_v41 = vsel %vm2025_vm0, %v3924_v30, 0  ;;  %v2210_v48 = vsel %vm2025_vm0, %v3932_v31, 0  ;;  %v170_v60 = vld [vmem:[%s4069_s14 + $0xa8] sm:$0xf] }
  0x1a   : > { %v369_v43 = vrot.slane %v368_v32, 4  ;;  %v379_v44 = vrot.slane %v378_v33, 4  ;;  %v560_v45 = vor.u32 %v559_v34, %v556_v27  ;;  %v575_v46 = vrot.slane %v573_v35, 5  ;;  %v171_v1 = vld [vmem:[%s4069_s14 + $0xac] sm:$0xf] }
  0x1b   : > { %v570_v47 = vor.u32 %v569_v39, %v565_v38  ;;  %v338_v49 = vshrl.u32 %v154_v36, 16  ;;  %v341_v50 = vshll.u32 %v154_v36, 16  ;;  %2219 = vmatpush.bf16.xpose.msra.mxu2 %v2189_v8  ;;  %v347_v55 = vshll.u32 %v155_v42, 16  ;;  %v188_v10 = vld [vmem:[%s4069_s14 + $0xb0] sm:$0x1] }
  0x1c   : > { %2232 = vmatpush.bf16.xpose.msra.mxu3 %v2213_v11  ;;  %v374_v51 = vsel %vm4097_vm3, %v369_v43, %v373_v22  ;;  %v384_v52 = vsel %vm4097_vm3, %v379_v44, %v383_v26  ;;  %v561_v53 = vrot.slane %v560_v45, 4  ;;  %v351_v0 = vshrl.u32 %v155_v42, 16  ;;  %v3931_v22 = vld [vmem:[%s4069_s14 + $0x90] sm:$0xff]  ;;  %v152_v28 = vld [vmem:[%s4069_s14 + $0x3c] sm:$0xf] }
  0x1d   : > { %v1991_v56 = vunpack.c.l.b16 %v374_v51  ;;  %v1992_v57 = vunpack.c.l.b16 %v384_v52  ;;  %v571_v58 = vrot.slane %v570_v47, 4  ;;  %v340_v59 = vrot.slane %v338_v49, 4  ;;  %v153_v33 = vld [vmem:[%s4069_s14 + $0x40] sm:$0xf]  ;;  %v179_v39 = vld [vmem:[%s4069_s14 + $0x44] sm:$0x1] }
  0x1e   : > { %v566_v61 = vsel %vm4097_vm3, %v561_v53, %v565_v38  ;;  %v343_v62 = vrot.slane %v341_v50, 5  ;;  %v349_v63 = vrot.slane %v347_v55, 5  ;;  %v357_v5 = vshll.u32 %v180_v54, 16  ;;  %v168_v53 = vld [vmem:[%s4069_s14 + $0x9c] sm:$0xf] }
  0x1f   : > { %v2016_v2 = vpack.c.b16 %v1992_v57, %v1991_v56  ;;  %v576_v3 = vsel %vm4097_vm3, %v571_v58, %v575_v46  ;;  %v2007_v4 = vunpack.c.l.b16 %v566_v61  ;;  %v353_v8 = vrot.slane %v351_v0, 4  ;;  %v169_v58 = vld [vmem:[%s4069_s14 + $0xa0] sm:$0xf]  ;;  %v4496_v40 = vld [vmem:[%s4069_s14 + $0x7c] sm:$0xf] }
  0x20   : > { %v2008_v6 = vunpack.c.l.b16 %v576_v3  ;;  %v344_v7 = vor.u32 %v343_v62, %v340_v59  ;;  %v530_v11 = vshrl.u32 %v170_v60, 16  ;;  %v359_v14 = vrot.slane %v357_v5, 5 }
  0x21   : > { %v4119_v13 = vsel %vm2025_vm0, %v2016_v2, 0  ;;  %v533_v15 = vshll.u32 %v170_v60, 16  ;;  %v539_v16 = vshll.u32 %v171_v1, 16  ;;  %v354_v20 = vor.u32 %v353_v8, %v349_v63  ;;  %v3922_v8 = vld [vmem:[%s4069_s14 + $0x24] sm:$0xff] }
  0x22   : > { %2077 = vmatpush.bf16.xpose.msra.mxu0 %v4119_v13  ;;  %v2024_v17 = vpack.c.b16 %v2008_v6, %v2007_v4  ;;  %v345_v19 = vrot.slane %v344_v7, 4  ;;  %v532_v21 = vrot.slane %v530_v11, 4  ;;  %v543_v26 = vshrl.u32 %v171_v1, 16 }
  0x23   : > { %v535_v23 = vrot.slane %v533_v15, 5  ;;  %v541_v25 = vrot.slane %v539_v16, 5  ;;  %v549_v27 = vshll.u32 %v188_v10, 16  ;;  %2220 = vmatpush.bf16.xpose.msra.mxu2 %v2186_v41  ;;  %v355_v31 = vrot.slane %v354_v20, 4  ;;  %v3930_v10 = vld [vmem:[%s4069_s14 + $0x84] sm:$0xff] }
  0x24   : > { %v4125_v29 = vsel %vm2025_vm0, %v2024_v17, 0  ;;  %2233 = vmatpush.bf16.xpose.msra.mxu3 %v2210_v48  ;;  %v350_v30 = vsel %vm4097_vm3, %v345_v19, %v349_v63  ;;  %v2183_v32 = vsel %vm2025_vm0, %v3923_v12, 0  ;;  %v545_v36 = vrot.slane %v543_v26, 4  ;;  %v187_v63 = vld [vmem:[%s4069_s14 + $0xa4] sm:$0x1] }
  0x25   : > { %2090 = vmatpush.bf16.xpose.msra.mxu1 %v4125_v29  ;;  %v1989_v34 = vunpack.c.l.b16 %v350_v30  ;;  %v536_v35 = vor.u32 %v535_v23, %v532_v21  ;;  %v551_v38 = vrot.slane %v549_v27, 5  ;;  %v360_v42 = vsel %vm4097_vm3, %v355_v31, %v359_v14  ;;  %v150_v21 = vld [vmem:[%s4069_s14 + $0x30] sm:$0xf]  ;;  %v151_v27 = vld [vmem:[%s4069_s14 + $0x34] sm:$0xf] }
  0x26   : > { %v2207_v41 = vsel %vm2025_vm0, %v3931_v22, 0  ;;  %v314_v43 = vshrl.u32 %v152_v28, 16  ;;  %v317_v44 = vshll.u32 %v152_v28, 16  ;;  %v1990_v45 = vunpack.c.l.b16 %v360_v42  ;;  %v178_v28 = vld [vmem:[%s4069_s14 + $0x38] sm:$0x1] }
  0x27   : > { %v537_v46 = vrot.slane %v536_v35, 4  ;;  %v546_v47 = vor.u32 %v545_v36, %v541_v25  ;;  %v323_v48 = vshll.u32 %v153_v33, 16  ;;  %v327_v51 = vshrl.u32 %v153_v33, 16 }
  0x28   : > { %v316_v49 = vrot.slane %v314_v43, 4  ;;  %v319_v50 = vrot.slane %v317_v44, 5  ;;  %v333_v52 = vshll.u32 %v179_v39, 16  ;;  %v2015_v54 = vpack.c.b16 %v1990_v45, %v1989_v34  ;;  %v166_v44 = vld [vmem:[%s4069_s14 + $0x90] sm:$0xf] }
  0x29   : > { %v542_v55 = vsel %vm4097_vm3, %v537_v46, %v541_v25  ;;  %v547_v56 = vrot.slane %v546_v47, 4  ;;  %v325_v57 = vrot.slane %v323_v48, 5  ;;  %v329_v61 = vrot.slane %v327_v51, 4 }
  0x2a   : > { %v2005_v59 = vunpack.c.l.b16 %v542_v55  ;;  %v320_v60 = vor.u32 %v319_v50, %v316_v49  ;;  %v335_v62 = vrot.slane %v333_v52, 5  ;;  %v4142_v0 = vsel %vm2025_vm0, %v2015_v54, 0  ;;  %v167_v49 = vld [vmem:[%s4069_s14 + $0x94] sm:$0xf]  ;;  %v186_v54 = vld [vmem:[%s4069_s14 + $0x98] sm:$0x1] }
  0x2b   : > { %v552_v1 = vsel %vm4097_vm3, %v547_v56, %v551_v38  ;;  %v506_v2 = vshrl.u32 %v168_v53, 16  ;;  %v509_v3 = vshll.u32 %v168_v53, 16  ;;  %2078 = vmatpush.bf16.xpose.msra.mxu0 %v4142_v0  ;;  %2221 = vmatpush.bf16.xpose.msra.mxu2 %v2183_v32  ;;  %v330_v6 = vor.u32 %v329_v61, %v325_v57 }
  0x2c   : > { %v2006_v4 = vunpack.c.l.b16 %v552_v1  ;;  %v321_v5 = vrot.slane %v320_v60, 4  ;;  %v515_v7 = vshll.u32 %v169_v58, 16  ;;  %2234 = vmatpush.bf16.xpose.msra.mxu3 %v2207_v41  ;;  %v519_v14 = vshrl.u32 %v169_v58, 16 }
  0x2d   : > { %v508_v11 = vrot.slane %v506_v2, 4  ;;  %v511_v12 = vrot.slane %v509_v3, 5  ;;  %v525_v15 = vshll.u32 %v187_v63, 16  ;;  %v331_v19 = vrot.slane %v330_v6, 4 }
  0x2e   : > { %v2023_v16 = vpack.c.b16 %v2006_v4, %v2005_v59  ;;  %v326_v17 = vsel %vm4097_vm3, %v321_v5, %v325_v57  ;;  %v517_v20 = vrot.slane %v515_v7, 5  ;;  %v521_v25 = vrot.slane %v519_v14, 4  ;;  %v3921_v59 = vld [vmem:[%s4069_s14 + $0x18] sm:$0xff] }
  0x2f   : > { %v1987_v22 = vunpack.c.l.b16 %v326_v17  ;;  %v512_v23 = vor.u32 %v511_v12, %v508_v11  ;;  %v527_v26 = vrot.slane %v525_v15, 5  ;;  %v336_v31 = vsel %vm4097_vm3, %v331_v19, %v335_v62  ;;  %v3929_v5 = vld [vmem:[%s4069_s14 + $0x78] sm:$0xff]  ;;  %v148_v11 = vld [vmem:[%s4069_s14 + $0x24] sm:$0xf]  ;;  %v149_v17 = vld [vmem:[%s4069_s14 + $0x28] sm:$0xf] }
  0x30   : > { %v4155_v30 = vsel %vm2025_vm0, %v2023_v16, 0  ;;  %v2180_v32 = vsel %vm2025_vm0, %v3922_v8, 0  ;;  %v2204_v33 = vsel %vm2025_vm0, %v3930_v10, 0  ;;  %v1988_v34 = vunpack.c.l.b16 %v336_v31 }
  0x31   : > { %2091 = vmatpush.bf16.xpose.msra.mxu1 %v4155_v30  ;;  %v513_v35 = vrot.slane %v512_v23, 4  ;;  %v522_v36 = vor.u32 %v521_v25, %v517_v20  ;;  %v290_v38 = vshrl.u32 %v150_v21, 16  ;;  %v293_v39 = vshll.u32 %v150_v21, 16  ;;  %v177_v23 = vld [vmem:[%s4069_s14 + $0x2c] sm:$0x1] }
  0x32   : > { %v299_v42 = vshll.u32 %v151_v27, 16  ;;  %v303_v41 = vshrl.u32 %v151_v27, 16  ;;  %v309_v43 = vshll.u32 %v178_v28, 16  ;;  %v2014_v45 = vpack.c.b16 %v1988_v34, %v1987_v22 }
  0x33   : > { %v518_v46 = vsel %vm4097_vm3, %v513_v35, %v517_v20  ;;  %v523_v47 = vrot.slane %v522_v36, 4  ;;  %v292_v48 = vrot.slane %v290_v38, 4  ;;  %2222 = vmatpush.bf16.xpose.msra.mxu2 %v2180_v32  ;;  %v295_v51 = vrot.slane %v293_v39, 5 }
  0x34   : > { %v2003_v50 = vunpack.c.l.b16 %v518_v46  ;;  %v301_v52 = vrot.slane %v299_v42, 5  ;;  %v305_v53 = vrot.slane %v303_v41, 4  ;;  %v4168_v55 = vsel %vm2025_vm0, %v2014_v45, 0  ;;  %2235 = vmatpush.bf16.xpose.msra.mxu3 %v2204_v33  ;;  %v164_v42 = vld [vmem:[%s4069_s14 + $0x84] sm:$0xf] }
  0x35   : > { %v528_v56 = vsel %vm4097_vm3, %v523_v47, %v527_v26  ;;  %v311_v57 = vrot.slane %v309_v43, 5  ;;  %v482_v58 = vshrl.u32 %v166_v44, 16  ;;  %2079 = vmatpush.bf16.xpose.msra.mxu0 %v4168_v55  ;;  %v296_v61 = vor.u32 %v295_v51, %v292_v48  ;;  %v165_v46 = vld [vmem:[%s4069_s14 + $0x88] sm:$0xf]  ;;  %v185_v51 = vld [vmem:[%s4069_s14 + $0x8c] sm:$0x1] }
  0x36   : > { %v2004_v60 = vunpack.c.l.b16 %v528_v56  ;;  %v306_v62 = vor.u32 %v305_v53, %v301_v52  ;;  %v485_v63 = vshll.u32 %v166_v44, 16  ;;  %v491_v2 = vshll.u32 %v167_v49, 16 }
  0x37   : > { %v484_v1 = vrot.slane %v482_v58, 4  ;;  %v495_v3 = vshrl.u32 %v167_v49, 16  ;;  %v501_v4 = vshll.u32 %v186_v54, 16  ;;  %v297_v7 = vrot.slane %v296_v61, 4 }
  0x38   : > { %v2022_v6 = vpack.c.b16 %v2004_v60, %v2003_v50  ;;  %v307_v8 = vrot.slane %v306_v62, 4  ;;  %v487_v10 = vrot.slane %v485_v63, 5  ;;  %v493_v12 = vrot.slane %v491_v2, 5 }
  0x39   : > { %v497_v14 = vrot.slane %v495_v3, 4  ;;  %v503_v15 = vrot.slane %v501_v4, 5  ;;  %v2177_v16 = vsel %vm2025_vm0, %v3921_v59, 0  ;;  %v302_v20 = vsel %vm4097_vm3, %v297_v7, %v301_v52  ;;  %v3928_v3 = vld [vmem:[%s4069_s14 + $0x6c] sm:$0xff] }
  0x3a   : > { %v4179_v19 = vsel %vm2025_vm0, %v2022_v6, 0  ;;  %v312_v21 = vsel %vm4097_vm3, %v307_v8, %v311_v57  ;;  %v488_v22 = vor.u32 %v487_v10, %v484_v1  ;;  %v1985_v25 = vunpack.c.l.b16 %v302_v20  ;;  %v3920_v57 = vld [vmem:[%s4069_s14 + $0xc] sm:$0xff]  ;;  %v146_v8 = vld [vmem:[%s4069_s14 + $0x18] sm:$0xf] }
  0x3b   : > { %2092 = vmatpush.bf16.xpose.msra.mxu1 %v4179_v19  ;;  %v1986_v26 = vunpack.c.l.b16 %v312_v21  ;;  %v498_v27 = vor.u32 %v497_v14, %v493_v12  ;;  %v2201_v28 = vsel %vm2025_vm0, %v3929_v5, 0  ;;  %2223 = vmatpush.bf16.xpose.msra.mxu2 %v2177_v16  ;;  %v266_v32 = vshrl.u32 %v148_v11, 16 }
  0x3c   : > { %v489_v31 = vrot.slane %v488_v22, 4  ;;  %v269_v33 = vshll.u32 %v148_v11, 16  ;;  %v275_v34 = vshll.u32 %v149_v17, 16  ;;  %2236 = vmatpush.bf16.xpose.msra.mxu3 %v2201_v28  ;;  %v279_v38 = vshrl.u32 %v149_v17, 16  ;;  %v176_v22 = vld [vmem:[%s4069_s14 + $0x20] sm:$0x1] }
  0x3d   : > { %v2013_v35 = vpack.c.b16 %v1986_v26, %v1985_v25  ;;  %v499_v36 = vrot.slane %v498_v27, 4  ;;  %v285_v39 = vshll.u32 %v177_v23, 16  ;;  %v268_v43 = vrot.slane %v266_v32, 4 }
  0x3e   : > { %v494_v41 = vsel %vm4097_vm3, %v489_v31, %v493_v12  ;;  %v271_v44 = vrot.slane %v269_v33, 5  ;;  %v277_v45 = vrot.slane %v275_v34, 5  ;;  %v281_v50 = vrot.slane %v279_v38, 4 }
  0x3f   : > { %v4193_v47 = vsel %vm2025_vm0, %v2013_v35, 0  ;;  %v504_v48 = vsel %vm4097_vm3, %v499_v36, %v503_v15  ;;  %v2001_v49 = vunpack.c.l.b16 %v494_v41  ;;  %v287_v54 = vrot.slane %v285_v39, 5  ;;  %v147_v15 = vld [vmem:[%s4069_s14 + $0x1c] sm:$0xf]  ;;  %v162_v39 = vld [vmem:[%s4069_s14 + $0x78] sm:$0xf] }
  0x40   : > { %2080 = vmatpush.bf16.xpose.msra.mxu0 %v4193_v47  ;;  %v2002_v52 = vunpack.c.l.b16 %v504_v48  ;;  %v272_v53 = vor.u32 %v271_v44, %v268_v43  ;;  %v458_v56 = vshrl.u32 %v164_v42, 16  ;;  %v282_v58 = vor.u32 %v281_v50, %v277_v45 }
  0x41   : > { %v461_v59 = vshll.u32 %v164_v42, 16  ;;  %v467_v60 = vshll.u32 %v165_v46, 16  ;;  %v471_v61 = vshrl.u32 %v165_v46, 16  ;;  %v477_v2 = vshll.u32 %v185_v51, 16  ;;  %v184_v51 = vld [vmem:[%s4069_s14 + $0x80] sm:$0x1] }
  0x42   : > { %v2021_v62 = vpack.c.b16 %v2002_v52, %v2001_v49  ;;  %v273_v63 = vrot.slane %v272_v53, 4  ;;  %v460_v1 = vrot.slane %v458_v56, 4  ;;  %v283_v4 = vrot.slane %v282_v58, 4 }
  0x43   : > { %v463_v5 = vrot.slane %v461_v59, 5  ;;  %v469_v6 = vrot.slane %v467_v60, 5  ;;  %v473_v7 = vrot.slane %v471_v61, 4  ;;  %v479_v12 = vrot.slane %v477_v2, 5  ;;  %v3919_v61 = vld [vmem:[%s4069_s14] sm:$0xff] }
  0x44   : > { %v4203_v10 = vsel %vm2025_vm0, %v2021_v62, 0  ;;  %v278_v11 = vsel %vm4097_vm3, %v273_v63, %v277_v45  ;;  %v2174_v14 = vsel %vm2025_vm0, %v3920_v57, 0  ;;  %v288_v16 = vsel %vm4097_vm3, %v283_v4, %v287_v54  ;;  %v163_v45 = vld [vmem:[%s4069_s14 + $0x7c] sm:$0xf]  ;;  %v3927_v62 = vld [vmem:[%s4069_s14 + $0x60] sm:$0xff] }
  0x45   : > { %2093 = vmatpush.bf16.xpose.msra.mxu1 %v4203_v10  ;;  %v1983_v17 = vunpack.c.l.b16 %v278_v11  ;;  %v464_v20 = vor.u32 %v463_v5, %v460_v1  ;;  %v474_v21 = vor.u32 %v473_v7, %v469_v6  ;;  %2224 = vmatpush.bf16.xpose.msra.mxu2 %v2174_v14  ;;  %v1984_v23 = vunpack.c.l.b16 %v288_v16  ;;  %v3532_v4 = vld [vmem:[%s4069_s14 + $0x60] sm:$0xf]  ;;  %v3533_v11 = vld [vmem:[%s4069_s14 + $0x64] sm:$0xf] }
  0x46   : > { %v2198_v25 = vsel %vm2025_vm0, %v3928_v3, 0  ;;  %v242_v26 = vshrl.u32 %v146_v8, 16  ;;  %v245_v27 = vshll.u32 %v146_v8, 16  ;;  %v251_v32 = vshll.u32 %v147_v15, 16 }
  0x47   : > { %v465_v28 = vrot.slane %v464_v20, 4  ;;  %v475_v31 = vrot.slane %v474_v21, 4  ;;  %2237 = vmatpush.bf16.xpose.msra.mxu3 %v2198_v25  ;;  %v255_v33 = vshrl.u32 %v147_v15, 16  ;;  %v2012_v34 = vpack.c.b16 %v1984_v23, %v1983_v17  ;;  %v3557_v17 = vld [vmem:[%s4069_s14 + $0x68] sm:$0x1] }
  0x48   : > { %v244_v35 = vrot.slane %v242_v26, 4  ;;  %v247_v36 = vrot.slane %v245_v27, 5  ;;  %v261_v38 = vshll.u32 %v176_v22, 16  ;;  %v253_v43 = vrot.slane %v251_v32, 5 }
  0x49   : > { %v470_v42 = vsel %vm4097_vm3, %v465_v28, %v469_v6  ;;  %v480_v41 = vsel %vm4097_vm3, %v475_v31, %v479_v12  ;;  %v257_v44 = vrot.slane %v255_v33, 4  ;;  %v4221_v46 = vsel %vm2025_vm0, %v2012_v34, 0 }
  0x4a   : > { %v1999_v48 = vunpack.c.l.b16 %v470_v42  ;;  %v2000_v49 = vunpack.c.l.b16 %v480_v41  ;;  %v248_v50 = vor.u32 %v247_v36, %v244_v35  ;;  %2081 = vmatpush.bf16.xpose.msra.mxu0 %v4221_v46  ;;  %v263_v53 = vrot.slane %v261_v38, 5  ;;  %v3548_v35 = vld [vmem:[%s4069_s14 + $0xc0] sm:$0xf]  ;;  %v3549_v41 = vld [vmem:[%s4069_s14 + $0xc4] sm:$0xf] }
  0x4b   : > { %v258_v52 = vor.u32 %v257_v44, %v253_v43  ;;  %v434_v54 = vshrl.u32 %v162_v39, 16  ;;  %v437_v56 = vshll.u32 %v162_v39, 16  ;;  %v443_v59 = vshll.u32 %v163_v45, 16 }
  0x4c   : > { %v2020_v57 = vpack.c.b16 %v2000_v49, %v1999_v48  ;;  %v249_v58 = vrot.slane %v248_v50, 4  ;;  %v447_v60 = vshrl.u32 %v163_v45, 16  ;;  %v453_v3 = vshll.u32 %v184_v51, 16  ;;  %v3565_v49 = vld [vmem:[%s4069_s14 + $0xc8] sm:$0x1] }
  0x4d   : > { %v259_v63 = vrot.slane %v258_v52, 4  ;;  %v436_v1 = vrot.slane %v434_v54, 4  ;;  %v439_v2 = vrot.slane %v437_v56, 5  ;;  %v445_v7 = vrot.slane %v443_v59, 5  ;;  %v144_v59 = vld [vmem:[%s4069_s14 + $0xc] sm:$0xf] }
  0x4e   : > { %v4229_v5 = vsel %vm2025_vm0, %v2020_v57, 0  ;;  %v254_v6 = vsel %vm4097_vm3, %v249_v58, %v253_v43  ;;  %v449_v8 = vrot.slane %v447_v60, 4  ;;  %v455_v16 = vrot.slane %v453_v3, 5 }
  0x4f   : > { %2094 = vmatpush.bf16.xpose.msra.mxu1 %v4229_v5  ;;  %v264_v12 = vsel %vm4097_vm3, %v259_v63, %v263_v53  ;;  %v1981_v14 = vunpack.c.l.b16 %v254_v6  ;;  %v440_v15 = vor.u32 %v439_v2, %v436_v1  ;;  %v2171_v22 = vsel %vm2025_vm0, %v3919_v61, 0  ;;  %v145_v6 = vld [vmem:[%s4069_s14 + $0x10] sm:$0xf] }
  0x50   : > { %v1982_v20 = vunpack.c.l.b16 %v264_v12  ;;  %v450_v21 = vor.u32 %v449_v8, %v445_v7  ;;  %v2195_v23 = vsel %vm2025_vm0, %v3927_v62, 0  ;;  %2225 = vmatpush.bf16.xpose.msra.mxu2 %v2171_v22  ;;  %v974_v26 = vshrl.u32 %v3532_v4, 16  ;;  %v175_v12 = vld [vmem:[%s4069_s14 + $0x14] sm:$0x1] }
  0x51   : > { %v441_v25 = vrot.slane %v440_v15, 4  ;;  %2238 = vmatpush.bf16.xpose.msra.mxu3 %v2195_v23  ;;  %v977_v27 = vshll.u32 %v3532_v4, 16  ;;  %v983_v28 = vshll.u32 %v3533_v11, 16  ;;  %v987_v33 = vshrl.u32 %v3533_v11, 16 }
  0x52   : > { %v2011_v31 = vpack.c.b16 %v1982_v20, %v1981_v14  ;;  %v451_v32 = vrot.slane %v450_v21, 4  ;;  %v993_v34 = vshll.u32 %v3557_v17, 16  ;;  %v976_v38 = vrot.slane %v974_v26, 4  ;;  %v160_v21 = vld [vmem:[%s4069_s14 + $0x6c] sm:$0xf] }
  0x53   : > { %v446_v36 = vsel %vm4097_vm3, %v441_v25, %v445_v7  ;;  %v979_v39 = vrot.slane %v977_v27, 5  ;;  %v985_v42 = vrot.slane %v983_v28, 5  ;;  %v989_v48 = vrot.slane %v987_v33, 4 }
  0x54   : > { %v4245_v43 = vsel %vm2025_vm0, %v2011_v31, 0  ;;  %v456_v44 = vsel %vm4097_vm3, %v451_v32, %v455_v16  ;;  %v1997_v45 = vunpack.c.l.b16 %v446_v36  ;;  %v995_v52 = vrot.slane %v993_v34, 5  ;;  %v161_v36 = vld [vmem:[%s4069_s14 + $0x70] sm:$0xf] }
  0x55   : > { %2082 = vmatpush.bf16.xpose.msra.mxu0 %v4245_v43  ;;  %v1998_v50 = vunpack.c.l.b16 %v456_v44  ;;  %v980_v51 = vor.u32 %v979_v39, %v976_v38  ;;  %v1166_v53 = vshrl.u32 %v3548_v35, 16  ;;  %v990_v54 = vor.u32 %v989_v48, %v985_v42 }
  0x56   : > { %v1169_v56 = vshll.u32 %v3548_v35, 16  ;;  %v1175_v57 = vshll.u32 %v3549_v41, 16  ;;  %v1179_v58 = vshrl.u32 %v3549_v41, 16  ;;  %v1185_v63 = vshll.u32 %v3565_v49, 16 }
  0x57   : > { %v2019_v60 = vpack.c.b16 %v1998_v50, %v1997_v45  ;;  %v981_v61 = vrot.slane %v980_v51, 4  ;;  %v1168_v62 = vrot.slane %v1166_v53, 4  ;;  %v991_v1 = vrot.slane %v990_v54, 4  ;;  %v183_v45 = vld [vmem:[%s4069_s14 + $0x74] sm:$0x1] }
  0x58   : > { %v1171_v2 = vrot.slane %v1169_v56, 5  ;;  %v1177_v3 = vrot.slane %v1175_v57, 5  ;;  %v1181_v4 = vrot.slane %v1179_v58, 4  ;;  %v1187_v11 = vrot.slane %v1185_v63, 5 }
  0x59   : > { %v4254_v7 = vsel %vm2025_vm0, %v2019_v60, 0  ;;  %v986_v8 = vsel %vm4097_vm3, %v981_v61, %v985_v42  ;;  %v218_v14 = vshrl.u32 %v144_v59, 16  ;;  %v996_v15 = vsel %vm4097_vm3, %v991_v1, %v995_v52  ;;  %v3530_v52 = vld [vmem:[%s4069_s14 + $0x54] sm:$0xf] }
  0x5a   : > { %2095 = vmatpush.bf16.xpose.msra.mxu1 %v4254_v7  ;;  %v2405_v16 = vunpack.c.l.b16 %v986_v8  ;;  %v1172_v17 = vor.u32 %v1171_v2, %v1168_v62  ;;  %v1182_v20 = vor.u32 %v1181_v4, %v1177_v3  ;;  %v2406_v22 = vunpack.c.l.b16 %v996_v15  ;;  %v3531_v62 = vld [vmem:[%s4069_s14 + $0x58] sm:$0xf]  ;;  %v3546_v4 = vld [vmem:[%s4069_s14 + $0xb4] sm:$0xf] }
  0x5b   : > { %v220_v23 = vrot.slane %v218_v14, 4  ;;  %v221_v25 = vshll.u32 %v144_v59, 16  ;;  %v227_v26 = vshll.u32 %v145_v6, 16  ;;  %v231_v31 = vshrl.u32 %v145_v6, 16  ;;  %v3556_v14 = vld [vmem:[%s4069_s14 + $0x5c] sm:$0x1] }
  0x5c   : > { %v1173_v27 = vrot.slane %v1172_v17, 4  ;;  %v1183_v28 = vrot.slane %v1182_v20, 4  ;;  %v237_v32 = vshll.u32 %v175_v12, 16  ;;  %v2430_v33 = vpack.c.b16 %v2406_v22, %v2405_v16 }
  0x5d   : > { %v223_v34 = vrot.slane %v221_v25, 5  ;;  %v229_v35 = vrot.slane %v227_v26, 5  ;;  %v410_v38 = vshrl.u32 %v160_v21, 16  ;;  %v233_v41 = vrot.slane %v231_v31, 4  ;;  %v3547_v31 = vld [vmem:[%s4069_s14 + $0xb8] sm:$0xf] }
  0x5e   : > { %v1178_v39 = vsel %vm4097_vm3, %v1173_v27, %v1177_v3  ;;  %v1188_v42 = vsel %vm4097_vm3, %v1183_v28, %v1187_v11  ;;  %v239_v44 = vrot.slane %v237_v32, 5  ;;  %v4270_v48 = vsel %vm2025_vm0, %v2430_v33, 0 }
  0x5f   : > { %v2421_v49 = vunpack.c.l.b16 %v1178_v39  ;;  %v2422_v50 = vunpack.c.l.b16 %v1188_v42  ;;  %v224_v51 = vor.u32 %v223_v34, %v220_v23  ;;  %2490 = vmatpush.bf16.xpose.msrb.mxu2 %v4270_v48  ;;  %v234_v53 = vor.u32 %v233_v41, %v229_v35 }
  0x60   : > { %v412_v54 = vrot.slane %v410_v38, 4  ;;  %v413_v56 = vshll.u32 %v160_v21, 16  ;;  %v419_v57 = vshll.u32 %v161_v36, 16  ;;  %v423_v60 = vshrl.u32 %v161_v36, 16  ;;  %v3564_v38 = vld [vmem:[%s4069_s14 + $0xbc] sm:$0x1] }
  0x61   : > { %v2438_v58 = vpack.c.b16 %v2422_v50, %v2421_v49  ;;  %v225_v59 = vrot.slane %v224_v51, 4  ;;  %v429_v61 = vshll.u32 %v183_v45, 16  ;;  %v235_v63 = vrot.slane %v234_v53, 4  ;;  %v142_v45 = vld [vmem:[%s4069_s14] sm:$0xf] }
  0x62   : > { %v415_v1 = vrot.slane %v413_v56, 5  ;;  %v421_v2 = vrot.slane %v419_v57, 5  ;;  %v950_v3 = vshrl.u32 %v3530_v52, 16  ;;  %v425_v11 = vrot.slane %v423_v60, 4 }
  0x63   : > { %v4277_v6 = vsel %vm2025_vm0, %v2438_v58, 0  ;;  %v230_v8 = vsel %vm4097_vm3, %v225_v59, %v229_v35  ;;  %v431_v12 = vrot.slane %v429_v61, 5  ;;  %v240_v15 = vsel %vm4097_vm3, %v235_v63, %v239_v44  ;;  %v143_v61 = vld [vmem:[%s4069_s14 + $0x4] sm:$0xf] }
  0x64   : > { %2503 = vmatpush.bf16.xpose.msrb.mxu3 %v4277_v6  ;;  %v1979_v16 = vunpack.c.l.b16 %v230_v8  ;;  %v416_v17 = vor.u32 %v415_v1, %v412_v54  ;;  %v952_v20 = vrot.slane %v950_v3, 4  ;;  %v1980_v21 = vunpack.c.l.b16 %v240_v15  ;;  %v158_v8 = vld [vmem:[%s4069_s14 + $0x60] sm:$0xf]  ;;  %v174_v15 = vld [vmem:[%s4069_s14 + $0x8] sm:$0x1] }
  0x65   : > { %v426_v22 = vor.u32 %v425_v11, %v421_v2  ;;  %v953_v23 = vshll.u32 %v3530_v52, 16  ;;  %v959_v25 = vshll.u32 %v3531_v62, 16  ;;  %v963_v27 = vshrl.u32 %v3531_v62, 16 }
  0x66   : > { %v417_v26 = vrot.slane %v416_v17, 4  ;;  %v969_v28 = vshll.u32 %v3556_v14, 16  ;;  %v1142_v32 = vshrl.u32 %v3546_v4, 16  ;;  %v2010_v33 = vpack.c.b16 %v1980_v21, %v1979_v16 }
  0x67   : > { %v427_v34 = vrot.slane %v426_v22, 4  ;;  %v955_v35 = vrot.slane %v953_v23, 5  ;;  %v961_v36 = vrot.slane %v959_v25, 5  ;;  %v965_v42 = vrot.slane %v963_v27, 4 }
  0x68   : > { %v422_v39 = vsel %vm4097_vm3, %v417_v26, %v421_v2  ;;  %v971_v41 = vrot.slane %v969_v28, 5  ;;  %v1144_v44 = vrot.slane %v1142_v32, 4  ;;  %v4291_v49 = vsel %vm2025_vm0, %v2010_v33, 0 }
  0x69   : > { %v432_v50 = vsel %vm4097_vm3, %v427_v34, %v431_v12  ;;  %v1995_v51 = vunpack.c.l.b16 %v422_v39  ;;  %v956_v52 = vor.u32 %v955_v35, %v952_v20  ;;  %2083 = vmatpush.bf16.xpose.msra.mxu0 %v4291_v49  ;;  %v966_v54 = vor.u32 %v965_v42, %v961_v36  ;;  %v3942_v39 = vld [vmem:[%s4069_s14 + $0x60] sm:$0xff] }
  0x6a   : > { %v1996_v53 = vunpack.c.l.b16 %v432_v50  ;;  %v1145_v56 = vshll.u32 %v3546_v4, 16  ;;  %v1151_v57 = vshll.u32 %v3547_v31, 16  ;;  %v1155_v59 = vshrl.u32 %v3547_v31, 16  ;;  %v182_v50 = vld [vmem:[%s4069_s14 + $0x68] sm:$0x1] }
  0x6b   : > { %v957_v58 = vrot.slane %v956_v52, 4  ;;  %v1161_v60 = vshll.u32 %v3564_v38, 16  ;;  %v194_v62 = vshrl.u32 %v142_v45, 16  ;;  %v967_v1 = vrot.slane %v966_v54, 4  ;;  %v159_v38 = vld [vmem:[%s4069_s14 + $0x64] sm:$0xf] }
  0x6c   : > { %v2018_v63 = vpack.c.b16 %v1996_v53, %v1995_v51  ;;  %v1147_v2 = vrot.slane %v1145_v56, 5  ;;  %v1153_v3 = vrot.slane %v1151_v57, 5  ;;  %v1157_v12 = vrot.slane %v1155_v59, 4  ;;  %v3950_v56 = vld [vmem:[%s4069_s14 + $0xc0] sm:$0xff] }
  0x6d   : > { %v962_v11 = vsel %vm4097_vm3, %v957_v58, %v961_v36  ;;  %v1163_v14 = vrot.slane %v1161_v60, 5  ;;  %v196_v16 = vrot.slane %v194_v62, 4  ;;  %v972_v17 = vsel %vm4097_vm3, %v967_v1, %v971_v41 }
  0x6e   : > { %v4302_v4 = vsel %vm2025_vm0, %v2018_v63, 0  ;;  %v2403_v20 = vunpack.c.l.b16 %v962_v11  ;;  %v1148_v21 = vor.u32 %v1147_v2, %v1144_v44  ;;  %v2404_v22 = vunpack.c.l.b16 %v972_v17  ;;  %v3528_v2 = vld [vmem:[%s4069_s14 + $0x48] sm:$0xf] }
  0x6f   : > { %2096 = vmatpush.bf16.xpose.msra.mxu1 %v4302_v4  ;;  %v1158_v23 = vor.u32 %v1157_v12, %v1153_v3  ;;  %v197_v25 = vshll.u32 %v142_v45, 16  ;;  %v203_v26 = vshll.u32 %v143_v61, 16  ;;  %v207_v28 = vshrl.u32 %v143_v61, 16 }
  0x70   : > { %v1149_v27 = vrot.slane %v1148_v21, 4  ;;  %v213_v31 = vshll.u32 %v174_v15, 16  ;;  %v386_v32 = vshrl.u32 %v158_v8, 16  ;;  %v2429_v33 = vpack.c.b16 %v2404_v22, %v2403_v20  ;;  %v3529_v15 = vld [vmem:[%s4069_s14 + $0x4c] sm:$0xf] }
  0x71   : > { %v1159_v34 = vrot.slane %v1158_v23, 4  ;;  %v199_v35 = vrot.slane %v197_v25, 5  ;;  %v205_v36 = vrot.slane %v203_v26, 5  ;;  %v209_v41 = vrot.slane %v207_v28, 4  ;;  %v3555_v21 = vld [vmem:[%s4069_s14 + $0x50] sm:$0x1] }
  0x72   : > { %v1154_v42 = vsel %vm4097_vm3, %v1149_v27, %v1153_v3  ;;  %v215_v44 = vrot.slane %v213_v31, 5  ;;  %v388_v45 = vrot.slane %v386_v32, 4  ;;  %v4313_v51 = vsel %vm2025_vm0, %v2429_v33, 0 }
  0x73   : > { %v1164_v52 = vsel %vm4097_vm3, %v1159_v34, %v1163_v14  ;;  %v2419_v53 = vunpack.c.l.b16 %v1154_v42  ;;  %v200_v54 = vor.u32 %v199_v35, %v196_v16  ;;  %2491 = vmatpush.bf16.xpose.msrb.mxu2 %v4313_v51  ;;  %v210_v58 = vor.u32 %v209_v41, %v205_v36 }
  0x74   : > { %v2420_v57 = vunpack.c.l.b16 %v1164_v52  ;;  %v389_v59 = vshll.u32 %v158_v8, 16  ;;  %v395_v60 = vshll.u32 %v159_v38, 16  ;;  %v399_v62 = vshrl.u32 %v159_v38, 16  ;;  %v3544_v38 = vld [vmem:[%s4069_s14 + $0xa8] sm:$0xf] }
  0x75   : > { %v201_v61 = vrot.slane %v200_v54, 4  ;;  %v405_v63 = vshll.u32 %v182_v50, 16  ;;  %v4320_v1 = vsel %vm2025_vm0, %v3942_v39, 0  ;;  %v211_v11 = vrot.slane %v210_v58, 4 }
  0x76   : > { %5700 = vst [vmem:[#allocation3_spill] sm:$0xff] %v4320_v1  ;;  %v2437_v3 = vpack.c.b16 %v2420_v57, %v2419_v53  ;;  %v391_v12 = vrot.slane %v389_v59, 5  ;;  %v397_v14 = vrot.slane %v395_v60, 5  ;;  %v401_v17 = vrot.slane %v399_v62, 4 }
  0x77   : > { %v206_v16 = vsel %vm4097_vm3, %v201_v61, %v205_v36  ;;  %v407_v20 = vrot.slane %v405_v63, 5  ;;  %v4327_v8 = vsel %vm2025_vm0, %v3950_v56, 0  ;;  %v216_v23 = vsel %vm4097_vm3, %v211_v11, %v215_v44  ;;  %v3545_v44 = vld [vmem:[%s4069_s14 + $0xac] sm:$0xf]  ;;  %v3563_v56 = vld [vmem:[%s4069_s14 + $0xb0] sm:$0x1] }
  0x78   : > { %5701 = vst [vmem:[#allocation4_spill] sm:$0xff] %v4327_v8  ;;  %v4331_v22 = vsel %vm2025_vm0, %v2437_v3, 0  ;;  %v1977_v25 = vunpack.c.l.b16 %v206_v16  ;;  %v392_v26 = vor.u32 %v391_v12, %v388_v45  ;;  %v1978_v27 = vunpack.c.l.b16 %v216_v23  ;;  %v3949_v16 = vld [vmem:[%s4069_s14 + $0xb4] sm:$0xff] }
  0x79   : > { %2504 = vmatpush.bf16.xpose.msrb.mxu3 %v4331_v22  ;;  %v402_v28 = vor.u32 %v401_v17, %v397_v14  ;;  %v926_v31 = vshrl.u32 %v3528_v2, 16  ;;  %v929_v32 = vshll.u32 %v3528_v2, 16  ;;  %v935_v34 = vshll.u32 %v3529_v15, 16 }
  0x7a   : > { %v393_v33 = vrot.slane %v392_v26, 4  ;;  %v939_v35 = vshrl.u32 %v3529_v15, 16  ;;  %v945_v36 = vshll.u32 %v3555_v21, 16  ;;  %v2009_v39 = vpack.c.b16 %v1978_v27, %v1977_v25  ;;  %v3941_v15 = vld [vmem:[%s4069_s14 + $0x54] sm:$0xff]  ;;  %v3526_v25 = vld [vmem:[%s4069_s14 + $0x3c] sm:$0xf] }
  0x7b   : > { %v403_v42 = vrot.slane %v402_v28, 4  ;;  %v928_v41 = vrot.slane %v926_v31, 4  ;;  %v931_v50 = vrot.slane %v929_v32, 5  ;;  %v937_v52 = vrot.slane %v935_v34, 5  ;;  %v3527_v32 = vld [vmem:[%s4069_s14 + $0x40] sm:$0xf] }
  0x7c   : > { %v398_v45 = vsel %vm4097_vm3, %v393_v33, %v397_v14  ;;  %v941_v53 = vrot.slane %v939_v35, 4  ;;  %v947_v54 = vrot.slane %v945_v36, 5  ;;  %v4342_v57 = vsel %vm2025_vm0, %v2009_v39, 0 }
  0x7d   : > { %v408_v58 = vsel %vm4097_vm3, %v403_v42, %v407_v20  ;;  %v1993_v59 = vunpack.c.l.b16 %v398_v45  ;;  %v932_v60 = vor.u32 %v931_v50, %v928_v41  ;;  %2084 = vmatpush.bf16.xpose.msra.mxu0 %v4342_v57  ;;  %v1118_v63 = vshrl.u32 %v3544_v38, 16 }
  0x7e   : > { %v1994_v61 = vunpack.c.l.b16 %v408_v58  ;;  %v942_v62 = vor.u32 %v941_v53, %v937_v52  ;;  %v1121_v2 = vshll.u32 %v3544_v38, 16  ;;  %v1127_v11 = vshll.u32 %v3545_v44, 16  ;;  %v3554_v38 = vld [vmem:[%s4069_s14 + $0x44] sm:$0x1] }
  0x7f   : > { %v933_v3 = vrot.slane %v932_v60, 4  ;;  %v1131_v12 = vshrl.u32 %v3545_v44, 16  ;;  %v1137_v14 = vshll.u32 %v3563_v56, 16  ;;  %v1120_v21 = vrot.slane %v1118_v63, 4  ;;  %v3542_v60 = vld [vmem:[%s4069_s14 + $0x9c] sm:$0xf] }
  0x80   : > { %v2017_v17 = vpack.c.b16 %v1994_v61, %v1993_v59  ;;  %v943_v20 = vrot.slane %v942_v62, 4  ;;  %v1123_v23 = vrot.slane %v1121_v2, 5  ;;  %v1129_v27 = vrot.slane %v1127_v11, 5 }
  0x81   : > { %v938_v26 = vsel %vm4097_vm3, %v933_v3, %v937_v52  ;;  %v1133_v28 = vrot.slane %v1131_v12, 4  ;;  %v1139_v31 = vrot.slane %v1137_v14, 5  ;;  %v4362_v41 = vsel %vm2025_vm0, %v3941_v15, 0  ;;  %v3543_v3 = vld [vmem:[%s4069_s14 + $0xa0] sm:$0xf] }
  0x82   : > { %v4355_v33 = vsel %vm2025_vm0, %v2017_v17, 0  ;;  %v948_v34 = vsel %vm4097_vm3, %v943_v20, %v947_v54  ;;  %v2401_v35 = vunpack.c.l.b16 %v938_v26  ;;  %v1124_v36 = vor.u32 %v1123_v23, %v1120_v21  ;;  %5702 = vst [vmem:[#allocation5_spill] sm:$0xff] %v4362_v41 }
  0x83   : > { %2097 = vmatpush.bf16.xpose.msra.mxu1 %v4355_v33  ;;  %v2402_v39 = vunpack.c.l.b16 %v948_v34  ;;  %v1134_v42 = vor.u32 %v1133_v28, %v1129_v27  ;;  %v4365_v50 = vsel %vm2025_vm0, %v3949_v16, 0  ;;  %v902_v45 = vshrl.u32 %v3526_v25, 16  ;;  %v3562_v16 = vld [vmem:[%s4069_s14 + $0xa4] sm:$0x1] }
  0x84   : > { %5703 = vst [vmem:[#allocation6_spill] sm:$0xff] %v4365_v50  ;;  %v1125_v44 = vrot.slane %v1124_v36, 4  ;;  %v905_v52 = vshll.u32 %v3526_v25, 16  ;;  %v911_v53 = vshll.u32 %v3527_v32, 16  ;;  %v915_v58 = vshrl.u32 %v3527_v32, 16  ;;  %v3940_v25 = vld [vmem:[%s4069_s14 + $0x48] sm:$0xff] }
  0x85   : > { %2361 = vmatpush.bf16.xpose.msrb.mxu0 %v4320_v1  ;;  %v2428_v54 = vpack.c.b16 %v2402_v39, %v2401_v35  ;;  %v1135_v56 = vrot.slane %v1134_v42, 4  ;;  %v921_v59 = vshll.u32 %v3554_v38, 16  ;;  %v904_v62 = vrot.slane %v902_v45, 4  ;;  %v3948_v38 = vld [vmem:[%s4069_s14 + $0xa8] sm:$0xff]  ;;  %v3944_v1 = vld [vmem:[%s4069_s14 + $0x78] sm:$0xff] }
  0x86   : > { %v1130_v61 = vsel %vm4097_vm3, %v1125_v44, %v1129_v27  ;;  %v907_v63 = vrot.slane %v905_v52, 5  ;;  %v913_v2 = vrot.slane %v911_v53, 5  ;;  %v917_v15 = vrot.slane %v915_v58, 4  ;;  %v3524_v52 = vld [vmem:[%s4069_s14 + $0x30] sm:$0xf] }
  0x87   : > { %v4373_v11 = vsel %vm2025_vm0, %v2428_v54, 0  ;;  %v1140_v12 = vsel %vm4097_vm3, %v1135_v56, %v1139_v31  ;;  %v2417_v14 = vunpack.c.l.b16 %v1130_v61  ;;  %v923_v21 = vrot.slane %v921_v59, 5  ;;  %v3525_v59 = vld [vmem:[%s4069_s14 + $0x34] sm:$0xf] }
  0x88   : > { %2492 = vmatpush.bf16.xpose.msrb.mxu2 %v4373_v11  ;;  %v2418_v17 = vunpack.c.l.b16 %v1140_v12  ;;  %v908_v20 = vor.u32 %v907_v63, %v904_v62  ;;  %v1094_v23 = vshrl.u32 %v3542_v60, 16  ;;  %v918_v26 = vor.u32 %v917_v15, %v913_v2 }
  0x89   : > { %v1097_v27 = vshll.u32 %v3542_v60, 16  ;;  %v1103_v28 = vshll.u32 %v3543_v3, 16  ;;  %v1107_v32 = vshrl.u32 %v3543_v3, 16  ;;  %v1113_v36 = vshll.u32 %v3562_v16, 16  ;;  %v3553_v3 = vld [vmem:[%s4069_s14 + $0x38] sm:$0x1] }
  0x8a   : > { %v2436_v31 = vpack.c.b16 %v2418_v17, %v2417_v14  ;;  %v909_v34 = vrot.slane %v908_v20, 4  ;;  %v1096_v35 = vrot.slane %v1094_v23, 4  ;;  %v919_v39 = vrot.slane %v918_v26, 4 }
  0x8b   : > { %2374 = vmatpush.bf16.xpose.msrb.mxu1 %v4327_v8  ;;  %v1099_v42 = vrot.slane %v1097_v27, 5  ;;  %v1105_v44 = vrot.slane %v1103_v28, 5  ;;  %v1109_v45 = vrot.slane %v1107_v32, 4  ;;  %v1115_v56 = vrot.slane %v1113_v36, 5  ;;  %v3540_v28 = vld [vmem:[%s4069_s14 + $0x90] sm:$0xf] }
  0x8c   : > { %v4384_v53 = vsel %vm2025_vm0, %v2436_v31, 0  ;;  %v914_v54 = vsel %vm4097_vm3, %v909_v34, %v913_v2  ;;  %v4390_v58 = vsel %vm2025_vm0, %v3940_v25, 0  ;;  %v924_v60 = vsel %vm4097_vm3, %v919_v39, %v923_v21  ;;  %v3541_v36 = vld [vmem:[%s4069_s14 + $0x94] sm:$0xf] }
  0x8d   : > { %2362 = vmatpush.bf16.xpose.msrb.mxu0 %v4362_v41  ;;  %5704 = vst [vmem:[#allocation7_spill] sm:$0xff] %v4390_v58  ;;  %2505 = vmatpush.bf16.xpose.msrb.mxu3 %v4384_v53  ;;  %v2399_v61 = vunpack.c.l.b16 %v914_v54  ;;  %v1100_v62 = vor.u32 %v1099_v42, %v1096_v35  ;;  %v1110_v63 = vor.u32 %v1109_v45, %v1105_v44  ;;  %v2400_v12 = vunpack.c.l.b16 %v924_v60 }
  0x8e   : > { %v4398_v14 = vsel %vm2025_vm0, %v3948_v38, 0  ;;  %v878_v2 = vshrl.u32 %v3524_v52, 16  ;;  %v881_v15 = vshll.u32 %v3524_v52, 16  ;;  %v887_v20 = vshll.u32 %v3525_v59, 16  ;;  %v3561_v52 = vld [vmem:[%s4069_s14 + $0x98] sm:$0x1] }
  0x8f   : > { %5705 = vst [vmem:[#allocation8_spill] sm:$0xff] %v4398_v14  ;;  %v1101_v16 = vrot.slane %v1100_v62, 4  ;;  %v1111_v17 = vrot.slane %v1110_v63, 4  ;;  %v891_v23 = vshrl.u32 %v3525_v59, 16  ;;  %v2427_v21 = vpack.c.b16 %v2400_v12, %v2399_v61  ;;  %v3947_v12 = vld [vmem:[%s4069_s14 + $0x9c] sm:$0xff] }
  0x90   : > { %v880_v25 = vrot.slane %v878_v2, 4  ;;  %v883_v26 = vrot.slane %v881_v15, 5  ;;  %v897_v27 = vshll.u32 %v3553_v3, 16  ;;  %v889_v34 = vrot.slane %v887_v20, 5  ;;  %v3939_v3 = vld [vmem:[%s4069_s14 + $0x3c] sm:$0xff] }
  0x91   : > { %v1106_v32 = vsel %vm4097_vm3, %v1101_v16, %v1105_v44  ;;  %v1116_v31 = vsel %vm4097_vm3, %v1111_v17, %v1115_v56  ;;  %v893_v35 = vrot.slane %v891_v23, 4  ;;  %v4408_v38 = vsel %vm2025_vm0, %v2427_v21, 0  ;;  %v3522_v20 = vld [vmem:[%s4069_s14 + $0x24] sm:$0xf] }
  0x92   : > { %v2415_v39 = vunpack.c.l.b16 %v1106_v32  ;;  %v2416_v42 = vunpack.c.l.b16 %v1116_v31  ;;  %v884_v45 = vor.u32 %v883_v26, %v880_v25  ;;  %2493 = vmatpush.bf16.xpose.msrb.mxu2 %v4408_v38  ;;  %v899_v44 = vrot.slane %v897_v27, 5  ;;  %v3523_v27 = vld [vmem:[%s4069_s14 + $0x28] sm:$0xf] }
  0x93   : > { %2375 = vmatpush.bf16.xpose.msrb.mxu1 %v4365_v50  ;;  %v894_v54 = vor.u32 %v893_v35, %v889_v34  ;;  %v1070_v59 = vshrl.u32 %v3540_v28, 16  ;;  %v1073_v60 = vshll.u32 %v3540_v28, 16  ;;  %v1079_v62 = vshll.u32 %v3541_v36, 16 }
  0x94   : > { %v2435_v56 = vpack.c.b16 %v2416_v42, %v2415_v39  ;;  %v885_v61 = vrot.slane %v884_v45, 4  ;;  %v1083_v63 = vshrl.u32 %v3541_v36, 16  ;;  %v1089_v17 = vshll.u32 %v3561_v52, 16  ;;  %v3552_v36 = vld [vmem:[%s4069_s14 + $0x2c] sm:$0x1] }
  0x95   : > { %2363 = vmatpush.bf16.xpose.msrb.mxu0 %v4390_v58  ;;  %v895_v2 = vrot.slane %v894_v54, 4  ;;  %v1072_v15 = vrot.slane %v1070_v59, 4  ;;  %v1075_v16 = vrot.slane %v1073_v60, 5  ;;  %v1081_v25 = vrot.slane %v1079_v62, 5  ;;  %v1974_v39 = vld [vmem:[%s5634_s1] sm:$0xf] }
  0x96   : > { %v4417_v23 = vsel %vm2025_vm0, %v2435_v56, 0  ;;  %v890_v21 = vsel %vm4097_vm3, %v885_v61, %v889_v34  ;;  %v1085_v26 = vrot.slane %v1083_v63, 4  ;;  %v1091_v35 = vrot.slane %v1089_v17, 5  ;;  %3745 = vmatmul.msk.bf16.vlgmr.msra.gmra.mxu2 %vm2025_vm0, %v1974_v39  ;;  %3746 = vmatmul.msk.bf16.vlgmr.msra.gmra.mxu3 %vm2025_vm0, %v1974_v39  ;;  %v4442_v17 = vld [vmem:[%s4069_s14 + $0x88] sm:$0xf]  ;;  %v3938_v39 = vld [vmem:[%s4069_s14 + $0x30] sm:$0xff] }
  0x97   : > { %2506 = vmatpush.bf16.xpose.msrb.mxu3 %v4417_v23  ;;  %v900_v28 = vsel %vm4097_vm3, %v895_v2, %v899_v44  ;;  %v2397_v32 = vunpack.c.l.b16 %v890_v21  ;;  %v1076_v31 = vor.u32 %v1075_v16, %v1072_v15  ;;  %v4430_v34 = vsel %vm2025_vm0, %v3939_v3, 0  ;;  %v3538_v3 = vld [vmem:[%s4069_s14 + $0x84] sm:$0xf] }
  0x98   : > { %v2398_v42 = vunpack.c.l.b16 %v900_v28  ;;  %v1086_v45 = vor.u32 %v1085_v26, %v1081_v25  ;;  %5706 = vst [vmem:[#allocation9_spill] sm:$0xff] %v4430_v34  ;;  %v4433_v52 = vsel %vm2025_vm0, %v3947_v12, 0  ;;  %v854_v44 = vshrl.u32 %v3522_v20, 16  ;;  %v4451_v28 = vld [vmem:[%s4069_s14 + $0x8c] sm:$0x1] }
  0x99   : > { %5707 = vst [vmem:[#allocation10_spill] sm:$0xff] %v4433_v52  ;;  %v1077_v54 = vrot.slane %v1076_v31, 4  ;;  %v857_v59 = vshll.u32 %v3522_v20, 16  ;;  %v863_v60 = vshll.u32 %v3523_v27, 16  ;;  %v867_v62 = vshrl.u32 %v3523_v27, 16 }
  0x9a   : > { %v2426_v56 = vpack.c.b16 %v2398_v42, %v2397_v32  ;;  %v1087_v61 = vrot.slane %v1086_v45, 4  ;;  %v873_v63 = vshll.u32 %v3552_v36, 16  ;;  %v856_v2 = vrot.slane %v854_v44, 4 }
  0x9b   : > { %2376 = vmatpush.bf16.xpose.msrb.mxu1 %v4398_v14  ;;  %v1082_v12 = vsel %vm4097_vm3, %v1077_v54, %v1081_v25  ;;  %v859_v15 = vrot.slane %v857_v59, 5  ;;  %v865_v16 = vrot.slane %v863_v60, 5  ;;  %v869_v27 = vrot.slane %v867_v62, 4  ;;  %v4523_v14 = vld [vmem:[%s4069_s14 + $0x14] sm:$0x1] }
  0x9c   : > { %v4445_v21 = vsel %vm2025_vm0, %v2426_v56, 0  ;;  %v1092_v20 = vsel %vm4097_vm3, %v1087_v61, %v1091_v35  ;;  %v2413_v26 = vunpack.c.l.b16 %v1082_v12  ;;  %v875_v31 = vrot.slane %v873_v63, 5  ;;  %v3946_v61 = vld [vmem:[%s4069_s14 + $0x90] sm:$0xff] }
  0x9d   : > { %2364 = vmatpush.bf16.xpose.msrb.mxu0 %v4430_v34  ;;  %2494 = vmatpush.bf16.xpose.msrb.mxu2 %v4445_v21  ;;  %v2414_v25 = vunpack.c.l.b16 %v1092_v20  ;;  %v860_v32 = vor.u32 %v859_v15, %v856_v2  ;;  %v1046_v36 = vshrl.u32 %v3538_v3, 16  ;;  %v870_v42 = vor.u32 %v869_v27, %v865_v16  ;;  %v3520_v15 = vld [vmem:[%s4069_s14 + $0x18] sm:$0xf]  ;;  %v3518_v34 = vld [vmem:[%s4069_s14 + $0xc] sm:$0xf] }
  0x9e   : > { %v1049_v45 = vshll.u32 %v3538_v3, 16  ;;  %v1055_v54 = vshll.u32 %v4442_v17, 16  ;;  %v1059_v35 = vshrl.u32 %v4442_v17, 16  ;;  %v1065_v56 = vshll.u32 %v4451_v28, 16 }
  0x9f   : > { %v2434_v44 = vpack.c.b16 %v2414_v25, %v2413_v26  ;;  %v861_v59 = vrot.slane %v860_v32, 4  ;;  %v1048_v60 = vrot.slane %v1046_v36, 4  ;;  %v871_v62 = vrot.slane %v870_v42, 4  ;;  %v4469_v25 = vld [vmem:[%s4069_s14 + $0x1c] sm:$0xf] }
  0xa0   : > { %v1051_v12 = vrot.slane %v1049_v45, 5  ;;  %v1057_v63 = vrot.slane %v1055_v54, 5  ;;  %v1061_v2 = vrot.slane %v1059_v35, 4  ;;  %v1067_v27 = vrot.slane %v1065_v56, 5  ;;  %v4476_v54 = vld [vmem:[%s4069_s14 + $0x20] sm:$0x1] }
  0xa1   : > { %v4461_v20 = vsel %vm2025_vm0, %v2434_v44, 0  ;;  %v866_v3 = vsel %vm4097_vm3, %v861_v59, %v865_v16  ;;  %v4466_v26 = vsel %vm2025_vm0, %v3938_v39, 0  ;;  %v876_v32 = vsel %vm4097_vm3, %v871_v62, %v875_v31  ;;  %v3678_v16 = vld [vmem:[%s5634_s1 + $0x4] sm:$0xf] }
  0xa2   : > { %5708 = vst [vmem:[#allocation11_spill] sm:$0xff] %v4466_v26  ;;  %2507 = vmatpush.bf16.xpose.msrb.mxu3 %v4461_v20  ;;  %v2395_v36 = vunpack.c.l.b16 %v866_v3  ;;  %v1052_v42 = vor.u32 %v1051_v12, %v1048_v60  ;;  %v1062_v45 = vor.u32 %v1061_v2, %v1057_v63  ;;  %v2396_v39 = vunpack.c.l.b16 %v876_v32  ;;  %3679 = vmatmul.msk.bf16.vlgmr.msra.gmra.mxu0 %vm2025_vm0, %v3678_v16 }
  0xa3   : > { %2377 = vmatpush.bf16.xpose.msrb.mxu1 %v4433_v52  ;;  %v4482_v35 = vsel %vm2025_vm0, %v3946_v61, 0  ;;  %v830_v44 = vshrl.u32 %v3520_v15, 16  ;;  %v833_v59 = vshll.u32 %v3520_v15, 16  ;;  %v839_v56 = vshll.u32 %v4469_v25, 16  ;;  %v3536_v15 = vld [vmem:[%s4069_s14 + $0x78] sm:$0xf] }
  0xa4   : > { %5709 = vst [vmem:[#allocation12_spill] sm:$0xff] %v4482_v35  ;;  %3680 = vmatmul.msk.bf16.vlgmr.msra.gmra.mxu1 %vm2025_vm0, %v3678_v16  ;;  %v1053_v31 = vrot.slane %v1052_v42, 4  ;;  %v1063_v60 = vrot.slane %v1062_v45, 4  ;;  %v843_v62 = vshrl.u32 %v4469_v25, 16  ;;  %v2425_v12 = vpack.c.b16 %v2396_v39, %v2395_v36 }
  0xa5   : > { %2365 = vmatpush.bf16.xpose.msrb.mxu0 %v4466_v26  ;;  %v832_v2 = vrot.slane %v830_v44, 4  ;;  %v835_v61 = vrot.slane %v833_v59, 5  ;;  %v849_v3 = vshll.u32 %v4476_v54, 16  ;;  %v841_v45 = vrot.slane %v839_v56, 5  ;;  %v4502_v59 = vld [vmem:[%s4069_s14 + $0x80] sm:$0x1] }
  0xa6   : > { %v1058_v32 = vsel %vm4097_vm3, %v1053_v31, %v1057_v63  ;;  %v1068_v42 = vsel %vm4097_vm3, %v1063_v60, %v1067_v27  ;;  %v845_v16 = vrot.slane %v843_v62, 4  ;;  %v4499_v18 = vsel %vm2025_vm0, %v2425_v12, 0  ;;  %v3937_v26 = vld [vmem:[%s4069_s14 + $0x24] sm:$0xff] }
  0xa7   : > { %v2411_v36 = vunpack.c.l.b16 %v1058_v32  ;;  %v2412_v39 = vunpack.c.l.b16 %v1068_v42  ;;  %v836_v44 = vor.u32 %v835_v61, %v832_v2  ;;  %2495 = vmatpush.bf16.xpose.msrb.mxu2 %v4499_v18  ;;  %v851_v31 = vrot.slane %v849_v3, 5  ;;  %v3945_v32 = vld [vmem:[%s4069_s14 + $0x84] sm:$0xff] }
  0xa8   : > { %v846_v63 = vor.u32 %v845_v16, %v841_v45  ;;  %v1022_v27 = vshrl.u32 %v3536_v15, 16  ;;  %v1025_v60 = vshll.u32 %v3536_v15, 16  ;;  %v1035_v12 = vshrl.u32 %v4496_v40, 16 }
  0xa9   : > { %v2433_v56 = vpack.c.b16 %v2412_v39, %v2411_v36  ;;  %v837_v62 = vrot.slane %v836_v44, 4  ;;  %v1041_v52 = vshll.u32 %v4502_v59, 16  ;;  %v4517_v39 = vld [vmem:[%s4069_s14 + $0x10] sm:$0xf]  ;;  %v4526_v50 = vsel %vm2025_vm0, %v3937_v26, 0 }
  0xaa   : > { %v847_v2 = vrot.slane %v846_v63, 4  ;;  %v1024_v61 = vrot.slane %v1022_v27, 4  ;;  %v1027_v42 = vrot.slane %v1025_v60, 5  ;;  %v1037_v36 = vrot.slane %v1035_v12, 4  ;;  %5711 = vst [vmem:[#allocation14_spill] sm:$0xff] %v4526_v50 }
  0xab   : > { %2378 = vmatpush.bf16.xpose.msrb.mxu1 %v4482_v35  ;;  %v1031_v35 = vshll.u32 %v4496_v40, 16  ;;  %v4512_v3 = vsel %vm2025_vm0, %v2433_v56, 0  ;;  %v842_v15 = vsel %vm4097_vm3, %v837_v62, %v841_v45  ;;  %v1043_v60 = vrot.slane %v1041_v52, 5 }
  0xac   : > { %5710 = vst [vmem:[#allocation13_spill] sm:$0xff] %v4512_v3  ;;  %2508 = vmatpush.bf16.xpose.msrb.mxu3 %v4512_v3  ;;  %v852_v44 = vsel %vm4097_vm3, %v847_v2, %v851_v31  ;;  %v2393_v63 = vunpack.c.l.b16 %v842_v15  ;;  %v1028_v27 = vor.u32 %v1027_v42, %v1024_v61  ;;  %v806_v31 = vshrl.u32 %v3518_v34, 16  ;;  %v3534_v42 = vld [vmem:[%s4069_s14 + $0x6c] sm:$0xf] }
  0xad   : > { %v1033_v16 = vrot.slane %v1031_v35, 5  ;;  %v2394_v56 = vunpack.c.l.b16 %v852_v44  ;;  %v4529_v35 = vsel %vm2025_vm0, %v3945_v32, 0  ;;  %2366 = vmatpush.bf16.xpose.msrb.mxu0 %v4526_v50  ;;  %v809_v62 = vshll.u32 %v3518_v34, 16  ;;  %v3935_v3 = vld [vmem:[%s4069_s14 + $0xc] sm:$0xff] }
  0xae   : > { %5712 = vst [vmem:[#allocation15_spill] sm:$0xff] %v4529_v35  ;;  %v1029_v45 = vrot.slane %v1028_v27, 4  ;;  %v815_v52 = vshll.u32 %v4517_v39, 16  ;;  %v819_v61 = vshrl.u32 %v4517_v39, 16  ;;  %v825_v26 = vshll.u32 %v4523_v14, 16 }
  0xaf   : > { %v1038_v58 = vor.u32 %v1037_v36, %v1033_v16  ;;  %v2424_v12 = vpack.c.b16 %v2394_v56, %v2393_v63  ;;  %v808_v15 = vrot.slane %v806_v31, 4  ;;  %v811_v36 = vrot.slane %v809_v62, 5  ;;  %v4540_v27 = vld [vmem:[%s4069_s14 + $0x70] sm:$0xf] }
  0xb0   : > { %v1034_v32 = vsel %vm4097_vm3, %v1029_v45, %v1033_v16  ;;  %v817_v44 = vrot.slane %v815_v52, 5  ;;  %v821_v56 = vrot.slane %v819_v61, 4  ;;  %v827_v31 = vrot.slane %v825_v26, 5  ;;  %v3936_v52 = vld [vmem:[%s4069_s14 + $0x18] sm:$0xff] }
  0xb1   : > { %v1039_v2 = vrot.slane %v1038_v58, 4  ;;  %v4543_v34 = vsel %vm2025_vm0, %v2424_v12, 0  ;;  %v2409_v63 = vunpack.c.l.b16 %v1034_v32  ;;  %v812_v45 = vor.u32 %v811_v36, %v808_v15 }
  0xb2   : > { %5713 = vst [vmem:[#allocation16_spill] sm:$0xff] %v4543_v34  ;;  %2496 = vmatpush.bf16.xpose.msrb.mxu2 %v4543_v34  ;;  %v998_v62 = vshrl.u32 %v3534_v42, 16  ;;  %v822_v50 = vor.u32 %v821_v56, %v817_v44  ;;  %v1001_v12 = vshll.u32 %v3534_v42, 16  ;;  %v1007_v41 = vshll.u32 %v4540_v27, 16  ;;  %v3943_v34 = vld [vmem:[%s4069_s14 + $0x6c] sm:$0xff] }
  0xb3   : > { %2379 = vmatpush.bf16.xpose.msrb.mxu1 %v4529_v35  ;;  %v1044_v58 = vsel %vm4097_vm3, %v1039_v2, %v1043_v60  ;;  %v4548_v35 = vld [vmem:[%s4069_s14 + $0x74] sm:$0x1]  ;;  %v1011_v60 = vshrl.u32 %v4540_v27, 16  ;;  %v813_v61 = vrot.slane %v812_v45, 4 }
  0xb4   : > { %v2410_v16 = vunpack.c.l.b16 %v1044_v58  ;;  %v1000_v32 = vrot.slane %v998_v62, 4  ;;  %v1017_v8 = vshll.u32 %v4548_v35, 16  ;;  %v823_v15 = vrot.slane %v822_v50, 4 }
  0xb5   : > { %v1003_v26 = vrot.slane %v1001_v12, 5  ;;  %v1009_v36 = vrot.slane %v1007_v41, 5  ;;  %v1013_v58 = vrot.slane %v1011_v60, 4  ;;  %v584_v12 = vld [vmem:[%s4069_s14 + $0x54] sm:$0xe] }
  0xb6   : > { %v2432_v2 = vpack.c.b16 %v2410_v16, %v2409_v63  ;;  %v818_v63 = vsel %vm4097_vm3, %v813_v61, %v817_v44  ;;  %v1019_v56 = vrot.slane %v1017_v8, 5  ;;  %v4564_v16 = vsel %vm2025_vm0, %v3936_v52, 0  ;;  %v592_v60 = vld [vmem:[%s4069_s14 + $0xb4] sm:$0xe] }
  0xb7   : > { %5714 = vst [vmem:[#allocation17_spill] sm:$0xff] %v4564_v16  ;;  %v828_v45 = vsel %vm4097_vm3, %v823_v15, %v827_v31  ;;  %v2391_v50 = vunpack.c.l.b16 %v818_v63  ;;  %v1004_v62 = vor.u32 %v1003_v26, %v1000_v32  ;;  %v1014_v41 = vor.u32 %v1013_v58, %v1009_v36  ;;  %2367 = vmatpush.bf16.xpose.msrb.mxu0 %v4564_v16  ;;  %v583_v31 = vld [vmem:[%s4069_s14 + $0x48] sm:$0xe] }
  0xb8   : > { %v4559_v42 = vsel %vm2025_vm0, %v2432_v2, 0  ;;  %v2392_v2 = vunpack.c.l.b16 %v828_v45  ;;  %v4573_v44 = vsel %vm2025_vm0, %v3944_v1, 0  ;;  %v4576_v8 = vsel %vm2025_vm0, %v3935_v3, 0  ;;  %v3976_v3 = vld [vmem:[%s4069_s14 + $0x58] sm:$0xf] }
  0xb9   : > { %2509 = vmatpush.bf16.xpose.msrb.mxu3 %v4559_v42  ;;  %5715 = vst [vmem:[#allocation18_spill] sm:$0xff] %v4573_v44  ;;  %v4579_v52 = vsel %vm2025_vm0, %v3943_v34, 0  ;;  %v1005_v61 = vrot.slane %v1004_v62, 4  ;;  %v1015_v32 = vrot.slane %v1014_v41, 4  ;;  %v3509_v1 = vrot.slane %v584_v12, 9 }
  0xba   : > { %5716 = vst [vmem:[#allocation19_spill] sm:$0xff] %v4576_v8  ;;  %v2423_v15 = vpack.c.b16 %v2392_v2, %v2391_v50  ;;  %v695_v58 = vrot.slane %v3976_v3, 5  ;;  %v3517_v63 = vrot.slane %v592_v60, 9  ;;  %v3977_v62 = vld [vmem:[%s4069_s14 + $0xb8] sm:$0xf] }
  0xbb   : > { %5717 = vst [vmem:[#allocation20_spill] sm:$0xff] %v4579_v52  ;;  %2380 = vmatpush.bf16.xpose.msrb.mxu1 %v4573_v44  ;;  %v1010_v34 = vsel %vm4097_vm3, %v1005_v61, %v1009_v36  ;;  %v1020_v45 = vsel %vm4097_vm3, %v1015_v32, %v1019_v56  ;;  %v751_v41 = vrot.slane %v3977_v62, 5  ;;  %v3508_v44 = vrot.slane %v583_v31, 9  ;;  %v591_v60 = vld [vmem:[%s4069_s14 + $0xa8] sm:$0xe] }
  0xbc   : > { %v4594_v50 = vsel %vm2025_vm0, %v2423_v15, 0  ;;  %v2407_v2 = vunpack.c.l.b16 %v1010_v34  ;;  %v2408_v16 = vunpack.c.l.b16 %v1020_v45  ;;  %v696_v12 = vsel %vm4583_vm6, %v3509_v1, %v695_v58  ;;  %v3978_v3 = vld [vmem:[%s4069_s14 + $0x4c] sm:$0xf]  ;;  %v3979_v45 = vld [vmem:[%s4069_s14 + $0x50] sm:$0x1] }
  0xbd   : > { %2497 = vmatpush.bf16.xpose.msrb.mxu2 %v4594_v50  ;;  %v697_v36 = vrot.slane %v695_v58, 4  ;;  %v2536_v61 = vunpack.c.l.b16 %v696_v12  ;;  %v752_v56 = vsel %vm4583_vm6, %v3517_v63, %v751_v41  ;;  %v753_v32 = vrot.slane %v751_v41, 4 }
  0xbe   : > { %v2431_v31 = vpack.c.b16 %v2408_v16, %v2407_v2  ;;  %v2552_v15 = vunpack.c.l.b16 %v752_v56  ;;  %v688_v34 = vrot.slane %v3978_v3, 5  ;;  %v691_v62 = vrot.slane %v3979_v45, 5  ;;  %v582_v45 = vld [vmem:[%s4069_s14 + $0x3c] sm:$0xe] }
  0xbf   : > { %2368 = vmatpush.bf16.xpose.msrb.mxu0 %v4576_v8  ;;  %v5720_v1 = vrot.slane %v4081_v9, 5  ;;  %v5721_v12 = vrot.slane %v4089_v24, 5  ;;  %v3516_v63 = vrot.slane %v591_v60, 9  ;;  %v3814_v24 = vld [vmem:[%s5634_s1 + $0xc] sm:$0xf] }
  0xc0   : > { %v4616_v2 = vsel %vm2025_vm0, %v2431_v31, 0  ;;  %v689_v9 = vsel %vm4583_vm6, %v3508_v44, %v688_v34  ;;  %v690_v60 = vrot.slane %v688_v34, 4  ;;  %v3982_v8 = vld [vmem:[%s4069_s14 + $0x40] sm:$0xf] }
  0xc1   : > { %v699_v58 = vsel %vm4583_vm6, %v697_v36, %v5720_v1  ;;  %v755_v16 = vsel %vm4583_vm6, %v753_v32, %v5721_v12  ;;  %2510 = vmatpush.bf16.xpose.msrb.mxu3 %v4616_v2  ;;  %v2534_v36 = vunpack.c.l.b16 %v689_v9  ;;  %v3507_v9 = vrot.slane %v582_v45, 9 }
  0xc2   : > { %v2537_v56 = vunpack.c.l.b16 %v699_v58  ;;  %v2553_v3 = vunpack.c.l.b16 %v755_v16  ;;  %v3981_v58 = vld [vmem:[%s4069_s14 + $0xb0] sm:$0x1]  ;;  %v692_v34 = vsel %vm4583_vm6, %v690_v60, %v691_v62  ;;  %v681_v37 = vrot.slane %v3982_v8, 5 }
  0xc3   : > { %2381 = vmatpush.bf16.xpose.msrb.mxu1 %v4579_v52  ;;  %v747_v12 = vrot.slane %v3981_v58, 5  ;;  %v3747_v52 = vld [vmem:[%s5634_s1 + $0x8] sm:$0xf] }
  0xc4   : > { %v2561_v44 = vpack.c.b16 %v2537_v56, %v2536_v61  ;;  %v2569_v1 = vpack.c.b16 %v2553_v3, %v2552_v15  ;;  %3815 = vmatmul.msk.bf16.vlgmr.msrb.gmra.mxu2 %vm2025_vm0, %v3814_v24  ;;  %v2535_v15 = vunpack.c.l.b16 %v692_v34  ;;  %v682_v8 = vsel %vm4583_vm6, %v3507_v9, %v681_v37 }
  0xc5   : > { %2650 = vmatpush.bf16.xpose.msra.mxu2 %v4119_v13  ;;  %v3980_v13 = vld [vmem:[%s4069_s14 + $0xac] sm:$0xf]  ;;  %v683_v3 = vrot.slane %v681_v37, 4  ;;  %v2532_v37 = vunpack.c.l.b16 %v682_v8 }
  0xc6   : > { %v744_v41 = vrot.slane %v3980_v13, 5  ;;  %v590_v13 = vld [vmem:[%s4069_s14 + $0x9c] sm:$0xe]  ;;  %v2619_v61 = vsel %vm2025_vm0, %v2569_v1, 0  ;;  %3812 = vmatmul.msk.bf16.vlgmr.msrb.gmra.mxu0 %vm2025_vm0, %v3747_v52  ;;  %v2560_v60 = vpack.c.b16 %v2535_v15, %v2534_v36  ;;  %v3985_v1 = vld [vmem:[%s4069_s14 + $0xa4] sm:$0x1] }
  0xc7   : > { %v3515_v45 = vrot.slane %v590_v13, 9  ;;  %v740_v58 = vrot.slane %v3985_v1, 5  ;;  %v589_v13 = vld [vmem:[%s4069_s14 + $0x90] sm:$0xe]  ;;  %v580_v1 = vld [vmem:[%s4069_s14 + $0x24] sm:$0xe] }
  0xc8   : > { %v745_v32 = vsel %vm4583_vm6, %v3516_v63, %v744_v41  ;;  %v746_v31 = vrot.slane %v744_v41, 4  ;;  %v3983_v63 = vld [vmem:[%s4069_s14 + $0x44] sm:$0x1]  ;;  %3816 = vmatmul.msk.bf16.vlgmr.msrb.gmra.mxu3 %vm2025_vm0, %v3814_v24 }
  0xc9   : > { %2663 = vmatpush.bf16.xpose.msra.mxu3 %v4125_v29  ;;  %v2550_v16 = vunpack.c.l.b16 %v745_v32  ;;  %v684_v41 = vrot.slane %v3983_v63, 5  ;;  %v2595_v29 = vsel %vm2025_vm0, %v2561_v44, 0  ;;  %v3984_v32 = vld [vmem:[%s4069_s14 + $0xa0] sm:$0xf]  ;;  %v3986_v63 = vld [vmem:[%s4069_s14 + $0x34] sm:$0xf] }
  0xca   : > { %v748_v56 = vsel %vm4583_vm6, %v746_v31, %v747_v12  ;;  %2621 = vmatpush.bf16.xpose.msra.mxu0 %v2595_v29  ;;  %v737_v44 = vrot.slane %v3984_v32, 5  ;;  %v581_v31 = vld [vmem:[%s4069_s14 + $0x30] sm:$0xe]  ;;  %v674_v9 = vrot.slane %v3986_v63, 5  ;;  %3813 = vmatmul.msk.bf16.vlgmr.msrb.gmra.mxu1 %vm2025_vm0, %v3747_v52  ;;  %v3989_v32 = vld [vmem:[%s4069_s14 + $0x98] sm:$0x1] }
  0xcb   : > { %2634 = vmatpush.bf16.xpose.msra.mxu1 %v2619_v61  ;;  %v2551_v62 = vunpack.c.l.b16 %v748_v56  ;;  %v685_v34 = vsel %vm4583_vm6, %v683_v3, %v684_v41  ;;  %v3506_v61 = vrot.slane %v581_v31, 9  ;;  %v3987_v56 = vld [vmem:[%s4069_s14 + $0x38] sm:$0x1]  ;;  %v3514_v3 = vrot.slane %v589_v13, 9  ;;  %v588_v13 = vld [vmem:[%s4069_s14 + $0x84] sm:$0xe] }
  0xcc   : > { %v739_v36 = vrot.slane %v737_v44, 4  ;;  %v2533_v29 = vunpack.c.l.b16 %v685_v34  ;;  %v676_v15 = vrot.slane %v674_v9, 4 }
  0xcd   : > { %2651 = vmatpush.bf16.xpose.msra.mxu2 %v4142_v0  ;;  %v2568_v12 = vpack.c.b16 %v2551_v62, %v2550_v16  ;;  %v738_v0 = vsel %vm4583_vm6, %v3515_v45, %v737_v44  ;;  %v2592_v16 = vsel %vm2025_vm0, %v2560_v60, 0  ;;  %v677_v62 = vrot.slane %v3987_v56, 5  ;;  %v3988_v45 = vld [vmem:[%s4069_s14 + $0x94] sm:$0xf] }
  0xce   : > { %v741_v52 = vsel %vm4583_vm6, %v739_v36, %v740_v58  ;;  %v2548_v24 = vunpack.c.l.b16 %v738_v0  ;;  %v730_v60 = vrot.slane %v3988_v45, 5  ;;  %v733_v44 = vrot.slane %v3989_v32, 5 }
  0xcf   : > { %v2616_v41 = vsel %vm2025_vm0, %v2568_v12, 0  ;;  %v2549_v8 = vunpack.c.l.b16 %v741_v52  ;;  %v3990_v12 = vld [vmem:[%s4069_s14 + $0x28] sm:$0xf]  ;;  %v675_v58 = vsel %vm4583_vm6, %v3506_v61, %v674_v9  ;;  %v678_v0 = vsel %vm4583_vm6, %v676_v15, %v677_v62  ;;  %v3993_v62 = vld [vmem:[%s4069_s14 + $0x8c] sm:$0x1] }
  0xd0   : > { %v667_v31 = vrot.slane %v3990_v12, 5  ;;  %v732_v34 = vrot.slane %v730_v60, 4  ;;  %v3505_v36 = vrot.slane %v580_v1, 9  ;;  %v731_v52 = vsel %vm4583_vm6, %v3514_v3, %v730_v60  ;;  %v3992_v61 = vld [vmem:[%s4069_s14 + $0x88] sm:$0xf] }
  0xd1   : > { %2664 = vmatpush.bf16.xpose.msra.mxu3 %v4155_v30  ;;  %v2559_v30 = vpack.c.b16 %v2533_v29, %v2532_v37  ;;  %v2567_v63 = vpack.c.b16 %v2549_v8, %v2548_v24  ;;  %v2530_v9 = vunpack.c.l.b16 %v675_v58  ;;  %v2531_v56 = vunpack.c.l.b16 %v678_v0  ;;  %v3994_v12 = vld [vmem:[%s4069_s14 + $0x1c] sm:$0xf]  ;;  %v579_v58 = vld [vmem:[%s4069_s14 + $0x18] sm:$0xe] }
  0xd2   : > { %2622 = vmatpush.bf16.xpose.msra.mxu0 %v2592_v16  ;;  %v734_v16 = vsel %vm4583_vm6, %v732_v34, %v733_v44  ;;  %v669_v37 = vrot.slane %v667_v31, 4  ;;  %v3513_v15 = vrot.slane %v588_v13, 9  ;;  %v726_v8 = vrot.slane %v3993_v62, 5  ;;  %v587_v0 = vld [vmem:[%s4069_s14 + $0x78] sm:$0xe] }
  0xd3   : > { %2635 = vmatpush.bf16.xpose.msra.mxu1 %v2616_v41  ;;  %v3991_v41 = vld [vmem:[%s4069_s14 + $0x2c] sm:$0x1]  ;;  %v2589_v24 = vsel %vm2025_vm0, %v2559_v30, 0  ;;  %v2613_v3 = vsel %vm2025_vm0, %v2567_v63, 0  ;;  %v2546_v45 = vunpack.c.l.b16 %v731_v52  ;;  %v2547_v60 = vunpack.c.l.b16 %v734_v16  ;;  %v3995_v52 = vld [vmem:[%s4069_s14 + $0x7c] sm:$0xf] }
  0xd4   : > { %v670_v29 = vrot.slane %v3991_v41, 5  ;;  %v668_v44 = vsel %vm4583_vm6, %v3505_v36, %v667_v31  ;;  %v660_v30 = vrot.slane %v3994_v12, 5  ;;  %v2558_v34 = vpack.c.b16 %v2531_v56, %v2530_v9  ;;  %v3998_v12 = vld [vmem:[%s4069_s14 + $0x64] sm:$0xf] }
  0xd5   : > { %2652 = vmatpush.bf16.xpose.msra.mxu2 %v4168_v55  ;;  %v723_v55 = vrot.slane %v3992_v61, 5  ;;  %v2566_v31 = vpack.c.b16 %v2547_v60, %v2546_v45  ;;  %v2528_v36 = vunpack.c.l.b16 %v668_v44  ;;  %v716_v16 = vrot.slane %v3995_v52, 5  ;;  %v586_v52 = vld [vmem:[%s4069_s14 + $0x6c] sm:$0xe] }
  0xd6   : > { %v671_v1 = vsel %vm4583_vm6, %v669_v37, %v670_v29  ;;  %v3504_v37 = vrot.slane %v579_v58, 9  ;;  %v662_v41 = vrot.slane %v660_v30, 4  ;;  %v3996_v29 = vld [vmem:[%s4069_s14 + $0x20] sm:$0x1]  ;;  %v2586_v56 = vsel %vm2025_vm0, %v2558_v34, 0 }
  0xd7   : > { %v725_v32 = vrot.slane %v723_v55, 4  ;;  %v2529_v13 = vunpack.c.l.b16 %v671_v1  ;;  %v663_v9 = vrot.slane %v3996_v29, 5  ;;  %v1304_v58 = vrot.slane %v3998_v12, 5  ;;  %v3999_v34 = vld [vmem:[%s4069_s14 + $0x10] sm:$0xf] }
  0xd8   : > { %v661_v60 = vsel %vm4583_vm6, %v3504_v37, %v660_v30 }
  0xd9   : > { %2665 = vmatpush.bf16.xpose.msra.mxu3 %v4179_v19  ;;  %v724_v19 = vsel %vm4583_vm6, %v3513_v15, %v723_v55  ;;  %v727_v63 = vsel %vm4583_vm6, %v725_v32, %v726_v8  ;;  %v3573_v15 = vld [vmem:[%s4069_s14 + $0x60] sm:$0xe]  ;;  %v2557_v62 = vpack.c.b16 %v2529_v13, %v2528_v36  ;;  %v718_v8 = vrot.slane %v716_v16, 4 }
  0xda   : > { %2623 = vmatpush.bf16.xpose.msra.mxu0 %v2589_v24  ;;  %v2544_v61 = vunpack.c.l.b16 %v724_v19  ;;  %v2545_v55 = vunpack.c.l.b16 %v727_v63  ;;  %v3512_v24 = vrot.slane %v587_v0, 9  ;;  %v664_v32 = vsel %vm4583_vm6, %v662_v41, %v663_v9  ;;  %v578_v0 = vld [vmem:[%s4069_s14 + $0xc] sm:$0xe]  ;;  %v4001_v9 = vld [vmem:[%s4069_s14 + $0x68] sm:$0x1] }
  0xdb   : > { %2636 = vmatpush.bf16.xpose.msra.mxu1 %v2613_v3  ;;  %v3997_v3 = vld [vmem:[%s4069_s14 + $0x80] sm:$0x1]  ;;  %v653_v19 = vrot.slane %v3999_v34, 5  ;;  %v2583_v30 = vsel %vm2025_vm0, %v2557_v62, 0  ;;  %v2527_v36 = vunpack.c.l.b16 %v664_v32  ;;  %v1306_v29 = vrot.slane %v1304_v58, 4 }
  0xdc   : > { %v719_v45 = vrot.slane %v3997_v3, 5  ;;  %v2565_v44 = vpack.c.b16 %v2545_v55, %v2544_v61  ;;  %v717_v1 = vsel %vm4583_vm6, %v3512_v24, %v716_v16  ;;  %v4000_v16 = vld [vmem:[%s4069_s14 + $0x70] sm:$0xf]  ;;  %v1307_v61 = vrot.slane %v4001_v9, 5  ;;  %v3581_v55 = vld [vmem:[%s4069_s14 + $0xc0] sm:$0xe] }
  0xdd   : > { %2653 = vmatpush.bf16.xpose.msra.mxu2 %v4193_v47  ;;  %v2610_v47 = vsel %vm2025_vm0, %v2566_v31, 0  ;;  %v2526_v31 = vunpack.c.l.b16 %v661_v60  ;;  %v2542_v13 = vunpack.c.l.b16 %v717_v1  ;;  %v709_v37 = vrot.slane %v4000_v16, 5  ;;  %v4004_v32 = vld [vmem:[%s4069_s14 + $0x74] sm:$0x1]  ;;  %v4005_v34 = vld [vmem:[%s4069_s14 + $0xc8] sm:$0x1] }
  0xde   : > { %v720_v63 = vsel %vm4583_vm6, %v718_v8, %v719_v45  ;;  %v2607_v41 = vsel %vm2025_vm0, %v2565_v44, 0  ;;  %v4003_v8 = vld [vmem:[%s4069_s14 + $0xc4] sm:$0xf]  ;;  %v3511_v45 = vrot.slane %v586_v52, 9  ;;  %v712_v44 = vrot.slane %v4004_v32, 5 }
  0xdf   : > { %v2543_v24 = vunpack.c.l.b16 %v720_v63  ;;  %v1360_v3 = vrot.slane %v4003_v8, 5  ;;  %v711_v60 = vrot.slane %v709_v37, 4  ;;  %v2556_v1 = vpack.c.b16 %v2527_v36, %v2526_v31  ;;  %v3572_v31 = vld [vmem:[%s4069_s14 + $0x54] sm:$0xe] }
  0xe0   : > { %v1308_v12 = vsel %vm4583_vm6, %v1306_v29, %v1307_v61  ;;  %v710_v52 = vsel %vm4583_vm6, %v3511_v45, %v709_v37  ;;  %v577_v29 = vld [vmem:[%s4069_s14] sm:$0xe]  ;;  %v3588_v37 = vrot.slane %v3572_v31, 9  ;;  %v4009_v45 = vld [vmem:[%s4069_s14 + $0x64] sm:$0xf] }
  0xe1   : > { %2666 = vmatpush.bf16.xpose.msra.mxu3 %v4203_v10  ;;  %v3589_v10 = vrot.slane %v3573_v15, 9  ;;  %v655_v15 = vrot.slane %v653_v19, 4  ;;  %v2564_v36 = vpack.c.b16 %v2543_v24, %v2542_v13  ;;  %v713_v16 = vsel %vm4583_vm6, %v711_v60, %v712_v44  ;;  %v3580_v44 = vld [vmem:[%s4069_s14 + $0xb4] sm:$0xe]  ;;  %v4011_v31 = vld [vmem:[%s4069_s14 + $0x68] sm:$0x1] }
  0xe2   : > { %2624 = vmatpush.bf16.xpose.msra.mxu0 %v2586_v56  ;;  %v3503_v56 = vrot.slane %v578_v0, 9  ;;  %v702_v60 = vrot.slane %v4009_v45, 5 }
  0xe3   : > { %2637 = vmatpush.bf16.xpose.msra.mxu1 %v2610_v47  ;;  %v4002_v47 = vld [vmem:[%s4069_s14 + $0x14] sm:$0x1] }
  0xe4   : > { %v656_v62 = vrot.slane %v4002_v47, 5  ;;  %v654_v63 = vsel %vm4583_vm6, %v3503_v56, %v653_v19  ;;  %v2726_v19 = vunpack.c.l.b16 %v1308_v12  ;;  %v585_v56 = vld [vmem:[%s4069_s14 + $0x60] sm:$0xe]  ;;  %v2541_v47 = vunpack.c.l.b16 %v713_v16 }
  0xe5   : > { %2654 = vmatpush.bf16.xpose.msra.mxu2 %v4221_v46  ;;  %v4721_v46 = vsel %vm4583_vm6, %v3589_v10, %v1304_v58  ;;  %v3597_v10 = vrot.slane %v3581_v55, 9  ;;  %v2524_v13 = vunpack.c.l.b16 %v654_v63  ;;  %v4007_v55 = vld [vmem:[%s4069_s14 + $0x58] sm:$0xf]  ;;  %v3510_v63 = vrot.slane %v585_v56, 9 }
  0xe6   : > { %v2725_v58 = vunpack.c.l.b16 %v4721_v46  ;;  %v657_v0 = vsel %vm4583_vm6, %v655_v15, %v656_v62  ;;  %v1297_v24 = vrot.slane %v4007_v55, 5  ;;  %v2540_v15 = vunpack.c.l.b16 %v710_v52  ;;  %v4008_v62 = vld [vmem:[%s4069_s14 + $0xb8] sm:$0xf] }
  0xe7   : > { %v4746_v46 = vsel %vm4583_vm6, %v3597_v10, %v1360_v3  ;;  %v2525_v61 = vunpack.c.l.b16 %v657_v0  ;;  %v1353_v8 = vrot.slane %v4008_v62, 5  ;;  %v4010_v10 = vld [vmem:[%s4069_s14 + $0x8] sm:$0x1]  ;;  %v704_v0 = vrot.slane %v702_v60, 4  ;;  %v4013_v62 = vld [vmem:[%s4069_s14 + $0xbc] sm:$0x1] }
  0xe8   : > { %v649_v12 = vrot.slane %v4010_v10, 5  ;;  %v705_v52 = vrot.slane %v4011_v31, 5  ;;  %v1356_v45 = vrot.slane %v4013_v62, 5  ;;  %v2750_v56 = vpack.c.b16 %v2726_v19, %v2725_v58  ;;  %v3571_v19 = vld [vmem:[%s4069_s14 + $0x48] sm:$0xe] }
  0xe9   : > { %2667 = vmatpush.bf16.xpose.msra.mxu3 %v4229_v5  ;;  %v1363_v5 = vrot.slane %v4005_v34, 5  ;;  %v2555_v16 = vpack.c.b16 %v2525_v61, %v2524_v13  ;;  %v4015_v31 = vld [vmem:[%s4069_s14 + $0x50] sm:$0x1] }
  0xea   : > { %2625 = vmatpush.bf16.xpose.msra.mxu0 %v2583_v30  ;;  %v1362_v30 = vrot.slane %v1360_v3, 4  ;;  %v2604_v3 = vsel %vm2025_vm0, %v2564_v36, 0  ;;  %v4012_v36 = vld [vmem:[%s4069_s14 + $0x5c] sm:$0x1] }
  0xeb   : > { %2638 = vmatpush.bf16.xpose.msra.mxu1 %v2607_v41  ;;  %v2580_v41 = vsel %vm2025_vm0, %v2556_v1, 0  ;;  %v3502_v1 = vrot.slane %v577_v29, 9  ;;  %v1300_v55 = vrot.slane %v4012_v36, 5  ;;  %v1355_v29 = vrot.slane %v1353_v8, 4  ;;  %v4016_v36 = vld [vmem:[%s4069_s14 + $0xac] sm:$0xf] }
  0xec   : > { %v1364_v32 = vsel %vm4583_vm6, %v1362_v30, %v1363_v5  ;;  %v2563_v5 = vpack.c.b16 %v2541_v47, %v2540_v15  ;;  %v3596_v30 = vrot.slane %v3580_v44, 9  ;;  %v2741_v47 = vunpack.c.l.b16 %v4746_v46 }
  0xed   : > { %2655 = vmatpush.bf16.xpose.msra.mxu2 %v4245_v43  ;;  %v4006_v43 = vld [vmem:[%s4069_s14 + $0x4] sm:$0xf] }
  0xee   : > { %v646_v9 = vrot.slane %v4006_v43, 5  ;;  %v1298_v43 = vsel %vm4583_vm6, %v3588_v37, %v1297_v24  ;;  %v703_v37 = vsel %vm4583_vm6, %v3510_v63, %v702_v60  ;;  %v2601_v44 = vsel %vm2025_vm0, %v2563_v5, 0 }
  0xef   : > { %v2723_v58 = vunpack.c.l.b16 %v1298_v43  ;;  %v1354_v60 = vsel %vm4583_vm6, %v3596_v30, %v1353_v8  ;;  %v2538_v10 = vunpack.c.l.b16 %v703_v37  ;;  %v3587_v63 = vrot.slane %v3571_v19, 9  ;;  %v4017_v37 = vld [vmem:[%s4069_s14 + $0x40] sm:$0xf] }
  0xf0   : > { %v648_v34 = vrot.slane %v646_v9, 4  ;;  %v647_v13 = vsel %vm4583_vm6, %v3502_v1, %v646_v9  ;;  %v2577_v9 = vsel %vm2025_vm0, %v2555_v16, 0  ;;  %v1357_v1 = vsel %vm4583_vm6, %v1355_v29, %v1356_v45 }
  0xf1   : > { %2668 = vmatpush.bf16.xpose.msra.mxu3 %v4254_v7  ;;  %v1299_v7 = vrot.slane %v1297_v24, 4  ;;  %v4014_v24 = vld [vmem:[%s4069_s14 + $0x4c] sm:$0xf]  ;;  %v2522_v46 = vunpack.c.l.b16 %v647_v13  ;;  %v4788_v16 = vsel %vm2025_vm0, %v2750_v56, 0  ;;  %v2740_v43 = vunpack.c.l.b16 %v1357_v1 }
  0xf2   : > { %2626 = vmatpush.bf16.xpose.msra.mxu0 %v2580_v41  ;;  %v650_v61 = vsel %vm4583_vm6, %v648_v34, %v649_v12  ;;  %v706_v41 = vsel %vm4583_vm6, %v704_v0, %v705_v52  ;;  %v1290_v15 = vrot.slane %v4014_v24, 5  ;;  %v1293_v52 = vrot.slane %v4015_v31, 5 }
  0xf3   : > { %2639 = vmatpush.bf16.xpose.msra.mxu1 %v2604_v3  ;;  %v2742_v3 = vunpack.c.l.b16 %v1364_v32  ;;  %v2523_v32 = vunpack.c.l.b16 %v650_v61  ;;  %v2539_v12 = vunpack.c.l.b16 %v706_v41  ;;  %v3570_v61 = vld [vmem:[%s4069_s14 + $0x3c] sm:$0xe]  ;;  %v1283_v41 = vrot.slane %v4017_v37, 5 }
  0xf4   : > { %v1292_v0 = vrot.slane %v1290_v15, 4  ;;  %v1291_v62 = vsel %vm4583_vm6, %v3587_v63, %v1290_v15 }
  0xf5   : > { %2656 = vmatpush.bf16.xpose.msra.mxu2 %v4291_v49  ;;  %v1301_v49 = vsel %vm4583_vm6, %v1299_v7, %v1300_v55  ;;  %v2758_v8 = vpack.c.b16 %v2742_v3, %v2741_v47  ;;  %v3579_v7 = vld [vmem:[%s4069_s14 + $0xa8] sm:$0xe]  ;;  %v1346_v55 = vrot.slane %v4016_v36, 5  ;;  %v2554_v5 = vpack.c.b16 %v2523_v32, %v2522_v46  ;;  %v4018_v47 = vld [vmem:[%s4069_s14 + $0xb0] sm:$0x1] }
  0xf6   : > { %v2724_v34 = vunpack.c.l.b16 %v1301_v49  ;;  %v2562_v30 = vpack.c.b16 %v2539_v12, %v2538_v10  ;;  %v1294_v45 = vsel %vm4583_vm6, %v1292_v0, %v1293_v52  ;;  %v3595_v13 = vrot.slane %v3579_v7, 9  ;;  %v4019_v46 = vld [vmem:[%s4069_s14 + $0x44] sm:$0x1]  ;;  %v4020_v10 = vld [vmem:[%s4069_s14 + $0xa0] sm:$0xf] }
  0xf7   : > { %v4799_v56 = vsel %vm2025_vm0, %v2758_v8, 0  ;;  %v1348_v24 = vrot.slane %v1346_v55, 4  ;;  %v1349_v3 = vrot.slane %v4018_v47, 5  ;;  %v2574_v15 = vsel %vm2025_vm0, %v2554_v5, 0 }
  0xf8   : > { %v2749_v29 = vpack.c.b16 %v2724_v34, %v2723_v58  ;;  %v2598_v49 = vsel %vm2025_vm0, %v2562_v30, 0  ;;  %v2721_v58 = vunpack.c.l.b16 %v1291_v62  ;;  %v2722_v19 = vunpack.c.l.b16 %v1294_v45  ;;  %v4022_v30 = vld [vmem:[%s4069_s14 + $0xa4] sm:$0x1] }
  0xf9   : > { %2669 = vmatpush.bf16.xpose.msra.mxu3 %v4302_v4  ;;  %v2739_v4 = vunpack.c.l.b16 %v1354_v60  ;;  %v1347_v60 = vsel %vm4583_vm6, %v3595_v13, %v1346_v55  ;;  %v1285_v1 = vrot.slane %v1283_v41, 4  ;;  %v1286_v32 = vrot.slane %v4019_v46, 5 }
  0xfa   : > { %2627 = vmatpush.bf16.xpose.msra.mxu0 %v2577_v9  ;;  %v4809_v9 = vsel %vm2025_vm0, %v2749_v29, 0  ;;  %v1339_v12 = vrot.slane %v4020_v10, 5  ;;  %v1350_v34 = vsel %vm4583_vm6, %v1348_v24, %v1349_v3  ;;  %v2748_v0 = vpack.c.b16 %v2722_v19, %v2721_v58 }
  0xfb   : > { %2640 = vmatpush.bf16.xpose.msra.mxu1 %v2601_v44  ;;  %v3586_v44 = vrot.slane %v3570_v61, 9  ;;  %v2737_v31 = vunpack.c.l.b16 %v1347_v60  ;;  %v2738_v36 = vunpack.c.l.b16 %v1350_v34  ;;  %v1287_v55 = vsel %vm4583_vm6, %v1285_v1, %v1286_v32 }
  0xfc   : > { %v1341_v5 = vrot.slane %v1339_v12, 4  ;;  %v1342_v29 = vrot.slane %v4022_v30, 5  ;;  %v2720_v13 = vunpack.c.l.b16 %v1287_v55  ;;  %v4836_v24 = vsel %vm2025_vm0, %v2748_v0, 0  ;;  %v4026_v0 = vld [vmem:[%s4069_s14 + $0x28] sm:$0xf] }
  0xfd   : > { %2657 = vmatpush.bf16.xpose.msra.mxu2 %v4342_v57  ;;  %v2757_v57 = vpack.c.b16 %v2740_v43, %v2739_v4  ;;  %v1284_v52 = vsel %vm4583_vm6, %v3586_v44, %v1283_v41  ;;  %v3569_v4 = vld [vmem:[%s4069_s14 + $0x30] sm:$0xe]  ;;  %v4021_v43 = vld [vmem:[%s4069_s14 + $0x34] sm:$0xf]  ;;  %v4023_v41 = vld [vmem:[%s4069_s14 + $0x38] sm:$0x1]  ;;  %v2756_v47 = vpack.c.b16 %v2738_v36, %v2737_v31 }
  0xfe   : > { %v1276_v7 = vrot.slane %v4021_v43, 5  ;;  %v2719_v62 = vunpack.c.l.b16 %v1284_v52  ;;  %v3585_v45 = vrot.slane %v3569_v4, 9  ;;  %v1343_v3 = vsel %vm4583_vm6, %v1341_v5, %v1342_v29  ;;  %v3568_v52 = vld [vmem:[%s4069_s14 + $0x24] sm:$0xe]  ;;  %v3817_v5 = vld [vmem:[%s5634_s1 + $0x10] sm:$0xf] }
  0xff   : > { %v4819_v63 = vsel %vm2025_vm0, %v2757_v57, 0  ;;  %v1279_v57 = vrot.slane %v4023_v41, 5  ;;  %v2736_v1 = vunpack.c.l.b16 %v1343_v3  ;;  %v1269_v31 = vrot.slane %v4026_v0, 5 }
 0x100   : > { %v1278_v37 = vrot.slane %v1276_v7, 4  ;;  %v1277_v44 = vsel %vm4583_vm6, %v3585_v45, %v1276_v7  ;;  %v2747_v60 = vpack.c.b16 %v2720_v13, %v2719_v62  ;;  %v1325_v55 = vrot.slane %v4442_v17, 5  ;;  %v4027_v45 = vld [vmem:[%s4069_s14 + $0x2c] sm:$0x1] }
 0x101   : > { %2670 = vmatpush.bf16.xpose.msra.mxu3 %v4355_v33  ;;  %v3578_v33 = vld [vmem:[%s4069_s14 + $0x9c] sm:$0xe]  ;;  %v3584_v29 = vrot.slane %v3568_v52, 9  ;;  %v1271_v62 = vrot.slane %v1269_v31, 4  ;;  %v1272_v13 = vrot.slane %v4027_v45, 5 }
 0x102   : > { %2628 = vmatpush.bf16.xpose.msra.mxu0 %v2574_v15  ;;  %v3594_v8 = vrot.slane %v3578_v33, 9  ;;  %v3577_v15 = vld [vmem:[%s4069_s14 + $0x90] sm:$0xe]  ;;  %v1280_v46 = vsel %vm4583_vm6, %v1278_v37, %v1279_v57  ;;  %v4850_v33 = vsel %vm2025_vm0, %v2756_v47, 0  ;;  %v4857_v43 = vsel %vm2025_vm0, %v2747_v60, 0 }
 0x103   : > { %2641 = vmatpush.bf16.xpose.msra.mxu1 %v2598_v49  ;;  %v4024_v49 = vld [vmem:[%s4069_s14 + $0x94] sm:$0xf]  ;;  %v3593_v32 = vrot.slane %v3577_v15, 9  ;;  %v2718_v4 = vunpack.c.l.b16 %v1280_v46  ;;  %v1270_v3 = vsel %vm4583_vm6, %v3584_v29, %v1269_v31  ;;  %v1273_v15 = vsel %vm4583_vm6, %v1271_v62, %v1272_v13  ;;  %v3575_v52 = vld [vmem:[%s4069_s14 + $0x78] sm:$0xe] }
 0x104   : > { %v1340_v61 = vsel %vm4583_vm6, %v3594_v8, %v1339_v12  ;;  %v1332_v58 = vrot.slane %v4024_v49, 5  ;;  %v4025_v12 = vld [vmem:[%s4069_s14 + $0x98] sm:$0x1]  ;;  %v2717_v8 = vunpack.c.l.b16 %v1277_v44  ;;  %3821 = vmatmul.msk.bf16.vlgmr.msra.gmra.mxu2 %vm2025_vm0, %v3817_v5  ;;  %v1327_v49 = vrot.slane %v1325_v55, 4  ;;  %v3567_v44 = vld [vmem:[%s4069_s14 + $0x18] sm:$0xe] }
 0x105   : > { %2810 = vmatpush.bf16.xpose.msrb.mxu2 %v4788_v16  ;;  %v2735_v19 = vunpack.c.l.b16 %v1340_v61  ;;  %v1335_v34 = vrot.slane %v4025_v12, 5  ;;  %v3576_v61 = vld [vmem:[%s4069_s14 + $0x84] sm:$0xe]  ;;  %v2716_v46 = vunpack.c.l.b16 %v1273_v15  ;;  %v1265_v31 = vrot.slane %v4476_v54, 5  ;;  %v3566_v62 = vld [vmem:[%s4069_s14 + $0xc] sm:$0xe] }
 0x106   : > { %v1334_v10 = vrot.slane %v1332_v58, 4  ;;  %v1333_v36 = vsel %vm4583_vm6, %v3593_v32, %v1332_v58  ;;  %v2746_v17 = vpack.c.b16 %v2718_v4, %v2717_v8  ;;  %v3592_v47 = vrot.slane %v3576_v61, 9 }
 0x107   : > { %v2755_v7 = vpack.c.b16 %v2736_v1, %v2735_v19  ;;  %v2733_v41 = vunpack.c.l.b16 %v1333_v36  ;;  %v1328_v58 = vrot.slane %v4451_v28, 5  ;;  %v1262_v19 = vrot.slane %v4469_v25, 5  ;;  %v3818_v28 = vld [vmem:[%s5634_s1 + $0x14] sm:$0xf] }
 0x108   : > { %v1336_v30 = vsel %vm4583_vm6, %v1334_v10, %v1335_v34  ;;  %3822 = vmatmul.msk.bf16.vlgmr.msra.gmra.mxu3 %vm2025_vm0, %v3817_v5  ;;  %v4886_v60 = vsel %vm2025_vm0, %v2746_v17, 0  ;;  %v2715_v1 = vunpack.c.l.b16 %v1270_v3  ;;  %v1326_v10 = vsel %vm4583_vm6, %v3592_v47, %v1325_v55 }
 0x109   : > { %2823 = vmatpush.bf16.xpose.msrb.mxu3 %v4799_v56  ;;  %v4875_v37 = vsel %vm2025_vm0, %v2755_v7, 0  ;;  %v2734_v57 = vunpack.c.l.b16 %v1336_v30  ;;  %v1329_v12 = vsel %vm4583_vm6, %v1327_v49, %v1328_v58  ;;  %v1318_v34 = vrot.slane %v4496_v40, 5  ;;  %3819 = vmatmul.msk.bf16.vlgmr.msra.gmra.mxu0 %vm2025_vm0, %v3818_v28  ;;  %v3574_v49 = vld [vmem:[%s4069_s14 + $0x6c] sm:$0xe] }
 0x10a   : > { %2681 = vmatpush.bf16.xpose.msrb.mxu0 %v4270_v48  ;;  %v3583_v25 = vrot.slane %v3567_v44, 9  ;;  %v1264_v0 = vrot.slane %v1262_v19, 4  ;;  %3820 = vmatmul.msk.bf16.vlgmr.msra.gmra.mxu1 %vm2025_vm0, %v3818_v28  ;;  %v2745_v40 = vpack.c.b16 %v2716_v46, %v2715_v1  ;;  %v2731_v8 = vunpack.c.l.b16 %v1326_v10 }
 0x10b   : > { %2694 = vmatpush.bf16.xpose.msrb.mxu1 %v4277_v6  ;;  %v2754_v32 = vpack.c.b16 %v2734_v57, %v2733_v41  ;;  %v2732_v4 = vunpack.c.l.b16 %v1329_v12  ;;  %v3591_v36 = vrot.slane %v3575_v52, 9  ;;  %v1320_v54 = vrot.slane %v1318_v34, 4 }
 0x10c   : > { %v1321_v55 = vrot.slane %v4502_v59, 5  ;;  %v1263_v5 = vsel %vm4583_vm6, %v3583_v25, %v1262_v19  ;;  %v1266_v30 = vsel %vm4583_vm6, %v1264_v0, %v1265_v31  ;;  %v1255_v29 = vrot.slane %v4517_v39, 5 }
 0x10d   : > { %2811 = vmatpush.bf16.xpose.msrb.mxu2 %v4809_v9  ;;  %v4904_v7 = vsel %vm2025_vm0, %v2754_v32, 0  ;;  %v4915_v45 = vsel %vm2025_vm0, %v2745_v40, 0  ;;  %v2753_v13 = vpack.c.b16 %v2732_v4, %v2731_v8  ;;  %v2713_v61 = vunpack.c.l.b16 %v1263_v5 }
 0x10e   : > { %v2714_v17 = vunpack.c.l.b16 %v1266_v30  ;;  %v1319_v59 = vsel %vm4583_vm6, %v3591_v36, %v1318_v34  ;;  %v1322_v41 = vsel %vm4583_vm6, %v1320_v54, %v1321_v55  ;;  %v3582_v39 = vrot.slane %v3566_v62, 9  ;;  %v5724_v54 = vld [vmem:[#allocation13_spill] sm:$0xff] }
 0x10f   : > { %v1257_v3 = vrot.slane %v1255_v29, 4  ;;  %v1258_v15 = vrot.slane %v4523_v14, 5  ;;  %v1311_v58 = vrot.slane %v4540_v27, 5  ;;  %v4932_v19 = vsel %vm2025_vm0, %v2753_v13, 0 }
 0x110   : > { %5722 = vst [vmem:[#allocation21_spill] sm:$0xff] %v4932_v19  ;;  %v2744_v44 = vpack.c.b16 %v2714_v17, %v2713_v61  ;;  %v2729_v1 = vunpack.c.l.b16 %v1319_v59  ;;  %v2730_v46 = vunpack.c.l.b16 %v1322_v41  ;;  %v3590_v32 = vrot.slane %v3574_v49, 9  ;;  %v5727_v17 = vld [vmem:[#allocation16_spill] sm:$0xff]  ;;  %v5729_v41 = vld [vmem:[#allocation3_spill] sm:$0xff]  ;;  %v3823_v49 = vld [vmem:[%s5634_s1 + $0x18] sm:$0xf] }
 0x111   : > { %2824 = vmatpush.bf16.xpose.msrb.mxu3 %v4819_v63  ;;  %v1256_v14 = vsel %vm4583_vm6, %v3582_v39, %v1255_v29  ;;  %v1259_v27 = vsel %vm4583_vm6, %v1257_v3, %v1258_v15  ;;  %v1313_v34 = vrot.slane %v1311_v58, 4  ;;  %v1314_v28 = vrot.slane %v4548_v35, 5  ;;  %v5730_v39 = vld [vmem:[#allocation4_spill] sm:$0xff]  ;;  %v3826_v3 = vld [vmem:[%s5634_s1 + $0x1c] sm:$0xf] }
 0x112   : > { %2682 = vmatpush.bf16.xpose.msrb.mxu0 %v4313_v51  ;;  %v4945_v25 = vsel %vm2025_vm0, %v2744_v44, 0  ;;  %v2752_v0 = vpack.c.b16 %v2730_v46, %v2729_v1  ;;  %v2711_v31 = vunpack.c.l.b16 %v1256_v14  ;;  %v2712_v52 = vunpack.c.l.b16 %v1259_v27  ;;  %v5731_v15 = vld [vmem:[#allocation5_spill] sm:$0xff]  ;;  %v3612_v44 = vld [vmem:[%s4069_s14 + $0x6c] sm:$0xf]  ;;  %v3613_v1 = vld [vmem:[%s4069_s14 + $0x70] sm:$0xf] }
 0x113   : > { %2695 = vmatpush.bf16.xpose.msrb.mxu1 %v4331_v22  ;;  %5723 = vst [vmem:[#allocation22_spill] sm:$0xff] %v4945_v25  ;;  %v1312_v4 = vsel %vm4583_vm6, %v3590_v32, %v1311_v58  ;;  %v1315_v36 = vsel %vm4583_vm6, %v1313_v34, %v1314_v28  ;;  %v5732_v58 = vld [vmem:[#allocation6_spill] sm:$0xff]  ;;  %v3628_v46 = vld [vmem:[%s4069_s14 + $0xcc] sm:$0xf]  ;;  %v1583_v32 = vshrl.u32 %v3612_v44, 16  ;;  %v1586_v14 = vshll.u32 %v3612_v44, 16 }
 0x114   : > { %v4955_v35 = vsel %vm2025_vm0, %v2752_v0, 0  ;;  %v2743_v55 = vpack.c.b16 %v2712_v52, %v2711_v31  ;;  %v2727_v5 = vunpack.c.l.b16 %v1312_v4  ;;  %v2728_v30 = vunpack.c.l.b16 %v1315_v36  ;;  %v3629_v28 = vld [vmem:[%s4069_s14 + $0xd0] sm:$0xf]  ;;  %v5733_v0 = vld [vmem:[#allocation7_spill] sm:$0xff] }
 0x115   : > { %2812 = vmatpush.bf16.xpose.msrb.mxu2 %v4836_v24  ;;  %5725 = vst [vmem:[#allocation13_spill] sm:$0xff] %v4955_v35  ;;  %v1592_v27 = vshll.u32 %v3613_v1, 16  ;;  %v1596_v34 = vshrl.u32 %v3613_v1, 16  ;;  %v1775_v31 = vshrl.u32 %v3628_v46, 16  ;;  %v1778_v52 = vshll.u32 %v3628_v46, 16  ;;  %v5734_v44 = vld [vmem:[#allocation8_spill] sm:$0xff] }
 0x116   : > { %v4959_v13 = vsel %vm2025_vm0, %v2743_v55, 0  ;;  %v2751_v61 = vpack.c.b16 %v2728_v30, %v2727_v5  ;;  %v1585_v4 = vrot.slane %v1583_v32, 4  ;;  %v1588_v36 = vrot.slane %v1586_v14, 5 }
 0x117   : > { %5726 = vst [vmem:[#allocation23_spill] sm:$0xff] %v4959_v13  ;;  %v1594_v55 = vrot.slane %v1592_v27, 5  ;;  %v1598_v5 = vrot.slane %v1596_v34, 4 }
 0x118   : > { %v4965_v59 = vsel %vm2025_vm0, %v2751_v61, 0  ;;  %v1777_v61 = vrot.slane %v1775_v31, 4 }
 0x119   : > { %2825 = vmatpush.bf16.xpose.msrb.mxu3 %v4850_v33  ;;  %v4921_v57 = vpop.f32.mrf.mxu2  ;;  %v4923_v47 = vpop.f32.mrf.mxu3  ;;  %5728 = vst [vmem:[#allocation16_spill] sm:$0xff] %v4965_v59 }
 0x11a   : > { %2683 = vmatpush.bf16.xpose.msrb.mxu0 %v4373_v11 }
 0x11b   : > { %2696 = vmatpush.bf16.xpose.msrb.mxu1 %v4384_v53 }
 0x11d   : > { %2813 = vmatpush.bf16.xpose.msrb.mxu2 %v4857_v43 }
 0x11f   : > { %v4934_v10 = vpop.f32.mrf.mxu0 }
 0x120   : > { %v2228_v30 = vadd.f32 %v4921_v57, %v4934_v10 }
 0x121   : > { %2826 = vmatpush.bf16.xpose.msrb.mxu3 %v4875_v37  ;;  %v4936_v12 = vpop.f32.mrf.mxu1  ;;  %v2229_v40 = vpop.f32.mrf.mxu2 }
 0x122   : > { %2684 = vmatpush.bf16.xpose.msrb.mxu0 %v4408_v38  ;;  %v2242_v8 = vpop.f32.mrf.mxu3  ;;  %v1784_v40 = vshll.u32 %v3629_v28, 16 }
 0x123   : > { %2697 = vmatpush.bf16.xpose.msrb.mxu1 %v4417_v23  ;;  %v1788_v8 = vshrl.u32 %v3629_v28, 16  ;;  %v2241_v28 = vadd.f32 %v4923_v47, %v4936_v12 }
 0x125   : > { %2814 = vmatpush.bf16.xpose.msrb.mxu2 %v4886_v60  ;;  %v1790_v32 = vrot.slane %v1788_v8, 4 }
 0x127   : > { %v2088_v29 = vpop.f32.mrf.mxu0 }
 0x128   : > { %v3637_v29 = vld [vmem:[%s4069_s14 + $0x74] sm:$0x1] }
 0x129   : > { %2827 = vmatpush.bf16.xpose.msrb.mxu3 %v4904_v7  ;;  %v2101_v62 = vpop.f32.mrf.mxu1 }
 0x12a   : > { %2685 = vmatpush.bf16.xpose.msrb.mxu0 %v4445_v21  ;;  %v3645_v62 = vld [vmem:[%s4069_s14 + $0xd4] sm:$0x1] }
 0x12b   : > { %2698 = vmatpush.bf16.xpose.msrb.mxu1 %v4461_v20  ;;  %v1794_v14 = vshll.u32 %v3645_v62, 16 }
 0x12d   : > { %2815 = vmatpush.bf16.xpose.msrb.mxu2 %v4915_v45 }
 0x131   : > { %2828 = vmatpush.bf16.xpose.msrb.mxu3 %v4932_v19 }
 0x132   : > { %2686 = vmatpush.bf16.xpose.msrb.mxu0 %v4499_v18 }
 0x133   : > { %2699 = vmatpush.bf16.xpose.msrb.mxu1 %v5724_v54 }
 0x135   : > { %2816 = vmatpush.bf16.xpose.msrb.mxu2 %v4945_v25 }
 0x139   : > { %2829 = vmatpush.bf16.xpose.msrb.mxu3 %v4955_v35 }
 0x13a   : > { %2687 = vmatpush.bf16.xpose.msrb.mxu0 %v5727_v17 }
 0x13b   : > { %2700 = vmatpush.bf16.xpose.msrb.mxu1 %v4559_v42 }
 0x13d   : > { %2817 = vmatpush.bf16.xpose.msrb.mxu2 %v4959_v13 }
 0x141   : > { %2830 = vmatpush.bf16.xpose.msrb.mxu3 %v4965_v59 }
 0x142   : > { %2688 = vmatpush.bf16.xpose.msrb.mxu0 %v4594_v50 }
 0x143   : > { %2701 = vmatpush.bf16.xpose.msrb.mxu1 %v4616_v2 }
 0x144   : > { %3827 = vmatmul.msk.bf16.vlgmr.msrb.gmra.mxu2 %vm2025_vm0, %v3826_v3 }
 0x145   : > { %2874 = vmatpush.bf16.xpose.msra.mxu2 %v5729_v41  ;;  %v1780_v41 = vrot.slane %v1778_v52, 5  ;;  %v1796_v52 = vrot.slane %v1794_v14, 5 }
 0x147   : > { %v1781_v46 = vor.u32 %v1780_v41, %v1777_v61  ;;  %v2383_v27 = vpop.f32.mrf.mxu1 }
 0x148   : > { %3828 = vmatmul.msk.bf16.vlgmr.msrb.gmra.mxu3 %vm2025_vm0, %v3826_v3  ;;  %v1589_v3 = vor.u32 %v1588_v36, %v1585_v4  ;;  %v3610_v4 = vld [vmem:[%s4069_s14 + $0x60] sm:$0xf]  ;;  %v2388_v62 = vadd.f32 %v2383_v27, %v2241_v28 }
 0x149   : > { %2887 = vmatpush.bf16.xpose.msra.mxu3 %v5730_v39  ;;  %3824 = vmatmul.msk.bf16.vlgmr.msrb.gmra.mxu0 %vm2025_vm0, %v3823_v49  ;;  %v2370_v39 = vpop.f32.mrf.mxu0  ;;  %v1559_v47 = vshrl.u32 %v3610_v4, 16  ;;  %v1562_v12 = vshll.u32 %v3610_v4, 16  ;;  %v5738_v28 = vld [vmem:[#allocation10_spill] sm:$0xff] }
 0x14a   : > { %2845 = vmatpush.bf16.xpose.msra.mxu0 %v4270_v48  ;;  %3825 = vmatmul.msk.bf16.vlgmr.msrb.gmra.mxu1 %vm2025_vm0, %v3823_v49  ;;  %v1602_v49 = vshll.u32 %v3637_v29, 16  ;;  %v2387_v1 = vadd.f32 %v2370_v39, %v2228_v30  ;;  %v1590_v34 = vrot.slane %v1589_v3, 4  ;;  %v5008_v30 = vld [vmem:[%s4069_s14 + $0x64] sm:$0xf]  ;;  %v5736_v29 = vld [vmem:[#allocation9_spill] sm:$0xff] }
 0x14b   : > { %2858 = vmatpush.bf16.xpose.msra.mxu1 %v4277_v6  ;;  %v3626_v39 = vld [vmem:[%s4069_s14 + $0xc0] sm:$0xf]  ;;  %v1572_v14 = vshrl.u32 %v5008_v30, 16  ;;  %v2512_v27 = vpop.f32.mrf.mxu3 }
 0x14c   : > { %v1604_v10 = vrot.slane %v1602_v49, 5  ;;  %v1595_v36 = vsel %vm4097_vm3, %v1590_v34, %v1594_v55  ;;  %v1561_v49 = vrot.slane %v1559_v47, 4 }
 0x14d   : > { %2875 = vmatpush.bf16.xpose.msra.mxu2 %v5731_v15  ;;  %v1599_v15 = vor.u32 %v1598_v5, %v1594_v55  ;;  %v5011_v41 = vunpack.c.l.b16 %v1595_v36  ;;  %v1564_v55 = vrot.slane %v1562_v12, 5  ;;  %v1574_v47 = vrot.slane %v1572_v14, 4  ;;  %v5742_v14 = vld [vmem:[#allocation11_spill] sm:$0xff] }
 0x14f   : > { %v1600_v57 = vrot.slane %v1599_v15, 4  ;;  %v1565_v4 = vor.u32 %v1564_v55, %v1561_v49  ;;  %v1754_v49 = vshll.u32 %v3626_v39, 16 }
 0x151   : > { %2888 = vmatpush.bf16.xpose.msra.mxu3 %v5732_v58  ;;  %v1786_v58 = vrot.slane %v1784_v40, 5  ;;  %v2499_v40 = vpop.f32.mrf.mxu2  ;;  %v1605_v5 = vsel %vm4097_vm3, %v1600_v57, %v1604_v10  ;;  %v1751_v57 = vshrl.u32 %v3626_v39, 16  ;;  %v2372_v10 = vpop.f32.mrf.mxu0  ;;  %v1566_v39 = vrot.slane %v1565_v4, 4 }
 0x152   : > { %2846 = vmatpush.bf16.xpose.msra.mxu0 %v4313_v51  ;;  %v2516_v61 = vadd.f32 %v2499_v40, %v2387_v1  ;;  %v5014_v3 = vunpack.c.l.b16 %v1605_v5 }
 0x153   : > { %2859 = vmatpush.bf16.xpose.msra.mxu1 %v4331_v22  ;;  %v1791_v31 = vor.u32 %v1790_v32, %v1786_v58  ;;  %v1568_v32 = vshll.u32 %v5008_v30, 16 }
 0x154   : > { %v3402_v1 = vmul.f32 %v2516_v61, %v2516_v61  ;;  %v3086_v36 = vpack.c.b16 %v5014_v3, %v5011_v41  ;;  %v3608_v3 = vld [vmem:[%s4069_s14 + $0x54] sm:$0xf] }
 0x155   : > { %2876 = vmatpush.bf16.xpose.msra.mxu2 %v5733_v0  ;;  %v1782_v0 = vrot.slane %v1781_v46, 4  ;;  %v1792_v15 = vrot.slane %v1791_v31, 4  ;;  %v5019_v46 = vld [vmem:[%s4069_s14 + $0x68] sm:$0x1]  ;;  %v2517_v31 = vadd.f32 %v2512_v27, %v2388_v62  ;;  %v5026_v40 = vrot.slane %v1568_v32, 5 }
 0x156   : > { %5737 = vst [vmem:[#allocation3_spill] sm:$0xff] %v5019_v46  ;;  %v1753_v62 = vrot.slane %v1751_v57, 4  ;;  %v1535_v13 = vshrl.u32 %v3608_v3, 16  ;;  %v1538_v35 = vshll.u32 %v3608_v3, 16 }
 0x157   : > { %v1797_v34 = vsel %vm4097_vm3, %v1792_v15, %v1796_v52  ;;  %v2385_v52 = vpop.f32.mrf.mxu1  ;;  %v3398_v12 = vadd.f32 %v2517_v31, %v2516_v61  ;;  %v5035_v15 = vld [vmem:[%s4069_s14 + $0xc8] sm:$0x1]  ;;  %v1575_v32 = vor.u32 %v1574_v47, %v5026_v40 }
 0x158   : > { %5740 = vst [vmem:[#allocation5_spill] sm:$0xff] %v5035_v15  ;;  %v3078_v55 = vunpack.c.l.b16 %v1797_v34  ;;  %v1770_v52 = vshll.u32 %v5035_v15, 16  ;;  %v5107_v15 = vld [vmem:[%s4069_s14 + $0x50] sm:$0x1] }
 0x159   : > { %2889 = vmatpush.bf16.xpose.msra.mxu3 %v5734_v44  ;;  %v1787_v44 = vsel %vm4097_vm3, %v1782_v0, %v1786_v58  ;;  %v1578_v58 = vshll.u32 %v5019_v46, 16  ;;  %v5030_v0 = vld [vmem:[%s4069_s14 + $0xc4] sm:$0xf]  ;;  %v2501_v61 = vpop.f32.mrf.mxu2  ;;  %3399 = vadd.xlane.f32.xlu0 %v3398_v12  ;;  %v1576_v34 = vrot.slane %v1575_v32, 4 }
 0x15a   : > { %2847 = vmatpush.bf16.xpose.msra.mxu0 %v4373_v11  ;;  %5739 = vst [vmem:[#allocation4_spill] sm:$0xff] %v5030_v0  ;;  %v3077_v5 = vunpack.c.l.b16 %v1787_v44  ;;  %v1760_v27 = vshll.u32 %v5030_v0, 16  ;;  %v1764_v41 = vshrl.u32 %v5030_v0, 16  ;;  %v5044_v44 = vld [vmem:[%s4069_s14 + $0x58] sm:$0xf]  ;;  %v1772_v12 = vrot.slane %v1770_v52, 5 }
 0x15b   : > { %2860 = vmatpush.bf16.xpose.msra.mxu1 %v4384_v53  ;;  %5741 = vst [vmem:[#allocation6_spill] sm:$0xff] %v5044_v44  ;;  %v1580_v10 = vrot.slane %v1578_v58, 5  ;;  %v1544_v61 = vshll.u32 %v5044_v44, 16  ;;  %v1548_v4 = vshrl.u32 %v5044_v44, 16  ;;  %v3624_v58 = vld [vmem:[%s4069_s14 + $0xb4] sm:$0xf] }
 0x15c   : > { %v1766_v47 = vrot.slane %v1764_v41, 4  ;;  %v3094_v25 = vpack.c.b16 %v3078_v55, %v3077_v5  ;;  %v1540_v41 = vrot.slane %v1538_v35, 5  ;;  %v5062_v52 = vld [vmem:[%s4069_s14 + $0xb8] sm:$0xf]  ;;  %v5067_v35 = vsel %vm2025_vm0, %v3086_v36, 0 }
 0x15d   : > { %2877 = vmatpush.bf16.xpose.msra.mxu2 %v5736_v29  ;;  %v3403_v29 = vmul.f32 %v2517_v31, %v2517_v31  ;;  %v1762_v31 = vrot.slane %v1760_v27, 5  ;;  %v1537_v27 = vrot.slane %v1535_v13, 4  ;;  %v1581_v5 = vsel %vm4097_vm3, %v1576_v34, %v1580_v10  ;;  %5745 = vst [vmem:[#allocation8_spill] sm:$0xff] %v5062_v52  ;;  %v5083_v36 = vld [vmem:[%s4069_s14 + $0xbc] sm:$0x1] }
 0x15e   : > { %v1546_v3 = vrot.slane %v1544_v61, 5  ;;  %5746 = vst [vmem:[#allocation2_spill] sm:$0xff] %v5067_v35  ;;  %v5079_v34 = vunpack.c.l.b16 %v1581_v5  ;;  %v3958_v61 = vld [vmem:[%s4069_s14 + $0x6c] sm:$0xff]  ;;  %v1740_v5 = vshrl.u32 %v5062_v52, 16  ;;  %v3622_v44 = vld [vmem:[%s4069_s14 + $0xa8] sm:$0xf] }
 0x15f   : > { %v3404_v57 = vadd.f32 %v3403_v29, %v3402_v1  ;;  %v5050_v1 = vld [vmem:[%s4069_s14 + $0x5c] sm:$0x1]  ;;  %v2514_v29 = vpop.f32.mrf.mxu3  ;;  %5749 = vst [vmem:[#allocation10_spill] sm:$0xff] %v5083_v36 }
 0x160   : > { %5743 = vst [vmem:[#allocation7_spill] sm:$0xff] %v5050_v1  ;;  %v1727_v29 = vshrl.u32 %v3624_v58, 16 }
 0x161   : > { %2890 = vmatpush.bf16.xpose.msra.mxu3 %v5738_v28  ;;  %v1756_v28 = vrot.slane %v1754_v49, 5  ;;  %3405 = vadd.xlane.f32.xlu1 %v3404_v57  ;;  %v5744_v49 = vld [vmem:[#allocation12_spill] sm:$0xff]  ;;  %v1550_v57 = vrot.slane %v1548_v4, 4 }
 0x162   : > { %2848 = vmatpush.bf16.xpose.msra.mxu0 %v4408_v38  ;;  %5752 = vst [vmem:[#allocation12_spill] sm:$0xff] %v5107_v15 }
 0x163   : > { %2861 = vmatpush.bf16.xpose.msra.mxu1 %v4417_v23  ;;  %v1757_v59 = vor.u32 %v1756_v28, %v1753_v62  ;;  %v1571_v62 = vsel %vm4097_vm3, %v1566_v39, %v5026_v40  ;;  %v1541_v28 = vor.u32 %v1540_v41, %v1537_v27  ;;  %v5747_v40 = vld [vmem:[#allocation14_spill] sm:$0xff]  ;;  %v5075_v39 = vsel %vm2025_vm0, %v3094_v25, 0  ;;  %v3966_v25 = vld [vmem:[%s4069_s14 + $0xcc] sm:$0xff] }
 0x164   : > { %5748 = vst [vmem:[#allocation9_spill] sm:$0xff] %v5075_v39  ;;  %v5077_v10 = vunpack.c.l.b16 %v1571_v62 }
 0x165   : > { %2878 = vmatpush.bf16.xpose.msra.mxu2 %v5742_v14  ;;  %v1767_v14 = vor.u32 %v1766_v47, %v1762_v31  ;;  %v1758_v32 = vrot.slane %v1757_v59, 4  ;;  %v1554_v47 = vshll.u32 %v5050_v1, 16  ;;  %v1542_v4 = vrot.slane %v1541_v28, 4 }
 0x166   : > { %v1746_v28 = vshll.u32 %v5083_v36, 16 }
 0x167   : > { %v1768_v55 = vrot.slane %v1767_v14, 4  ;;  %v1763_v13 = vsel %vm4097_vm3, %v1758_v32, %v1762_v31  ;;  %v1551_v14 = vor.u32 %v1550_v57, %v1546_v3  ;;  %v1729_v31 = vrot.slane %v1727_v29, 4  ;;  %v5095_v29 = vld [vmem:[%s4069_s14 + $0x4c] sm:$0xf] }
 0x168   : > { %v1736_v32 = vshll.u32 %v5062_v52, 16  ;;  %v5087_v27 = vunpack.c.l.b16 %v1763_v13  ;;  %v1556_v62 = vrot.slane %v1554_v47, 5  ;;  %5750 = vst [vmem:[#allocation11_spill] sm:$0xff] %v5095_v29  ;;  %v3085_v13 = vpack.c.b16 %v5079_v34, %v5077_v10 }
 0x169   : > { %2891 = vmatpush.bf16.xpose.msra.mxu3 %v5744_v49  ;;  %v1773_v59 = vsel %vm4097_vm3, %v1768_v55, %v1772_v12  ;;  %v1730_v49 = vshll.u32 %v3624_v58, 16  ;;  %v3606_v12 = vld [vmem:[%s4069_s14 + $0x48] sm:$0xf]  ;;  %v1552_v55 = vrot.slane %v1551_v14, 4  ;;  %v1742_v47 = vrot.slane %v1740_v5, 4 }
 0x16a   : > { %2849 = vmatpush.bf16.xpose.msra.mxu0 %v4445_v21  ;;  %v5089_v41 = vunpack.c.l.b16 %v1773_v59  ;;  %v5751_v58 = vld [vmem:[#allocation15_spill] sm:$0xff]  ;;  %v5101_v59 = vsel %vm2025_vm0, %v3958_v61, 0  ;;  %v1511_v1 = vshrl.u32 %v3606_v12, 16  ;;  %v1547_v14 = vsel %vm4097_vm3, %v1542_v4, %v1546_v3  ;;  %v5753_v4 = vld [vmem:[#allocation17_spill] sm:$0xff] }
 0x16b   : > { %2862 = vmatpush.bf16.xpose.msra.mxu1 %v4461_v20  ;;  %v1732_v57 = vrot.slane %v1730_v49, 5  ;;  %v1748_v49 = vrot.slane %v1746_v28, 5  ;;  %v1524_v10 = vshrl.u32 %v5095_v29, 16  ;;  %v5116_v34 = vsel %vm2025_vm0, %v3966_v25, 0  ;;  %v5127_v25 = vld [vmem:[%s4069_s14 + $0xac] sm:$0xf] }
 0x16c   : > { %v1513_v0 = vrot.slane %v1511_v1, 4  ;;  %v3093_v3 = vpack.c.b16 %v5089_v41, %v5087_v27  ;;  %v1557_v61 = vsel %vm4097_vm3, %v1552_v55, %v1556_v62  ;;  %v5121_v28 = vunpack.c.l.b16 %v1547_v14  ;;  %5754 = vst [vmem:[#allocation14_spill] sm:$0xff] %v5127_v25  ;;  %v3604_v14 = vld [vmem:[%s4069_s14 + $0x3c] sm:$0xf] }
 0x16d   : > { %2879 = vmatpush.bf16.xpose.msra.mxu2 %v5747_v40  ;;  %v1738_v40 = vrot.slane %v1736_v32, 5  ;;  %v1733_v52 = vor.u32 %v1732_v57, %v1729_v31  ;;  %v1514_v32 = vshll.u32 %v3606_v12, 16  ;;  %v1526_v57 = vrot.slane %v1524_v10, 4 }
 0x16e   : > { %v1530_v41 = vshll.u32 %v5107_v15, 16  ;;  %v1703_v62 = vshrl.u32 %v3622_v44, 16  ;;  %v5756_v15 = vld [vmem:[#allocation18_spill] sm:$0xff]  ;;  %v1712_v19 = vshll.u32 %v5127_v25, 16 }
 0x16f   : > { %v1743_v36 = vor.u32 %v1742_v47, %v1738_v40  ;;  %v1734_v1 = vrot.slane %v1733_v52, 4  ;;  %v1516_v12 = vrot.slane %v1514_v32, 5  ;;  %v5129_v52 = vunpack.c.l.b16 %v1557_v61  ;;  %v5134_v32 = vld [vmem:[%s4069_s14 + $0xb0] sm:$0x1] }
 0x170   : > { %5755 = vst [vmem:[#allocation15_spill] sm:$0xff] %v5134_v32  ;;  %v1532_v46 = vrot.slane %v1530_v41, 5 }
 0x171   : > { %2892 = vmatpush.bf16.xpose.msra.mxu3 %v5751_v58  ;;  %v1520_v58 = vshll.u32 %v5095_v29, 16  ;;  %v1744_v31 = vrot.slane %v1743_v36, 4  ;;  %v1739_v27 = vsel %vm4097_vm3, %v1734_v1, %v1738_v40  ;;  %v1517_v55 = vor.u32 %v1516_v12, %v1513_v0  ;;  %v3957_v40 = vld [vmem:[%s4069_s14 + $0x60] sm:$0xff] }
 0x172   : > { %2850 = vmatpush.bf16.xpose.msra.mxu0 %v4499_v18  ;;  %v1705_v1 = vrot.slane %v1703_v62, 4  ;;  %v3965_v29 = vld [vmem:[%s4069_s14 + $0xc0] sm:$0xff]  ;;  %v1716_v0 = vshrl.u32 %v5127_v25, 16  ;;  %v1722_v12 = vshll.u32 %v5134_v32, 16  ;;  %v3084_v62 = vpack.c.b16 %v5129_v52, %v5121_v28 }
 0x173   : > { %2863 = vmatpush.bf16.xpose.msra.mxu1 %v5724_v54  ;;  %v1522_v5 = vrot.slane %v1520_v58, 5  ;;  %v1749_v36 = vsel %vm4097_vm3, %v1744_v31, %v1748_v49  ;;  %v5137_v58 = vunpack.c.l.b16 %v1739_v27  ;;  %v1518_v61 = vrot.slane %v1517_v55, 4  ;;  %v5172_v52 = vld [vmem:[%s4069_s14 + $0x44] sm:$0x1] }
 0x174   : > { %v5139_v10 = vunpack.c.l.b16 %v1749_v36  ;;  %v5148_v27 = vsel %vm2025_vm0, %v3085_v13, 0  ;;  %v1718_v41 = vrot.slane %v1716_v0, 4  ;;  %v5158_v36 = vsel %vm2025_vm0, %v3957_v40, 0  ;;  %v3620_v40 = vld [vmem:[%s4069_s14 + $0x9c] sm:$0xf] }
 0x175   : > { %2880 = vmatpush.bf16.xpose.msra.mxu2 %v5753_v4  ;;  %v1527_v47 = vor.u32 %v1526_v57, %v1522_v5  ;;  %v1706_v4 = vshll.u32 %v3622_v44, 16  ;;  %v1487_v57 = vshrl.u32 %v3604_v14, 16  ;;  %5757 = vst [vmem:[#allocation17_spill] sm:$0xff] %v5148_v27  ;;  %v5151_v44 = vsel %vm2025_vm0, %v3093_v3, 0  ;;  %v5760_v3 = vld [vmem:[#allocation19_spill] sm:$0xff] }
 0x176   : > { %5758 = vst [vmem:[#allocation18_spill] sm:$0xff] %v5151_v44  ;;  %v1523_v13 = vsel %vm4097_vm3, %v1518_v61, %v1522_v5  ;;  %v1724_v28 = vrot.slane %v1722_v12, 5  ;;  %v1506_v32 = vshll.u32 %v5172_v52, 16  ;;  %v1682_v25 = vshll.u32 %v3620_v40, 16 }
 0x177   : > { %v1528_v49 = vrot.slane %v1527_v47, 4  ;;  %v1708_v31 = vrot.slane %v1706_v4, 5  ;;  %v5163_v47 = vld [vmem:[%s4069_s14 + $0x40] sm:$0xf]  ;;  %v5169_v4 = vsel %vm2025_vm0, %v3965_v29, 0  ;;  %5761 = vst [vmem:[#allocation19_spill] sm:$0xff] %v5172_v52 }
 0x178   : > { %5759 = vst [vmem:[#allocation24_spill] sm:$0xff] %v5163_v47  ;;  %v1489_v61 = vrot.slane %v1487_v57, 4  ;;  %v1496_v29 = vshll.u32 %v5163_v47, 16  ;;  %v5763_v57 = vld [vmem:[#allocation20_spill] sm:$0xff] }
 0x179   : > { %2893 = vmatpush.bf16.xpose.msra.mxu3 %v5756_v15  ;;  %v1714_v15 = vrot.slane %v1712_v19, 5  ;;  %v1709_v55 = vor.u32 %v1708_v31, %v1705_v1  ;;  %v3092_v19 = vpack.c.b16 %v5139_v10, %v5137_v58  ;;  %v1533_v5 = vsel %vm4097_vm3, %v1528_v49, %v1532_v46  ;;  %v5186_v46 = vld [vmem:[%s4069_s14 + $0xa0] sm:$0xf]  ;;  %v3964_v52 = vld [vmem:[%s4069_s14 + $0xb4] sm:$0xff] }
 0x17a   : > { %2851 = vmatpush.bf16.xpose.msra.mxu0 %v5727_v17  ;;  %v1490_v31 = vshll.u32 %v3604_v14, 16  ;;  %v1500_v10 = vshrl.u32 %v5163_v47, 16  ;;  %5762 = vst [vmem:[#allocation25_spill] sm:$0xff] %v5186_v46  ;;  %v1679_v49 = vshrl.u32 %v3620_v40, 16  ;;  %v5189_v14 = vunpack.c.l.b16 %v1533_v5  ;;  %v5194_v47 = vld [vmem:[%s4069_s14 + $0xa4] sm:$0x1] }
 0x17b   : > { %2864 = vmatpush.bf16.xpose.msra.mxu1 %v4559_v42  ;;  %v1719_v0 = vor.u32 %v1718_v41, %v1714_v15  ;;  %v1710_v1 = vrot.slane %v1709_v55, 4  ;;  %v1498_v55 = vrot.slane %v1496_v29, 5  ;;  %5764 = vst [vmem:[#allocation20_spill] sm:$0xff] %v5194_v47  ;;  %v5208_v29 = vsel %vm2025_vm0, %v3084_v62, 0 }
 0x17c   : > { %v1492_v41 = vrot.slane %v1490_v31, 5  ;;  %v3956_v31 = vld [vmem:[%s4069_s14 + $0x54] sm:$0xff]  ;;  %5765 = vst [vmem:[#allocation26_spill] sm:$0xff] %v5208_v29  ;;  %v5219_v62 = vsel %vm2025_vm0, %v3092_v19, 0 }
 0x17d   : > { %2881 = vmatpush.bf16.xpose.msra.mxu2 %v5760_v3  ;;  %v5178_v3 = vunpack.c.l.b16 %v1523_v13  ;;  %v1720_v58 = vrot.slane %v1719_v0, 4  ;;  %v1715_v12 = vsel %vm4097_vm3, %v1710_v1, %v1714_v15  ;;  %v1502_v0 = vrot.slane %v1500_v10, 4  ;;  %5767 = vst [vmem:[#allocation28_spill] sm:$0xff] %v5219_v62 }
 0x17e   : > { %v5197_v15 = vunpack.c.l.b16 %v1715_v12  ;;  %v1508_v12 = vrot.slane %v1506_v32, 5 }
 0x17f   : > { %v1725_v13 = vsel %vm4097_vm3, %v1720_v58, %v1724_v28  ;;  %v1503_v5 = vor.u32 %v1502_v0, %v1498_v55  ;;  %v1688_v28 = vshll.u32 %v5186_v46, 16  ;;  %v1692_v58 = vshrl.u32 %v5186_v46, 16  ;;  %v5215_v46 = vld [vmem:[%s4069_s14 + $0x34] sm:$0xf] }
 0x180   : > { %v5199_v1 = vunpack.c.l.b16 %v1725_v13  ;;  %v1698_v13 = vshll.u32 %v5194_v47, 16  ;;  %5766 = vst [vmem:[#allocation27_spill] sm:$0xff] %v5215_v46 }
 0x181   : > { %2894 = vmatpush.bf16.xpose.msra.mxu3 %v5763_v57  ;;  %v1681_v57 = vrot.slane %v1679_v49, 4  ;;  %v1504_v40 = vrot.slane %v1503_v5, 4  ;;  %v1690_v49 = vrot.slane %v1688_v28, 5  ;;  %v1694_v0 = vrot.slane %v1692_v58, 4  ;;  %v5232_v58 = vld [vmem:[%s4069_s14 + $0x38] sm:$0x1] }
 0x182   : > { %2852 = vmatpush.bf16.xpose.msra.mxu0 %v4594_v50  ;;  %v1700_v28 = vrot.slane %v1698_v13, 5  ;;  %5768 = vst [vmem:[#allocation29_spill] sm:$0xff] %v5232_v58 }
 0x183   : > { %2865 = vmatpush.bf16.xpose.msra.mxu1 %v4616_v2  ;;  %v1695_v5 = vor.u32 %v1694_v0, %v1690_v49 }
 0x185   : > { %3146 = vmatpush.bf16.xpose.msrb.mxu2 %v5067_v35  ;;  %v1493_v35 = vor.u32 %v1492_v41, %v1489_v61  ;;  %v3602_v61 = vld [vmem:[%s4069_s14 + $0x30] sm:$0xf]  ;;  %v1684_v41 = vrot.slane %v1682_v25, 5  ;;  %v3091_v25 = vpack.c.b16 %v5199_v1, %v5197_v15  ;;  %v1476_v15 = vshrl.u32 %v5215_v46, 16 }
 0x186   : > { %v3618_v1 = vld [vmem:[%s4069_s14 + $0x90] sm:$0xf] }
 0x187   : > { %v1494_v10 = vrot.slane %v1493_v35, 4  ;;  %v3083_v35 = vpack.c.b16 %v5189_v14, %v5178_v3  ;;  %v1685_v32 = vor.u32 %v1684_v41, %v1681_v57  ;;  %v1463_v3 = vshrl.u32 %v3602_v61, 16 }
 0x188   : > { %v1466_v14 = vshll.u32 %v3602_v61, 16  ;;  %v1478_v0 = vrot.slane %v1476_v15, 4 }
 0x189   : > { %3159 = vmatpush.bf16.xpose.msrb.mxu3 %v5075_v39  ;;  %v1499_v19 = vsel %vm4097_vm3, %v1494_v10, %v1498_v55  ;;  %v1686_v47 = vrot.slane %v1685_v32, 4  ;;  %v1465_v57 = vrot.slane %v1463_v3, 4  ;;  %v1482_v55 = vshll.u32 %v5232_v58, 16  ;;  %v5246_v10 = vld [vmem:[%s4069_s14 + $0x94] sm:$0xf] }
 0x18a   : > { %3017 = vmatpush.bf16.xpose.msrb.mxu0 %v5101_v59  ;;  %v5224_v59 = vsel %vm2025_vm0, %v3956_v31, 0  ;;  %v1472_v31 = vshll.u32 %v5215_v46, 16  ;;  %v1468_v13 = vrot.slane %v1466_v14, 5  ;;  %5769 = vst [vmem:[#allocation30_spill] sm:$0xff] %v5246_v10  ;;  %v5248_v61 = vunpack.c.l.b16 %v1499_v19  ;;  %v3955_v14 = vld [vmem:[%s4069_s14 + $0x48] sm:$0xff] }
 0x18b   : > { %3030 = vmatpush.bf16.xpose.msrb.mxu1 %v5116_v34  ;;  %v5227_v34 = vsel %vm2025_vm0, %v3964_v52, 0  ;;  %v1509_v52 = vsel %vm4097_vm3, %v1504_v40, %v1508_v12  ;;  %v1691_v12 = vsel %vm4097_vm3, %v1686_v47, %v1690_v49  ;;  %v1655_v47 = vshrl.u32 %v3618_v1, 16 }
 0x18c   : > { %v5242_v41 = vrot.slane %v1472_v31, 5  ;;  %v3054_v32 = vunpack.c.l.b16 %v1509_v52  ;;  %v1469_v46 = vor.u32 %v1468_v13, %v1465_v57  ;;  %v5259_v31 = vld [vmem:[%s4069_s14 + $0x98] sm:$0x1]  ;;  %v1658_v49 = vshll.u32 %v3618_v1, 16 }
 0x18d   : > { %3147 = vmatpush.bf16.xpose.msrb.mxu2 %v5148_v27  ;;  %v1696_v27 = vrot.slane %v1695_v5, 4  ;;  %v3069_v5 = vunpack.c.l.b16 %v1691_v12  ;;  %5770 = vst [vmem:[#allocation31_spill] sm:$0xff] %v5259_v31  ;;  %v1668_v15 = vshrl.u32 %v5246_v10, 16  ;;  %v1657_v57 = vrot.slane %v1655_v47, 4 }
 0x18e   : > { %v1479_v19 = vor.u32 %v1478_v0, %v5242_v41  ;;  %v1470_v52 = vrot.slane %v1469_v46, 4  ;;  %v1660_v13 = vrot.slane %v1658_v49, 5  ;;  %v5271_v1 = vsel %vm2025_vm0, %v3955_v14, 0  ;;  %v3963_v0 = vld [vmem:[%s4069_s14 + $0xa8] sm:$0xff] }
 0x18f   : > { %v1701_v40 = vsel %vm4097_vm3, %v1696_v27, %v1700_v28  ;;  %v1664_v27 = vshll.u32 %v5246_v10, 16  ;;  %v5264_v28 = vsel %vm2025_vm0, %v3083_v35, 0  ;;  %v1670_v58 = vrot.slane %v1668_v15, 4  ;;  %v5276_v35 = vld [vmem:[%s4069_s14 + $0x28] sm:$0xf] }
 0x190   : > { %v3070_v3 = vunpack.c.l.b16 %v1701_v40  ;;  %5771 = vst [vmem:[#allocation32_spill] sm:$0xff] %v5264_v28  ;;  %v3600_v40 = vld [vmem:[%s4069_s14 + $0x24] sm:$0xf]  ;;  %v5279_v46 = vsel %vm2025_vm0, %v3091_v25, 0  ;;  %v1661_v47 = vor.u32 %v1660_v13, %v1657_v57  ;;  %v1475_v14 = vsel %vm4097_vm3, %v1470_v52, %v5242_v41  ;;  %v5290_v15 = vld [vmem:[%s4069_s14 + $0x2c] sm:$0x1] }
 0x191   : > { %3160 = vmatpush.bf16.xpose.msrb.mxu3 %v5151_v44  ;;  %v5267_v12 = vrot.slane %v1664_v27, 5  ;;  %5772 = vst [vmem:[#allocation33_spill] sm:$0xff] %v5276_v35  ;;  %v1439_v25 = vshrl.u32 %v3600_v40, 16  ;;  %v1452_v41 = vshrl.u32 %v5276_v35, 16  ;;  %v3616_v52 = vld [vmem:[%s4069_s14 + $0x84] sm:$0xf] }
 0x192   : > { %3018 = vmatpush.bf16.xpose.msrb.mxu0 %v5158_v36  ;;  %v1484_v36 = vrot.slane %v1482_v55, 5  ;;  %v3082_v55 = vpack.c.b16 %v3054_v32, %v5248_v61  ;;  %5773 = vst [vmem:[#allocation34_spill] sm:$0xff] %v5290_v15  ;;  %v3829_v61 = vld [vmem:[%s5634_s1 + $0x20] sm:$0xf]  ;;  %v1662_v32 = vrot.slane %v1661_v47, 4 }
 0x193   : > { %3031 = vmatpush.bf16.xpose.msrb.mxu1 %v5169_v4  ;;  %v1480_v4 = vrot.slane %v1479_v19, 4  ;;  %v3090_v19 = vpack.c.b16 %v3070_v3, %v3069_v5  ;;  %v1671_v27 = vor.u32 %v1670_v58, %v5267_v12  ;;  %v1442_v5 = vshll.u32 %v3600_v40, 16  ;;  %3833 = vmatmul.msk.bf16.vlgmr.msra.gmra.mxu2 %vm2025_vm0, %v3829_v61  ;;  %v5302_v13 = vld [vmem:[%s4069_s14 + $0x88] sm:$0xf] }
 0x194   : > { %v1448_v3 = vshll.u32 %v5276_v35, 16  ;;  %3834 = vmatmul.msk.bf16.vlgmr.msra.gmra.mxu3 %vm2025_vm0, %v3829_v61  ;;  %v3006_v58 = vsel %vm2025_vm0, %v3963_v0, 0  ;;  %v1441_v57 = vrot.slane %v1439_v25, 4  ;;  %5774 = vst [vmem:[#allocation35_spill] sm:$0xff] %v5302_v13  ;;  %v1454_v35 = vrot.slane %v1452_v41, 4  ;;  %v3954_v25 = vld [vmem:[%s4069_s14 + $0x3c] sm:$0xff] }
 0x195   : > { %3148 = vmatpush.bf16.xpose.msrb.mxu2 %v5208_v29  ;;  %v1674_v29 = vshll.u32 %v5259_v31, 16  ;;  %v1485_v49 = vsel %vm4097_vm3, %v1480_v4, %v1484_v36  ;;  %v1672_v36 = vrot.slane %v1671_v27, 4  ;;  %v1444_v40 = vrot.slane %v1442_v5, 5  ;;  %v3962_v61 = vld [vmem:[%s4069_s14 + $0x9c] sm:$0xff] }
 0x196   : > { %v1450_v47 = vrot.slane %v1448_v3, 5  ;;  %v1458_v31 = vshll.u32 %v5290_v15, 16  ;;  %v5315_v0 = vsel %vm2025_vm0, %v3090_v19, 0  ;;  %v3051_v27 = vunpack.c.l.b16 %v1475_v14 }
 0x197   : > { %v1676_v4 = vrot.slane %v1674_v29, 5  ;;  %v5312_v29 = vsel %vm2025_vm0, %v3082_v55, 0  ;;  %5777 = vst [vmem:[#allocation38_spill] sm:$0xff] %v5315_v0  ;;  %v1445_v5 = vor.u32 %v1444_v40, %v1441_v57  ;;  %v1631_v41 = vshrl.u32 %v3616_v52, 16  ;;  %v5332_v40 = vld [vmem:[%s4069_s14 + $0x1c] sm:$0xf] }
 0x198   : > { %5776 = vst [vmem:[#allocation37_spill] sm:$0xff] %v5312_v29  ;;  %v1455_v3 = vor.u32 %v1454_v35, %v1450_v47  ;;  %v1640_v55 = vshll.u32 %v5302_v13, 16  ;;  %v1644_v15 = vshrl.u32 %v5302_v13, 16  ;;  %v1460_v10 = vrot.slane %v1458_v31, 5  ;;  %v3830_v31 = vld [vmem:[%s5634_s1 + $0x24] sm:$0xf] }
 0x199   : > { %3161 = vmatpush.bf16.xpose.msrb.mxu3 %v5219_v62  ;;  %v5308_v62 = vld [vmem:[%s4069_s14 + $0x8c] sm:$0x1]  ;;  %v1677_v14 = vsel %vm4097_vm3, %v1672_v36, %v1676_v4  ;;  %v1633_v44 = vrot.slane %v1631_v41, 4  ;;  %v3003_v36 = vsel %vm2025_vm0, %v3962_v61, 0  ;;  %v5341_v41 = vld [vmem:[%s4069_s14 + $0x20] sm:$0x1]  ;;  %3831 = vmatmul.msk.bf16.vlgmr.msra.gmra.mxu0 %vm2025_vm0, %v3830_v31 }
 0x19a   : > { %3019 = vmatpush.bf16.xpose.msrb.mxu0 %v5224_v59  ;;  %5775 = vst [vmem:[#allocation36_spill] sm:$0xff] %v5308_v62  ;;  %v3052_v59 = vunpack.c.l.b16 %v1485_v49  ;;  %v1650_v19 = vshll.u32 %v5308_v62, 16  ;;  %v1446_v49 = vrot.slane %v1445_v5, 4  ;;  %v1456_v35 = vrot.slane %v1455_v3, 4  ;;  %3832 = vmatmul.msk.bf16.vlgmr.msra.gmra.mxu1 %vm2025_vm0, %v3830_v31 }
 0x19b   : > { %3032 = vmatpush.bf16.xpose.msrb.mxu1 %v5227_v34  ;;  %v1667_v34 = vsel %vm4097_vm3, %v1662_v32, %v5267_v12  ;;  %v3598_v12 = vld [vmem:[%s4069_s14 + $0x18] sm:$0xf]  ;;  %v5329_v57 = vrot.slane %v1640_v55, 5  ;;  %v2979_v62 = vsel %vm2025_vm0, %v3954_v25, 0  ;;  %v3068_v4 = vunpack.c.l.b16 %v1677_v14 }
 0x19c   : > { %v3081_v13 = vpack.c.b16 %v3052_v59, %v3051_v27  ;;  %v3067_v39 = vunpack.c.l.b16 %v1667_v34  ;;  %v1415_v27 = vshrl.u32 %v3598_v12, 16  ;;  %v1418_v59 = vshll.u32 %v3598_v12, 16 }
 0x19d   : > { %3149 = vmatpush.bf16.xpose.msrb.mxu2 %v5264_v28  ;;  %v1634_v28 = vshll.u32 %v3616_v52, 16  ;;  %v1646_v52 = vrot.slane %v1644_v15, 4  ;;  %v1451_v15 = vsel %vm4097_vm3, %v1446_v49, %v1450_v47  ;;  %v1461_v34 = vsel %vm4097_vm3, %v1456_v35, %v1460_v10  ;;  %v5356_v49 = vld [vmem:[%s4069_s14 + $0x7c] sm:$0xf] }
 0x19e   : > { %v1428_v55 = vshrl.u32 %v5332_v40, 16  ;;  %v1434_v47 = vshll.u32 %v5341_v41, 16  ;;  %5778 = vst [vmem:[#allocation39_spill] sm:$0xff] %v5356_v49  ;;  %v5359_v12 = vsel %vm2025_vm0, %v3081_v13, 0  ;;  %v3050_v10 = vunpack.c.l.b16 %v1461_v34 }
 0x19f   : > { %v1636_v32 = vrot.slane %v1634_v28, 5  ;;  %v1647_v3 = vor.u32 %v1646_v52, %v5329_v57  ;;  %v1652_v28 = vrot.slane %v1650_v19, 5  ;;  %v1417_v19 = vrot.slane %v1415_v27, 4 }
 0x1a0   : > { %v3049_v52 = vunpack.c.l.b16 %v1451_v15  ;;  %v1430_v31 = vrot.slane %v1428_v55, 4  ;;  %v1436_v15 = vrot.slane %v1434_v47, 5  ;;  %v3953_v47 = vld [vmem:[%s4069_s14 + $0x30] sm:$0xff] }
 0x1a1   : > { %3162 = vmatpush.bf16.xpose.msrb.mxu3 %v5279_v46  ;;  %v1637_v5 = vor.u32 %v1636_v32, %v1633_v44  ;;  %v1424_v44 = vshll.u32 %v5332_v40, 16  ;;  %v1648_v61 = vrot.slane %v1647_v3, 4  ;;  %v3089_v32 = vpack.c.b16 %v3068_v4, %v3067_v39 }
 0x1a2   : > { %3020 = vmatpush.bf16.xpose.msrb.mxu0 %v5271_v1  ;;  %v3614_v1 = vld [vmem:[%s4069_s14 + $0x78] sm:$0xf]  ;;  %v1616_v39 = vshll.u32 %v5356_v49, 16 }
 0x1a3   : > { %3033 = vmatpush.bf16.xpose.msrb.mxu1 %v3006_v58  ;;  %v1638_v25 = vrot.slane %v1637_v5, 4  ;;  %v1420_v58 = vrot.slane %v1418_v59, 5  ;;  %v1426_v14 = vrot.slane %v1424_v44, 5  ;;  %v1653_v5 = vsel %vm4097_vm3, %v1648_v61, %v1652_v28  ;;  %v5373_v61 = vpop.f32.mrf.mxu2 }
 0x1a4   : > { %v1607_v59 = vshrl.u32 %v3614_v1, 16  ;;  %v1610_v13 = vshll.u32 %v3614_v1, 16  ;;  %v1620_v44 = vshrl.u32 %v5356_v49, 16  ;;  %v1618_v28 = vrot.slane %v1616_v39, 5  ;;  %v2630_v39 = vpop.f32.mrf.mxu0 }
 0x1a5   : > { %3150 = vmatpush.bf16.xpose.msrb.mxu2 %v5312_v29  ;;  %v5362_v29 = vld [vmem:[%s4069_s14 + $0x80] sm:$0x1]  ;;  %v1643_v35 = vsel %vm4097_vm3, %v1638_v25, %v5329_v57  ;;  %v1421_v3 = vor.u32 %v1420_v58, %v1417_v19  ;;  %v1431_v27 = vor.u32 %v1430_v31, %v1426_v14  ;;  %v5375_v19 = vpop.f32.mrf.mxu3  ;;  %v5379_v58 = vsel %vm2025_vm0, %v3089_v32, 0  ;;  %v3961_v31 = vld [vmem:[%s4069_s14 + $0x90] sm:$0xff] }
 0x1a6   : > { %5779 = vst [vmem:[#allocation40_spill] sm:$0xff] %v5362_v29  ;;  %v1626_v34 = vshll.u32 %v5362_v29, 16  ;;  %v1609_v25 = vrot.slane %v1607_v59, 4  ;;  %v1612_v55 = vrot.slane %v1610_v13, 5  ;;  %v1622_v1 = vrot.slane %v1620_v44, 4 }
 0x1a7   : > { %v1422_v4 = vrot.slane %v1421_v3, 4  ;;  %v1432_v57 = vrot.slane %v1431_v27, 4  ;;  %v3080_v29 = vpack.c.b16 %v3050_v10, %v3049_v52  ;;  %v3065_v27 = vunpack.c.l.b16 %v1643_v35 }
 0x1a8   : > { %v1613_v3 = vor.u32 %v1612_v55, %v1609_v25  ;;  %v3066_v59 = vunpack.c.l.b16 %v1653_v5  ;;  %v1623_v13 = vor.u32 %v1622_v1, %v1618_v28  ;;  %v1628_v44 = vrot.slane %v1626_v34, 5  ;;  %v3952_v55 = vld [vmem:[%s4069_s14 + $0x24] sm:$0xff] }
 0x1a9   : > { %3163 = vmatpush.bf16.xpose.msrb.mxu3 %v5315_v0  ;;  %v2643_v0 = vpop.f32.mrf.mxu1  ;;  %v1427_v49 = vsel %vm4097_vm3, %v1422_v4, %v1426_v14  ;;  %v2976_v52 = vsel %vm2025_vm0, %v3953_v47, 0  ;;  %v3000_v10 = vsel %vm2025_vm0, %v3961_v31, 0  ;;  %v5391_v35 = vsel %vm2025_vm0, %v3080_v29, 0  ;;  %v3960_v1 = vld [vmem:[%s4069_s14 + $0x84] sm:$0xff] }
 0x1aa   : > { %3021 = vmatpush.bf16.xpose.msrb.mxu0 %v2979_v62  ;;  %v1437_v62 = vsel %vm4097_vm3, %v1432_v57, %v1436_v15  ;;  %v1624_v32 = vrot.slane %v1623_v13, 4  ;;  %v3088_v5 = vpack.c.b16 %v3066_v59, %v3065_v27  ;;  %v3047_v25 = vunpack.c.l.b16 %v1427_v49 }
 0x1ab   : > { %3034 = vmatpush.bf16.xpose.msrb.mxu1 %v3003_v36  ;;  %v1614_v36 = vrot.slane %v1613_v3, 4  ;;  %v3048_v14 = vunpack.c.l.b16 %v1437_v62  ;;  %v2661_v34 = vpop.f32.mrf.mxu2  ;;  %v2973_v8 = vsel %vm2025_vm0, %v3952_v55, 0  ;;  %v2997_v27 = vsel %vm2025_vm0, %v3960_v1, 0  ;;  %v3951_v62 = vld [vmem:[%s4069_s14 + $0x18] sm:$0xff] }
 0x1ac   : > { %v1629_v15 = vsel %vm4097_vm3, %v1624_v32, %v1628_v44  ;;  %v5401_v29 = vsel %vm2025_vm0, %v3088_v5, 0  ;;  %v2970_v32 = vsel %vm2025_vm0, %v3951_v62, 0  ;;  %v5780_v62 = vld [vmem:[#allocation21_spill] sm:$0xff] }
 0x1ad   : > { %3151 = vmatpush.bf16.xpose.msrb.mxu2 %v5359_v12  ;;  %v1619_v4 = vsel %vm4097_vm3, %v1614_v36, %v1618_v28  ;;  %v2674_v57 = vpop.f32.mrf.mxu3  ;;  %v3079_v49 = vpack.c.b16 %v3048_v14, %v3047_v25  ;;  %v3064_v31 = vunpack.c.l.b16 %v1629_v15  ;;  %v2632_v28 = vpop.f32.mrf.mxu0  ;;  %v3959_v36 = vld [vmem:[%s4069_s14 + $0x78] sm:$0xff]  ;;  %v3661_v15 = vld [vmem:[%s4069_s14 + $0xcc] sm:$0xe] }
 0x1ae   : > { %v3063_v47 = vunpack.c.l.b16 %v1619_v4  ;;  %v3653_v4 = vld [vmem:[%s4069_s14 + $0x6c] sm:$0xe]  ;;  %v4030_v57 = vld [vmem:[%s4069_s14 + $0x74] sm:$0x1]  ;;  %v3677_v1 = vrot.slane %v3661_v15, 9 }
 0x1af   : > { %v5407_v59 = vsel %vm2025_vm0, %v3079_v49, 0  ;;  %v1916_v55 = vrot.slane %v4030_v57, 5  ;;  %v5788_v15 = vld [vmem:[#allocation7_spill] sm:$0xff] }
 0x1b0   : > { %v3087_v13 = vpack.c.b16 %v3064_v31, %v3063_v47  ;;  %v4031_v47 = vld [vmem:[%s4069_s14 + $0xd4] sm:$0x1] }
 0x1b1   : > { %3164 = vmatpush.bf16.xpose.msrb.mxu3 %v5379_v58  ;;  %v2645_v3 = vpop.f32.mrf.mxu1 }
 0x1b2   : > { %3022 = vmatpush.bf16.xpose.msrb.mxu0 %v2976_v52  ;;  %v5413_v44 = vsel %vm2025_vm0, %v3087_v13, 0  ;;  %v2994_v52 = vsel %vm2025_vm0, %v3959_v36, 0 }
 0x1b3   : > { %3035 = vmatpush.bf16.xpose.msrb.mxu1 %v3000_v10  ;;  %v3902_v10 = vld [vmem:[%s5634_s1 + $0x2c] sm:$0xf] }
 0x1b5   : > { %3152 = vmatpush.bf16.xpose.msrb.mxu2 %v5391_v35 }
 0x1b9   : > { %3165 = vmatpush.bf16.xpose.msrb.mxu3 %v5401_v29 }
 0x1ba   : > { %3023 = vmatpush.bf16.xpose.msrb.mxu0 %v2973_v8 }
 0x1bb   : > { %3036 = vmatpush.bf16.xpose.msrb.mxu1 %v2997_v27 }
 0x1bd   : > { %3153 = vmatpush.bf16.xpose.msrb.mxu2 %v5407_v59 }
 0x1c1   : > { %3166 = vmatpush.bf16.xpose.msrb.mxu3 %v5413_v44 }
 0x1c2   : > { %3024 = vmatpush.bf16.xpose.msrb.mxu0 %v2970_v32  ;;  %v5781_v32 = vld [vmem:[#allocation3_spill] sm:$0xff] }
 0x1c3   : > { %3037 = vmatpush.bf16.xpose.msrb.mxu1 %v2994_v52  ;;  %v1909_v52 = vrot.slane %v5781_v32, 5 }
 0x1c4   : > { %3903 = vmatmul.msk.bf16.vlgmr.msrb.gmra.mxu2 %vm2025_vm0, %v3902_v10 }
 0x1c5   : > { %3210 = vmatpush.bf16.xpose.msra.mxu2 %v4270_v48  ;;  %v3835_v48 = vld [vmem:[%s5634_s1 + $0x28] sm:$0xf] }
 0x1c7   : > { %v2819_v5 = vpop.f32.mrf.mxu2 }
 0x1c8   : > { %3904 = vmatmul.msk.bf16.vlgmr.msrb.gmra.mxu3 %vm2025_vm0, %v3902_v10  ;;  %v5782_v10 = vld [vmem:[#allocation4_spill] sm:$0xff] }
 0x1c9   : > { %3223 = vmatpush.bf16.xpose.msra.mxu3 %v4277_v6  ;;  %3900 = vmatmul.msk.bf16.vlgmr.msrb.gmra.mxu0 %vm2025_vm0, %v3835_v48  ;;  %v2660_v6 = vadd.f32 %v5373_v61, %v2630_v39  ;;  %v4028_v39 = vld [vmem:[%s4069_s14 + $0x70] sm:$0xf] }
 0x1ca   : > { %3181 = vmatpush.bf16.xpose.msra.mxu0 %v4788_v16  ;;  %3901 = vmatmul.msk.bf16.vlgmr.msrb.gmra.mxu1 %vm2025_vm0, %v3835_v48  ;;  %v2703_v16 = vpop.f32.mrf.mxu1  ;;  %v1913_v25 = vrot.slane %v4028_v39, 5  ;;  %v5786_v39 = vld [vmem:[#allocation22_spill] sm:$0xff] }
 0x1cb   : > { %3194 = vmatpush.bf16.xpose.msra.mxu1 %v4799_v56 }
 0x1cc   : > { %v1915_v34 = vrot.slane %v1913_v25, 4 }
 0x1cd   : > { %3211 = vmatpush.bf16.xpose.msra.mxu2 %v4313_v51  ;;  %v2673_v51 = vadd.f32 %v5375_v19, %v2643_v0 }
 0x1ce   : > { %v1917_v28 = vsel %vm4583_vm6, %v1915_v34, %v1916_v55  ;;  %v5789_v34 = vld [vmem:[#allocation10_spill] sm:$0xff]  ;;  %v5790_v55 = vld [vmem:[#allocation11_spill] sm:$0xff] }
 0x1cf   : > { %v3286_v8 = vunpack.c.l.b16 %v1917_v28  ;;  %v1958_v57 = vrot.slane %v5789_v34, 5  ;;  %v3650_v28 = vld [vmem:[%s4069_s14 + $0x48] sm:$0xe]  ;;  %v3657_v34 = vld [vmem:[%s4069_s14 + $0x9c] sm:$0xe] }
 0x1d1   : > { %3224 = vmatpush.bf16.xpose.msra.mxu3 %v4331_v22  ;;  %v2690_v22 = vpop.f32.mrf.mxu0 }
 0x1d2   : > { %3182 = vmatpush.bf16.xpose.msra.mxu0 %v4809_v9  ;;  %v2707_v56 = vadd.f32 %v2690_v22, %v2660_v6  ;;  %v2708_v9 = vadd.f32 %v2703_v16, %v2673_v51  ;;  %v2705_v19 = vpop.f32.mrf.mxu1 }
 0x1d3   : > { %3195 = vmatpush.bf16.xpose.msra.mxu1 %v4819_v63 }
 0x1d4   : > { %v2836_v63 = vadd.f32 %v2819_v5, %v2707_v56 }
 0x1d5   : > { %3212 = vmatpush.bf16.xpose.msra.mxu2 %v4373_v11  ;;  %v2832_v11 = vpop.f32.mrf.mxu3 }
 0x1d6   : > { %v3412_v61 = vmul.f32 %v2836_v63, %v2836_v63 }
 0x1d9   : > { %3225 = vmatpush.bf16.xpose.msra.mxu3 %v4384_v53  ;;  %v2837_v53 = vadd.f32 %v2832_v11, %v2708_v9  ;;  %v5783_v9 = vld [vmem:[#allocation5_spill] sm:$0xff] }
 0x1da   : > { %3183 = vmatpush.bf16.xpose.msra.mxu0 %v4836_v24  ;;  %v1965_v5 = vrot.slane %v5783_v9, 5 }
 0x1db   : > { %3196 = vmatpush.bf16.xpose.msra.mxu1 %v4850_v33  ;;  %v3413_v0 = vmul.f32 %v2837_v53, %v2837_v53  ;;  %v3408_v24 = vadd.f32 %v2837_v53, %v2836_v63  ;;  %v2692_v33 = vpop.f32.mrf.mxu0  ;;  %v5784_v63 = vld [vmem:[#allocation6_spill] sm:$0xff]  ;;  %v3651_v53 = vld [vmem:[%s4069_s14 + $0x54] sm:$0xe] }
 0x1dc   : > { %v1899_v11 = vrot.slane %v5784_v63, 5  ;;  %v5797_v63 = vld [vmem:[#allocation15_spill] sm:$0xff] }
 0x1dd   : > { %3213 = vmatpush.bf16.xpose.msra.mxu2 %v4408_v38  ;;  %3409 = vadd.xlane.f32.xlu0 %v3408_v24  ;;  %v3414_v38 = vadd.f32 %v3413_v0, %v3412_v61  ;;  %v2834_v14 = vpop.f32.mrf.mxu3  ;;  %v5785_v61 = vld [vmem:[#allocation8_spill] sm:$0xff] }
 0x1de   : > { %v3659_v24 = vld [vmem:[%s4069_s14 + $0xb4] sm:$0xe]  ;;  %v3667_v14 = vrot.slane %v3651_v53, 9 }
 0x1df   : > { %3415 = vadd.xlane.f32.xlu1 %v3414_v38 }
 0x1e1   : > { %3226 = vmatpush.bf16.xpose.msra.mxu3 %v4417_v23  ;;  %v2821_v23 = vpop.f32.mrf.mxu2 }
 0x1e2   : > { %3184 = vmatpush.bf16.xpose.msra.mxu0 %v4857_v43  ;;  %v4029_v43 = vld [vmem:[%s4069_s14 + $0xd0] sm:$0xf] }
 0x1e3   : > { %3197 = vmatpush.bf16.xpose.msra.mxu1 %v4875_v37  ;;  %v1969_v37 = vrot.slane %v4029_v43, 5  ;;  %v1902_v43 = vrot.slane %v5788_v15, 5 }
 0x1e5   : > { %3214 = vmatpush.bf16.xpose.msra.mxu2 %v4445_v21  ;;  %v3669_v21 = vrot.slane %v3653_v4, 9  ;;  %v1971_v49 = vrot.slane %v1969_v37, 4  ;;  %v1970_v3 = vsel %vm4583_vm6, %v3677_v1, %v1969_v37  ;;  %v1901_v4 = vrot.slane %v1899_v11, 4 }
 0x1e6   : > { %v3301_v48 = vunpack.c.l.b16 %v1970_v3  ;;  %v3675_v37 = vrot.slane %v3659_v24, 9  ;;  %v1892_v1 = vrot.slane %v5790_v55, 5  ;;  %v3649_v24 = vld [vmem:[%s4069_s14 + $0x3c] sm:$0xe]  ;;  %v5802_v55 = vld [vmem:[#allocation18_spill] sm:$0xff] }
 0x1e7   : > { %v1914_v31 = vsel %vm4583_vm6, %v3669_v21, %v1913_v25  ;;  %v5787_v25 = vld [vmem:[#allocation13_spill] sm:$0xff]  ;;  %v3665_v15 = vrot.slane %v3649_v24, 9  ;;  %v5809_v24 = vld [vmem:[#allocation31_spill] sm:$0xff] }
 0x1e9   : > { %3227 = vmatpush.bf16.xpose.msra.mxu3 %v4461_v20  ;;  %v1972_v20 = vrot.slane %v4031_v47, 5 }
 0x1ea   : > { %3185 = vmatpush.bf16.xpose.msra.mxu0 %v4886_v60  ;;  %v3652_v60 = vld [vmem:[%s4069_s14 + $0x60] sm:$0xe] }
 0x1eb   : > { %3198 = vmatpush.bf16.xpose.msra.mxu1 %v4904_v7  ;;  %v1906_v7 = vrot.slane %v5008_v30, 5  ;;  %v1973_v27 = vsel %vm4583_vm6, %v1971_v49, %v1972_v20  ;;  %v3668_v13 = vrot.slane %v3652_v60, 9  ;;  %v3660_v30 = vld [vmem:[%s4069_s14 + $0xc0] sm:$0xe]  ;;  %v1900_v60 = vsel %vm4583_vm6, %v3667_v14, %v1899_v11  ;;  %v3905_v14 = vld [vmem:[%s5634_s1 + $0x30] sm:$0xf] }
 0x1ec   : > { %v3302_v6 = vunpack.c.l.b16 %v1973_v27  ;;  %v3676_v16 = vrot.slane %v3660_v30, 9  ;;  %v5791_v27 = vld [vmem:[#allocation12_spill] sm:$0xff]  ;;  %v1951_v11 = vrot.slane %v5797_v63, 5 }
 0x1ed   : > { %3215 = vmatpush.bf16.xpose.msra.mxu2 %v4499_v18  ;;  %v3285_v18 = vunpack.c.l.b16 %v1914_v31  ;;  %v1908_v36 = vrot.slane %v1906_v7, 4  ;;  %v1907_v22 = vsel %vm4583_vm6, %v3668_v13, %v1906_v7  ;;  %v1895_v13 = vrot.slane %v5791_v27, 5  ;;  %v3648_v27 = vld [vmem:[%s4069_s14 + $0x30] sm:$0xe] }
 0x1ee   : > { %v3318_v0 = vpack.c.b16 %v3302_v6, %v3301_v48  ;;  %v3283_v33 = vunpack.c.l.b16 %v1907_v22  ;;  %v5794_v48 = vld [vmem:[#allocation16_spill] sm:$0xff]  ;;  %v5795_v6 = vld [vmem:[#allocation2_spill] sm:$0xff] }
 0x1ef   : > { %v3310_v51 = vpack.c.b16 %v3286_v8, %v3285_v18  ;;  %v3666_v18 = vrot.slane %v3650_v28, 9  ;;  %v1894_v8 = vrot.slane %v1892_v1, 4  ;;  %v5803_v28 = vld [vmem:[#allocation20_spill] sm:$0xff] }
 0x1f0   : > { %v3368_v49 = vsel %vm2025_vm0, %v3318_v0, 0 }
 0x1f1   : > { %3228 = vmatpush.bf16.xpose.msra.mxu3 %v5724_v54  ;;  %v1962_v54 = vrot.slane %v5782_v10, 5  ;;  %v3344_v38 = vsel %vm2025_vm0, %v3310_v51, 0  ;;  %v3281_v10 = vunpack.c.l.b16 %v1900_v60  ;;  %v5796_v51 = vld [vmem:[#allocation9_spill] sm:$0xff]  ;;  %v1896_v9 = vsel %vm4583_vm6, %v1894_v8, %v1895_v13 }
 0x1f2   : > { %3186 = vmatpush.bf16.xpose.msra.mxu0 %v4915_v45  ;;  %v1910_v45 = vsel %vm4583_vm6, %v1908_v36, %v1909_v52  ;;  %v5792_v36 = vld [vmem:[#allocation14_spill] sm:$0xff]  ;;  %v1944_v60 = vrot.slane %v5803_v28, 5 }
 0x1f3   : > { %3199 = vmatpush.bf16.xpose.msra.mxu1 %v5780_v62  ;;  %v1964_v56 = vrot.slane %v1962_v54, 4  ;;  %v3284_v19 = vunpack.c.l.b16 %v1910_v45  ;;  %v1963_v23 = vsel %vm4583_vm6, %v3676_v16, %v1962_v54  ;;  %v3658_v62 = vld [vmem:[%s4069_s14 + $0xa8] sm:$0xe]  ;;  %v1948_v32 = vrot.slane %v5792_v36, 5 }
 0x1f4   : > { %v3299_v20 = vunpack.c.l.b16 %v1963_v23  ;;  %v3674_v45 = vrot.slane %v3658_v62, 9 }
 0x1f5   : > { %3216 = vmatpush.bf16.xpose.msra.mxu2 %v5727_v17  ;;  %v1955_v17 = vrot.slane %v5785_v61, 5  ;;  %v3309_v47 = vpack.c.b16 %v3284_v19, %v3283_v33  ;;  %v3280_v33 = vunpack.c.l.b16 %v1896_v9  ;;  %v5808_v9 = vld [vmem:[#allocation28_spill] sm:$0xff] }
 0x1f6   : > { %v1949_v23 = vsel %vm4583_vm6, %v3674_v45, %v1948_v32 }
 0x1f7   : > { %v1957_v21 = vrot.slane %v1955_v17, 4  ;;  %v1956_v7 = vsel %vm4583_vm6, %v3675_v37, %v1955_v17  ;;  %v3341_v52 = vsel %vm2025_vm0, %v3309_v47, 0  ;;  %v5798_v17 = vld [vmem:[#allocation24_spill] sm:$0xff]  ;;  %v5800_v37 = vld [vmem:[#allocation19_spill] sm:$0xff] }
 0x1f8   : > { %v3297_v22 = vunpack.c.l.b16 %v1956_v7  ;;  %v1885_v0 = vrot.slane %v5798_v17, 5 }
 0x1f9   : > { %3229 = vmatpush.bf16.xpose.msra.mxu3 %v4559_v42  ;;  %v1966_v42 = vsel %vm4583_vm6, %v1964_v56, %v1965_v5  ;;  %v1959_v3 = vsel %vm4583_vm6, %v1957_v21, %v1958_v57  ;;  %v1893_v56 = vsel %vm4583_vm6, %v3666_v18, %v1892_v1  ;;  %v1950_v5 = vrot.slane %v1948_v32, 4  ;;  %v5801_v57 = vld [vmem:[#allocation17_spill] sm:$0xff]  ;;  %v5804_v18 = vld [vmem:[#allocation27_spill] sm:$0xff] }
 0x1fa   : > { %3187 = vmatpush.bf16.xpose.msra.mxu0 %v5786_v39  ;;  %v3300_v31 = vunpack.c.l.b16 %v1966_v42  ;;  %v3298_v16 = vunpack.c.l.b16 %v1959_v3  ;;  %v1888_v21 = vrot.slane %v5800_v37, 5  ;;  %v1886_v7 = vsel %vm4583_vm6, %v3665_v15, %v1885_v0 }
 0x1fb   : > { %3200 = vmatpush.bf16.xpose.msra.mxu1 %v5787_v25  ;;  %v1952_v39 = vsel %vm4583_vm6, %v1950_v5, %v1951_v11  ;;  %v5799_v25 = vld [vmem:[#allocation25_spill] sm:$0xff]  ;;  %v1878_v8 = vrot.slane %v5804_v18, 5  ;;  %v3277_v36 = vunpack.c.l.b16 %v1886_v7  ;;  %v5814_v7 = vld [vmem:[#allocation36_spill] sm:$0xff] }
 0x1fc   : > { %v3317_v30 = vpack.c.b16 %v3300_v31, %v3299_v20  ;;  %v3316_v19 = vpack.c.b16 %v3298_v16, %v3297_v22  ;;  %v1941_v42 = vrot.slane %v5799_v25, 5  ;;  %v3296_v47 = vunpack.c.l.b16 %v1952_v39  ;;  %v5806_v22 = vld [vmem:[#allocation30_spill] sm:$0xff] }
 0x1fd   : > { %3217 = vmatpush.bf16.xpose.msra.mxu2 %v4594_v50  ;;  %v1903_v50 = vsel %vm4583_vm6, %v1901_v4, %v1902_v43  ;;  %v1887_v43 = vrot.slane %v1885_v0, 4  ;;  %v3673_v20 = vrot.slane %v3657_v34, 9  ;;  %v1934_v16 = vrot.slane %v5806_v22, 5 }
 0x1fe   : > { %v3282_v54 = vunpack.c.l.b16 %v1903_v50  ;;  %v3365_v53 = vsel %vm2025_vm0, %v3317_v30, 0  ;;  %v1943_v31 = vrot.slane %v1941_v42, 4  ;;  %v3362_v50 = vsel %vm2025_vm0, %v3316_v19, 0 }
 0x1ff   : > { %v1889_v3 = vsel %vm4583_vm6, %v1887_v43, %v1888_v21  ;;  %v1936_v0 = vrot.slane %v1934_v16, 4  ;;  %v5811_v43 = vld [vmem:[#allocation35_spill] sm:$0xff] }
 0x200   : > { %v3308_v61 = vpack.c.b16 %v3282_v54, %v3281_v10  ;;  %v3278_v32 = vunpack.c.l.b16 %v1889_v3  ;;  %v1945_v30 = vsel %vm4583_vm6, %v1943_v31, %v1944_v60  ;;  %v3906_v10 = vld [vmem:[%s5634_s1 + $0x34] sm:$0xf]  ;;  %v3664_v54 = vrot.slane %v3648_v27, 9 }
 0x201   : > { %3230 = vmatpush.bf16.xpose.msra.mxu3 %v4616_v2  ;;  %v5793_v2 = vld [vmem:[#allocation23_spill] sm:$0xff]  ;;  %v3294_v11 = vunpack.c.l.b16 %v1945_v30  ;;  %v1927_v37 = vrot.slane %v5811_v43, 5  ;;  %v1930_v3 = vrot.slane %v5814_v7, 5  ;;  %v1864_v27 = vrot.slane %v5332_v40, 5 }
 0x202   : > { %3188 = vmatpush.bf16.xpose.msra.mxu0 %v5793_v2  ;;  %v3338_v4 = vsel %vm2025_vm0, %v3308_v61, 0  ;;  %v1880_v2 = vrot.slane %v1878_v8, 4  ;;  %v3306_v5 = vpack.c.b16 %v3278_v32, %v3277_v36  ;;  %v1879_v61 = vsel %vm4583_vm6, %v3664_v54, %v1878_v8 }
 0x203   : > { %3201 = vmatpush.bf16.xpose.msra.mxu1 %v5794_v48  ;;  %v5805_v48 = vld [vmem:[#allocation29_spill] sm:$0xff]  ;;  %v3275_v25 = vunpack.c.l.b16 %v1879_v61  ;;  %v1866_v54 = vrot.slane %v1864_v27, 4 }
 0x204   : > { %3909 = vmatmul.msk.bf16.vlgmr.msra.gmra.mxu2 %vm2025_vm0, %v3905_v14 }
 0x205   : > { %3370 = vmatpush.bf16.xpose.msrb.mxu2 %v3344_v38  ;;  %v3279_v38 = vunpack.c.l.b16 %v1893_v56  ;;  %v5807_v56 = vld [vmem:[#allocation26_spill] sm:$0xff] }
 0x207   : > { %v3307_v1 = vpack.c.b16 %v3280_v33, %v3279_v38  ;;  %v1937_v38 = vrot.slane %v5809_v24, 5  ;;  %v5810_v33 = vld [vmem:[#allocation33_spill] sm:$0xff]  ;;  %v5818_v24 = vld [vmem:[#allocation40_spill] sm:$0xff] }
 0x208   : > { %3910 = vmatmul.msk.bf16.vlgmr.msra.gmra.mxu3 %vm2025_vm0, %v3905_v14  ;;  %v1871_v19 = vrot.slane %v5810_v33, 5  ;;  %v3332_v14 = vsel %vm2025_vm0, %v3306_v5, 0 }
 0x209   : > { %3383 = vmatpush.bf16.xpose.msrb.mxu3 %v3368_v49  ;;  %v3295_v49 = vunpack.c.l.b16 %v1949_v23  ;;  %v3335_v13 = vsel %vm2025_vm0, %v3307_v1, 0  ;;  %3907 = vmatmul.msk.bf16.vlgmr.msra.gmra.mxu0 %vm2025_vm0, %v3906_v10  ;;  %v3647_v23 = vld [vmem:[%s4069_s14 + $0x24] sm:$0xe]  ;;  %v1938_v15 = vsel %vm4583_vm6, %v1936_v0, %v1937_v38  ;;  %v1923_v38 = vrot.slane %v5818_v24, 5 }
 0x20a   : > { %3241 = vmatpush.bf16.xpose.msrb.mxu0 %v5795_v6  ;;  %v1881_v6 = vrot.slane %v5805_v48, 5  ;;  %3908 = vmatmul.msk.bf16.vlgmr.msra.gmra.mxu1 %vm2025_vm0, %v3906_v10  ;;  %v3663_v21 = vrot.slane %v3647_v23, 9  ;;  %v1873_v34 = vrot.slane %v1871_v19, 4  ;;  %v3655_v1 = vld [vmem:[%s4069_s14 + $0x84] sm:$0xe]  ;;  %v3292_v31 = vunpack.c.l.b16 %v1938_v15 }
 0x20b   : > { %3254 = vmatpush.bf16.xpose.msrb.mxu1 %v5796_v51  ;;  %v3315_v62 = vpack.c.b16 %v3296_v47, %v3295_v49  ;;  %v3656_v51 = vld [vmem:[%s4069_s14 + $0x90] sm:$0xe]  ;;  %v3671_v60 = vrot.slane %v3655_v1, 9  ;;  %v3654_v48 = vld [vmem:[%s4069_s14 + $0x78] sm:$0xe] }
 0x20c   : > { %v1882_v17 = vsel %vm4583_vm6, %v1880_v2, %v1881_v6  ;;  %v5813_v49 = vld [vmem:[#allocation32_spill] sm:$0xff]  ;;  %v1872_v18 = vsel %vm4583_vm6, %v3663_v21, %v1871_v19  ;;  %v1867_v2 = vrot.slane %v5341_v41, 5  ;;  %v5815_v6 = vld [vmem:[#allocation39_spill] sm:$0xff] }
 0x20d   : > { %3371 = vmatpush.bf16.xpose.msrb.mxu2 %v3341_v52  ;;  %v1942_v52 = vsel %vm4583_vm6, %v3673_v20, %v1941_v42  ;;  %v3359_v45 = vsel %vm2025_vm0, %v3315_v62, 0  ;;  %v3276_v42 = vunpack.c.l.b16 %v1882_v17  ;;  %v3273_v36 = vunpack.c.l.b16 %v1872_v18 }
 0x20e   : > { %v3293_v63 = vunpack.c.l.b16 %v1942_v52  ;;  %v1928_v52 = vsel %vm4583_vm6, %v3671_v60, %v1927_v37  ;;  %v1920_v40 = vrot.slane %v5815_v6, 5  ;;  %v1868_v17 = vsel %vm4583_vm6, %v1866_v54, %v1867_v2 }
 0x20f   : > { %v3305_v47 = vpack.c.b16 %v3276_v42, %v3275_v25  ;;  %v3289_v5 = vunpack.c.l.b16 %v1928_v52 }
 0x210   : > { %v3314_v39 = vpack.c.b16 %v3294_v11, %v3293_v63  ;;  %v3670_v11 = vrot.slane %v3654_v48, 9  ;;  %v1922_v0 = vrot.slane %v1920_v40, 4 }
 0x211   : > { %3384 = vmatpush.bf16.xpose.msrb.mxu3 %v3365_v53  ;;  %v3672_v53 = vrot.slane %v3656_v51, 9 }
 0x212   : > { %3242 = vmatpush.bf16.xpose.msrb.mxu0 %v5801_v57  ;;  %v5812_v57 = vld [vmem:[#allocation34_spill] sm:$0xff]  ;;  %v3356_v28 = vsel %vm2025_vm0, %v3314_v39, 0  ;;  %v3272_v39 = vunpack.c.l.b16 %v1868_v17  ;;  %v1921_v25 = vsel %vm4583_vm6, %v3670_v11, %v1920_v40  ;;  %v1924_v42 = vsel %vm4583_vm6, %v1922_v0, %v1923_v38  ;;  %v3400_v38 = vpop.xlane.xlu0 %3399 }
 0x213   : > { %3255 = vmatpush.bf16.xpose.msrb.mxu1 %v5802_v55  ;;  %v1874_v55 = vrot.slane %v5812_v57, 5  ;;  %v3288_v21 = vunpack.c.l.b16 %v1924_v42 }
 0x215   : > { %3372 = vmatpush.bf16.xpose.msrb.mxu2 %v3338_v4  ;;  %v1935_v4 = vsel %vm4583_vm6, %v3672_v53, %v1934_v16  ;;  %v1875_v8 = vsel %vm4583_vm6, %v1873_v34, %v1874_v55  ;;  %v5816_v16 = vld [vmem:[#allocation37_spill] sm:$0xff] }
 0x216   : > { %v3291_v20 = vunpack.c.l.b16 %v1935_v4  ;;  %v3274_v32 = vunpack.c.l.b16 %v1875_v8  ;;  %v2883_v51 = vpop.f32.mrf.mxu2  ;;  %v2854_v53 = vpop.f32.mrf.mxu0 }
 0x217   : > { %v2896_v22 = vpop.f32.mrf.mxu3  ;;  %v2867_v61 = vpop.f32.mrf.mxu1 }
 0x218   : > { %v3313_v62 = vpack.c.b16 %v3292_v31, %v3291_v20 }
 0x219   : > { %3385 = vmatpush.bf16.xpose.msrb.mxu3 %v3362_v50  ;;  %v1929_v50 = vrot.slane %v1927_v37, 4  ;;  %v3287_v37 = vunpack.c.l.b16 %v1921_v25 }
 0x21a   : > { %3243 = vmatpush.bf16.xpose.msrb.mxu0 %v5807_v56  ;;  %v3353_v56 = vsel %vm2025_vm0, %v3313_v62, 0 }
 0x21b   : > { %3256 = vmatpush.bf16.xpose.msrb.mxu1 %v5808_v9  ;;  %v1931_v30 = vsel %vm4583_vm6, %v1929_v50, %v1930_v3  ;;  %v3304_v9 = vpack.c.b16 %v3274_v32, %v3273_v36  ;;  %v3311_v1 = vpack.c.b16 %v3288_v21, %v3287_v37 }
 0x21c   : > { %v3290_v63 = vunpack.c.l.b16 %v1931_v30 }
 0x21d   : > { %3373 = vmatpush.bf16.xpose.msrb.mxu2 %v3335_v13  ;;  %v3329_v13 = vsel %vm2025_vm0, %v3305_v47, 0  ;;  %v3326_v33 = vsel %vm2025_vm0, %v3304_v9, 0  ;;  %v3347_v26 = vsel %vm2025_vm0, %v3311_v1, 0 }
 0x21e   : > { %v3312_v19 = vpack.c.b16 %v3290_v63, %v3289_v5  ;;  %v2856_v34 = vpop.f32.mrf.mxu0 }
 0x21f   : > { %v2898_v4 = vpop.f32.mrf.mxu3  ;;  %v2869_v57 = vpop.f32.mrf.mxu1 }
 0x220   : > { %v3350_v15 = vsel %vm2025_vm0, %v3312_v19, 0 }
 0x221   : > { %3386 = vmatpush.bf16.xpose.msrb.mxu3 %v3359_v45  ;;  %v5817_v45 = vld [vmem:[#allocation38_spill] sm:$0xff] }
 0x222   : > { %3244 = vmatpush.bf16.xpose.msrb.mxu0 %v5813_v49 }
 0x223   : > { %3257 = vmatpush.bf16.xpose.msrb.mxu1 %v5279_v46  ;;  %v3646_v46 = vld [vmem:[%s4069_s14 + $0x18] sm:$0xe] }
 0x224   : > { %v3662_v10 = vrot.slane %v3646_v46, 9 }
 0x225   : > { %3374 = vmatpush.bf16.xpose.msrb.mxu2 %v3332_v14  ;;  %v2885_v14 = vpop.f32.mrf.mxu2 }
 0x226   : > { %v1865_v41 = vsel %vm4583_vm6, %v3662_v10, %v1864_v27 }
 0x227   : > { %v3271_v23 = vunpack.c.l.b16 %v1865_v41 }
 0x229   : > { %3387 = vmatpush.bf16.xpose.msrb.mxu3 %v3356_v28  ;;  %v3303_v43 = vpack.c.b16 %v3272_v39, %v3271_v23 }
 0x22a   : > { %3245 = vmatpush.bf16.xpose.msrb.mxu0 %v5816_v16 }
 0x22b   : > { %3258 = vmatpush.bf16.xpose.msrb.mxu1 %v5817_v45  ;;  %v3323_v55 = vsel %vm2025_vm0, %v3303_v43, 0 }
 0x22d   : > { %3375 = vmatpush.bf16.xpose.msrb.mxu2 %v3329_v13 }
 0x231   : > { %3388 = vmatpush.bf16.xpose.msrb.mxu3 %v3353_v56 }
 0x232   : > { %3246 = vmatpush.bf16.xpose.msrb.mxu0 %v5359_v12  ;;  %v3914_v12 = vld [vmem:[%s5634_s1 + $0x3c] sm:$0xf] }
 0x233   : > { %3259 = vmatpush.bf16.xpose.msrb.mxu1 %v5379_v58  ;;  %v3911_v58 = vld [vmem:[%s5634_s1 + $0x38] sm:$0xf] }
 0x235   : > { %3376 = vmatpush.bf16.xpose.msrb.mxu2 %v3326_v33  ;;  %v3406_v33 = vpop.xlane.xlu1 %3405 }
 0x239   : > { %3389 = vmatpush.bf16.xpose.msrb.mxu3 %v3350_v15 }
 0x23a   : > { %3247 = vmatpush.bf16.xpose.msrb.mxu0 %v5391_v35  ;;  %v2884_v35 = vadd.f32 %v2883_v51, %v2854_v53 }
 0x23b   : > { %3260 = vmatpush.bf16.xpose.msrb.mxu1 %v5401_v29  ;;  %v2897_v29 = vadd.f32 %v2896_v22, %v2867_v61 }
 0x23d   : > { %3377 = vmatpush.bf16.xpose.msrb.mxu2 %v3323_v55 }
 0x241   : > { %3390 = vmatpush.bf16.xpose.msrb.mxu3 %v3347_v26 }
 0x242   : > { %3248 = vmatpush.bf16.xpose.msrb.mxu0 %v5407_v59 }
 0x243   : > { %3261 = vmatpush.bf16.xpose.msrb.mxu1 %v5413_v44 }
 0x244   : > { %3915 = vmatmul.msk.bf16.vlgmr.msrb.gmra.mxu2 %vm2025_vm0, %v3914_v12 }
 0x246   : > { %v3026_v49 = vpop.f32.mrf.mxu0 }
 0x247   : > { %v3039_v47 = vpop.f32.mrf.mxu1  ;;  %v3043_v20 = vadd.f32 %v3026_v49, %v2884_v35  ;;  %v3155_v28 = vpop.f32.mrf.mxu2 }
 0x248   : > { %3916 = vmatmul.msk.bf16.vlgmr.msrb.gmra.mxu3 %vm2025_vm0, %v3914_v12  ;;  %v3044_v31 = vadd.f32 %v3039_v47, %v2897_v29 }
 0x249   : > { %3912 = vmatmul.msk.bf16.vlgmr.msrb.gmra.mxu0 %vm2025_vm0, %v3911_v58  ;;  %v3172_v59 = vadd.f32 %v3155_v28, %v3043_v20 }
 0x24a   : > { %3913 = vmatmul.msk.bf16.vlgmr.msrb.gmra.mxu1 %vm2025_vm0, %v3911_v58 }
 0x24b   : > { %v3168_v60 = vpop.f32.mrf.mxu3  ;;  %v3422_v18 = vmul.f32 %v3172_v59, %v3172_v59 }
 0x24c   : > { %v3173_v44 = vadd.f32 %v3168_v60, %v3044_v31 }
 0x24e   : > { %v3418_v50 = vadd.f32 %v3173_v44, %v3172_v59  ;;  %v3028_v7 = vpop.f32.mrf.mxu0  ;;  %v3423_v8 = vmul.f32 %v3173_v44, %v3173_v44 }
 0x24f   : > { %v3041_v3 = vpop.f32.mrf.mxu1  ;;  %v3157_v27 = vpop.f32.mrf.mxu2 }
 0x250   : > { %3419 = vadd.xlane.f32.xlu2 %v3418_v50  ;;  %v3424_v13 = vadd.f32 %v3423_v8, %v3422_v18  ;;  %v3410_v23 = vpop.xlane.xlu0 %3409 }
 0x251   : > { %v3411_v25 = vadd.f32 %v3410_v23, %v3400_v38 }
 0x252   : > { %v3416_v39 = vpop.xlane.xlu1 %3415 }
 0x253   : > { %v3170_v46 = vpop.f32.mrf.mxu3  ;;  %v3417_v14 = vadd.f32 %v3416_v39, %v3406_v33 }
 0x258   : > { %3425 = vadd.xlane.f32.xlu2 %v3424_v13 }
 0x286   : > { %v3190_v32 = vpop.f32.mrf.mxu0 }
 0x287   : > { %v3219_v62 = vpop.f32.mrf.mxu2  ;;  %v3203_v52 = vpop.f32.mrf.mxu1 }
 0x288   : > { %v3220_v48 = vadd.f32 %v3219_v62, %v3190_v32 }
 0x28b   : > { %v3232_v36 = vpop.f32.mrf.mxu3 }
 0x28c   : > { %v3233_v40 = vadd.f32 %v3232_v36, %v3203_v52 }
 0x28e   : > { %v3192_v54 = vpop.f32.mrf.mxu0 }
 0x28f   : > { %v3221_v30 = vpop.f32.mrf.mxu2  ;;  %v3205_v2 = vpop.f32.mrf.mxu1 }
 0x293   : > { %v3234_v10 = vpop.f32.mrf.mxu3 }
 0x2c3   : > { %v3420_v19 = vpop.xlane.xlu2 %3419 }
 0x2c4   : > { %v3421_v4 = vadd.f32 %v3420_v19, %v3411_v25 }
 0x2c6   : > { %v3250_v51 = vpop.f32.mrf.mxu0 }
 0x2c7   : > { %v3379_v6 = vpop.f32.mrf.mxu2  ;;  %v3267_v22 = vadd.f32 %v3250_v51, %v3220_v48  ;;  %v3263_v16 = vpop.f32.mrf.mxu1 }
 0x2c8   : > { %v3268_v45 = vadd.f32 %v3263_v16, %v3233_v40 }
 0x2c9   : > { %v3396_v9 = vadd.f32 %v3379_v6, %v3267_v22 }
 0x2cb   : > { %v3392_v56 = vpop.f32.mrf.mxu3  ;;  %v3432_v63 = vmul.f32 %v3396_v9, %v3396_v9  ;;  %v3426_v42 = vpop.xlane.xlu2 %3425 }
 0x2cc   : > { %v3397_v5 = vadd.f32 %v3392_v56, %v3268_v45  ;;  %v3427_v43 = vadd.f32 %v3426_v42, %v3417_v14 }
 0x2ce   : > { %v3428_v11 = vadd.f32 %v3397_v5, %v3396_v9  ;;  %v3433_v53 = vmul.f32 %v3397_v5, %v3397_v5  ;;  %v3252_v41 = vpop.f32.mrf.mxu0 }
 0x2cf   : > { %v3381_v61 = vpop.f32.mrf.mxu2  ;;  %v3265_v0 = vpop.f32.mrf.mxu1 }
 0x2d0   : > { %3429 = vadd.xlane.f32.xlu0 %v3428_v11  ;;  %v3434_v17 = vadd.f32 %v3433_v53, %v3432_v63 }
 0x2d2   : > { %3435 = vadd.xlane.f32.xlu1 %v3434_v17 }
 0x2d3   : > { %v3394_v24 = vpop.f32.mrf.mxu3 }
 0x343   : > { %v3430_v15 = vpop.xlane.xlu0 %3429 }
 0x344   : > { %v3431_v37 = vadd.f32 %v3430_v15, %v3421_v4 }
 0x345   : > { %v3436_v21 = vpop.xlane.xlu1 %3435 }
 0x346   : > { %3439 = vst.msk [vmem:[%s141_s24] sm:$0xff] %vm3438_vm7, %v3431_v37  ;;  %v3437_v34 = vadd.f32 %v3436_v21, %v3427_v43 }
 0x348   : > { %3441 = vst.msk [vmem:[%s141_s24] sm:$0xff] %vm3440_vm8, %v3437_v34 }
 0x349 PF: > { %s12_s9 = sadd.s32 1, %s4038_s9  }
 0x34a   : > { %p9_p4 = scmp.ge.s32.totalorder %s12_s9, 4  }
 0x34c   :  { %11 = sbr.rel (!%p9_p4) target bundleno = 1 (0x1), region = 75 }

</bundles_post_ra>
